<compile_context>
chip_gen: v7x
topology: tpu7x:2x2x1
jax: 0.10.0
libtpu: 0.0.40
codegen_flags: <defaults>
</compile_context>

<pallas_src>
import functools

import jax
import jax.numpy as jnp
from jax.experimental import pallas as pl
from jax.experimental.pallas import tpu as pltpu


_VMEM_LIMIT = 32 * 1024 * 1024  # safe on v5e/v6e (128 MiB) and v7x (64 MiB)


# ---------------------------------------------------------------------------
# Kernel 1: fused Conv2d(3x3, pad=1) + bias + ReLU + MaxPool2d(2, 2)
# ---------------------------------------------------------------------------
def _conv3x3_relu_pool_kernel(x_ref, w_ref, b_ref, o_ref, hp_ref, *,
                              H, W, Cin, band):
    """One batch element per grid step.

    x_ref : ((H+2)*(W+2)+8, Cin)  padded image, rows flattened in (h, w) order
    w_ref : (9*Cin, Cout)         rows ordered (dy, dx, cin)
    b_ref : (1, Cout)
    o_ref : (H//2 * W//2, Cout)   pooled output, rows ordered (ho, wo)
    hp_ref: (H//2 * W,  Cout)     VMEM scratch: vertically pooled rows
    """
    Wp = W + 2
    Hh, Wh = H // 2, W // 2
    for h0 in range(0, H, band):
        # In-kernel "im2col": each tap is a contiguous window of the flattened
        # padded image (2 garbage columns per row, discarded at pooling time).
        acc = None
        for dy in range(3):
            for dx in range(3):
                start = (h0 + dy) * Wp + dx
                patch = x_ref[pl.ds(start, band * Wp), :]        # (band*Wp, Cin)
                tap = (dy * 3 + dx) * Cin
                part = jnp.dot(patch, w_ref[tap:tap + Cin, :],
                               preferred_element_type=jnp.float32)
                acc = part if acc is None else acc + part
        # Vertical 2->1 max pool for this band (drops the 2 garbage columns).
        for hi in range(band // 2):
            top = acc[(2 * hi) * Wp:(2 * hi) * Wp + W, :]
            bot = acc[(2 * hi + 1) * Wp:(2 * hi + 1) * Wp + W, :]
            hp_ref[pl.ds((h0 // 2 + hi) * W, W), :] = jnp.maximum(top, bot)
    # Horizontal 2->1 max pool via sublane-strided loads, then bias + ReLU
    # (applied once, on the pooled tensor -- equivalent to PyTorch's order).
    left = hp_ref[pl.ds(0, Hh * Wh, 2), :]
    right = hp_ref[pl.ds(1, Hh * Wh, 2), :]
    pooled = jnp.maximum(left, right)
    o_ref[...] = jnp.maximum(pooled + b_ref[...], 0.0).astype(o_ref.dtype)


def conv3x3_relu_pool(x_nhwc, w_mat, b_row, *, band=8):
    """maxpool2x2(relu(conv2d(x, 3x3, pad=1) + b)) for NHWC input.

    Returns (B, H//2 * W//2, Cout) with rows ordered (ho, wo)  (== NHWC flat).
    """
    B, H, W, Cin = x_nhwc.shape
    Cout = w_mat.shape[1]
    assert w_mat.shape[0] == 9 * Cin
    assert H % 2 == 0 and W % 2 == 0 and H % band == 0 and band % 2 == 0
    Hh, Wh = H // 2, W // 2
    Wp = W + 2
    R = (H + 2) * Wp

    xpad = jnp.pad(x_nhwc, ((0, 0), (1, 1), (1, 1), (0, 0)))
    xflat = xpad.reshape(B, R, Cin)
    xflat = jnp.pad(xflat, ((0, 0), (0, 8), (0, 0)))   # slack for last tap window

    kernel = functools.partial(_conv3x3_relu_pool_kernel,
                               H=H, W=W, Cin=Cin, band=band)
    return pl.pallas_call(
        kernel,
        out_shape=jax.ShapeDtypeStruct((B, Hh * Wh, Cout), jnp.float32),
        grid=(B,),
        in_specs=[
            pl.BlockSpec((None, R + 8, Cin), lambda i: (i, 0, 0)),
            pl.BlockSpec((9 * Cin, Cout), lambda i: (0, 0)),   # resident weights
            pl.BlockSpec((1, Cout), lambda i: (0, 0)),         # resident bias
        ],
        out_specs=pl.BlockSpec((None, Hh * Wh, Cout), lambda i: (i, 0, 0)),
        scratch_shapes=[pltpu.VMEM((Hh * W, Cout), jnp.float32)],
        compiler_params=pltpu.CompilerParams(
            dimension_semantics=("parallel",),
            vmem_limit_bytes=_VMEM_LIMIT,
        ),
    )(xflat, w_mat, b_row)


# ---------------------------------------------------------------------------
# Kernel 2: fused fc1 (ReLU) + fc2
# ---------------------------------------------------------------------------
def _fc_fused_kernel(x_ref, w1_ref, b1_ref, w2_ref, b2_ref, o_ref):
    h = jnp.dot(x_ref[...], w1_ref[...], preferred_element_type=jnp.float32)
    h = jnp.maximum(h + b1_ref[...], 0.0)
    out = jnp.dot(h, w2_ref[...], preferred_element_type=jnp.float32) + b2_ref[...]
    o_ref[...] = out.astype(o_ref.dtype)


def fc_relu_fc(x, w1, b1, w2, b2):
    """fc2(relu(fc1(x)));  the (B,128) intermediate never leaves VMEM."""
    B, K = x.shape
    N1 = w1.shape[1]
    N2 = w2.shape[1]
    tm = min(128, max(8, ((B + 7) // 8) * 8))   # M-tile; batch-size safe
    return pl.pallas_call(
        _fc_fused_kernel,
        out_shape=jax.ShapeDtypeStruct((B, N2), jnp.float32),
        grid=(pl.cdiv(B, tm),),
        in_specs=[
            pl.BlockSpec((tm, K), lambda i: (i, 0)),
            pl.BlockSpec((K, N1), lambda i: (0, 0)),   # resident W1
            pl.BlockSpec((1, N1), lambda i: (0, 0)),
            pl.BlockSpec((N1, N2), lambda i: (0, 0)),  # resident W2
            pl.BlockSpec((1, N2), lambda i: (0, 0)),
        ],
        out_specs=pl.BlockSpec((tm, N2), lambda i: (i, 0)),
        compiler_params=pltpu.CompilerParams(
            dimension_semantics=("parallel",),
            vmem_limit_bytes=_VMEM_LIMIT,
        ),
    )(x, w1, b1, w2, b2)


# ---------------------------------------------------------------------------
# Full Net.forward
# ---------------------------------------------------------------------------
def net_forward(x_nchw, params):
    """params must come from prepare_params (kernel-ready layouts)."""
    B = x_nchw.shape[0]
    x = jnp.transpose(x_nchw, (0, 2, 3, 1))                       # NCHW -> NHWC
    x = conv3x3_relu_pool(x, params["conv1_w"], params["conv1_b"])  # (B,256,32)
    x = x.reshape(B, 16, 16, 32)
    x = conv3x3_relu_pool(x, params["conv2_w"], params["conv2_b"])  # (B, 64,64)
    x = x.reshape(B, 8 * 8 * 64)          # NHWC flatten; fc1_w is pre-permuted
    return fc_relu_fc(x, params["fc1_w"], params["fc1_b"],
                      params["fc2_w"], params["fc2_b"])            # (B, 10)


def init_params(key):
    """PyTorch-layout parameters (same init scheme as nn.Conv2d/Linear)."""
    ks = jax.random.split(key, 8)

    def u(k, shape, fan_in):
        bound = 1.0 / jnp.sqrt(jnp.float32(fan_in))
        return jax.random.uniform(k, shape, jnp.float32, -bound, bound)

    return {
        "conv1_w": u(ks[0], (32, 3, 3, 3), 3 * 9),
        "conv1_b": u(ks[1], (32,), 3 * 9),
        "conv2_w": u(ks[2], (64, 32, 3, 3), 32 * 9),
        "conv2_b": u(ks[3], (64,), 32 * 9),
        "fc1_w": u(ks[4], (128, 64 * 8 * 8), 64 * 8 * 8),
        "fc1_b": u(ks[5], (128,), 64 * 8 * 8),
        "fc2_w": u(ks[6], (10, 128), 128),
        "fc2_b": u(ks[7], (10,), 128),
    }


def prepare_params(p):
    """One-time conversion of PyTorch-layout params to kernel-ready layouts."""
    c1 = jnp.transpose(p["conv1_w"], (2, 3, 1, 0)).reshape(9 * 3, 32)
    c2 = jnp.transpose(p["conv2_w"], (2, 3, 1, 0)).reshape(9 * 32, 64)
    # fc1: PyTorch flattens NCHW (c,h,w); our activations are NHWC-flat (h,w,c)
    # -> permute the 4096 input rows once so no runtime transpose is needed.
    w1 = p["fc1_w"].reshape(128, 64, 8, 8)
    w1 = jnp.transpose(w1, (2, 3, 1, 0)).reshape(8 * 8 * 64, 128)
    w2 = p["fc2_w"].T
    return {
        "conv1_w": c1, "conv1_b": p["conv1_b"].reshape(1, 32),
        "conv2_w": c2, "conv2_b": p["conv2_b"].reshape(1, 64),
        "fc1_w": w1, "fc1_b": p["fc1_b"].reshape(1, 128),
        "fc2_w": w2, "fc2_b": p["fc2_b"].reshape(1, 10),
    }


if __name__ == "__main__":
    key = jax.random.PRNGKey(0)
    kx, kp = jax.random.split(key)
    # Spatial size must be 32 so fc1's 64*8*8 input dim is consistent.
    x = jax.random.normal(kx, (2, 3, 32, 32), jnp.float32)
    params = prepare_params(init_params(kp))

    out = jax.jit(net_forward)(x, params)
    out = jax.block_until_ready(out)
    assert out.shape == (2, 10) and out.dtype == jnp.float32
    print("KERNEL_OK")
</pallas_src>

<mosaic_0001>
module attributes {stable_mosaic.version = 11 : i64} {
  func.func @_conv3x3_relu_pool_kernel(%arg0: i32, %arg1: memref<1x1164x3xf32, #tpu.memory_space<vmem>>, %arg2: memref<27x32xf32, #tpu.memory_space<vmem>>, %arg3: memref<1x32xf32, #tpu.memory_space<vmem>>, %arg4: memref<1x256x32xf32, #tpu.memory_space<vmem>>, %arg5: memref<512x32xf32, #tpu.memory_space<vmem>>) attributes {dimension_semantics = [#tpu.dimension_semantics<parallel>], iteration_bounds = array<i64: 2>, scalar_prefetch = 0 : i64, scratch_operands = 1 : i64, tpu.core_type = #tpu.core_type<tc>, window_params = [{transform_indices = @transform_0, window_bounds = array<i64: 1, 1164, 3>}, {pipeline_mode = #tpu.pipeline_mode<synchronous>, transform_indices = @transform_1, window_bounds = array<i64: 27, 32>}, {pipeline_mode = #tpu.pipeline_mode<synchronous>, transform_indices = @transform_2, window_bounds = array<i64: 1, 32>}, {transform_indices = @transform_3, window_bounds = array<i64: 1, 256, 32>}]} {
    %c0 = arith.constant 0 : index
    %c0_0 = arith.constant 0 : index
    %c0_1 = arith.constant 0 : index
    %0 = vector.load %arg1[%c0, %c0_0, %c0_1] : memref<1x1164x3xf32, #tpu.memory_space<vmem>>, vector<1x272x3xf32>
    %1 = vector.shape_cast %0 : vector<1x272x3xf32> to vector<272x3xf32>
    %c0_2 = arith.constant 0 : index
    %c0_3 = arith.constant 0 : index
    %2 = vector.load %arg2[%c0_2, %c0_3] : memref<27x32xf32, #tpu.memory_space<vmem>>, vector<3x32xf32>
    %cst = arith.constant dense<0.000000e+00> : vector<272x32xf32>
    %3 = tpu.matmul %1, %2, %cst {dimension_numbers = #tpu.dot_dimension_numbers<[1], [0], [0], [1], [0, 0, 1, 1], [], []>} : vector<272x3xf32>, vector<3x32xf32>, vector<272x32xf32> -> vector<272x32xf32>
    %c0_4 = arith.constant 0 : index
    %c1 = arith.constant 1 : index
    %c0_5 = arith.constant 0 : index
    %4 = vector.load %arg1[%c0_4, %c1, %c0_5] : memref<1x1164x3xf32, #tpu.memory_space<vmem>>, vector<1x272x3xf32>
    %5 = vector.shape_cast %4 : vector<1x272x3xf32> to vector<272x3xf32>
    %c3 = arith.constant 3 : index
    %c0_6 = arith.constant 0 : index
    %6 = vector.load %arg2[%c3, %c0_6] : memref<27x32xf32, #tpu.memory_space<vmem>>, vector<3x32xf32>
    %cst_7 = arith.constant dense<0.000000e+00> : vector<272x32xf32>
    %7 = tpu.matmul %5, %6, %cst_7 {dimension_numbers = #tpu.dot_dimension_numbers<[1], [0], [0], [1], [0, 0, 1, 1], [], []>} : vector<272x3xf32>, vector<3x32xf32>, vector<272x32xf32> -> vector<272x32xf32>
    %8 = arith.addf %3, %7 : vector<272x32xf32>
    %c0_8 = arith.constant 0 : index
    %c2 = arith.constant 2 : index
    %c0_9 = arith.constant 0 : index
    %9 = vector.load %arg1[%c0_8, %c2, %c0_9] : memref<1x1164x3xf32, #tpu.memory_space<vmem>>, vector<1x272x3xf32>
    %10 = vector.shape_cast %9 : vector<1x272x3xf32> to vector<272x3xf32>
    %c6 = arith.constant 6 : index
    %c0_10 = arith.constant 0 : index
    %11 = vector.load %arg2[%c6, %c0_10] : memref<27x32xf32, #tpu.memory_space<vmem>>, vector<3x32xf32>
    %cst_11 = arith.constant dense<0.000000e+00> : vector<272x32xf32>
    %12 = tpu.matmul %10, %11, %cst_11 {dimension_numbers = #tpu.dot_dimension_numbers<[1], [0], [0], [1], [0, 0, 1, 1], [], []>} : vector<272x3xf32>, vector<3x32xf32>, vector<272x32xf32> -> vector<272x32xf32>
    %13 = arith.addf %8, %12 : vector<272x32xf32>
    %c0_12 = arith.constant 0 : index
    %c34 = arith.constant 34 : index
    %c0_13 = arith.constant 0 : index
    %14 = vector.load %arg1[%c0_12, %c34, %c0_13] : memref<1x1164x3xf32, #tpu.memory_space<vmem>>, vector<1x272x3xf32>
    %15 = vector.shape_cast %14 : vector<1x272x3xf32> to vector<272x3xf32>
    %c9 = arith.constant 9 : index
    %c0_14 = arith.constant 0 : index
    %16 = vector.load %arg2[%c9, %c0_14] : memref<27x32xf32, #tpu.memory_space<vmem>>, vector<3x32xf32>
    %cst_15 = arith.constant dense<0.000000e+00> : vector<272x32xf32>
    %17 = tpu.matmul %15, %16, %cst_15 {dimension_numbers = #tpu.dot_dimension_numbers<[1], [0], [0], [1], [0, 0, 1, 1], [], []>} : vector<272x3xf32>, vector<3x32xf32>, vector<272x32xf32> -> vector<272x32xf32>
    %18 = arith.addf %13, %17 : vector<272x32xf32>
    %c0_16 = arith.constant 0 : index
    %c35 = arith.constant 35 : index
    %c0_17 = arith.constant 0 : index
    %19 = vector.load %arg1[%c0_16, %c35, %c0_17] : memref<1x1164x3xf32, #tpu.memory_space<vmem>>, vector<1x272x3xf32>
    %20 = vector.shape_cast %19 : vector<1x272x3xf32> to vector<272x3xf32>
    %c12 = arith.constant 12 : index
    %c0_18 = arith.constant 0 : index
    %21 = vector.load %arg2[%c12, %c0_18] : memref<27x32xf32, #tpu.memory_space<vmem>>, vector<3x32xf32>
    %cst_19 = arith.constant dense<0.000000e+00> : vector<272x32xf32>
    %22 = tpu.matmul %20, %21, %cst_19 {dimension_numbers = #tpu.dot_dimension_numbers<[1], [0], [0], [1], [0, 0, 1, 1], [], []>} : vector<272x3xf32>, vector<3x32xf32>, vector<272x32xf32> -> vector<272x32xf32>
    %23 = arith.addf %18, %22 : vector<272x32xf32>
    %c0_20 = arith.constant 0 : index
    %c36 = arith.constant 36 : index
    %c0_21 = arith.constant 0 : index
    %24 = vector.load %arg1[%c0_20, %c36, %c0_21] : memref<1x1164x3xf32, #tpu.memory_space<vmem>>, vector<1x272x3xf32>
    %25 = vector.shape_cast %24 : vector<1x272x3xf32> to vector<272x3xf32>
    %c15 = arith.constant 15 : index
    %c0_22 = arith.constant 0 : index
    %26 = vector.load %arg2[%c15, %c0_22] : memref<27x32xf32, #tpu.memory_space<vmem>>, vector<3x32xf32>
    %cst_23 = arith.constant dense<0.000000e+00> : vector<272x32xf32>
    %27 = tpu.matmul %25, %26, %cst_23 {dimension_numbers = #tpu.dot_dimension_numbers<[1], [0], [0], [1], [0, 0, 1, 1], [], []>} : vector<272x3xf32>, vector<3x32xf32>, vector<272x32xf32> -> vector<272x32xf32>
    %28 = arith.addf %23, %27 : vector<272x32xf32>
    %c0_24 = arith.constant 0 : index
    %c68 = arith.constant 68 : index
    %c0_25 = arith.constant 0 : index
    %29 = vector.load %arg1[%c0_24, %c68, %c0_25] : memref<1x1164x3xf32, #tpu.memory_space<vmem>>, vector<1x272x3xf32>
    %30 = vector.shape_cast %29 : vector<1x272x3xf32> to vector<272x3xf32>
    %c18 = arith.constant 18 : index
    %c0_26 = arith.constant 0 : index
    %31 = vector.load %arg2[%c18, %c0_26] : memref<27x32xf32, #tpu.memory_space<vmem>>, vector<3x32xf32>
    %cst_27 = arith.constant dense<0.000000e+00> : vector<272x32xf32>
    %32 = tpu.matmul %30, %31, %cst_27 {dimension_numbers = #tpu.dot_dimension_numbers<[1], [0], [0], [1], [0, 0, 1, 1], [], []>} : vector<272x3xf32>, vector<3x32xf32>, vector<272x32xf32> -> vector<272x32xf32>
    %33 = arith.addf %28, %32 : vector<272x32xf32>
    %c0_28 = arith.constant 0 : index
    %c69 = arith.constant 69 : index
    %c0_29 = arith.constant 0 : index
    %34 = vector.load %arg1[%c0_28, %c69, %c0_29] : memref<1x1164x3xf32, #tpu.memory_space<vmem>>, vector<1x272x3xf32>
    %35 = vector.shape_cast %34 : vector<1x272x3xf32> to vector<272x3xf32>
    %c21 = arith.constant 21 : index
    %c0_30 = arith.constant 0 : index
    %36 = vector.load %arg2[%c21, %c0_30] : memref<27x32xf32, #tpu.memory_space<vmem>>, vector<3x32xf32>
    %cst_31 = arith.constant dense<0.000000e+00> : vector<272x32xf32>
    %37 = tpu.matmul %35, %36, %cst_31 {dimension_numbers = #tpu.dot_dimension_numbers<[1], [0], [0], [1], [0, 0, 1, 1], [], []>} : vector<272x3xf32>, vector<3x32xf32>, vector<272x32xf32> -> vector<272x32xf32>
    %38 = arith.addf %33, %37 : vector<272x32xf32>
    %c0_32 = arith.constant 0 : index
    %c70 = arith.constant 70 : index
    %c0_33 = arith.constant 0 : index
    %39 = vector.load %arg1[%c0_32, %c70, %c0_33] : memref<1x1164x3xf32, #tpu.memory_space<vmem>>, vector<1x272x3xf32>
    %40 = vector.shape_cast %39 : vector<1x272x3xf32> to vector<272x3xf32>
    %c24 = arith.constant 24 : index
    %c0_34 = arith.constant 0 : index
    %41 = vector.load %arg2[%c24, %c0_34] : memref<27x32xf32, #tpu.memory_space<vmem>>, vector<3x32xf32>
    %cst_35 = arith.constant dense<0.000000e+00> : vector<272x32xf32>
    %42 = tpu.matmul %40, %41, %cst_35 {dimension_numbers = #tpu.dot_dimension_numbers<[1], [0], [0], [1], [0, 0, 1, 1], [], []>} : vector<272x3xf32>, vector<3x32xf32>, vector<272x32xf32> -> vector<272x32xf32>
    %43 = arith.addf %38, %42 : vector<272x32xf32>
    %44 = vector.extract_strided_slice %43 {offsets = [0, 0], sizes = [32, 32], strides = [1, 1]} : vector<272x32xf32> to vector<32x32xf32>
    %45 = vector.extract_strided_slice %43 {offsets = [34, 0], sizes = [32, 32], strides = [1, 1]} : vector<272x32xf32> to vector<32x32xf32>
    %46 = arith.maximumf %44, %45 : vector<32x32xf32>
    %c0_36 = arith.constant 0 : index
    %c0_37 = arith.constant 0 : index
    %47 = vector.load %arg5[%c0_36, %c0_37] : memref<512x32xf32, #tpu.memory_space<vmem>>, vector<32x32xf32>
    tpu.vector_store %arg5[%c0_36, %c0_37], %46 {strides = array<i32>} : memref<512x32xf32, #tpu.memory_space<vmem>>, vector<32x32xf32>,
    %48 = vector.extract_strided_slice %43 {offsets = [68, 0], sizes = [32, 32], strides = [1, 1]} : vector<272x32xf32> to vector<32x32xf32>
    %49 = vector.extract_strided_slice %43 {offsets = [102, 0], sizes = [32, 32], strides = [1, 1]} : vector<272x32xf32> to vector<32x32xf32>
    %50 = arith.maximumf %48, %49 : vector<32x32xf32>
    %c32 = arith.constant 32 : index
    %c0_38 = arith.constant 0 : index
    %51 = vector.load %arg5[%c32, %c0_38] : memref<512x32xf32, #tpu.memory_space<vmem>>, vector<32x32xf32>
    tpu.vector_store %arg5[%c32, %c0_38], %50 {strides = array<i32>} : memref<512x32xf32, #tpu.memory_space<vmem>>, vector<32x32xf32>,
    %52 = vector.extract_strided_slice %43 {offsets = [136, 0], sizes = [32, 32], strides = [1, 1]} : vector<272x32xf32> to vector<32x32xf32>
    %53 = vector.extract_strided_slice %43 {offsets = [170, 0], sizes = [32, 32], strides = [1, 1]} : vector<272x32xf32> to vector<32x32xf32>
    %54 = arith.maximumf %52, %53 : vector<32x32xf32>
    %c64 = arith.constant 64 : index
    %c0_39 = arith.constant 0 : index
    %55 = vector.load %arg5[%c64, %c0_39] : memref<512x32xf32, #tpu.memory_space<vmem>>, vector<32x32xf32>
    tpu.vector_store %arg5[%c64, %c0_39], %54 {strides = array<i32>} : memref<512x32xf32, #tpu.memory_space<vmem>>, vector<32x32xf32>,
    %56 = vector.extract_strided_slice %43 {offsets = [204, 0], sizes = [32, 32], strides = [1, 1]} : vector<272x32xf32> to vector<32x32xf32>
    %57 = vector.extract_strided_slice %43 {offsets = [238, 0], sizes = [32, 32], strides = [1, 1]} : vector<272x32xf32> to vector<32x32xf32>
    %58 = arith.maximumf %56, %57 : vector<32x32xf32>
    %c96 = arith.constant 96 : index
    %c0_40 = arith.constant 0 : index
    %59 = vector.load %arg5[%c96, %c0_40] : memref<512x32xf32, #tpu.memory_space<vmem>>, vector<32x32xf32>
    tpu.vector_store %arg5[%c96, %c0_40], %58 {strides = array<i32>} : memref<512x32xf32, #tpu.memory_space<vmem>>, vector<32x32xf32>,
    %c0_41 = arith.constant 0 : index
    %c272 = arith.constant 272 : index
    %c0_42 = arith.constant 0 : index
    %60 = vector.load %arg1[%c0_41, %c272, %c0_42] : memref<1x1164x3xf32, #tpu.memory_space<vmem>>, vector<1x272x3xf32>
    %61 = vector.shape_cast %60 : vector<1x272x3xf32> to vector<272x3xf32>
    %c0_43 = arith.constant 0 : index
    %c0_44 = arith.constant 0 : index
    %62 = vector.load %arg2[%c0_43, %c0_44] : memref<27x32xf32, #tpu.memory_space<vmem>>, vector<3x32xf32>
    %cst_45 = arith.constant dense<0.000000e+00> : vector<272x32xf32>
    %63 = tpu.matmul %61, %62, %cst_45 {dimension_numbers = #tpu.dot_dimension_numbers<[1], [0], [0], [1], [0, 0, 1, 1], [], []>} : vector<272x3xf32>, vector<3x32xf32>, vector<272x32xf32> -> vector<272x32xf32>
    %c0_46 = arith.constant 0 : index
    %c273 = arith.constant 273 : index
    %c0_47 = arith.constant 0 : index
    %64 = vector.load %arg1[%c0_46, %c273, %c0_47] : memref<1x1164x3xf32, #tpu.memory_space<vmem>>, vector<1x272x3xf32>
    %65 = vector.shape_cast %64 : vector<1x272x3xf32> to vector<272x3xf32>
    %c3_48 = arith.constant 3 : index
    %c0_49 = arith.constant 0 : index
    %66 = vector.load %arg2[%c3_48, %c0_49] : memref<27x32xf32, #tpu.memory_space<vmem>>, vector<3x32xf32>
    %cst_50 = arith.constant dense<0.000000e+00> : vector<272x32xf32>
    %67 = tpu.matmul %65, %66, %cst_50 {dimension_numbers = #tpu.dot_dimension_numbers<[1], [0], [0], [1], [0, 0, 1, 1], [], []>} : vector<272x3xf32>, vector<3x32xf32>, vector<272x32xf32> -> vector<272x32xf32>
    %68 = arith.addf %63, %67 : vector<272x32xf32>
    %c0_51 = arith.constant 0 : index
    %c274 = arith.constant 274 : index
    %c0_52 = arith.constant 0 : index
    %69 = vector.load %arg1[%c0_51, %c274, %c0_52] : memref<1x1164x3xf32, #tpu.memory_space<vmem>>, vector<1x272x3xf32>
    %70 = vector.shape_cast %69 : vector<1x272x3xf32> to vector<272x3xf32>
    %c6_53 = arith.constant 6 : index
    %c0_54 = arith.constant 0 : index
    %71 = vector.load %arg2[%c6_53, %c0_54] : memref<27x32xf32, #tpu.memory_space<vmem>>, vector<3x32xf32>
    %cst_55 = arith.constant dense<0.000000e+00> : vector<272x32xf32>
    %72 = tpu.matmul %70, %71, %cst_55 {dimension_numbers = #tpu.dot_dimension_numbers<[1], [0], [0], [1], [0, 0, 1, 1], [], []>} : vector<272x3xf32>, vector<3x32xf32>, vector<272x32xf32> -> vector<272x32xf32>
    %73 = arith.addf %68, %72 : vector<272x32xf32>
    %c0_56 = arith.constant 0 : index
    %c306 = arith.constant 306 : index
    %c0_57 = arith.constant 0 : index
    %74 = vector.load %arg1[%c0_56, %c306, %c0_57] : memref<1x1164x3xf32, #tpu.memory_space<vmem>>, vector<1x272x3xf32>
    %75 = vector.shape_cast %74 : vector<1x272x3xf32> to vector<272x3xf32>
    %c9_58 = arith.constant 9 : index
    %c0_59 = arith.constant 0 : index
    %76 = vector.load %arg2[%c9_58, %c0_59] : memref<27x32xf32, #tpu.memory_space<vmem>>, vector<3x32xf32>
    %cst_60 = arith.constant dense<0.000000e+00> : vector<272x32xf32>
    %77 = tpu.matmul %75, %76, %cst_60 {dimension_numbers = #tpu.dot_dimension_numbers<[1], [0], [0], [1], [0, 0, 1, 1], [], []>} : vector<272x3xf32>, vector<3x32xf32>, vector<272x32xf32> -> vector<272x32xf32>
    %78 = arith.addf %73, %77 : vector<272x32xf32>
    %c0_61 = arith.constant 0 : index
    %c307 = arith.constant 307 : index
    %c0_62 = arith.constant 0 : index
    %79 = vector.load %arg1[%c0_61, %c307, %c0_62] : memref<1x1164x3xf32, #tpu.memory_space<vmem>>, vector<1x272x3xf32>
    %80 = vector.shape_cast %79 : vector<1x272x3xf32> to vector<272x3xf32>
    %c12_63 = arith.constant 12 : index
    %c0_64 = arith.constant 0 : index
    %81 = vector.load %arg2[%c12_63, %c0_64] : memref<27x32xf32, #tpu.memory_space<vmem>>, vector<3x32xf32>
    %cst_65 = arith.constant dense<0.000000e+00> : vector<272x32xf32>
    %82 = tpu.matmul %80, %81, %cst_65 {dimension_numbers = #tpu.dot_dimension_numbers<[1], [0], [0], [1], [0, 0, 1, 1], [], []>} : vector<272x3xf32>, vector<3x32xf32>, vector<272x32xf32> -> vector<272x32xf32>
    %83 = arith.addf %78, %82 : vector<272x32xf32>
    %c0_66 = arith.constant 0 : index
    %c308 = arith.constant 308 : index
    %c0_67 = arith.constant 0 : index
    %84 = vector.load %arg1[%c0_66, %c308, %c0_67] : memref<1x1164x3xf32, #tpu.memory_space<vmem>>, vector<1x272x3xf32>
    %85 = vector.shape_cast %84 : vector<1x272x3xf32> to vector<272x3xf32>
    %c15_68 = arith.constant 15 : index
    %c0_69 = arith.constant 0 : index
    %86 = vector.load %arg2[%c15_68, %c0_69] : memref<27x32xf32, #tpu.memory_space<vmem>>, vector<3x32xf32>
    %cst_70 = arith.constant dense<0.000000e+00> : vector<272x32xf32>
    %87 = tpu.matmul %85, %86, %cst_70 {dimension_numbers = #tpu.dot_dimension_numbers<[1], [0], [0], [1], [0, 0, 1, 1], [], []>} : vector<272x3xf32>, vector<3x32xf32>, vector<272x32xf32> -> vector<272x32xf32>
    %88 = arith.addf %83, %87 : vector<272x32xf32>
    %c0_71 = arith.constant 0 : index
    %c340 = arith.constant 340 : index
    %c0_72 = arith.constant 0 : index
    %89 = vector.load %arg1[%c0_71, %c340, %c0_72] : memref<1x1164x3xf32, #tpu.memory_space<vmem>>, vector<1x272x3xf32>
    %90 = vector.shape_cast %89 : vector<1x272x3xf32> to vector<272x3xf32>
    %c18_73 = arith.constant 18 : index
    %c0_74 = arith.constant 0 : index
    %91 = vector.load %arg2[%c18_73, %c0_74] : memref<27x32xf32, #tpu.memory_space<vmem>>, vector<3x32xf32>
    %cst_75 = arith.constant dense<0.000000e+00> : vector<272x32xf32>
    %92 = tpu.matmul %90, %91, %cst_75 {dimension_numbers = #tpu.dot_dimension_numbers<[1], [0], [0], [1], [0, 0, 1, 1], [], []>} : vector<272x3xf32>, vector<3x32xf32>, vector<272x32xf32> -> vector<272x32xf32>
    %93 = arith.addf %88, %92 : vector<272x32xf32>
    %c0_76 = arith.constant 0 : index
    %c341 = arith.constant 341 : index
    %c0_77 = arith.constant 0 : index
    %94 = vector.load %arg1[%c0_76, %c341, %c0_77] : memref<1x1164x3xf32, #tpu.memory_space<vmem>>, vector<1x272x3xf32>
    %95 = vector.shape_cast %94 : vector<1x272x3xf32> to vector<272x3xf32>
    %c21_78 = arith.constant 21 : index
    %c0_79 = arith.constant 0 : index
    %96 = vector.load %arg2[%c21_78, %c0_79] : memref<27x32xf32, #tpu.memory_space<vmem>>, vector<3x32xf32>
    %cst_80 = arith.constant dense<0.000000e+00> : vector<272x32xf32>
    %97 = tpu.matmul %95, %96, %cst_80 {dimension_numbers = #tpu.dot_dimension_numbers<[1], [0], [0], [1], [0, 0, 1, 1], [], []>} : vector<272x3xf32>, vector<3x32xf32>, vector<272x32xf32> -> vector<272x32xf32>
    %98 = arith.addf %93, %97 : vector<272x32xf32>
    %c0_81 = arith.constant 0 : index
    %c342 = arith.constant 342 : index
    %c0_82 = arith.constant 0 : index
    %99 = vector.load %arg1[%c0_81, %c342, %c0_82] : memref<1x1164x3xf32, #tpu.memory_space<vmem>>, vector<1x272x3xf32>
    %100 = vector.shape_cast %99 : vector<1x272x3xf32> to vector<272x3xf32>
    %c24_83 = arith.constant 24 : index
    %c0_84 = arith.constant 0 : index
    %101 = vector.load %arg2[%c24_83, %c0_84] : memref<27x32xf32, #tpu.memory_space<vmem>>, vector<3x32xf32>
    %cst_85 = arith.constant dense<0.000000e+00> : vector<272x32xf32>
    %102 = tpu.matmul %100, %101, %cst_85 {dimension_numbers = #tpu.dot_dimension_numbers<[1], [0], [0], [1], [0, 0, 1, 1], [], []>} : vector<272x3xf32>, vector<3x32xf32>, vector<272x32xf32> -> vector<272x32xf32>
    %103 = arith.addf %98, %102 : vector<272x32xf32>
    %104 = vector.extract_strided_slice %103 {offsets = [0, 0], sizes = [32, 32], strides = [1, 1]} : vector<272x32xf32> to vector<32x32xf32>
    %105 = vector.extract_strided_slice %103 {offsets = [34, 0], sizes = [32, 32], strides = [1, 1]} : vector<272x32xf32> to vector<32x32xf32>
    %106 = arith.maximumf %104, %105 : vector<32x32xf32>
    %c128 = arith.constant 128 : index
    %c0_86 = arith.constant 0 : index
    %107 = vector.load %arg5[%c128, %c0_86] : memref<512x32xf32, #tpu.memory_space<vmem>>, vector<32x32xf32>
    tpu.vector_store %arg5[%c128, %c0_86], %106 {strides = array<i32>} : memref<512x32xf32, #tpu.memory_space<vmem>>, vector<32x32xf32>,
    %108 = vector.extract_strided_slice %103 {offsets = [68, 0], sizes = [32, 32], strides = [1, 1]} : vector<272x32xf32> to vector<32x32xf32>
    %109 = vector.extract_strided_slice %103 {offsets = [102, 0], sizes = [32, 32], strides = [1, 1]} : vector<272x32xf32> to vector<32x32xf32>
    %110 = arith.maximumf %108, %109 : vector<32x32xf32>
    %c160 = arith.constant 160 : index
    %c0_87 = arith.constant 0 : index
    %111 = vector.load %arg5[%c160, %c0_87] : memref<512x32xf32, #tpu.memory_space<vmem>>, vector<32x32xf32>
    tpu.vector_store %arg5[%c160, %c0_87], %110 {strides = array<i32>} : memref<512x32xf32, #tpu.memory_space<vmem>>, vector<32x32xf32>,
    %112 = vector.extract_strided_slice %103 {offsets = [136, 0], sizes = [32, 32], strides = [1, 1]} : vector<272x32xf32> to vector<32x32xf32>
    %113 = vector.extract_strided_slice %103 {offsets = [170, 0], sizes = [32, 32], strides = [1, 1]} : vector<272x32xf32> to vector<32x32xf32>
    %114 = arith.maximumf %112, %113 : vector<32x32xf32>
    %c192 = arith.constant 192 : index
    %c0_88 = arith.constant 0 : index
    %115 = vector.load %arg5[%c192, %c0_88] : memref<512x32xf32, #tpu.memory_space<vmem>>, vector<32x32xf32>
    tpu.vector_store %arg5[%c192, %c0_88], %114 {strides = array<i32>} : memref<512x32xf32, #tpu.memory_space<vmem>>, vector<32x32xf32>,
    %116 = vector.extract_strided_slice %103 {offsets = [204, 0], sizes = [32, 32], strides = [1, 1]} : vector<272x32xf32> to vector<32x32xf32>
    %117 = vector.extract_strided_slice %103 {offsets = [238, 0], sizes = [32, 32], strides = [1, 1]} : vector<272x32xf32> to vector<32x32xf32>
    %118 = arith.maximumf %116, %117 : vector<32x32xf32>
    %c224 = arith.constant 224 : index
    %c0_89 = arith.constant 0 : index
    %119 = vector.load %arg5[%c224, %c0_89] : memref<512x32xf32, #tpu.memory_space<vmem>>, vector<32x32xf32>
    tpu.vector_store %arg5[%c224, %c0_89], %118 {strides = array<i32>} : memref<512x32xf32, #tpu.memory_space<vmem>>, vector<32x32xf32>,
    %c0_90 = arith.constant 0 : index
    %c544 = arith.constant 544 : index
    %c0_91 = arith.constant 0 : index
    %120 = vector.load %arg1[%c0_90, %c544, %c0_91] : memref<1x1164x3xf32, #tpu.memory_space<vmem>>, vector<1x272x3xf32>
    %121 = vector.shape_cast %120 : vector<1x272x3xf32> to vector<272x3xf32>
    %c0_92 = arith.constant 0 : index
    %c0_93 = arith.constant 0 : index
    %122 = vector.load %arg2[%c0_92, %c0_93] : memref<27x32xf32, #tpu.memory_space<vmem>>, vector<3x32xf32>
    %cst_94 = arith.constant dense<0.000000e+00> : vector<272x32xf32>
    %123 = tpu.matmul %121, %122, %cst_94 {dimension_numbers = #tpu.dot_dimension_numbers<[1], [0], [0], [1], [0, 0, 1, 1], [], []>} : vector<272x3xf32>, vector<3x32xf32>, vector<272x32xf32> -> vector<272x32xf32>
    %c0_95 = arith.constant 0 : index
    %c545 = arith.constant 545 : index
    %c0_96 = arith.constant 0 : index
    %124 = vector.load %arg1[%c0_95, %c545, %c0_96] : memref<1x1164x3xf32, #tpu.memory_space<vmem>>, vector<1x272x3xf32>
    %125 = vector.shape_cast %124 : vector<1x272x3xf32> to vector<272x3xf32>
    %c3_97 = arith.constant 3 : index
    %c0_98 = arith.constant 0 : index
    %126 = vector.load %arg2[%c3_97, %c0_98] : memref<27x32xf32, #tpu.memory_space<vmem>>, vector<3x32xf32>
    %cst_99 = arith.constant dense<0.000000e+00> : vector<272x32xf32>
    %127 = tpu.matmul %125, %126, %cst_99 {dimension_numbers = #tpu.dot_dimension_numbers<[1], [0], [0], [1], [0, 0, 1, 1], [], []>} : vector<272x3xf32>, vector<3x32xf32>, vector<272x32xf32> -> vector<272x32xf32>
    %128 = arith.addf %123, %127 : vector<272x32xf32>
    %c0_100 = arith.constant 0 : index
    %c546 = arith.constant 546 : index
    %c0_101 = arith.constant 0 : index
    %129 = vector.load %arg1[%c0_100, %c546, %c0_101] : memref<1x1164x3xf32, #tpu.memory_space<vmem>>, vector<1x272x3xf32>
    %130 = vector.shape_cast %129 : vector<1x272x3xf32> to vector<272x3xf32>
    %c6_102 = arith.constant 6 : index
    %c0_103 = arith.constant 0 : index
    %131 = vector.load %arg2[%c6_102, %c0_103] : memref<27x32xf32, #tpu.memory_space<vmem>>, vector<3x32xf32>
    %cst_104 = arith.constant dense<0.000000e+00> : vector<272x32xf32>
    %132 = tpu.matmul %130, %131, %cst_104 {dimension_numbers = #tpu.dot_dimension_numbers<[1], [0], [0], [1], [0, 0, 1, 1], [], []>} : vector<272x3xf32>, vector<3x32xf32>, vector<272x32xf32> -> vector<272x32xf32>
    %133 = arith.addf %128, %132 : vector<272x32xf32>
    %c0_105 = arith.constant 0 : index
    %c578 = arith.constant 578 : index
    %c0_106 = arith.constant 0 : index
    %134 = vector.load %arg1[%c0_105, %c578, %c0_106] : memref<1x1164x3xf32, #tpu.memory_space<vmem>>, vector<1x272x3xf32>
    %135 = vector.shape_cast %134 : vector<1x272x3xf32> to vector<272x3xf32>
    %c9_107 = arith.constant 9 : index
    %c0_108 = arith.constant 0 : index
    %136 = vector.load %arg2[%c9_107, %c0_108] : memref<27x32xf32, #tpu.memory_space<vmem>>, vector<3x32xf32>
    %cst_109 = arith.constant dense<0.000000e+00> : vector<272x32xf32>
    %137 = tpu.matmul %135, %136, %cst_109 {dimension_numbers = #tpu.dot_dimension_numbers<[1], [0], [0], [1], [0, 0, 1, 1], [], []>} : vector<272x3xf32>, vector<3x32xf32>, vector<272x32xf32> -> vector<272x32xf32>
    %138 = arith.addf %133, %137 : vector<272x32xf32>
    %c0_110 = arith.constant 0 : index
    %c579 = arith.constant 579 : index
    %c0_111 = arith.constant 0 : index
    %139 = vector.load %arg1[%c0_110, %c579, %c0_111] : memref<1x1164x3xf32, #tpu.memory_space<vmem>>, vector<1x272x3xf32>
    %140 = vector.shape_cast %139 : vector<1x272x3xf32> to vector<272x3xf32>
    %c12_112 = arith.constant 12 : index
    %c0_113 = arith.constant 0 : index
    %141 = vector.load %arg2[%c12_112, %c0_113] : memref<27x32xf32, #tpu.memory_space<vmem>>, vector<3x32xf32>
    %cst_114 = arith.constant dense<0.000000e+00> : vector<272x32xf32>
    %142 = tpu.matmul %140, %141, %cst_114 {dimension_numbers = #tpu.dot_dimension_numbers<[1], [0], [0], [1], [0, 0, 1, 1], [], []>} : vector<272x3xf32>, vector<3x32xf32>, vector<272x32xf32> -> vector<272x32xf32>
    %143 = arith.addf %138, %142 : vector<272x32xf32>
    %c0_115 = arith.constant 0 : index
    %c580 = arith.constant 580 : index
    %c0_116 = arith.constant 0 : index
    %144 = vector.load %arg1[%c0_115, %c580, %c0_116] : memref<1x1164x3xf32, #tpu.memory_space<vmem>>, vector<1x272x3xf32>
    %145 = vector.shape_cast %144 : vector<1x272x3xf32> to vector<272x3xf32>
    %c15_117 = arith.constant 15 : index
    %c0_118 = arith.constant 0 : index
    %146 = vector.load %arg2[%c15_117, %c0_118] : memref<27x32xf32, #tpu.memory_space<vmem>>, vector<3x32xf32>
    %cst_119 = arith.constant dense<0.000000e+00> : vector<272x32xf32>
    %147 = tpu.matmul %145, %146, %cst_119 {dimension_numbers = #tpu.dot_dimension_numbers<[1], [0], [0], [1], [0, 0, 1, 1], [], []>} : vector<272x3xf32>, vector<3x32xf32>, vector<272x32xf32> -> vector<272x32xf32>
    %148 = arith.addf %143, %147 : vector<272x32xf32>
    %c0_120 = arith.constant 0 : index
    %c612 = arith.constant 612 : index
    %c0_121 = arith.constant 0 : index
    %149 = vector.load %arg1[%c0_120, %c612, %c0_121] : memref<1x1164x3xf32, #tpu.memory_space<vmem>>, vector<1x272x3xf32>
    %150 = vector.shape_cast %149 : vector<1x272x3xf32> to vector<272x3xf32>
    %c18_122 = arith.constant 18 : index
    %c0_123 = arith.constant 0 : index
    %151 = vector.load %arg2[%c18_122, %c0_123] : memref<27x32xf32, #tpu.memory_space<vmem>>, vector<3x32xf32>
    %cst_124 = arith.constant dense<0.000000e+00> : vector<272x32xf32>
    %152 = tpu.matmul %150, %151, %cst_124 {dimension_numbers = #tpu.dot_dimension_numbers<[1], [0], [0], [1], [0, 0, 1, 1], [], []>} : vector<272x3xf32>, vector<3x32xf32>, vector<272x32xf32> -> vector<272x32xf32>
    %153 = arith.addf %148, %152 : vector<272x32xf32>
    %c0_125 = arith.constant 0 : index
    %c613 = arith.constant 613 : index
    %c0_126 = arith.constant 0 : index
    %154 = vector.load %arg1[%c0_125, %c613, %c0_126] : memref<1x1164x3xf32, #tpu.memory_space<vmem>>, vector<1x272x3xf32>
    %155 = vector.shape_cast %154 : vector<1x272x3xf32> to vector<272x3xf32>
    %c21_127 = arith.constant 21 : index
    %c0_128 = arith.constant 0 : index
    %156 = vector.load %arg2[%c21_127, %c0_128] : memref<27x32xf32, #tpu.memory_space<vmem>>, vector<3x32xf32>
    %cst_129 = arith.constant dense<0.000000e+00> : vector<272x32xf32>
    %157 = tpu.matmul %155, %156, %cst_129 {dimension_numbers = #tpu.dot_dimension_numbers<[1], [0], [0], [1], [0, 0, 1, 1], [], []>} : vector<272x3xf32>, vector<3x32xf32>, vector<272x32xf32> -> vector<272x32xf32>
    %158 = arith.addf %153, %157 : vector<272x32xf32>
    %c0_130 = arith.constant 0 : index
    %c614 = arith.constant 614 : index
    %c0_131 = arith.constant 0 : index
    %159 = vector.load %arg1[%c0_130, %c614, %c0_131] : memref<1x1164x3xf32, #tpu.memory_space<vmem>>, vector<1x272x3xf32>
    %160 = vector.shape_cast %159 : vector<1x272x3xf32> to vector<272x3xf32>
    %c24_132 = arith.constant 24 : index
    %c0_133 = arith.constant 0 : index
    %161 = vector.load %arg2[%c24_132, %c0_133] : memref<27x32xf32, #tpu.memory_space<vmem>>, vector<3x32xf32>
    %cst_134 = arith.constant dense<0.000000e+00> : vector<272x32xf32>
    %162 = tpu.matmul %160, %161, %cst_134 {dimension_numbers = #tpu.dot_dimension_numbers<[1], [0], [0], [1], [0, 0, 1, 1], [], []>} : vector<272x3xf32>, vector<3x32xf32>, vector<272x32xf32> -> vector<272x32xf32>
    %163 = arith.addf %158, %162 : vector<272x32xf32>
    %164 = vector.extract_strided_slice %163 {offsets = [0, 0], sizes = [32, 32], strides = [1, 1]} : vector<272x32xf32> to vector<32x32xf32>
    %165 = vector.extract_strided_slice %163 {offsets = [34, 0], sizes = [32, 32], strides = [1, 1]} : vector<272x32xf32> to vector<32x32xf32>
    %166 = arith.maximumf %164, %165 : vector<32x32xf32>
    %c256 = arith.constant 256 : index
    %c0_135 = arith.constant 0 : index
    %167 = vector.load %arg5[%c256, %c0_135] : memref<512x32xf32, #tpu.memory_space<vmem>>, vector<32x32xf32>
    tpu.vector_store %arg5[%c256, %c0_135], %166 {strides = array<i32>} : memref<512x32xf32, #tpu.memory_space<vmem>>, vector<32x32xf32>,
    %168 = vector.extract_strided_slice %163 {offsets = [68, 0], sizes = [32, 32], strides = [1, 1]} : vector<272x32xf32> to vector<32x32xf32>
    %169 = vector.extract_strided_slice %163 {offsets = [102, 0], sizes = [32, 32], strides = [1, 1]} : vector<272x32xf32> to vector<32x32xf32>
    %170 = arith.maximumf %168, %169 : vector<32x32xf32>
    %c288 = arith.constant 288 : index
    %c0_136 = arith.constant 0 : index
    %171 = vector.load %arg5[%c288, %c0_136] : memref<512x32xf32, #tpu.memory_space<vmem>>, vector<32x32xf32>
    tpu.vector_store %arg5[%c288, %c0_136], %170 {strides = array<i32>} : memref<512x32xf32, #tpu.memory_space<vmem>>, vector<32x32xf32>,
    %172 = vector.extract_strided_slice %163 {offsets = [136, 0], sizes = [32, 32], strides = [1, 1]} : vector<272x32xf32> to vector<32x32xf32>
    %173 = vector.extract_strided_slice %163 {offsets = [170, 0], sizes = [32, 32], strides = [1, 1]} : vector<272x32xf32> to vector<32x32xf32>
    %174 = arith.maximumf %172, %173 : vector<32x32xf32>
    %c320 = arith.constant 320 : index
    %c0_137 = arith.constant 0 : index
    %175 = vector.load %arg5[%c320, %c0_137] : memref<512x32xf32, #tpu.memory_space<vmem>>, vector<32x32xf32>
    tpu.vector_store %arg5[%c320, %c0_137], %174 {strides = array<i32>} : memref<512x32xf32, #tpu.memory_space<vmem>>, vector<32x32xf32>,
    %176 = vector.extract_strided_slice %163 {offsets = [204, 0], sizes = [32, 32], strides = [1, 1]} : vector<272x32xf32> to vector<32x32xf32>
    %177 = vector.extract_strided_slice %163 {offsets = [238, 0], sizes = [32, 32], strides = [1, 1]} : vector<272x32xf32> to vector<32x32xf32>
    %178 = arith.maximumf %176, %177 : vector<32x32xf32>
    %c352 = arith.constant 352 : index
    %c0_138 = arith.constant 0 : index
    %179 = vector.load %arg5[%c352, %c0_138] : memref<512x32xf32, #tpu.memory_space<vmem>>, vector<32x32xf32>
    tpu.vector_store %arg5[%c352, %c0_138], %178 {strides = array<i32>} : memref<512x32xf32, #tpu.memory_space<vmem>>, vector<32x32xf32>,
    %c0_139 = arith.constant 0 : index
    %c816 = arith.constant 816 : index
    %c0_140 = arith.constant 0 : index
    %180 = vector.load %arg1[%c0_139, %c816, %c0_140] : memref<1x1164x3xf32, #tpu.memory_space<vmem>>, vector<1x272x3xf32>
    %181 = vector.shape_cast %180 : vector<1x272x3xf32> to vector<272x3xf32>
    %c0_141 = arith.constant 0 : index
    %c0_142 = arith.constant 0 : index
    %182 = vector.load %arg2[%c0_141, %c0_142] : memref<27x32xf32, #tpu.memory_space<vmem>>, vector<3x32xf32>
    %cst_143 = arith.constant dense<0.000000e+00> : vector<272x32xf32>
    %183 = tpu.matmul %181, %182, %cst_143 {dimension_numbers = #tpu.dot_dimension_numbers<[1], [0], [0], [1], [0, 0, 1, 1], [], []>} : vector<272x3xf32>, vector<3x32xf32>, vector<272x32xf32> -> vector<272x32xf32>
    %c0_144 = arith.constant 0 : index
    %c817 = arith.constant 817 : index
    %c0_145 = arith.constant 0 : index
    %184 = vector.load %arg1[%c0_144, %c817, %c0_145] : memref<1x1164x3xf32, #tpu.memory_space<vmem>>, vector<1x272x3xf32>
    %185 = vector.shape_cast %184 : vector<1x272x3xf32> to vector<272x3xf32>
    %c3_146 = arith.constant 3 : index
    %c0_147 = arith.constant 0 : index
    %186 = vector.load %arg2[%c3_146, %c0_147] : memref<27x32xf32, #tpu.memory_space<vmem>>, vector<3x32xf32>
    %cst_148 = arith.constant dense<0.000000e+00> : vector<272x32xf32>
    %187 = tpu.matmul %185, %186, %cst_148 {dimension_numbers = #tpu.dot_dimension_numbers<[1], [0], [0], [1], [0, 0, 1, 1], [], []>} : vector<272x3xf32>, vector<3x32xf32>, vector<272x32xf32> -> vector<272x32xf32>
    %188 = arith.addf %183, %187 : vector<272x32xf32>
    %c0_149 = arith.constant 0 : index
    %c818 = arith.constant 818 : index
    %c0_150 = arith.constant 0 : index
    %189 = vector.load %arg1[%c0_149, %c818, %c0_150] : memref<1x1164x3xf32, #tpu.memory_space<vmem>>, vector<1x272x3xf32>
    %190 = vector.shape_cast %189 : vector<1x272x3xf32> to vector<272x3xf32>
    %c6_151 = arith.constant 6 : index
    %c0_152 = arith.constant 0 : index
    %191 = vector.load %arg2[%c6_151, %c0_152] : memref<27x32xf32, #tpu.memory_space<vmem>>, vector<3x32xf32>
    %cst_153 = arith.constant dense<0.000000e+00> : vector<272x32xf32>
    %192 = tpu.matmul %190, %191, %cst_153 {dimension_numbers = #tpu.dot_dimension_numbers<[1], [0], [0], [1], [0, 0, 1, 1], [], []>} : vector<272x3xf32>, vector<3x32xf32>, vector<272x32xf32> -> vector<272x32xf32>
    %193 = arith.addf %188, %192 : vector<272x32xf32>
    %c0_154 = arith.constant 0 : index
    %c850 = arith.constant 850 : index
    %c0_155 = arith.constant 0 : index
    %194 = vector.load %arg1[%c0_154, %c850, %c0_155] : memref<1x1164x3xf32, #tpu.memory_space<vmem>>, vector<1x272x3xf32>
    %195 = vector.shape_cast %194 : vector<1x272x3xf32> to vector<272x3xf32>
    %c9_156 = arith.constant 9 : index
    %c0_157 = arith.constant 0 : index
    %196 = vector.load %arg2[%c9_156, %c0_157] : memref<27x32xf32, #tpu.memory_space<vmem>>, vector<3x32xf32>
    %cst_158 = arith.constant dense<0.000000e+00> : vector<272x32xf32>
    %197 = tpu.matmul %195, %196, %cst_158 {dimension_numbers = #tpu.dot_dimension_numbers<[1], [0], [0], [1], [0, 0, 1, 1], [], []>} : vector<272x3xf32>, vector<3x32xf32>, vector<272x32xf32> -> vector<272x32xf32>
    %198 = arith.addf %193, %197 : vector<272x32xf32>
    %c0_159 = arith.constant 0 : index
    %c851 = arith.constant 851 : index
    %c0_160 = arith.constant 0 : index
    %199 = vector.load %arg1[%c0_159, %c851, %c0_160] : memref<1x1164x3xf32, #tpu.memory_space<vmem>>, vector<1x272x3xf32>
    %200 = vector.shape_cast %199 : vector<1x272x3xf32> to vector<272x3xf32>
    %c12_161 = arith.constant 12 : index
    %c0_162 = arith.constant 0 : index
    %201 = vector.load %arg2[%c12_161, %c0_162] : memref<27x32xf32, #tpu.memory_space<vmem>>, vector<3x32xf32>
    %cst_163 = arith.constant dense<0.000000e+00> : vector<272x32xf32>
    %202 = tpu.matmul %200, %201, %cst_163 {dimension_numbers = #tpu.dot_dimension_numbers<[1], [0], [0], [1], [0, 0, 1, 1], [], []>} : vector<272x3xf32>, vector<3x32xf32>, vector<272x32xf32> -> vector<272x32xf32>
    %203 = arith.addf %198, %202 : vector<272x32xf32>
    %c0_164 = arith.constant 0 : index
    %c852 = arith.constant 852 : index
    %c0_165 = arith.constant 0 : index
    %204 = vector.load %arg1[%c0_164, %c852, %c0_165] : memref<1x1164x3xf32, #tpu.memory_space<vmem>>, vector<1x272x3xf32>
    %205 = vector.shape_cast %204 : vector<1x272x3xf32> to vector<272x3xf32>
    %c15_166 = arith.constant 15 : index
    %c0_167 = arith.constant 0 : index
    %206 = vector.load %arg2[%c15_166, %c0_167] : memref<27x32xf32, #tpu.memory_space<vmem>>, vector<3x32xf32>
    %cst_168 = arith.constant dense<0.000000e+00> : vector<272x32xf32>
    %207 = tpu.matmul %205, %206, %cst_168 {dimension_numbers = #tpu.dot_dimension_numbers<[1], [0], [0], [1], [0, 0, 1, 1], [], []>} : vector<272x3xf32>, vector<3x32xf32>, vector<272x32xf32> -> vector<272x32xf32>
    %208 = arith.addf %203, %207 : vector<272x32xf32>
    %c0_169 = arith.constant 0 : index
    %c884 = arith.constant 884 : index
    %c0_170 = arith.constant 0 : index
    %209 = vector.load %arg1[%c0_169, %c884, %c0_170] : memref<1x1164x3xf32, #tpu.memory_space<vmem>>, vector<1x272x3xf32>
    %210 = vector.shape_cast %209 : vector<1x272x3xf32> to vector<272x3xf32>
    %c18_171 = arith.constant 18 : index
    %c0_172 = arith.constant 0 : index
    %211 = vector.load %arg2[%c18_171, %c0_172] : memref<27x32xf32, #tpu.memory_space<vmem>>, vector<3x32xf32>
    %cst_173 = arith.constant dense<0.000000e+00> : vector<272x32xf32>
    %212 = tpu.matmul %210, %211, %cst_173 {dimension_numbers = #tpu.dot_dimension_numbers<[1], [0], [0], [1], [0, 0, 1, 1], [], []>} : vector<272x3xf32>, vector<3x32xf32>, vector<272x32xf32> -> vector<272x32xf32>
    %213 = arith.addf %208, %212 : vector<272x32xf32>
    %c0_174 = arith.constant 0 : index
    %c885 = arith.constant 885 : index
    %c0_175 = arith.constant 0 : index
    %214 = vector.load %arg1[%c0_174, %c885, %c0_175] : memref<1x1164x3xf32, #tpu.memory_space<vmem>>, vector<1x272x3xf32>
    %215 = vector.shape_cast %214 : vector<1x272x3xf32> to vector<272x3xf32>
    %c21_176 = arith.constant 21 : index
    %c0_177 = arith.constant 0 : index
    %216 = vector.load %arg2[%c21_176, %c0_177] : memref<27x32xf32, #tpu.memory_space<vmem>>, vector<3x32xf32>
    %cst_178 = arith.constant dense<0.000000e+00> : vector<272x32xf32>
    %217 = tpu.matmul %215, %216, %cst_178 {dimension_numbers = #tpu.dot_dimension_numbers<[1], [0], [0], [1], [0, 0, 1, 1], [], []>} : vector<272x3xf32>, vector<3x32xf32>, vector<272x32xf32> -> vector<272x32xf32>
    %218 = arith.addf %213, %217 : vector<272x32xf32>
    %c0_179 = arith.constant 0 : index
    %c886 = arith.constant 886 : index
    %c0_180 = arith.constant 0 : index
    %219 = vector.load %arg1[%c0_179, %c886, %c0_180] : memref<1x1164x3xf32, #tpu.memory_space<vmem>>, vector<1x272x3xf32>
    %220 = vector.shape_cast %219 : vector<1x272x3xf32> to vector<272x3xf32>
    %c24_181 = arith.constant 24 : index
    %c0_182 = arith.constant 0 : index
    %221 = vector.load %arg2[%c24_181, %c0_182] : memref<27x32xf32, #tpu.memory_space<vmem>>, vector<3x32xf32>
    %cst_183 = arith.constant dense<0.000000e+00> : vector<272x32xf32>
    %222 = tpu.matmul %220, %221, %cst_183 {dimension_numbers = #tpu.dot_dimension_numbers<[1], [0], [0], [1], [0, 0, 1, 1], [], []>} : vector<272x3xf32>, vector<3x32xf32>, vector<272x32xf32> -> vector<272x32xf32>
    %223 = arith.addf %218, %222 : vector<272x32xf32>
    %224 = vector.extract_strided_slice %223 {offsets = [0, 0], sizes = [32, 32], strides = [1, 1]} : vector<272x32xf32> to vector<32x32xf32>
    %225 = vector.extract_strided_slice %223 {offsets = [34, 0], sizes = [32, 32], strides = [1, 1]} : vector<272x32xf32> to vector<32x32xf32>
    %226 = arith.maximumf %224, %225 : vector<32x32xf32>
    %c384 = arith.constant 384 : index
    %c0_184 = arith.constant 0 : index
    %227 = vector.load %arg5[%c384, %c0_184] : memref<512x32xf32, #tpu.memory_space<vmem>>, vector<32x32xf32>
    tpu.vector_store %arg5[%c384, %c0_184], %226 {strides = array<i32>} : memref<512x32xf32, #tpu.memory_space<vmem>>, vector<32x32xf32>,
    %228 = vector.extract_strided_slice %223 {offsets = [68, 0], sizes = [32, 32], strides = [1, 1]} : vector<272x32xf32> to vector<32x32xf32>
    %229 = vector.extract_strided_slice %223 {offsets = [102, 0], sizes = [32, 32], strides = [1, 1]} : vector<272x32xf32> to vector<32x32xf32>
    %230 = arith.maximumf %228, %229 : vector<32x32xf32>
    %c416 = arith.constant 416 : index
    %c0_185 = arith.constant 0 : index
    %231 = vector.load %arg5[%c416, %c0_185] : memref<512x32xf32, #tpu.memory_space<vmem>>, vector<32x32xf32>
    tpu.vector_store %arg5[%c416, %c0_185], %230 {strides = array<i32>} : memref<512x32xf32, #tpu.memory_space<vmem>>, vector<32x32xf32>,
    %232 = vector.extract_strided_slice %223 {offsets = [136, 0], sizes = [32, 32], strides = [1, 1]} : vector<272x32xf32> to vector<32x32xf32>
    %233 = vector.extract_strided_slice %223 {offsets = [170, 0], sizes = [32, 32], strides = [1, 1]} : vector<272x32xf32> to vector<32x32xf32>
    %234 = arith.maximumf %232, %233 : vector<32x32xf32>
    %c448 = arith.constant 448 : index
    %c0_186 = arith.constant 0 : index
    %235 = vector.load %arg5[%c448, %c0_186] : memref<512x32xf32, #tpu.memory_space<vmem>>, vector<32x32xf32>
    tpu.vector_store %arg5[%c448, %c0_186], %234 {strides = array<i32>} : memref<512x32xf32, #tpu.memory_space<vmem>>, vector<32x32xf32>,
    %236 = vector.extract_strided_slice %223 {offsets = [204, 0], sizes = [32, 32], strides = [1, 1]} : vector<272x32xf32> to vector<32x32xf32>
    %237 = vector.extract_strided_slice %223 {offsets = [238, 0], sizes = [32, 32], strides = [1, 1]} : vector<272x32xf32> to vector<32x32xf32>
    %238 = arith.maximumf %236, %237 : vector<32x32xf32>
    %c480 = arith.constant 480 : index
    %c0_187 = arith.constant 0 : index
    %239 = vector.load %arg5[%c480, %c0_187] : memref<512x32xf32, #tpu.memory_space<vmem>>, vector<32x32xf32>
    tpu.vector_store %arg5[%c480, %c0_187], %238 {strides = array<i32>} : memref<512x32xf32, #tpu.memory_space<vmem>>, vector<32x32xf32>,
    %c0_188 = arith.constant 0 : index
    %c0_189 = arith.constant 0 : index
    %240 = tpu.strided_load %arg5[%c0_188, %c0_189] {strides = array<i32: 2, 1>} : memref<512x32xf32, #tpu.memory_space<vmem>>, vector<256x32xf32>
    %c1_190 = arith.constant 1 : index
    %c0_191 = arith.constant 0 : index
    %241 = tpu.strided_load %arg5[%c1_190, %c0_191] {strides = array<i32: 2, 1>} : memref<512x32xf32, #tpu.memory_space<vmem>>, vector<256x32xf32>
    %242 = arith.maximumf %240, %241 : vector<256x32xf32>
    %c0_192 = arith.constant 0 : index
    %c0_193 = arith.constant 0 : index
    %243 = vector.load %arg3[%c0_192, %c0_193] : memref<1x32xf32, #tpu.memory_space<vmem>>, vector<1x32xf32>
    %244 = vector.broadcast %243 : vector<1x32xf32> to vector<256x32xf32>
    %245 = arith.addf %242, %244 : vector<256x32xf32>
    %cst_194 = arith.constant 0.000000e+00 : f32
    %246 = vector.broadcast %cst_194 : f32 to vector<256x32xf32>
    %247 = arith.maximumf %245, %246 : vector<256x32xf32>
    %c0_195 = arith.constant 0 : index
    %c0_196 = arith.constant 0 : index
    %c0_197 = arith.constant 0 : index
    %248 = vector.load %arg4[%c0_195, %c0_196, %c0_197] : memref<1x256x32xf32, #tpu.memory_space<vmem>>, vector<1x256x32xf32>
    %249 = vector.shape_cast %248 : vector<1x256x32xf32> to vector<256x32xf32>
    %250 = vector.shape_cast %247 : vector<256x32xf32> to vector<1x256x32xf32>
    tpu.vector_store %arg4[%c0_195, %c0_196, %c0_197], %250 {strides = array<i32>} : memref<1x256x32xf32, #tpu.memory_space<vmem>>, vector<1x256x32xf32>,
    return
  }
  func.func @transform_0(%arg0: i32) -> (i32, i32, i32) {
    %c0_i32 = arith.constant 0 : i32
    %c0_i32_0 = arith.constant 0 : i32
    %c0_i32_1 = arith.constant 0 : i32
    return %arg0, %c0_i32, %c0_i32_0 : i32, i32, i32
  }
  func.func @transform_1(%arg0: i32) -> (i32, i32) {
    %c0_i32 = arith.constant 0 : i32
    %c0_i32_0 = arith.constant 0 : i32
    %c0_i32_1 = arith.constant 0 : i32
    return %c0_i32, %c0_i32_0 : i32, i32
  }
  func.func @transform_2(%arg0: i32) -> (i32, i32) {
    %c0_i32 = arith.constant 0 : i32
    %c0_i32_0 = arith.constant 0 : i32
    %c0_i32_1 = arith.constant 0 : i32
    return %c0_i32, %c0_i32_0 : i32, i32
  }
  func.func @transform_3(%arg0: i32) -> (i32, i32, i32) {
    %c0_i32 = arith.constant 0 : i32
    %c0_i32_0 = arith.constant 0 : i32
    %c0_i32_1 = arith.constant 0 : i32
    return %arg0, %c0_i32, %c0_i32_0 : i32, i32, i32
  }
}

module attributes {stable_mosaic.version = 11 : i64} {
  func.func @_conv3x3_relu_pool_kernel(%arg0: i32, %arg1: memref<1x332x32xf32, #tpu.memory_space<vmem>>, %arg2: memref<288x64xf32, #tpu.memory_space<vmem>>, %arg3: memref<1x64xf32, #tpu.memory_space<vmem>>, %arg4: memref<1x64x64xf32, #tpu.memory_space<vmem>>, %arg5: memref<128x64xf32, #tpu.memory_space<vmem>>) attributes {dimension_semantics = [#tpu.dimension_semantics<parallel>], iteration_bounds = array<i64: 2>, scalar_prefetch = 0 : i64, scratch_operands = 1 : i64, tpu.core_type = #tpu.core_type<tc>, window_params = [{transform_indices = @transform_0, window_bounds = array<i64: 1, 332, 32>}, {pipeline_mode = #tpu.pipeline_mode<synchronous>, transform_indices = @transform_1, window_bounds = array<i64: 288, 64>}, {pipeline_mode = #tpu.pipeline_mode<synchronous>, transform_indices = @transform_2, window_bounds = array<i64: 1, 64>}, {transform_indices = @transform_3, window_bounds = array<i64: 1, 64, 64>}]} {
    %c0 = arith.constant 0 : index
    %c0_0 = arith.constant 0 : index
    %c0_1 = arith.constant 0 : index
    %0 = vector.load %arg1[%c0, %c0_0, %c0_1] : memref<1x332x32xf32, #tpu.memory_space<vmem>>, vector<1x144x32xf32>
    %1 = vector.shape_cast %0 : vector<1x144x32xf32> to vector<144x32xf32>
    %c0_2 = arith.constant 0 : index
    %c0_3 = arith.constant 0 : index
    %2 = vector.load %arg2[%c0_2, %c0_3] : memref<288x64xf32, #tpu.memory_space<vmem>>, vector<32x64xf32>
    %cst = arith.constant dense<0.000000e+00> : vector<144x64xf32>
    %3 = tpu.matmul %1, %2, %cst {dimension_numbers = #tpu.dot_dimension_numbers<[1], [0], [0], [1], [0, 0, 1, 1], [], []>} : vector<144x32xf32>, vector<32x64xf32>, vector<144x64xf32> -> vector<144x64xf32>
    %c0_4 = arith.constant 0 : index
    %c1 = arith.constant 1 : index
    %c0_5 = arith.constant 0 : index
    %4 = vector.load %arg1[%c0_4, %c1, %c0_5] : memref<1x332x32xf32, #tpu.memory_space<vmem>>, vector<1x144x32xf32>
    %5 = vector.shape_cast %4 : vector<1x144x32xf32> to vector<144x32xf32>
    %c32 = arith.constant 32 : index
    %c0_6 = arith.constant 0 : index
    %6 = vector.load %arg2[%c32, %c0_6] : memref<288x64xf32, #tpu.memory_space<vmem>>, vector<32x64xf32>
    %cst_7 = arith.constant dense<0.000000e+00> : vector<144x64xf32>
    %7 = tpu.matmul %5, %6, %cst_7 {dimension_numbers = #tpu.dot_dimension_numbers<[1], [0], [0], [1], [0, 0, 1, 1], [], []>} : vector<144x32xf32>, vector<32x64xf32>, vector<144x64xf32> -> vector<144x64xf32>
    %8 = arith.addf %3, %7 : vector<144x64xf32>
    %c0_8 = arith.constant 0 : index
    %c2 = arith.constant 2 : index
    %c0_9 = arith.constant 0 : index
    %9 = vector.load %arg1[%c0_8, %c2, %c0_9] : memref<1x332x32xf32, #tpu.memory_space<vmem>>, vector<1x144x32xf32>
    %10 = vector.shape_cast %9 : vector<1x144x32xf32> to vector<144x32xf32>
    %c64 = arith.constant 64 : index
    %c0_10 = arith.constant 0 : index
    %11 = vector.load %arg2[%c64, %c0_10] : memref<288x64xf32, #tpu.memory_space<vmem>>, vector<32x64xf32>
    %cst_11 = arith.constant dense<0.000000e+00> : vector<144x64xf32>
    %12 = tpu.matmul %10, %11, %cst_11 {dimension_numbers = #tpu.dot_dimension_numbers<[1], [0], [0], [1], [0, 0, 1, 1], [], []>} : vector<144x32xf32>, vector<32x64xf32>, vector<144x64xf32> -> vector<144x64xf32>
    %13 = arith.addf %8, %12 : vector<144x64xf32>
    %c0_12 = arith.constant 0 : index
    %c18 = arith.constant 18 : index
    %c0_13 = arith.constant 0 : index
    %14 = vector.load %arg1[%c0_12, %c18, %c0_13] : memref<1x332x32xf32, #tpu.memory_space<vmem>>, vector<1x144x32xf32>
    %15 = vector.shape_cast %14 : vector<1x144x32xf32> to vector<144x32xf32>
    %c96 = arith.constant 96 : index
    %c0_14 = arith.constant 0 : index
    %16 = vector.load %arg2[%c96, %c0_14] : memref<288x64xf32, #tpu.memory_space<vmem>>, vector<32x64xf32>
    %cst_15 = arith.constant dense<0.000000e+00> : vector<144x64xf32>
    %17 = tpu.matmul %15, %16, %cst_15 {dimension_numbers = #tpu.dot_dimension_numbers<[1], [0], [0], [1], [0, 0, 1, 1], [], []>} : vector<144x32xf32>, vector<32x64xf32>, vector<144x64xf32> -> vector<144x64xf32>
    %18 = arith.addf %13, %17 : vector<144x64xf32>
    %c0_16 = arith.constant 0 : index
    %c19 = arith.constant 19 : index
    %c0_17 = arith.constant 0 : index
    %19 = vector.load %arg1[%c0_16, %c19, %c0_17] : memref<1x332x32xf32, #tpu.memory_space<vmem>>, vector<1x144x32xf32>
    %20 = vector.shape_cast %19 : vector<1x144x32xf32> to vector<144x32xf32>
    %c128 = arith.constant 128 : index
    %c0_18 = arith.constant 0 : index
    %21 = vector.load %arg2[%c128, %c0_18] : memref<288x64xf32, #tpu.memory_space<vmem>>, vector<32x64xf32>
    %cst_19 = arith.constant dense<0.000000e+00> : vector<144x64xf32>
    %22 = tpu.matmul %20, %21, %cst_19 {dimension_numbers = #tpu.dot_dimension_numbers<[1], [0], [0], [1], [0, 0, 1, 1], [], []>} : vector<144x32xf32>, vector<32x64xf32>, vector<144x64xf32> -> vector<144x64xf32>
    %23 = arith.addf %18, %22 : vector<144x64xf32>
    %c0_20 = arith.constant 0 : index
    %c20 = arith.constant 20 : index
    %c0_21 = arith.constant 0 : index
    %24 = vector.load %arg1[%c0_20, %c20, %c0_21] : memref<1x332x32xf32, #tpu.memory_space<vmem>>, vector<1x144x32xf32>
    %25 = vector.shape_cast %24 : vector<1x144x32xf32> to vector<144x32xf32>
    %c160 = arith.constant 160 : index
    %c0_22 = arith.constant 0 : index
    %26 = vector.load %arg2[%c160, %c0_22] : memref<288x64xf32, #tpu.memory_space<vmem>>, vector<32x64xf32>
    %cst_23 = arith.constant dense<0.000000e+00> : vector<144x64xf32>
    %27 = tpu.matmul %25, %26, %cst_23 {dimension_numbers = #tpu.dot_dimension_numbers<[1], [0], [0], [1], [0, 0, 1, 1], [], []>} : vector<144x32xf32>, vector<32x64xf32>, vector<144x64xf32> -> vector<144x64xf32>
    %28 = arith.addf %23, %27 : vector<144x64xf32>
    %c0_24 = arith.constant 0 : index
    %c36 = arith.constant 36 : index
    %c0_25 = arith.constant 0 : index
    %29 = vector.load %arg1[%c0_24, %c36, %c0_25] : memref<1x332x32xf32, #tpu.memory_space<vmem>>, vector<1x144x32xf32>
    %30 = vector.shape_cast %29 : vector<1x144x32xf32> to vector<144x32xf32>
    %c192 = arith.constant 192 : index
    %c0_26 = arith.constant 0 : index
    %31 = vector.load %arg2[%c192, %c0_26] : memref<288x64xf32, #tpu.memory_space<vmem>>, vector<32x64xf32>
    %cst_27 = arith.constant dense<0.000000e+00> : vector<144x64xf32>
    %32 = tpu.matmul %30, %31, %cst_27 {dimension_numbers = #tpu.dot_dimension_numbers<[1], [0], [0], [1], [0, 0, 1, 1], [], []>} : vector<144x32xf32>, vector<32x64xf32>, vector<144x64xf32> -> vector<144x64xf32>
    %33 = arith.addf %28, %32 : vector<144x64xf32>
    %c0_28 = arith.constant 0 : index
    %c37 = arith.constant 37 : index
    %c0_29 = arith.constant 0 : index
    %34 = vector.load %arg1[%c0_28, %c37, %c0_29] : memref<1x332x32xf32, #tpu.memory_space<vmem>>, vector<1x144x32xf32>
    %35 = vector.shape_cast %34 : vector<1x144x32xf32> to vector<144x32xf32>
    %c224 = arith.constant 224 : index
    %c0_30 = arith.constant 0 : index
    %36 = vector.load %arg2[%c224, %c0_30] : memref<288x64xf32, #tpu.memory_space<vmem>>, vector<32x64xf32>
    %cst_31 = arith.constant dense<0.000000e+00> : vector<144x64xf32>
    %37 = tpu.matmul %35, %36, %cst_31 {dimension_numbers = #tpu.dot_dimension_numbers<[1], [0], [0], [1], [0, 0, 1, 1], [], []>} : vector<144x32xf32>, vector<32x64xf32>, vector<144x64xf32> -> vector<144x64xf32>
    %38 = arith.addf %33, %37 : vector<144x64xf32>
    %c0_32 = arith.constant 0 : index
    %c38 = arith.constant 38 : index
    %c0_33 = arith.constant 0 : index
    %39 = vector.load %arg1[%c0_32, %c38, %c0_33] : memref<1x332x32xf32, #tpu.memory_space<vmem>>, vector<1x144x32xf32>
    %40 = vector.shape_cast %39 : vector<1x144x32xf32> to vector<144x32xf32>
    %c256 = arith.constant 256 : index
    %c0_34 = arith.constant 0 : index
    %41 = vector.load %arg2[%c256, %c0_34] : memref<288x64xf32, #tpu.memory_space<vmem>>, vector<32x64xf32>
    %cst_35 = arith.constant dense<0.000000e+00> : vector<144x64xf32>
    %42 = tpu.matmul %40, %41, %cst_35 {dimension_numbers = #tpu.dot_dimension_numbers<[1], [0], [0], [1], [0, 0, 1, 1], [], []>} : vector<144x32xf32>, vector<32x64xf32>, vector<144x64xf32> -> vector<144x64xf32>
    %43 = arith.addf %38, %42 : vector<144x64xf32>
    %44 = vector.extract_strided_slice %43 {offsets = [0, 0], sizes = [16, 64], strides = [1, 1]} : vector<144x64xf32> to vector<16x64xf32>
    %45 = vector.extract_strided_slice %43 {offsets = [18, 0], sizes = [16, 64], strides = [1, 1]} : vector<144x64xf32> to vector<16x64xf32>
    %46 = arith.maximumf %44, %45 : vector<16x64xf32>
    %c0_36 = arith.constant 0 : index
    %c0_37 = arith.constant 0 : index
    %47 = vector.load %arg5[%c0_36, %c0_37] : memref<128x64xf32, #tpu.memory_space<vmem>>, vector<16x64xf32>
    tpu.vector_store %arg5[%c0_36, %c0_37], %46 {strides = array<i32>} : memref<128x64xf32, #tpu.memory_space<vmem>>, vector<16x64xf32>,
    %48 = vector.extract_strided_slice %43 {offsets = [36, 0], sizes = [16, 64], strides = [1, 1]} : vector<144x64xf32> to vector<16x64xf32>
    %49 = vector.extract_strided_slice %43 {offsets = [54, 0], sizes = [16, 64], strides = [1, 1]} : vector<144x64xf32> to vector<16x64xf32>
    %50 = arith.maximumf %48, %49 : vector<16x64xf32>
    %c16 = arith.constant 16 : index
    %c0_38 = arith.constant 0 : index
    %51 = vector.load %arg5[%c16, %c0_38] : memref<128x64xf32, #tpu.memory_space<vmem>>, vector<16x64xf32>
    tpu.vector_store %arg5[%c16, %c0_38], %50 {strides = array<i32>} : memref<128x64xf32, #tpu.memory_space<vmem>>, vector<16x64xf32>,
    %52 = vector.extract_strided_slice %43 {offsets = [72, 0], sizes = [16, 64], strides = [1, 1]} : vector<144x64xf32> to vector<16x64xf32>
    %53 = vector.extract_strided_slice %43 {offsets = [90, 0], sizes = [16, 64], strides = [1, 1]} : vector<144x64xf32> to vector<16x64xf32>
    %54 = arith.maximumf %52, %53 : vector<16x64xf32>
    %c32_39 = arith.constant 32 : index
    %c0_40 = arith.constant 0 : index
    %55 = vector.load %arg5[%c32_39, %c0_40] : memref<128x64xf32, #tpu.memory_space<vmem>>, vector<16x64xf32>
    tpu.vector_store %arg5[%c32_39, %c0_40], %54 {strides = array<i32>} : memref<128x64xf32, #tpu.memory_space<vmem>>, vector<16x64xf32>,
    %56 = vector.extract_strided_slice %43 {offsets = [108, 0], sizes = [16, 64], strides = [1, 1]} : vector<144x64xf32> to vector<16x64xf32>
    %57 = vector.extract_strided_slice %43 {offsets = [126, 0], sizes = [16, 64], strides = [1, 1]} : vector<144x64xf32> to vector<16x64xf32>
    %58 = arith.maximumf %56, %57 : vector<16x64xf32>
    %c48 = arith.constant 48 : index
    %c0_41 = arith.constant 0 : index
    %59 = vector.load %arg5[%c48, %c0_41] : memref<128x64xf32, #tpu.memory_space<vmem>>, vector<16x64xf32>
    tpu.vector_store %arg5[%c48, %c0_41], %58 {strides = array<i32>} : memref<128x64xf32, #tpu.memory_space<vmem>>, vector<16x64xf32>,
    %c0_42 = arith.constant 0 : index
    %c144 = arith.constant 144 : index
    %c0_43 = arith.constant 0 : index
    %60 = vector.load %arg1[%c0_42, %c144, %c0_43] : memref<1x332x32xf32, #tpu.memory_space<vmem>>, vector<1x144x32xf32>
    %61 = vector.shape_cast %60 : vector<1x144x32xf32> to vector<144x32xf32>
    %c0_44 = arith.constant 0 : index
    %c0_45 = arith.constant 0 : index
    %62 = vector.load %arg2[%c0_44, %c0_45] : memref<288x64xf32, #tpu.memory_space<vmem>>, vector<32x64xf32>
    %cst_46 = arith.constant dense<0.000000e+00> : vector<144x64xf32>
    %63 = tpu.matmul %61, %62, %cst_46 {dimension_numbers = #tpu.dot_dimension_numbers<[1], [0], [0], [1], [0, 0, 1, 1], [], []>} : vector<144x32xf32>, vector<32x64xf32>, vector<144x64xf32> -> vector<144x64xf32>
    %c0_47 = arith.constant 0 : index
    %c145 = arith.constant 145 : index
    %c0_48 = arith.constant 0 : index
    %64 = vector.load %arg1[%c0_47, %c145, %c0_48] : memref<1x332x32xf32, #tpu.memory_space<vmem>>, vector<1x144x32xf32>
    %65 = vector.shape_cast %64 : vector<1x144x32xf32> to vector<144x32xf32>
    %c32_49 = arith.constant 32 : index
    %c0_50 = arith.constant 0 : index
    %66 = vector.load %arg2[%c32_49, %c0_50] : memref<288x64xf32, #tpu.memory_space<vmem>>, vector<32x64xf32>
    %cst_51 = arith.constant dense<0.000000e+00> : vector<144x64xf32>
    %67 = tpu.matmul %65, %66, %cst_51 {dimension_numbers = #tpu.dot_dimension_numbers<[1], [0], [0], [1], [0, 0, 1, 1], [], []>} : vector<144x32xf32>, vector<32x64xf32>, vector<144x64xf32> -> vector<144x64xf32>
    %68 = arith.addf %63, %67 : vector<144x64xf32>
    %c0_52 = arith.constant 0 : index
    %c146 = arith.constant 146 : index
    %c0_53 = arith.constant 0 : index
    %69 = vector.load %arg1[%c0_52, %c146, %c0_53] : memref<1x332x32xf32, #tpu.memory_space<vmem>>, vector<1x144x32xf32>
    %70 = vector.shape_cast %69 : vector<1x144x32xf32> to vector<144x32xf32>
    %c64_54 = arith.constant 64 : index
    %c0_55 = arith.constant 0 : index
    %71 = vector.load %arg2[%c64_54, %c0_55] : memref<288x64xf32, #tpu.memory_space<vmem>>, vector<32x64xf32>
    %cst_56 = arith.constant dense<0.000000e+00> : vector<144x64xf32>
    %72 = tpu.matmul %70, %71, %cst_56 {dimension_numbers = #tpu.dot_dimension_numbers<[1], [0], [0], [1], [0, 0, 1, 1], [], []>} : vector<144x32xf32>, vector<32x64xf32>, vector<144x64xf32> -> vector<144x64xf32>
    %73 = arith.addf %68, %72 : vector<144x64xf32>
    %c0_57 = arith.constant 0 : index
    %c162 = arith.constant 162 : index
    %c0_58 = arith.constant 0 : index
    %74 = vector.load %arg1[%c0_57, %c162, %c0_58] : memref<1x332x32xf32, #tpu.memory_space<vmem>>, vector<1x144x32xf32>
    %75 = vector.shape_cast %74 : vector<1x144x32xf32> to vector<144x32xf32>
    %c96_59 = arith.constant 96 : index
    %c0_60 = arith.constant 0 : index
    %76 = vector.load %arg2[%c96_59, %c0_60] : memref<288x64xf32, #tpu.memory_space<vmem>>, vector<32x64xf32>
    %cst_61 = arith.constant dense<0.000000e+00> : vector<144x64xf32>
    %77 = tpu.matmul %75, %76, %cst_61 {dimension_numbers = #tpu.dot_dimension_numbers<[1], [0], [0], [1], [0, 0, 1, 1], [], []>} : vector<144x32xf32>, vector<32x64xf32>, vector<144x64xf32> -> vector<144x64xf32>
    %78 = arith.addf %73, %77 : vector<144x64xf32>
    %c0_62 = arith.constant 0 : index
    %c163 = arith.constant 163 : index
    %c0_63 = arith.constant 0 : index
    %79 = vector.load %arg1[%c0_62, %c163, %c0_63] : memref<1x332x32xf32, #tpu.memory_space<vmem>>, vector<1x144x32xf32>
    %80 = vector.shape_cast %79 : vector<1x144x32xf32> to vector<144x32xf32>
    %c128_64 = arith.constant 128 : index
    %c0_65 = arith.constant 0 : index
    %81 = vector.load %arg2[%c128_64, %c0_65] : memref<288x64xf32, #tpu.memory_space<vmem>>, vector<32x64xf32>
    %cst_66 = arith.constant dense<0.000000e+00> : vector<144x64xf32>
    %82 = tpu.matmul %80, %81, %cst_66 {dimension_numbers = #tpu.dot_dimension_numbers<[1], [0], [0], [1], [0, 0, 1, 1], [], []>} : vector<144x32xf32>, vector<32x64xf32>, vector<144x64xf32> -> vector<144x64xf32>
    %83 = arith.addf %78, %82 : vector<144x64xf32>
    %c0_67 = arith.constant 0 : index
    %c164 = arith.constant 164 : index
    %c0_68 = arith.constant 0 : index
    %84 = vector.load %arg1[%c0_67, %c164, %c0_68] : memref<1x332x32xf32, #tpu.memory_space<vmem>>, vector<1x144x32xf32>
    %85 = vector.shape_cast %84 : vector<1x144x32xf32> to vector<144x32xf32>
    %c160_69 = arith.constant 160 : index
    %c0_70 = arith.constant 0 : index
    %86 = vector.load %arg2[%c160_69, %c0_70] : memref<288x64xf32, #tpu.memory_space<vmem>>, vector<32x64xf32>
    %cst_71 = arith.constant dense<0.000000e+00> : vector<144x64xf32>
    %87 = tpu.matmul %85, %86, %cst_71 {dimension_numbers = #tpu.dot_dimension_numbers<[1], [0], [0], [1], [0, 0, 1, 1], [], []>} : vector<144x32xf32>, vector<32x64xf32>, vector<144x64xf32> -> vector<144x64xf32>
    %88 = arith.addf %83, %87 : vector<144x64xf32>
    %c0_72 = arith.constant 0 : index
    %c180 = arith.constant 180 : index
    %c0_73 = arith.constant 0 : index
    %89 = vector.load %arg1[%c0_72, %c180, %c0_73] : memref<1x332x32xf32, #tpu.memory_space<vmem>>, vector<1x144x32xf32>
    %90 = vector.shape_cast %89 : vector<1x144x32xf32> to vector<144x32xf32>
    %c192_74 = arith.constant 192 : index
    %c0_75 = arith.constant 0 : index
    %91 = vector.load %arg2[%c192_74, %c0_75] : memref<288x64xf32, #tpu.memory_space<vmem>>, vector<32x64xf32>
    %cst_76 = arith.constant dense<0.000000e+00> : vector<144x64xf32>
    %92 = tpu.matmul %90, %91, %cst_76 {dimension_numbers = #tpu.dot_dimension_numbers<[1], [0], [0], [1], [0, 0, 1, 1], [], []>} : vector<144x32xf32>, vector<32x64xf32>, vector<144x64xf32> -> vector<144x64xf32>
    %93 = arith.addf %88, %92 : vector<144x64xf32>
    %c0_77 = arith.constant 0 : index
    %c181 = arith.constant 181 : index
    %c0_78 = arith.constant 0 : index
    %94 = vector.load %arg1[%c0_77, %c181, %c0_78] : memref<1x332x32xf32, #tpu.memory_space<vmem>>, vector<1x144x32xf32>
    %95 = vector.shape_cast %94 : vector<1x144x32xf32> to vector<144x32xf32>
    %c224_79 = arith.constant 224 : index
    %c0_80 = arith.constant 0 : index
    %96 = vector.load %arg2[%c224_79, %c0_80] : memref<288x64xf32, #tpu.memory_space<vmem>>, vector<32x64xf32>
    %cst_81 = arith.constant dense<0.000000e+00> : vector<144x64xf32>
    %97 = tpu.matmul %95, %96, %cst_81 {dimension_numbers = #tpu.dot_dimension_numbers<[1], [0], [0], [1], [0, 0, 1, 1], [], []>} : vector<144x32xf32>, vector<32x64xf32>, vector<144x64xf32> -> vector<144x64xf32>
    %98 = arith.addf %93, %97 : vector<144x64xf32>
    %c0_82 = arith.constant 0 : index
    %c182 = arith.constant 182 : index
    %c0_83 = arith.constant 0 : index
    %99 = vector.load %arg1[%c0_82, %c182, %c0_83] : memref<1x332x32xf32, #tpu.memory_space<vmem>>, vector<1x144x32xf32>
    %100 = vector.shape_cast %99 : vector<1x144x32xf32> to vector<144x32xf32>
    %c256_84 = arith.constant 256 : index
    %c0_85 = arith.constant 0 : index
    %101 = vector.load %arg2[%c256_84, %c0_85] : memref<288x64xf32, #tpu.memory_space<vmem>>, vector<32x64xf32>
    %cst_86 = arith.constant dense<0.000000e+00> : vector<144x64xf32>
    %102 = tpu.matmul %100, %101, %cst_86 {dimension_numbers = #tpu.dot_dimension_numbers<[1], [0], [0], [1], [0, 0, 1, 1], [], []>} : vector<144x32xf32>, vector<32x64xf32>, vector<144x64xf32> -> vector<144x64xf32>
    %103 = arith.addf %98, %102 : vector<144x64xf32>
    %104 = vector.extract_strided_slice %103 {offsets = [0, 0], sizes = [16, 64], strides = [1, 1]} : vector<144x64xf32> to vector<16x64xf32>
    %105 = vector.extract_strided_slice %103 {offsets = [18, 0], sizes = [16, 64], strides = [1, 1]} : vector<144x64xf32> to vector<16x64xf32>
    %106 = arith.maximumf %104, %105 : vector<16x64xf32>
    %c64_87 = arith.constant 64 : index
    %c0_88 = arith.constant 0 : index
    %107 = vector.load %arg5[%c64_87, %c0_88] : memref<128x64xf32, #tpu.memory_space<vmem>>, vector<16x64xf32>
    tpu.vector_store %arg5[%c64_87, %c0_88], %106 {strides = array<i32>} : memref<128x64xf32, #tpu.memory_space<vmem>>, vector<16x64xf32>,
    %108 = vector.extract_strided_slice %103 {offsets = [36, 0], sizes = [16, 64], strides = [1, 1]} : vector<144x64xf32> to vector<16x64xf32>
    %109 = vector.extract_strided_slice %103 {offsets = [54, 0], sizes = [16, 64], strides = [1, 1]} : vector<144x64xf32> to vector<16x64xf32>
    %110 = arith.maximumf %108, %109 : vector<16x64xf32>
    %c80 = arith.constant 80 : index
    %c0_89 = arith.constant 0 : index
    %111 = vector.load %arg5[%c80, %c0_89] : memref<128x64xf32, #tpu.memory_space<vmem>>, vector<16x64xf32>
    tpu.vector_store %arg5[%c80, %c0_89], %110 {strides = array<i32>} : memref<128x64xf32, #tpu.memory_space<vmem>>, vector<16x64xf32>,
    %112 = vector.extract_strided_slice %103 {offsets = [72, 0], sizes = [16, 64], strides = [1, 1]} : vector<144x64xf32> to vector<16x64xf32>
    %113 = vector.extract_strided_slice %103 {offsets = [90, 0], sizes = [16, 64], strides = [1, 1]} : vector<144x64xf32> to vector<16x64xf32>
    %114 = arith.maximumf %112, %113 : vector<16x64xf32>
    %c96_90 = arith.constant 96 : index
    %c0_91 = arith.constant 0 : index
    %115 = vector.load %arg5[%c96_90, %c0_91] : memref<128x64xf32, #tpu.memory_space<vmem>>, vector<16x64xf32>
    tpu.vector_store %arg5[%c96_90, %c0_91], %114 {strides = array<i32>} : memref<128x64xf32, #tpu.memory_space<vmem>>, vector<16x64xf32>,
    %116 = vector.extract_strided_slice %103 {offsets = [108, 0], sizes = [16, 64], strides = [1, 1]} : vector<144x64xf32> to vector<16x64xf32>
    %117 = vector.extract_strided_slice %103 {offsets = [126, 0], sizes = [16, 64], strides = [1, 1]} : vector<144x64xf32> to vector<16x64xf32>
    %118 = arith.maximumf %116, %117 : vector<16x64xf32>
    %c112 = arith.constant 112 : index
    %c0_92 = arith.constant 0 : index
    %119 = vector.load %arg5[%c112, %c0_92] : memref<128x64xf32, #tpu.memory_space<vmem>>, vector<16x64xf32>
    tpu.vector_store %arg5[%c112, %c0_92], %118 {strides = array<i32>} : memref<128x64xf32, #tpu.memory_space<vmem>>, vector<16x64xf32>,
    %c0_93 = arith.constant 0 : index
    %c0_94 = arith.constant 0 : index
    %120 = tpu.strided_load %arg5[%c0_93, %c0_94] {strides = array<i32: 2, 1>} : memref<128x64xf32, #tpu.memory_space<vmem>>, vector<64x64xf32>
    %c1_95 = arith.constant 1 : index
    %c0_96 = arith.constant 0 : index
    %121 = tpu.strided_load %arg5[%c1_95, %c0_96] {strides = array<i32: 2, 1>} : memref<128x64xf32, #tpu.memory_space<vmem>>, vector<64x64xf32>
    %122 = arith.maximumf %120, %121 : vector<64x64xf32>
    %c0_97 = arith.constant 0 : index
    %c0_98 = arith.constant 0 : index
    %123 = vector.load %arg3[%c0_97, %c0_98] : memref<1x64xf32, #tpu.memory_space<vmem>>, vector<1x64xf32>
    %124 = vector.broadcast %123 : vector<1x64xf32> to vector<64x64xf32>
    %125 = arith.addf %122, %124 : vector<64x64xf32>
    %cst_99 = arith.constant 0.000000e+00 : f32
    %126 = vector.broadcast %cst_99 : f32 to vector<64x64xf32>
    %127 = arith.maximumf %125, %126 : vector<64x64xf32>
    %c0_100 = arith.constant 0 : index
    %c0_101 = arith.constant 0 : index
    %c0_102 = arith.constant 0 : index
    %128 = vector.load %arg4[%c0_100, %c0_101, %c0_102] : memref<1x64x64xf32, #tpu.memory_space<vmem>>, vector<1x64x64xf32>
    %129 = vector.shape_cast %128 : vector<1x64x64xf32> to vector<64x64xf32>
    %130 = vector.shape_cast %127 : vector<64x64xf32> to vector<1x64x64xf32>
    tpu.vector_store %arg4[%c0_100, %c0_101, %c0_102], %130 {strides = array<i32>} : memref<1x64x64xf32, #tpu.memory_space<vmem>>, vector<1x64x64xf32>,
    return
  }
  func.func @transform_0(%arg0: i32) -> (i32, i32, i32) {
    %c0_i32 = arith.constant 0 : i32
    %c0_i32_0 = arith.constant 0 : i32
    %c0_i32_1 = arith.constant 0 : i32
    return %arg0, %c0_i32, %c0_i32_0 : i32, i32, i32
  }
  func.func @transform_1(%arg0: i32) -> (i32, i32) {
    %c0_i32 = arith.constant 0 : i32
    %c0_i32_0 = arith.constant 0 : i32
    %c0_i32_1 = arith.constant 0 : i32
    return %c0_i32, %c0_i32_0 : i32, i32
  }
  func.func @transform_2(%arg0: i32) -> (i32, i32) {
    %c0_i32 = arith.constant 0 : i32
    %c0_i32_0 = arith.constant 0 : i32
    %c0_i32_1 = arith.constant 0 : i32
    return %c0_i32, %c0_i32_0 : i32, i32
  }
  func.func @transform_3(%arg0: i32) -> (i32, i32, i32) {
    %c0_i32 = arith.constant 0 : i32
    %c0_i32_0 = arith.constant 0 : i32
    %c0_i32_1 = arith.constant 0 : i32
    return %arg0, %c0_i32, %c0_i32_0 : i32, i32, i32
  }
}

module attributes {stable_mosaic.version = 11 : i64} {
  func.func @_fc_fused_kernel(%arg0: i32, %arg1: memref<8x4096xf32, #tpu.memory_space<vmem>>, %arg2: memref<4096x128xf32, #tpu.memory_space<vmem>>, %arg3: memref<1x128xf32, #tpu.memory_space<vmem>>, %arg4: memref<128x10xf32, #tpu.memory_space<vmem>>, %arg5: memref<1x10xf32, #tpu.memory_space<vmem>>, %arg6: memref<8x10xf32, #tpu.memory_space<vmem>>) attributes {dimension_semantics = [#tpu.dimension_semantics<parallel>], iteration_bounds = array<i64: 1>, scalar_prefetch = 0 : i64, scratch_operands = 0 : i64, tpu.core_type = #tpu.core_type<tc>, window_params = [{transform_indices = @transform_0, window_bounds = array<i64: 8, 4096>}, {pipeline_mode = #tpu.pipeline_mode<synchronous>, transform_indices = @transform_1, window_bounds = array<i64: 4096, 128>}, {pipeline_mode = #tpu.pipeline_mode<synchronous>, transform_indices = @transform_2, window_bounds = array<i64: 1, 128>}, {pipeline_mode = #tpu.pipeline_mode<synchronous>, transform_indices = @transform_3, window_bounds = array<i64: 128, 10>}, {pipeline_mode = #tpu.pipeline_mode<synchronous>, transform_indices = @transform_4, window_bounds = array<i64: 1, 10>}, {transform_indices = @transform_5, window_bounds = array<i64: 8, 10>}]} {
    %c0 = arith.constant 0 : index
    %c0_0 = arith.constant 0 : index
    %0 = vector.load %arg1[%c0, %c0_0] : memref<8x4096xf32, #tpu.memory_space<vmem>>, vector<8x4096xf32>
    %c0_1 = arith.constant 0 : index
    %c0_2 = arith.constant 0 : index
    %1 = vector.load %arg2[%c0_1, %c0_2] : memref<4096x128xf32, #tpu.memory_space<vmem>>, vector<4096x128xf32>
    %cst = arith.constant dense<0.000000e+00> : vector<8x128xf32>
    %2 = tpu.matmul %0, %1, %cst {dimension_numbers = #tpu.dot_dimension_numbers<[1], [0], [0], [1], [0, 0, 1, 1], [], []>} : vector<8x4096xf32>, vector<4096x128xf32>, vector<8x128xf32> -> vector<8x128xf32>
    %c0_3 = arith.constant 0 : index
    %c0_4 = arith.constant 0 : index
    %3 = vector.load %arg3[%c0_3, %c0_4] : memref<1x128xf32, #tpu.memory_space<vmem>>, vector<1x128xf32>
    %4 = vector.broadcast %3 : vector<1x128xf32> to vector<8x128xf32>
    %5 = arith.addf %2, %4 : vector<8x128xf32>
    %cst_5 = arith.constant 0.000000e+00 : f32
    %6 = vector.broadcast %cst_5 : f32 to vector<8x128xf32>
    %7 = arith.maximumf %5, %6 : vector<8x128xf32>
    %c0_6 = arith.constant 0 : index
    %c0_7 = arith.constant 0 : index
    %8 = vector.load %arg4[%c0_6, %c0_7] : memref<128x10xf32, #tpu.memory_space<vmem>>, vector<128x10xf32>
    %cst_8 = arith.constant dense<0.000000e+00> : vector<8x10xf32>
    %9 = tpu.matmul %7, %8, %cst_8 {dimension_numbers = #tpu.dot_dimension_numbers<[1], [0], [0], [1], [0, 0, 1, 1], [], []>} : vector<8x128xf32>, vector<128x10xf32>, vector<8x10xf32> -> vector<8x10xf32>
    %c0_9 = arith.constant 0 : index
    %c0_10 = arith.constant 0 : index
    %10 = vector.load %arg5[%c0_9, %c0_10] : memref<1x10xf32, #tpu.memory_space<vmem>>, vector<1x10xf32>
    %11 = vector.broadcast %10 : vector<1x10xf32> to vector<8x10xf32>
    %12 = arith.addf %9, %11 : vector<8x10xf32>
    %c0_11 = arith.constant 0 : index
    %c0_12 = arith.constant 0 : index
    %13 = vector.load %arg6[%c0_11, %c0_12] : memref<8x10xf32, #tpu.memory_space<vmem>>, vector<8x10xf32>
    tpu.vector_store %arg6[%c0_11, %c0_12], %12 {strides = array<i32>} : memref<8x10xf32, #tpu.memory_space<vmem>>, vector<8x10xf32>,
    return
  }
  func.func @transform_0(%arg0: i32) -> (i32, i32) {
    %c0_i32 = arith.constant 0 : i32
    %c0_i32_0 = arith.constant 0 : i32
    return %arg0, %c0_i32 : i32, i32
  }
  func.func @transform_1(%arg0: i32) -> (i32, i32) {
    %c0_i32 = arith.constant 0 : i32
    %c0_i32_0 = arith.constant 0 : i32
    %c0_i32_1 = arith.constant 0 : i32
    return %c0_i32, %c0_i32_0 : i32, i32
  }
  func.func @transform_2(%arg0: i32) -> (i32, i32) {
    %c0_i32 = arith.constant 0 : i32
    %c0_i32_0 = arith.constant 0 : i32
    %c0_i32_1 = arith.constant 0 : i32
    return %c0_i32, %c0_i32_0 : i32, i32
  }
  func.func @transform_3(%arg0: i32) -> (i32, i32) {
    %c0_i32 = arith.constant 0 : i32
    %c0_i32_0 = arith.constant 0 : i32
    %c0_i32_1 = arith.constant 0 : i32
    return %c0_i32, %c0_i32_0 : i32, i32
  }
  func.func @transform_4(%arg0: i32) -> (i32, i32) {
    %c0_i32 = arith.constant 0 : i32
    %c0_i32_0 = arith.constant 0 : i32
    %c0_i32_1 = arith.constant 0 : i32
    return %c0_i32, %c0_i32_0 : i32, i32
  }
  func.func @transform_5(%arg0: i32) -> (i32, i32) {
    %c0_i32 = arith.constant 0 : i32
    %c0_i32_0 = arith.constant 0 : i32
    return %arg0, %c0_i32 : i32, i32
  }
}

</mosaic_0001>

<bundles_post_ra>
// kernel: net_forward.5
= control target key start
LH: loop header
LB: loop body
LE: loop exit
PB: predicated region body
PF: predicated region fallthrough
CT: control target
= control target key end

     0   :  { %10 = vsyncpa [#allocation3], 0  ;;  %v3337_v54 = vmov 1983009808   ;;  %v611_v56 = vlaneseq  ;;  %vm3339_vm0 = vmmov 0   ;;  %vm2138_vm1 = vcmask 80896   ;;  %s5218_s0 = inlined_call_operand.vmem [shape: f32[2,4096], index: 0, kind: input, shape index: {}]   ;;  %s5219_s1 = inlined_call_operand.vmem [shape: f32[4096,128], index: 1, kind: input, shape index: {}]   ;;  %s5220_s2 = inlined_call_operand.vmem [shape: f32[1,128], index: 2, kind: input, shape index: {}]   ;;  %s5221_s3 = inlined_call_operand.vmem [shape: f32[128,10], index: 3, kind: input, shape index: {}]   ;;  %s5222_s4 = inlined_call_operand.vmem [shape: f32[1,10], index: 4, kind: input, shape index: {}]   ;;  %s5223_s5 = inlined_call_operand.hbm [shape: f32[2,10], index: 5, kind: output, shape index: {}]  }
   0x1   :  { %v69_v0 = vld [vmem:[%s5219_s1 + $0x80] sm:$0xff]  ;;  %v70_v1 = vld [vmem:[%s5219_s1 + $0x88] sm:$0xff]  ;;  %v71_v12 = vld [vmem:[%s5219_s1 + $0x90] sm:$0xff]  ;;  %v609_v55 = vunpack.c.l.s4 %v3337_v54 }
   0x2   :  { %v2770_v2 = vpack.c.bf16 %v70_v1, %v69_v0  ;;  %v53_v3 = vld [vmem:[%s5219_s1] sm:$0xff]  ;;  %v54_v4 = vld [vmem:[%s5219_s1 + $0x8] sm:$0xff]  ;;  %v72_v13 = vld [vmem:[%s5219_s1 + $0x98] sm:$0xff] }
   0x3   :  { %v101_v5 = vld [vmem:[%s5219_s1 + $0x180] sm:$0xff]  ;;  %v2772_v6 = vpack.c.bf16 %v54_v4, %v53_v3  ;;  %v102_v7 = vld [vmem:[%s5219_s1 + $0x188] sm:$0xff]  ;;  %v55_v14 = vld [vmem:[%s5219_s1 + $0x10] sm:$0xff]  ;;  %v2774_v15 = vpack.c.bf16 %v72_v13, %v71_v12 }
   0x4   :  { %v85_v8 = vld [vmem:[%s5219_s1 + $0x100] sm:$0xff]  ;;  %v86_v9 = vld [vmem:[%s5219_s1 + $0x108] sm:$0xff]  ;;  %2771 = vmatprep.subr.bf16.mxu0 %v2770_v2  ;;  %v2802_v10 = vpack.c.bf16 %v102_v7, %v101_v5  ;;  %v56_v16 = vld [vmem:[%s5219_s1 + $0x18] sm:$0xff]  ;;  %v610_v5 = vunpack.c.0.s8 %v609_v55 }
   0x5   :  { %v2804_v11 = vpack.c.bf16 %v86_v9, %v85_v8  ;;  %2773 = vmatpush3.bf16.msra.mxu0 %v2772_v6  ;;  %v103_v17 = vld [vmem:[%s5219_s1 + $0x190] sm:$0xff]  ;;  %v104_v18 = vld [vmem:[%s5219_s1 + $0x198] sm:$0xff]  ;;  %v2776_v19 = vpack.c.bf16 %v56_v16, %v55_v14  ;;  %v73_v23 = vld [vmem:[%s5219_s1 + $0xa0] sm:$0xff]  ;;  %v612_v6 = vshrl.u32 %v611_v56, 7 }
   0x6   :  { %2803 = vmatprep.subr.bf16.mxu1 %v2802_v10  ;;  %v2806_v20 = vpack.c.bf16 %v104_v18, %v103_v17  ;;  %v87_v21 = vld [vmem:[%s5219_s1 + $0x110] sm:$0xff]  ;;  %v88_v22 = vld [vmem:[%s5219_s1 + $0x118] sm:$0xff]  ;;  %2775 = vmatprep.subr.bf16.mxu0 %v2774_v15  ;;  %v74_v25 = vld [vmem:[%s5219_s1 + $0xa8] sm:$0xff] }
   0x7   :  { %2805 = vmatpush3.bf16.msra.mxu1 %v2804_v11  ;;  %v2808_v24 = vpack.c.bf16 %v88_v22, %v87_v21  ;;  %v57_v26 = vld [vmem:[%s5219_s1 + $0x20] sm:$0xff]  ;;  %v58_v27 = vld [vmem:[%s5219_s1 + $0x28] sm:$0xff]  ;;  %v2778_v28 = vpack.c.bf16 %v74_v25, %v73_v23  ;;  %v75_v35 = vld [vmem:[%s5219_s1 + $0xb0] sm:$0xff]  ;;  %v3545_v22 = vsub.s32 %v610_v5, %v612_v6 }
   0x8   :  { %2807 = vmatprep.subr.bf16.mxu1 %v2806_v20  ;;  %v105_v29 = vld [vmem:[%s5219_s1 + $0x1a0] sm:$0xff]  ;;  %v106_v30 = vld [vmem:[%s5219_s1 + $0x1a8] sm:$0xff]  ;;  %v2780_v32 = vpack.c.bf16 %v58_v27, %v57_v26  ;;  %v76_v36 = vld [vmem:[%s5219_s1 + $0xb8] sm:$0xff] }
   0x9   :  { %v89_v31 = vld [vmem:[%s5219_s1 + $0x120] sm:$0xff]  ;;  %2777 = vmatpush3.bf16.msra.mxu0 %v2776_v19  ;;  %v2810_v33 = vpack.c.bf16 %v106_v30, %v105_v29  ;;  %v90_v34 = vld [vmem:[%s5219_s1 + $0x128] sm:$0xff]  ;;  %v2782_v37 = vpack.c.bf16 %v76_v36, %v75_v35  ;;  %v59_v38 = vld [vmem:[%s5219_s1 + $0x30] sm:$0xff] }
   0xa   :  { %2779 = vmatprep.subr.bf16.mxu0 %v2778_v28  ;;  %v60_v39 = vld [vmem:[%s5219_s1 + $0x38] sm:$0xff]  ;;  %v107_v40 = vld [vmem:[%s5219_s1 + $0x1b0] sm:$0xff]  ;;  %v2812_v41 = vpack.c.bf16 %v90_v34, %v89_v31  ;;  %v77_v46 = vld [vmem:[%s5219_s1 + $0xc0] sm:$0xff] }
   0xb   :  { %2809 = vmatpush3.bf16.msra.mxu1 %v2808_v24  ;;  %v108_v42 = vld [vmem:[%s5219_s1 + $0x1b8] sm:$0xff]  ;;  %v91_v43 = vld [vmem:[%s5219_s1 + $0x130] sm:$0xff]  ;;  %v78_v47 = vld [vmem:[%s5219_s1 + $0xc8] sm:$0xff]  ;;  %v2784_v48 = vpack.c.bf16 %v60_v39, %v59_v38 }
   0xc   :  { %2811 = vmatprep.subr.bf16.mxu1 %v2810_v33  ;;  %v2814_v44 = vpack.c.bf16 %v108_v42, %v107_v40  ;;  %v92_v45 = vld [vmem:[%s5219_s1 + $0x138] sm:$0xff]  ;;  %v109_v49 = vld [vmem:[%s5219_s1 + $0x1c0] sm:$0xff]  ;;  %v110_v50 = vld [vmem:[%s5219_s1 + $0x1c8] sm:$0xff]  ;;  %v2786_v51 = vpack.c.bf16 %v78_v47, %v77_v46 }
   0xd   :  { %2781 = vmatpush3.bf16.msra.mxu0 %v2780_v32  ;;  %v61_v52 = vld [vmem:[%s5219_s1 + $0x40] sm:$0xff]  ;;  %v62_v53 = vld [vmem:[%s5219_s1 + $0x48] sm:$0xff]  ;;  %v2816_v57 = vpack.c.bf16 %v92_v45, %v91_v43  ;;  %v79_v58 = vld [vmem:[%s5219_s1 + $0xd0] sm:$0xff]  ;;  %v2818_v60 = vpack.c.bf16 %v110_v50, %v109_v49 }
   0xe   :  { %2783 = vmatprep.subr.bf16.mxu0 %v2782_v37  ;;  %v80_v59 = vld [vmem:[%s5219_s1 + $0xd8] sm:$0xff]  ;;  %v93_v61 = vld [vmem:[%s5219_s1 + $0x140] sm:$0xff]  ;;  %v94_v62 = vld [vmem:[%s5219_s1 + $0x148] sm:$0xff]  ;;  %v2788_v63 = vpack.c.bf16 %v62_v53, %v61_v52 }
   0xf   :  { %2813 = vmatpush3.bf16.msra.mxu1 %v2812_v41  ;;  %v111_v0 = vld [vmem:[%s5219_s1 + $0x1d0] sm:$0xff]  ;;  %v112_v1 = vld [vmem:[%s5219_s1 + $0x1d8] sm:$0xff]  ;;  %v2790_v2 = vpack.c.bf16 %v80_v59, %v79_v58  ;;  %v2820_v7 = vpack.c.bf16 %v94_v62, %v93_v61  ;;  %v81_v9 = vld [vmem:[%s5219_s1 + $0xe0] sm:$0xff] }
  0x10   :  { %2815 = vmatprep.subr.bf16.mxu1 %v2814_v44  ;;  %v63_v3 = vld [vmem:[%s5219_s1 + $0x50] sm:$0xff]  ;;  %v64_v4 = vld [vmem:[%s5219_s1 + $0x58] sm:$0xff]  ;;  %v82_v10 = vld [vmem:[%s5219_s1 + $0xe8] sm:$0xff]  ;;  %v2822_v11 = vpack.c.bf16 %v112_v1, %v111_v0 }
  0x11   :  { %2785 = vmatpush3.bf16.msra.mxu0 %v2784_v48  ;;  %v95_v8 = vld [vmem:[%s5219_s1 + $0x150] sm:$0xff]  ;;  %v96_v12 = vld [vmem:[%s5219_s1 + $0x158] sm:$0xff]  ;;  %v113_v13 = vld [vmem:[%s5219_s1 + $0x1e0] sm:$0xff]  ;;  %v2792_v15 = vpack.c.bf16 %v64_v4, %v63_v3  ;;  %v2794_v18 = vpack.c.bf16 %v82_v10, %v81_v9 }
  0x12   :  { %2787 = vmatprep.subr.bf16.mxu0 %v2786_v51  ;;  %v114_v14 = vld [vmem:[%s5219_s1 + $0x1e8] sm:$0xff]  ;;  %v65_v16 = vld [vmem:[%s5219_s1 + $0x60] sm:$0xff]  ;;  %v83_v19 = vld [vmem:[%s5219_s1 + $0xf0] sm:$0xff]  ;;  %v2824_v23 = vpack.c.bf16 %v96_v12, %v95_v8 }
  0x13   :  { %2817 = vmatpush3.bf16.msra.mxu1 %v2816_v57  ;;  %v66_v17 = vld [vmem:[%s5219_s1 + $0x68] sm:$0xff]  ;;  %v84_v20 = vld [vmem:[%s5219_s1 + $0xf8] sm:$0xff]  ;;  %v21_v21 = vld [vmem:[%s5218_s0] sm:$0xff]  ;;  %v2826_v24 = vpack.c.bf16 %v114_v14, %v113_v13 }
  0x14   :  { %2819 = vmatprep.subr.bf16.mxu1 %v2818_v60  ;;  %v29_v25 = vld [vmem:[%s5218_s0 + $0x40] sm:$0xff]  ;;  %v98_v29 = vld [vmem:[%s5219_s1 + $0x168] sm:$0xff]  ;;  %v2796_v34 = vpack.c.bf16 %v66_v17, %v65_v16  ;;  %v2798_v35 = vpack.c.bf16 %v84_v20, %v83_v19  ;;  %v115_v36 = vld [vmem:[%s5219_s1 + $0x1f0] sm:$0xff] }
  0x15   :  { %2789 = vmatpush3.bf16.msra.mxu0 %v2788_v63  ;;  %v37_v26 = vld [vmem:[%s5218_s0 + $0x80] sm:$0xff]  ;;  %v604_v30 = vcombine.low %v21_v21, %v29_v25  ;;  %v605_v32 = vcombine.high %v21_v21, %v29_v25  ;;  %v116_v37 = vld [vmem:[%s5219_s1 + $0x1f8] sm:$0xff]  ;;  %v67_v38 = vld [vmem:[%s5219_s1 + $0x70] sm:$0xff] }
  0x16   :  { %2791 = vmatprep.subr.bf16.mxu0 %v2790_v2  ;;  %v45_v27 = vld [vmem:[%s5218_s0 + $0xc0] sm:$0xff]  ;;  %v68_v39 = vld [vmem:[%s5219_s1 + $0x78] sm:$0xff]  ;;  %v134_v46 = vld [vmem:[%s5219_s1 + $0x288] sm:$0xff]  ;;  %v2830_v47 = vpack.c.bf16 %v116_v37, %v115_v36 }
  0x17   :  { %2821 = vmatpush3.bf16.msra.mxu1 %v2820_v7  ;;  %v97_v28 = vld [vmem:[%s5219_s1 + $0x160] sm:$0xff]  ;;  %v606_v31 = vcombine.low %v37_v26, %v45_v27  ;;  %v607_v33 = vcombine.high %v37_v26, %v45_v27  ;;  %v614_v40 = vrot.slane %v604_v30, %v3545_v22  ;;  %v621_v42 = vrot.slane %v605_v32, %v3545_v22  ;;  %v99_v48 = vld [vmem:[%s5219_s1 + $0x170] sm:$0xff]  ;;  %v100_v49 = vld [vmem:[%s5219_s1 + $0x178] sm:$0xff] }
  0x18   :  { %2823 = vmatprep.subr.bf16.mxu1 %v2822_v11  ;;  %v2828_v44 = vpack.c.bf16 %v98_v29, %v97_v28  ;;  %v133_v45 = vld [vmem:[%s5219_s1 + $0x280] sm:$0xff]  ;;  %v2800_v52 = vpack.c.bf16 %v68_v39, %v67_v38  ;;  %v166_v54 = vld [vmem:[%s5219_s1 + $0x388] sm:$0xff]  ;;  %v2832_v58 = vpack.c.bf16 %v100_v49, %v99_v48  ;;  %v135_v59 = vld [vmem:[%s5219_s1 + $0x290] sm:$0xff] }
  0x19   :  { %2793 = vmatpush3.bf16.msra.mxu0 %v2792_v15  ;;  %v628_v41 = vrot.slane %v606_v31, %v3545_v22  ;;  %v635_v43 = vrot.slane %v607_v33, %v3545_v22  ;;  %v165_v53 = vld [vmem:[%s5219_s1 + $0x380] sm:$0xff]  ;;  %v2834_v55 = vpack.c.bf16 %v134_v46, %v133_v45  ;;  %v118_v57 = vld [vmem:[%s5219_s1 + $0x208] sm:$0xff]  ;;  %v136_v60 = vld [vmem:[%s5219_s1 + $0x298] sm:$0xff] }
  0x1a   :  { %2795 = vmatprep.subr.bf16.mxu0 %v2794_v18  ;;  %v117_v56 = vld [vmem:[%s5219_s1 + $0x200] sm:$0xff]  ;;  %v2866_v62 = vpack.c.bf16 %v166_v54, %v165_v53  ;;  %v150_v0 = vld [vmem:[%s5219_s1 + $0x308] sm:$0xff]  ;;  %v167_v2 = vld [vmem:[%s5219_s1 + $0x390] sm:$0xff]  ;;  %v2838_v5 = vpack.c.bf16 %v136_v60, %v135_v59 }
  0x1b   :  { %2825 = vmatpush3.bf16.msra.mxu1 %v2824_v23  ;;  %v637_v50 = vcombine.high %v614_v40, %v628_v41  ;;  %v639_v51 = vcombine.high %v621_v42, %v635_v43  ;;  %v636_v61 = vcombine.low %v614_v40, %v628_v41  ;;  %v149_v63 = vld [vmem:[%s5219_s1 + $0x300] sm:$0xff]  ;;  %v2836_v1 = vpack.c.bf16 %v118_v57, %v117_v56  ;;  %v168_v3 = vld [vmem:[%s5219_s1 + $0x398] sm:$0xff]  ;;  %v119_v6 = vld [vmem:[%s5219_s1 + $0x210] sm:$0xff] }
  0x1c   :  { %2827 = vmatprep.subr.bf16.mxu1 %v2826_v24  ;;  %v638_v4 = vcombine.low %v621_v42, %v635_v43  ;;  %v120_v7 = vld [vmem:[%s5219_s1 + $0x218] sm:$0xff]  ;;  %v2868_v8 = vpack.c.bf16 %v150_v0, %v149_v63  ;;  %v137_v9 = vld [vmem:[%s5219_s1 + $0x2a0] sm:$0xff]  ;;  %v138_v10 = vld [vmem:[%s5219_s1 + $0x2a8] sm:$0xff]  ;;  %v2870_v11 = vpack.c.bf16 %v168_v3, %v167_v2 }
  0x1d   :  { %2797 = vmatpush3.bf16.msra.mxu0 %v2796_v34  ;;  %988 = vmatprep.mubr.f32.mxu0 %v637_v50  ;;  %v151_v12 = vld [vmem:[%s5219_s1 + $0x310] sm:$0xff]  ;;  %v152_v13 = vld [vmem:[%s5219_s1 + $0x318] sm:$0xff]  ;;  %v2840_v14 = vpack.c.bf16 %v120_v7, %v119_v6  ;;  %v169_v15 = vld [vmem:[%s5219_s1 + $0x3a0] sm:$0xff]  ;;  %v2842_v17 = vpack.c.bf16 %v138_v10, %v137_v9 }
  0x1e   :  { %2799 = vmatprep.subr.bf16.mxu0 %v2798_v35  ;;  %1058 = vmatprep.mubr.f32.mxu1 %v639_v51  ;;  %v170_v16 = vld [vmem:[%s5219_s1 + $0x3a8] sm:$0xff]  ;;  %v121_v18 = vld [vmem:[%s5219_s1 + $0x220] sm:$0xff]  ;;  %v2872_v20 = vpack.c.bf16 %v152_v13, %v151_v12  ;;  %v139_v21 = vld [vmem:[%s5219_s1 + $0x2b0] sm:$0xff] }
  0x1f   :  { %2829 = vmatpush3.bf16.msra.mxu1 %v2828_v44  ;;  %v122_v19 = vld [vmem:[%s5219_s1 + $0x228] sm:$0xff]  ;;  %v140_v23 = vld [vmem:[%s5219_s1 + $0x2b8] sm:$0xff]  ;;  %v2874_v24 = vpack.c.bf16 %v170_v16, %v169_v15  ;;  %v153_v25 = vld [vmem:[%s5219_s1 + $0x320] sm:$0xff] }
  0x20   :  { %2831 = vmatprep.subr.bf16.mxu1 %v2830_v47  ;;  %v154_v26 = vld [vmem:[%s5219_s1 + $0x328] sm:$0xff]  ;;  %v2844_v27 = vpack.c.bf16 %v122_v19, %v121_v18  ;;  %v171_v28 = vld [vmem:[%s5219_s1 + $0x3b0] sm:$0xff]  ;;  %v172_v29 = vld [vmem:[%s5219_s1 + $0x3b8] sm:$0xff]  ;;  %v2846_v30 = vpack.c.bf16 %v140_v23, %v139_v21 }
  0x21   :  { %2801 = vmatpush3.bf16.msra.mxu0 %v2800_v52  ;;  %v123_v31 = vld [vmem:[%s5219_s1 + $0x230] sm:$0xff]  ;;  %v124_v32 = vld [vmem:[%s5219_s1 + $0x238] sm:$0xff]  ;;  %v2876_v33 = vpack.c.bf16 %v154_v26, %v153_v25  ;;  %v141_v35 = vld [vmem:[%s5219_s1 + $0x2c0] sm:$0xff]  ;;  %v2878_v37 = vpack.c.bf16 %v172_v29, %v171_v28 }
  0x22   :  { %2835 = vmatprep.subr.bf16.mxu0 %v2834_v55  ;;  %v155_v34 = vld [vmem:[%s5219_s1 + $0x330] sm:$0xff]  ;;  %v142_v36 = vld [vmem:[%s5219_s1 + $0x2c8] sm:$0xff]  ;;  %v156_v38 = vld [vmem:[%s5219_s1 + $0x338] sm:$0xff]  ;;  %v2848_v41 = vpack.c.bf16 %v124_v32, %v123_v31 }
  0x23   :  { %2833 = vmatpush3.bf16.msra.mxu1 %v2832_v58  ;;  %v125_v39 = vld [vmem:[%s5219_s1 + $0x240] sm:$0xff]  ;;  %v174_v42 = vld [vmem:[%s5219_s1 + $0x3c8] sm:$0xff]  ;;  %v2850_v45 = vpack.c.bf16 %v142_v36, %v141_v35  ;;  %v2880_v51 = vpack.c.bf16 %v156_v38, %v155_v34  ;;  %v143_v52 = vld [vmem:[%s5219_s1 + $0x2d0] sm:$0xff] }
  0x24   :  { %989 = vmatmul.mubr.f32.vlgmr.msra.gmra.mrb[0].mxu0 %v636_v61  ;;  %2867 = vmatprep.subr.bf16.mxu1 %v2866_v62  ;;  %v173_v40 = vld [vmem:[%s5219_s1 + $0x3c0] sm:$0xff]  ;;  %v22_v43 = vld [vmem:[%s5218_s0 + $0x8] sm:$0xff]  ;;  %v144_v53 = vld [vmem:[%s5219_s1 + $0x2d8] sm:$0xff] }
  0x25   :  { %2837 = vmatpush3.bf16.msra.mxu0 %v2836_v1  ;;  %v30_v44 = vld [vmem:[%s5218_s0 + $0x48] sm:$0xff]  ;;  %v2882_v56 = vpack.c.bf16 %v174_v42, %v173_v40  ;;  %v157_v57 = vld [vmem:[%s5219_s1 + $0x340] sm:$0xff]  ;;  %v175_v62 = vld [vmem:[%s5219_s1 + $0x3d0] sm:$0xff]  ;;  %v2854_v2 = vpack.c.bf16 %v144_v53, %v143_v52 }
  0x26   :  { %1059 = vmatmul.mubr.f32.vlgmr.msra.gmra.mrb[0].mxu1 %v638_v4  ;;  %2839 = vmatprep.subr.bf16.mxu0 %v2838_v5  ;;  %v126_v46 = vld [vmem:[%s5219_s1 + $0x248] sm:$0xff]  ;;  %v640_v49 = vcombine.low %v22_v43, %v30_v44  ;;  %v641_v50 = vcombine.high %v22_v43, %v30_v44  ;;  %v176_v63 = vld [vmem:[%s5219_s1 + $0x3d8] sm:$0xff]  ;;  %v127_v3 = vld [vmem:[%s5219_s1 + $0x250] sm:$0xff] }
  0x27   :  { %2869 = vmatpush3.bf16.msra.mxu1 %v2868_v8  ;;  %v38_v47 = vld [vmem:[%s5218_s0 + $0x88] sm:$0xff]  ;;  %v2852_v61 = vpack.c.bf16 %v126_v46, %v125_v39  ;;  %v128_v4 = vld [vmem:[%s5219_s1 + $0x258] sm:$0xff]  ;;  %v145_v6 = vld [vmem:[%s5219_s1 + $0x2e0] sm:$0xff]  ;;  %v2886_v10 = vpack.c.bf16 %v176_v63, %v175_v62 }
  0x28   :  { %2871 = vmatprep.subr.bf16.mxu1 %v2870_v11  ;;  %v46_v48 = vld [vmem:[%s5218_s0 + $0xc8] sm:$0xff]  ;;  %v3723_v59 = vrot.slane %v640_v49, %v3545_v22  ;;  %v3726_v60 = vrot.slane %v641_v50, %v3545_v22  ;;  %v159_v11 = vld [vmem:[%s5219_s1 + $0x350] sm:$0xff]  ;;  %v160_v12 = vld [vmem:[%s5219_s1 + $0x358] sm:$0xff]  ;;  %v2856_v13 = vpack.c.bf16 %v128_v4, %v127_v3 }
  0x29   :  { %2841 = vmatpush3.bf16.msra.mxu0 %v2840_v14  ;;  %v642_v54 = vcombine.low %v38_v47, %v46_v48  ;;  %v643_v55 = vcombine.high %v38_v47, %v46_v48  ;;  %v158_v58 = vld [vmem:[%s5219_s1 + $0x348] sm:$0xff]  ;;  %v177_v14 = vld [vmem:[%s5219_s1 + $0x3e0] sm:$0xff]  ;;  %v2888_v19 = vpack.c.bf16 %v160_v12, %v159_v11  ;;  %v148_v21 = vld [vmem:[%s5219_s1 + $0x2f8] sm:$0xff] }
  0x2a   :  { %2843 = vmatprep.subr.bf16.mxu0 %v2842_v17  ;;  %v2884_v5 = vpack.c.bf16 %v158_v58, %v157_v57  ;;  %v146_v7 = vld [vmem:[%s5219_s1 + $0x2e8] sm:$0xff]  ;;  %v129_v17 = vld [vmem:[%s5219_s1 + $0x260] sm:$0xff]  ;;  %v180_v28 = vld [vmem:[%s5219_s1 + $0x3f8] sm:$0xff] }
  0x2b   :  { %2873 = vmatpush3.bf16.msra.mxu1 %v2872_v20  ;;  %v3735_v0 = vrot.slane %v642_v54, %v3545_v22  ;;  %v3738_v1 = vrot.slane %v643_v55, %v3545_v22  ;;  %v178_v15 = vld [vmem:[%s5219_s1 + $0x3e8] sm:$0xff]  ;;  %v2858_v16 = vpack.c.bf16 %v146_v7, %v145_v6  ;;  %v147_v20 = vld [vmem:[%s5219_s1 + $0x2f0] sm:$0xff]  ;;  %v132_v31 = vld [vmem:[%s5219_s1 + $0x278] sm:$0xff] }
  0x2c   :  { %2875 = vmatprep.subr.bf16.mxu1 %v2874_v24  ;;  %v130_v18 = vld [vmem:[%s5219_s1 + $0x268] sm:$0xff]  ;;  %v2890_v23 = vpack.c.bf16 %v178_v15, %v177_v14  ;;  %v161_v24 = vld [vmem:[%s5219_s1 + $0x360] sm:$0xff]  ;;  %v2862_v29 = vpack.c.bf16 %v148_v21, %v147_v20  ;;  %v163_v36 = vld [vmem:[%s5219_s1 + $0x370] sm:$0xff] }
  0x2d   :  { %2845 = vmatpush3.bf16.msra.mxu0 %v2844_v27  ;;  %v673_v8 = vcombine.high %v3723_v59, %v3735_v0  ;;  %v675_v9 = vcombine.high %v3726_v60, %v3738_v1  ;;  %v162_v25 = vld [vmem:[%s5219_s1 + $0x368] sm:$0xff]  ;;  %v2860_v26 = vpack.c.bf16 %v130_v18, %v129_v17  ;;  %v179_v27 = vld [vmem:[%s5219_s1 + $0x3f0] sm:$0xff]  ;;  %v229_v39 = vld [vmem:[%s5219_s1 + $0x580] sm:$0xff]  ;;  %v672_v47 = vcombine.low %v3723_v59, %v3735_v0 }
  0x2e   :  { %2847 = vmatprep.subr.bf16.mxu0 %v2846_v30  ;;  %v131_v30 = vld [vmem:[%s5219_s1 + $0x270] sm:$0xff]  ;;  %v2892_v32 = vpack.c.bf16 %v162_v25, %v161_v24  ;;  %v198_v34 = vld [vmem:[%s5219_s1 + $0x488] sm:$0xff]  ;;  %v2894_v35 = vpack.c.bf16 %v180_v28, %v179_v27  ;;  %v181_v42 = vld [vmem:[%s5219_s1 + $0x400] sm:$0xff]  ;;  %v674_v54 = vcombine.low %v3726_v60, %v3738_v1 }
  0x2f   :  { %2877 = vmatpush3.bf16.msra.mxu1 %v2876_v33  ;;  %1128 = vmatprep.mubr.f32.mxu0 %v673_v8  ;;  %v197_v33 = vld [vmem:[%s5219_s1 + $0x480] sm:$0xff]  ;;  %v2864_v38 = vpack.c.bf16 %v132_v31, %v131_v30  ;;  %v230_v40 = vld [vmem:[%s5219_s1 + $0x588] sm:$0xff]  ;;  %v200_v46 = vld [vmem:[%s5219_s1 + $0x498] sm:$0xff] }
  0x30   :  { %2879 = vmatprep.subr.bf16.mxu1 %v2878_v37  ;;  %1198 = vmatprep.mubr.f32.mxu1 %v675_v9  ;;  %v164_v37 = vld [vmem:[%s5219_s1 + $0x378] sm:$0xff]  ;;  %v182_v43 = vld [vmem:[%s5219_s1 + $0x408] sm:$0xff]  ;;  %v2930_v48 = vpack.c.bf16 %v230_v40, %v229_v39  ;;  %v213_v49 = vld [vmem:[%s5219_s1 + $0x500] sm:$0xff] }
  0x31   :  { %2849 = vmatpush3.bf16.msra.mxu0 %v2848_v41  ;;  %v2898_v41 = vpack.c.bf16 %v198_v34, %v197_v33  ;;  %v2896_v44 = vpack.c.bf16 %v164_v37, %v163_v36  ;;  %v214_v50 = vld [vmem:[%s5219_s1 + $0x508] sm:$0xff]  ;;  %v231_v52 = vld [vmem:[%s5219_s1 + $0x590] sm:$0xff]  ;;  %v232_v53 = vld [vmem:[%s5219_s1 + $0x598] sm:$0xff] }
  0x32   :  { %2851 = vmatprep.subr.bf16.mxu0 %v2850_v45  ;;  %v199_v45 = vld [vmem:[%s5219_s1 + $0x490] sm:$0xff]  ;;  %v184_v57 = vld [vmem:[%s5219_s1 + $0x418] sm:$0xff]  ;;  %v2932_v59 = vpack.c.bf16 %v214_v50, %v213_v49  ;;  %v201_v60 = vld [vmem:[%s5219_s1 + $0x4a0] sm:$0xff]  ;;  %v2934_v63 = vpack.c.bf16 %v232_v53, %v231_v52 }
  0x33   :  { %2881 = vmatpush3.bf16.msra.mxu1 %v2880_v51  ;;  %v2900_v51 = vpack.c.bf16 %v182_v43, %v181_v42  ;;  %v2902_v55 = vpack.c.bf16 %v200_v46, %v199_v45  ;;  %v215_v58 = vld [vmem:[%s5219_s1 + $0x510] sm:$0xff]  ;;  %v202_v62 = vld [vmem:[%s5219_s1 + $0x4a8] sm:$0xff]  ;;  %v233_v4 = vld [vmem:[%s5219_s1 + $0x5a0] sm:$0xff] }
  0x34   :  { %2883 = vmatprep.subr.bf16.mxu1 %v2882_v56  ;;  %v183_v56 = vld [vmem:[%s5219_s1 + $0x410] sm:$0xff]  ;;  %v2906_v9 = vpack.c.bf16 %v202_v62, %v201_v60  ;;  %v186_v11 = vld [vmem:[%s5219_s1 + $0x428] sm:$0xff]  ;;  %v217_v20 = vld [vmem:[%s5219_s1 + $0x520] sm:$0xff] }
  0x35   :  { %2853 = vmatpush3.bf16.msra.mxu0 %v2852_v61  ;;  %v216_v61 = vld [vmem:[%s5219_s1 + $0x518] sm:$0xff]  ;;  %v23_v0 = vld [vmem:[%s5218_s0 + $0x10] sm:$0xff]  ;;  %v2904_v3 = vpack.c.bf16 %v184_v57, %v183_v56  ;;  %v218_v21 = vld [vmem:[%s5219_s1 + $0x528] sm:$0xff] }
  0x36   :  { %2855 = vmatprep.subr.bf16.mxu0 %v2854_v2  ;;  %v31_v1 = vld [vmem:[%s5218_s0 + $0x50] sm:$0xff]  ;;  %v2936_v14 = vpack.c.bf16 %v216_v61, %v215_v58  ;;  %v236_v27 = vld [vmem:[%s5219_s1 + $0x5b8] sm:$0xff]  ;;  %v2940_v33 = vpack.c.bf16 %v218_v21, %v217_v20  ;;  %v205_v34 = vld [vmem:[%s5219_s1 + $0x4c0] sm:$0xff] }
  0x37   :  { %2885 = vmatpush3.bf16.msra.mxu1 %v2884_v5  ;;  %v39_v2 = vld [vmem:[%s5218_s0 + $0x90] sm:$0xff]  ;;  %v234_v5 = vld [vmem:[%s5219_s1 + $0x5a8] sm:$0xff]  ;;  %v676_v7 = vcombine.low %v23_v0, %v31_v1  ;;  %v677_v8 = vcombine.high %v23_v0, %v31_v1  ;;  %v188_v30 = vld [vmem:[%s5219_s1 + $0x438] sm:$0xff] }
  0x38   :  { %2887 = vmatprep.subr.bf16.mxu1 %v2886_v10  ;;  %v47_v6 = vld [vmem:[%s5218_s0 + $0xd0] sm:$0xff]  ;;  %v185_v10 = vld [vmem:[%s5219_s1 + $0x420] sm:$0xff]  ;;  %v222_v50 = vld [vmem:[%s5219_s1 + $0x548] sm:$0xff] }
  0x39   :  { %2857 = vmatpush3.bf16.msra.mxu0 %v2856_v13  ;;  %v678_v12 = vcombine.low %v39_v2, %v47_v6  ;;  %v679_v13 = vcombine.high %v39_v2, %v47_v6  ;;  %v203_v15 = vld [vmem:[%s5219_s1 + $0x4b0] sm:$0xff]  ;;  %v3893_v17 = vrot.slane %v676_v7, %v3545_v22  ;;  %v3896_v18 = vrot.slane %v677_v8, %v3545_v22  ;;  %v237_v40 = vld [vmem:[%s5219_s1 + $0x5c0] sm:$0xff]  ;;  %v240_v53 = vld [vmem:[%s5219_s1 + $0x5d8] sm:$0xff] }
  0x3a   :  { %2859 = vmatprep.subr.bf16.mxu0 %v2858_v16  ;;  %v204_v16 = vld [vmem:[%s5219_s1 + $0x4b8] sm:$0xff]  ;;  %v2908_v25 = vpack.c.bf16 %v186_v11, %v185_v10  ;;  %v219_v37 = vld [vmem:[%s5219_s1 + $0x530] sm:$0xff]  ;;  %v189_v43 = vld [vmem:[%s5219_s1 + $0x440] sm:$0xff] }
  0x3b   :  { %2889 = vmatpush3.bf16.msra.mxu1 %v2888_v19  ;;  %v2938_v19 = vpack.c.bf16 %v234_v5, %v233_v4  ;;  %v3908_v24 = vrot.slane %v679_v13, %v3545_v22  ;;  %v2910_v28 = vpack.c.bf16 %v204_v16, %v203_v15  ;;  %v207_v46 = vld [vmem:[%s5219_s1 + $0x4d0] sm:$0xff]  ;;  %v221_v49 = vld [vmem:[%s5219_s1 + $0x540] sm:$0xff]  ;;  %v192_v56 = vld [vmem:[%s5219_s1 + $0x458] sm:$0xff] }
  0x3c   :  { %2891 = vmatprep.subr.bf16.mxu1 %v2890_v23  ;;  %v3905_v23 = vrot.slane %v678_v12, %v3545_v22  ;;  %v239_v52 = vld [vmem:[%s5219_s1 + $0x5d0] sm:$0xff]  ;;  %v2948_v57 = vpack.c.bf16 %v222_v50, %v221_v49  ;;  %v209_v58 = vld [vmem:[%s5219_s1 + $0x4e0] sm:$0xff]  ;;  %v224_v62 = vld [vmem:[%s5219_s1 + $0x558] sm:$0xff] }
  0x3d   :  { %2861 = vmatpush3.bf16.msra.mxu0 %v2860_v26  ;;  %v235_v26 = vld [vmem:[%s5219_s1 + $0x5b0] sm:$0xff]  ;;  %v2950_v61 = vpack.c.bf16 %v240_v53, %v239_v52  ;;  %v241_v0 = vld [vmem:[%s5219_s1 + $0x5e0] sm:$0xff]  ;;  %v242_v1 = vld [vmem:[%s5219_s1 + $0x5e8] sm:$0xff] }
  0x3e   :  { %2863 = vmatprep.subr.bf16.mxu0 %v2862_v29  ;;  %v187_v29 = vld [vmem:[%s5219_s1 + $0x430] sm:$0xff]  ;;  %v709_v31 = vcombine.high %v3893_v17, %v3905_v23  ;;  %v2942_v36 = vpack.c.bf16 %v236_v27, %v235_v26  ;;  %v194_v4 = vld [vmem:[%s5219_s1 + $0x468] sm:$0xff]  ;;  %v225_v6 = vld [vmem:[%s5219_s1 + $0x560] sm:$0xff]  ;;  %v708_v49 = vcombine.low %v3893_v17, %v3905_v23  ;;  %v710_v23 = vcombine.low %v3896_v18, %v3908_v24 }
  0x3f   :  { %2893 = vmatpush3.bf16.msra.mxu1 %v2892_v32  ;;  %v711_v32 = vcombine.high %v3896_v18, %v3908_v24  ;;  %v2912_v39 = vpack.c.bf16 %v188_v30, %v187_v29  ;;  %v223_v60 = vld [vmem:[%s5219_s1 + $0x550] sm:$0xff]  ;;  %v212_v8 = vld [vmem:[%s5219_s1 + $0x4f8] sm:$0xff]  ;;  %v226_v10 = vld [vmem:[%s5219_s1 + $0x568] sm:$0xff] }
  0x40   :  { %2895 = vmatprep.subr.bf16.mxu1 %v2894_v35  ;;  %v206_v35 = vld [vmem:[%s5219_s1 + $0x4c8] sm:$0xff]  ;;  %v2952_v5 = vpack.c.bf16 %v224_v62, %v223_v60  ;;  %v211_v7 = vld [vmem:[%s5219_s1 + $0x4f0] sm:$0xff]  ;;  %v244_v12 = vld [vmem:[%s5219_s1 + $0x5f8] sm:$0xff] }
  0x41   :  { %2865 = vmatpush3.bf16.msra.mxu0 %v2864_v38  ;;  %v220_v38 = vld [vmem:[%s5219_s1 + $0x538] sm:$0xff]  ;;  %v2914_v42 = vpack.c.bf16 %v206_v35, %v205_v34  ;;  %v243_v11 = vld [vmem:[%s5219_s1 + $0x5f0] sm:$0xff]  ;;  %v2926_v16 = vpack.c.bf16 %v212_v8, %v211_v7  ;;  %v262_v20 = vld [vmem:[%s5219_s1 + $0x688] sm:$0xff] }
  0x42   :  { %2899 = vmatprep.subr.bf16.mxu0 %v2898_v41  ;;  %v238_v41 = vld [vmem:[%s5219_s1 + $0x5c8] sm:$0xff]  ;;  %v2944_v45 = vpack.c.bf16 %v220_v38, %v219_v37  ;;  %v196_v15 = vld [vmem:[%s5219_s1 + $0x478] sm:$0xff]  ;;  %v2958_v26 = vpack.c.bf16 %v244_v12, %v243_v11  ;;  %v227_v30 = vld [vmem:[%s5219_s1 + $0x570] sm:$0xff] }
  0x43   :  { %2897 = vmatpush3.bf16.msra.mxu1 %v2896_v44  ;;  %v190_v44 = vld [vmem:[%s5219_s1 + $0x448] sm:$0xff]  ;;  %v24_v21 = vld [vmem:[%s5218_s0 + $0x18] sm:$0xff]  ;;  %v293_v37 = vld [vmem:[%s5219_s1 + $0x780] sm:$0xff] }
  0x44   :  { %1129 = vmatmul.mubr.f32.vlgmr.msra.gmra.mrb[2].mxu0 %v672_v47  ;;  %2931 = vmatprep.subr.bf16.mxu1 %v2930_v48  ;;  %v208_v47 = vld [vmem:[%s5219_s1 + $0x4d8] sm:$0xff]  ;;  %v2946_v48 = vpack.c.bf16 %v238_v41, %v237_v40  ;;  %v294_v38 = vld [vmem:[%s5219_s1 + $0x788] sm:$0xff]  ;;  %v245_v40 = vld [vmem:[%s5219_s1 + $0x600] sm:$0xff] }
  0x45   :  { %2901 = vmatpush3.bf16.msra.mxu0 %v2900_v51  ;;  %1268 = vmatprep.mubr.f32.mxu0 %v709_v31  ;;  %v2916_v51 = vpack.c.bf16 %v190_v44, %v189_v43  ;;  %v32_v27 = vld [vmem:[%s5218_s0 + $0x58] sm:$0xff]  ;;  %v246_v41 = vld [vmem:[%s5219_s1 + $0x608] sm:$0xff]  ;;  %v2994_v50 = vpack.c.bf16 %v294_v38, %v293_v37  ;;  %v279_v62 = vld [vmem:[%s5219_s1 + $0x710] sm:$0xff] }
  0x46   :  { %1199 = vmatmul.mubr.f32.vlgmr.msra.gmra.mrb[2].mxu1 %v674_v54  ;;  %2903 = vmatprep.subr.bf16.mxu0 %v2902_v55  ;;  %v2918_v54 = vpack.c.bf16 %v208_v47, %v207_v46  ;;  %v191_v55 = vld [vmem:[%s5219_s1 + $0x450] sm:$0xff]  ;;  %v48_v29 = vld [vmem:[%s5218_s0 + $0xd8] sm:$0xff]  ;;  %v713_v34 = vcombine.high %v24_v21, %v32_v27  ;;  %v278_v52 = vld [vmem:[%s5219_s1 + $0x708] sm:$0xff]  ;;  %v2964_v53 = vpack.c.bf16 %v246_v41, %v245_v40 }
  0x47   :  { %2933 = vmatpush3.bf16.msra.mxu1 %v2932_v59  ;;  %1338 = vmatprep.mubr.f32.mxu1 %v711_v32  ;;  %v210_v59 = vld [vmem:[%s5219_s1 + $0x4e8] sm:$0xff]  ;;  %v228_v31 = vld [vmem:[%s5219_s1 + $0x578] sm:$0xff]  ;;  %v712_v32 = vcombine.low %v24_v21, %v32_v27  ;;  %v267_v7 = vld [vmem:[%s5219_s1 + $0x6b0] sm:$0xff] }
  0x48   :  { %2935 = vmatprep.subr.bf16.mxu1 %v2934_v63  ;;  %v2920_v63 = vpack.c.bf16 %v192_v56, %v191_v55  ;;  %v2922_v2 = vpack.c.bf16 %v210_v59, %v209_v58  ;;  %v2960_v44 = vpack.c.bf16 %v228_v31, %v227_v30  ;;  %v264_v46 = vld [vmem:[%s5219_s1 + $0x698] sm:$0xff]  ;;  %v4071_v47 = vrot.slane %v713_v34, %v3545_v22  ;;  %v266_v60 = vld [vmem:[%s5219_s1 + $0x6a8] sm:$0xff]  ;;  %v269_v21 = vld [vmem:[%s5219_s1 + $0x6c0] sm:$0xff] }
  0x49   :  { %2905 = vmatpush3.bf16.msra.mxu0 %v2904_v3  ;;  %v193_v3 = vld [vmem:[%s5219_s1 + $0x460] sm:$0xff]  ;;  %v296_v55 = vld [vmem:[%s5219_s1 + $0x798] sm:$0xff]  ;;  %v282_v11 = vld [vmem:[%s5219_s1 + $0x728] sm:$0xff] }
  0x4a   :  { %2907 = vmatprep.subr.bf16.mxu0 %v2906_v9  ;;  %v2954_v9 = vpack.c.bf16 %v242_v1, %v241_v0  ;;  %v2924_v13 = vpack.c.bf16 %v194_v4, %v193_v3  ;;  %v248_v58 = vld [vmem:[%s5219_s1 + $0x618] sm:$0xff]  ;;  %v297_v1 = vld [vmem:[%s5219_s1 + $0x7a0] sm:$0xff]  ;;  %v283_v27 = vld [vmem:[%s5219_s1 + $0x730] sm:$0xff] }
  0x4b   :  { %2937 = vmatpush3.bf16.msra.mxu1 %v2936_v14  ;;  %v195_v14 = vld [vmem:[%s5219_s1 + $0x470] sm:$0xff]  ;;  %v249_v4 = vld [vmem:[%s5219_s1 + $0x620] sm:$0xff]  ;;  %v268_v8 = vld [vmem:[%s5219_s1 + $0x6b8] sm:$0xff] }
  0x4c   :  { %2939 = vmatprep.subr.bf16.mxu1 %v2938_v19  ;;  %v261_v19 = vld [vmem:[%s5219_s1 + $0x680] sm:$0xff]  ;;  %v302_v31 = vld [vmem:[%s5219_s1 + $0x7c8] sm:$0xff]  ;;  %v272_v37 = vld [vmem:[%s5219_s1 + $0x6d8] sm:$0xff] }
  0x4d   :  { %2909 = vmatpush3.bf16.msra.mxu0 %v2908_v25  ;;  %v2956_v25 = vpack.c.bf16 %v226_v10, %v225_v6  ;;  %v281_v10 = vld [vmem:[%s5219_s1 + $0x720] sm:$0xff]  ;;  %v254_v34 = vld [vmem:[%s5219_s1 + $0x648] sm:$0xff] }
  0x4e   :  { %2911 = vmatprep.subr.bf16.mxu0 %v2910_v28  ;;  %v40_v28 = vld [vmem:[%s5218_s0 + $0x98] sm:$0xff]  ;;  %v301_v30 = vld [vmem:[%s5219_s1 + $0x7c0] sm:$0xff]  ;;  %v286_v40 = vld [vmem:[%s5219_s1 + $0x748] sm:$0xff] }
  0x4f   :  { %2941 = vmatpush3.bf16.msra.mxu1 %v2940_v33  ;;  %v714_v33 = vcombine.low %v40_v28, %v48_v29  ;;  %v715_v35 = vcombine.high %v40_v28, %v48_v29  ;;  %v284_v28 = vld [vmem:[%s5219_s1 + $0x738] sm:$0xff]  ;;  %v3010_v38 = vpack.c.bf16 %v302_v31, %v301_v30 }
  0x50   :  { %2943 = vmatprep.subr.bf16.mxu1 %v2942_v36  ;;  %v2928_v36 = vpack.c.bf16 %v196_v15, %v195_v14  ;;  %v300_v14 = vld [vmem:[%s5219_s1 + $0x7b8] sm:$0xff]  ;;  %v2974_v15 = vpack.c.bf16 %v268_v8, %v267_v7 }
  0x51   :  { %2913 = vmatpush3.bf16.msra.mxu0 %v2912_v39  ;;  %v2962_v39 = vpack.c.bf16 %v262_v20, %v261_v19  ;;  %v4062_v43 = vrot.slane %v714_v33, %v3545_v22  ;;  %v252_v19 = vld [vmem:[%s5219_s1 + $0x638] sm:$0xff]  ;;  %v3004_v20 = vpack.c.bf16 %v282_v11, %v281_v10  ;;  %v253_v33 = vld [vmem:[%s5219_s1 + $0x640] sm:$0xff]  ;;  %v259_v11 = vld [vmem:[%s5219_s1 + $0x670] sm:$0xff] }
  0x52   :  { %2915 = vmatprep.subr.bf16.mxu0 %v2914_v42  ;;  %v4059_v42 = vrot.slane %v712_v32, %v3545_v22  ;;  %v2980_v41 = vpack.c.bf16 %v254_v34, %v253_v33  ;;  %v308_v7 = vld [vmem:[%s5219_s1 + $0x7f8] sm:$0xff]  ;;  %v310_v33 = vld [vmem:[%s5219_s1 + $0x808] sm:$0xff] }
  0x53   :  { %2945 = vmatpush3.bf16.msra.mxu1 %v2944_v45  ;;  %v263_v45 = vld [vmem:[%s5219_s1 + $0x690] sm:$0xff] }
  0x54   :  { %2947 = vmatprep.subr.bf16.mxu1 %v2946_v48  ;;  %v4074_v48 = vrot.slane %v715_v35, %v3545_v22  ;;  %v745_v17 = vcombine.high %v4059_v42, %v4062_v43  ;;  %v2966_v56 = vpack.c.bf16 %v264_v46, %v263_v45  ;;  %v3008_v35 = vpack.c.bf16 %v284_v28, %v283_v27  ;;  %v304_v45 = vld [vmem:[%s5219_s1 + $0x7d8] sm:$0xff]  ;;  %v357_v27 = vld [vmem:[%s5219_s1 + $0x980] sm:$0xff]  ;;  %v358_v28 = vld [vmem:[%s5219_s1 + $0x988] sm:$0xff] }
  0x55   :  { %2917 = vmatpush3.bf16.msra.mxu0 %v2916_v51  ;;  %v277_v51 = vld [vmem:[%s5219_s1 + $0x700] sm:$0xff] }
  0x56   :  { %2919 = vmatprep.subr.bf16.mxu0 %v2918_v54  ;;  %v295_v54 = vld [vmem:[%s5219_s1 + $0x790] sm:$0xff]  ;;  %v2996_v59 = vpack.c.bf16 %v278_v52, %v277_v51  ;;  %v747_v18 = vcombine.high %v4071_v47, %v4074_v48 }
  0x57   :  { %2949 = vmatpush3.bf16.msra.mxu1 %v2948_v57  ;;  %v247_v57 = vld [vmem:[%s5219_s1 + $0x610] sm:$0xff]  ;;  %v2998_v24 = vpack.c.bf16 %v296_v55, %v295_v54  ;;  %v274_v54 = vld [vmem:[%s5219_s1 + $0x6e8] sm:$0xff] }
  0x58   :  { %2951 = vmatprep.subr.bf16.mxu1 %v2950_v61  ;;  %v265_v61 = vld [vmem:[%s5219_s1 + $0x6a0] sm:$0xff]  ;;  %v2968_v0 = vpack.c.bf16 %v248_v58, %v247_v57  ;;  %v287_v52 = vld [vmem:[%s5219_s1 + $0x750] sm:$0xff] }
  0x59   :  { %2921 = vmatpush3.bf16.msra.mxu0 %v2920_v63  ;;  %v280_v63 = vld [vmem:[%s5219_s1 + $0x718] sm:$0xff]  ;;  %v2970_v3 = vpack.c.bf16 %v266_v60, %v265_v61  ;;  %v305_v58 = vld [vmem:[%s5219_s1 + $0x7e0] sm:$0xff] }
  0x5a   :  { %2923 = vmatprep.subr.bf16.mxu0 %v2922_v2  ;;  %v298_v2 = vld [vmem:[%s5219_s1 + $0x7a8] sm:$0xff]  ;;  %v3000_v6 = vpack.c.bf16 %v280_v63, %v279_v62  ;;  %v25_v61 = vld [vmem:[%s5218_s0 + $0x20] sm:$0xff] }
  0x5b   :  { %2953 = vmatpush3.bf16.msra.mxu1 %v2952_v5  ;;  %v250_v5 = vld [vmem:[%s5219_s1 + $0x628] sm:$0xff]  ;;  %v49_v62 = vld [vmem:[%s5218_s0 + $0xe0] sm:$0xff] }
  0x5c   :  { %2955 = vmatprep.subr.bf16.mxu1 %v2954_v9  ;;  %v3002_v9 = vpack.c.bf16 %v298_v2, %v297_v1  ;;  %v2972_v12 = vpack.c.bf16 %v250_v5, %v249_v4  ;;  %v276_v1 = vld [vmem:[%s5219_s1 + $0x6f8] sm:$0xff]  ;;  %v290_v4 = vld [vmem:[%s5219_s1 + $0x768] sm:$0xff] }
  0x5d   :  { %2925 = vmatpush3.bf16.msra.mxu0 %v2924_v13  ;;  %v299_v13 = vld [vmem:[%s5219_s1 + $0x7b0] sm:$0xff] }
  0x5e   :  { %2927 = vmatprep.subr.bf16.mxu0 %v2926_v16  ;;  %v251_v16 = vld [vmem:[%s5219_s1 + $0x630] sm:$0xff] }
  0x5f   :  { %2957 = vmatpush3.bf16.msra.mxu1 %v2956_v25  ;;  %v270_v25 = vld [vmem:[%s5219_s1 + $0x6c8] sm:$0xff]  ;;  %v2976_v29 = vpack.c.bf16 %v252_v19, %v251_v16 }
  0x60   :  { %2959 = vmatprep.subr.bf16.mxu1 %v2958_v26  ;;  %v3006_v26 = vpack.c.bf16 %v300_v14, %v299_v13  ;;  %v2978_v32 = vpack.c.bf16 %v270_v25, %v269_v21  ;;  %v325_v14 = vld [vmem:[%s5219_s1 + $0x880] sm:$0xff]  ;;  %v291_v21 = vld [vmem:[%s5219_s1 + $0x770] sm:$0xff]  ;;  %v292_v25 = vld [vmem:[%s5219_s1 + $0x778] sm:$0xff] }
  0x61   :  { %2929 = vmatpush3.bf16.msra.mxu0 %v2928_v36  ;;  %v271_v36 = vld [vmem:[%s5219_s1 + $0x6d0] sm:$0xff]  ;;  %v3024_v34 = vpack.c.bf16 %v292_v25, %v291_v21  ;;  %v318_v21 = vld [vmem:[%s5219_s1 + $0x848] sm:$0xff] }
  0x62   :  { %2963 = vmatprep.subr.bf16.mxu0 %v2962_v39  ;;  %v285_v39 = vld [vmem:[%s5219_s1 + $0x740] sm:$0xff]  ;;  %v2982_v46 = vpack.c.bf16 %v272_v37, %v271_v36  ;;  %v328_v36 = vld [vmem:[%s5219_s1 + $0x898] sm:$0xff] }
  0x63   :  { %2961 = vmatpush3.bf16.msra.mxu1 %v2960_v44  ;;  %v303_v44 = vld [vmem:[%s5219_s1 + $0x7d0] sm:$0xff]  ;;  %v3012_v51 = vpack.c.bf16 %v286_v40, %v285_v39  ;;  %v744_v39 = vcombine.low %v4059_v42, %v4062_v43  ;;  %v3058_v40 = vpack.c.bf16 %v358_v28, %v357_v27  ;;  %v746_v43 = vcombine.low %v4071_v47, %v4074_v48  ;;  %v336_v27 = vld [vmem:[%s5219_s1 + $0x8d8] sm:$0xff] }
  0x64   :  { %1269 = vmatmul.mubr.f32.vlgmr.msra.gmra.mrb[4].mxu0 %v708_v49  ;;  %2995 = vmatprep.subr.bf16.mxu1 %v2994_v50  ;;  %v255_v49 = vld [vmem:[%s5219_s1 + $0x650] sm:$0xff]  ;;  %v256_v50 = vld [vmem:[%s5219_s1 + $0x658] sm:$0xff]  ;;  %v3014_v55 = vpack.c.bf16 %v304_v45, %v303_v44  ;;  %v342_v44 = vld [vmem:[%s5219_s1 + $0x908] sm:$0xff] }
  0x65   :  { %2965 = vmatpush3.bf16.msra.mxu0 %v2964_v53  ;;  %1408 = vmatprep.mubr.f32.mxu0 %v745_v17  ;;  %v273_v53 = vld [vmem:[%s5219_s1 + $0x6e0] sm:$0xff]  ;;  %v288_v17 = vld [vmem:[%s5219_s1 + $0x758] sm:$0xff]  ;;  %v2984_v57 = vpack.c.bf16 %v256_v50, %v255_v49 }
  0x66   :  { %1339 = vmatmul.mubr.f32.vlgmr.msra.gmra.mrb[4].mxu1 %v710_v23  ;;  %2967 = vmatprep.subr.bf16.mxu0 %v2966_v56  ;;  %v257_v23 = vld [vmem:[%s5219_s1 + $0x660] sm:$0xff]  ;;  %v258_v56 = vld [vmem:[%s5219_s1 + $0x668] sm:$0xff]  ;;  %v2986_v60 = vpack.c.bf16 %v274_v54, %v273_v53  ;;  %v3016_v63 = vpack.c.bf16 %v288_v17, %v287_v52  ;;  %v360_v49 = vld [vmem:[%s5219_s1 + $0x998] sm:$0xff] }
  0x67   :  { %2997 = vmatpush3.bf16.msra.mxu1 %v2996_v59  ;;  %1478 = vmatprep.mubr.f32.mxu1 %v747_v18  ;;  %v306_v59 = vld [vmem:[%s5219_s1 + $0x7e8] sm:$0xff]  ;;  %v33_v18 = vld [vmem:[%s5218_s0 + $0x60] sm:$0xff]  ;;  %v2988_v5 = vpack.c.bf16 %v258_v56, %v257_v23  ;;  %v312_v52 = vld [vmem:[%s5219_s1 + $0x818] sm:$0xff] }
  0x68   :  { %2999 = vmatprep.subr.bf16.mxu1 %v2998_v24  ;;  %v41_v24 = vld [vmem:[%s5218_s0 + $0xa0] sm:$0xff]  ;;  %v3018_v2 = vpack.c.bf16 %v306_v59, %v305_v58  ;;  %v748_v8 = vcombine.low %v25_v61, %v33_v18  ;;  %v749_v16 = vcombine.high %v25_v61, %v33_v18  ;;  %v343_v17 = vld [vmem:[%s5219_s1 + $0x910] sm:$0xff]  ;;  %v344_v23 = vld [vmem:[%s5219_s1 + $0x918] sm:$0xff] }
  0x69   :  { %2969 = vmatpush3.bf16.msra.mxu0 %v2968_v0  ;;  %v275_v0 = vld [vmem:[%s5219_s1 + $0x6f0] sm:$0xff]  ;;  %v751_v19 = vcombine.high %v41_v24, %v49_v62  ;;  %v329_v54 = vld [vmem:[%s5219_s1 + $0x8a0] sm:$0xff]  ;;  %v362_v58 = vld [vmem:[%s5219_s1 + $0x9a8] sm:$0xff]  ;;  %v3064_v18 = vpack.c.bf16 %v344_v23, %v343_v17 }
  0x6a   :  { %2971 = vmatprep.subr.bf16.mxu0 %v2970_v3  ;;  %v289_v3 = vld [vmem:[%s5219_s1 + $0x760] sm:$0xff]  ;;  %v2990_v10 = vpack.c.bf16 %v276_v1, %v275_v0  ;;  %v4295_v37 = vrot.slane %v749_v16, %v3545_v22  ;;  %v346_v1 = vld [vmem:[%s5219_s1 + $0x928] sm:$0xff] }
  0x6b   :  { %3001 = vmatpush3.bf16.msra.mxu1 %v3000_v6  ;;  %v307_v6 = vld [vmem:[%s5219_s1 + $0x7f0] sm:$0xff]  ;;  %v3020_v13 = vpack.c.bf16 %v290_v4, %v289_v3  ;;  %v313_v61 = vld [vmem:[%s5219_s1 + $0x820] sm:$0xff]  ;;  %v364_v4 = vld [vmem:[%s5219_s1 + $0x9b8] sm:$0xff] }
  0x6c   :  { %3003 = vmatprep.subr.bf16.mxu1 %v3002_v9  ;;  %v750_v9 = vcombine.low %v41_v24, %v49_v62  ;;  %v331_v24 = vld [vmem:[%s5219_s1 + $0x8b0] sm:$0xff]  ;;  %v332_v62 = vld [vmem:[%s5219_s1 + $0x8b8] sm:$0xff]  ;;  %v345_v0 = vld [vmem:[%s5219_s1 + $0x920] sm:$0xff] }
  0x6d   :  { %2973 = vmatpush3.bf16.msra.mxu0 %v2972_v12  ;;  %v260_v12 = vld [vmem:[%s5219_s1 + $0x678] sm:$0xff]  ;;  %v363_v3 = vld [vmem:[%s5219_s1 + $0x9b0] sm:$0xff]  ;;  %v366_v16 = vld [vmem:[%s5219_s1 + $0x9c8] sm:$0xff] }
  0x6e   :  { %2975 = vmatprep.subr.bf16.mxu0 %v2974_v15  ;;  %v326_v15 = vld [vmem:[%s5219_s1 + $0x888] sm:$0xff]  ;;  %v4280_v30 = vrot.slane %v750_v9, %v3545_v22  ;;  %v333_v9 = vld [vmem:[%s5219_s1 + $0x8c0] sm:$0xff] }
  0x6f   :  { %3005 = vmatpush3.bf16.msra.mxu1 %v3004_v20  ;;  %v3022_v20 = vpack.c.bf16 %v308_v7, %v307_v6  ;;  %v3026_v31 = vpack.c.bf16 %v326_v15, %v325_v14  ;;  %v315_v6 = vld [vmem:[%s5219_s1 + $0x830] sm:$0xff]  ;;  %v316_v7 = vld [vmem:[%s5219_s1 + $0x838] sm:$0xff]  ;;  %v365_v15 = vld [vmem:[%s5219_s1 + $0x9c0] sm:$0xff] }
  0x70   :  { %3007 = vmatprep.subr.bf16.mxu1 %v3006_v26  ;;  %v2992_v26 = vpack.c.bf16 %v260_v12, %v259_v11  ;;  %v3070_v11 = vpack.c.bf16 %v364_v4, %v363_v3  ;;  %v347_v12 = vld [vmem:[%s5219_s1 + $0x930] sm:$0xff]  ;;  %v3040_v14 = vpack.c.bf16 %v316_v7, %v315_v6  ;;  %v3074_v28 = vpack.c.bf16 %v366_v16, %v365_v15  ;;  %v50_v17 = vld [vmem:[%s5218_s0 + $0xe8] sm:$0xff]  ;;  %v389_v4 = vld [vmem:[%s5219_s1 + $0xa80] sm:$0xff] }
  0x71   :  { %2977 = vmatpush3.bf16.msra.mxu0 %v2976_v29  ;;  %v4277_v29 = vrot.slane %v748_v8, %v3545_v22  ;;  %v3068_v8 = vpack.c.bf16 %v346_v1, %v345_v0  ;;  %v323_v1 = vld [vmem:[%s5219_s1 + $0x870] sm:$0xff] }
  0x72   :  { %2979 = vmatprep.subr.bf16.mxu0 %v2978_v32  ;;  %v309_v32 = vld [vmem:[%s5219_s1 + $0x800] sm:$0xff] }
  0x73   :  { %3009 = vmatpush3.bf16.msra.mxu1 %v3008_v35  ;;  %v327_v35 = vld [vmem:[%s5219_s1 + $0x890] sm:$0xff]  ;;  %v3028_v45 = vpack.c.bf16 %v310_v33, %v309_v32  ;;  %v781_v42 = vcombine.high %v4277_v29, %v4280_v30  ;;  %v350_v32 = vld [vmem:[%s5219_s1 + $0x948] sm:$0xff] }
  0x74   :  { %3011 = vmatprep.subr.bf16.mxu1 %v3010_v38  ;;  %v4298_v38 = vrot.slane %v751_v19, %v3545_v22  ;;  %v3030_v50 = vpack.c.bf16 %v328_v36, %v327_v35  ;;  %v368_v35 = vld [vmem:[%s5219_s1 + $0x9d8] sm:$0xff] }
  0x75   :  { %2981 = vmatpush3.bf16.msra.mxu0 %v2980_v41  ;;  %v341_v41 = vld [vmem:[%s5219_s1 + $0x900] sm:$0xff] }
  0x76   :  { %2983 = vmatprep.subr.bf16.mxu0 %v2982_v46  ;;  %v359_v46 = vld [vmem:[%s5219_s1 + $0x990] sm:$0xff]  ;;  %v3060_v53 = vpack.c.bf16 %v342_v44, %v341_v41  ;;  %v783_v47 = vcombine.high %v4295_v37, %v4298_v38 }
  0x77   :  { %3013 = vmatpush3.bf16.msra.mxu1 %v3012_v51  ;;  %v311_v51 = vld [vmem:[%s5219_s1 + $0x810] sm:$0xff]  ;;  %v3062_v48 = vpack.c.bf16 %v360_v49, %v359_v46  ;;  %v338_v46 = vld [vmem:[%s5219_s1 + $0x8e8] sm:$0xff] }
  0x78   :  { %3015 = vmatprep.subr.bf16.mxu1 %v3014_v55  ;;  %v330_v55 = vld [vmem:[%s5219_s1 + $0x8a8] sm:$0xff]  ;;  %v3032_v56 = vpack.c.bf16 %v312_v52, %v311_v51  ;;  %v351_v44 = vld [vmem:[%s5219_s1 + $0x950] sm:$0xff]  ;;  %v369_v52 = vld [vmem:[%s5219_s1 + $0x9e0] sm:$0xff] }
  0x79   :  { %2985 = vmatpush3.bf16.msra.mxu0 %v2984_v57  ;;  %v361_v57 = vld [vmem:[%s5219_s1 + $0x9a0] sm:$0xff]  ;;  %v3034_v59 = vpack.c.bf16 %v330_v55, %v329_v54  ;;  %v26_v54 = vld [vmem:[%s5218_s0 + $0x28] sm:$0xff] }
  0x7a   :  { %2987 = vmatprep.subr.bf16.mxu0 %v2986_v60  ;;  %v314_v60 = vld [vmem:[%s5219_s1 + $0x828] sm:$0xff] }
  0x7b   :  { %3017 = vmatpush3.bf16.msra.mxu1 %v3016_v63  ;;  %v3066_v63 = vpack.c.bf16 %v362_v58, %v361_v57  ;;  %v340_v57 = vld [vmem:[%s5219_s1 + $0x8f8] sm:$0xff] }
  0x7c   :  { %3019 = vmatprep.subr.bf16.mxu1 %v3018_v2  ;;  %v3036_v2 = vpack.c.bf16 %v314_v60, %v313_v61  ;;  %v354_v61 = vld [vmem:[%s5219_s1 + $0x968] sm:$0xff] }
  0x7d   :  { %2989 = vmatpush3.bf16.msra.mxu0 %v2988_v5  ;;  %v3038_v5 = vpack.c.bf16 %v332_v62, %v331_v24  ;;  %v372_v24 = vld [vmem:[%s5219_s1 + $0x9f8] sm:$0xff] }
  0x7e   :  { %2991 = vmatprep.subr.bf16.mxu0 %v2990_v10  ;;  %v334_v10 = vld [vmem:[%s5219_s1 + $0x8c8] sm:$0xff] }
  0x7f   :  { %3021 = vmatpush3.bf16.msra.mxu1 %v3020_v13  ;;  %v348_v13 = vld [vmem:[%s5219_s1 + $0x938] sm:$0xff]  ;;  %v3042_v19 = vpack.c.bf16 %v334_v10, %v333_v9  ;;  %v355_v9 = vld [vmem:[%s5219_s1 + $0x970] sm:$0xff] }
  0x80   :  { %3023 = vmatprep.subr.bf16.mxu1 %v3022_v20  ;;  %v317_v20 = vld [vmem:[%s5219_s1 + $0x840] sm:$0xff]  ;;  %v3072_v25 = vpack.c.bf16 %v348_v13, %v347_v12  ;;  %v356_v10 = vld [vmem:[%s5219_s1 + $0x978] sm:$0xff]  ;;  %v422_v13 = vld [vmem:[%s5219_s1 + $0xb88] sm:$0xff] }
  0x81   :  { %2993 = vmatpush3.bf16.msra.mxu0 %v2992_v26  ;;  %v335_v26 = vld [vmem:[%s5219_s1 + $0x8d0] sm:$0xff]  ;;  %v3044_v33 = vpack.c.bf16 %v318_v21, %v317_v20  ;;  %v421_v12 = vld [vmem:[%s5219_s1 + $0xb80] sm:$0xff]  ;;  %v374_v20 = vld [vmem:[%s5219_s1 + $0xa08] sm:$0xff]  ;;  %v3088_v21 = vpack.c.bf16 %v356_v10, %v355_v9 }
  0x82   :  { %3027 = vmatprep.subr.bf16.mxu0 %v3026_v31  ;;  %v349_v31 = vld [vmem:[%s5219_s1 + $0x940] sm:$0xff]  ;;  %v3046_v36 = vpack.c.bf16 %v336_v27, %v335_v26  ;;  %v392_v26 = vld [vmem:[%s5219_s1 + $0xa98] sm:$0xff]  ;;  %v382_v9 = vld [vmem:[%s5219_s1 + $0xa48] sm:$0xff] }
  0x83   :  { %3025 = vmatpush3.bf16.msra.mxu1 %v3024_v34  ;;  %v367_v34 = vld [vmem:[%s5219_s1 + $0x9d0] sm:$0xff]  ;;  %v3076_v41 = vpack.c.bf16 %v350_v32, %v349_v31  ;;  %v780_v31 = vcombine.low %v4277_v29, %v4280_v30  ;;  %v3122_v32 = vpack.c.bf16 %v422_v13, %v421_v12  ;;  %v782_v30 = vcombine.low %v4295_v37, %v4298_v38  ;;  %v400_v12 = vld [vmem:[%s5219_s1 + $0xad8] sm:$0xff] }
  0x84   :  { %1409 = vmatmul.mubr.f32.vlgmr.msra.gmra.mrb[6].mxu0 %v744_v39  ;;  %3059 = vmatprep.subr.bf16.mxu1 %v3058_v40  ;;  %v319_v39 = vld [vmem:[%s5219_s1 + $0x850] sm:$0xff]  ;;  %v320_v40 = vld [vmem:[%s5219_s1 + $0x858] sm:$0xff]  ;;  %v3078_v49 = vpack.c.bf16 %v368_v35, %v367_v34  ;;  %v406_v34 = vld [vmem:[%s5219_s1 + $0xb08] sm:$0xff] }
  0x85   :  { %3029 = vmatpush3.bf16.msra.mxu0 %v3028_v45  ;;  %1548 = vmatprep.mubr.f32.mxu0 %v781_v42  ;;  %v337_v45 = vld [vmem:[%s5219_s1 + $0x8e0] sm:$0xff]  ;;  %v352_v42 = vld [vmem:[%s5219_s1 + $0x958] sm:$0xff]  ;;  %v3048_v51 = vpack.c.bf16 %v320_v40, %v319_v39 }
  0x86   :  { %1479 = vmatmul.mubr.f32.vlgmr.msra.gmra.mrb[6].mxu1 %v746_v43  ;;  %3031 = vmatprep.subr.bf16.mxu0 %v3030_v50  ;;  %v321_v43 = vld [vmem:[%s5219_s1 + $0x860] sm:$0xff]  ;;  %v322_v50 = vld [vmem:[%s5219_s1 + $0x868] sm:$0xff]  ;;  %v3050_v55 = vpack.c.bf16 %v338_v46, %v337_v45  ;;  %v3080_v23 = vpack.c.bf16 %v352_v42, %v351_v44  ;;  %v424_v39 = vld [vmem:[%s5219_s1 + $0xb98] sm:$0xff] }
  0x87   :  { %3061 = vmatpush3.bf16.msra.mxu1 %v3060_v53  ;;  %1618 = vmatprep.mubr.f32.mxu1 %v783_v47  ;;  %v370_v53 = vld [vmem:[%s5219_s1 + $0x9e8] sm:$0xff]  ;;  %v3052_v60 = vpack.c.bf16 %v322_v50, %v321_v43  ;;  %v376_v44 = vld [vmem:[%s5219_s1 + $0xa18] sm:$0xff]  ;;  %v393_v46 = vld [vmem:[%s5219_s1 + $0xaa0] sm:$0xff] }
  0x88   :  { %3063 = vmatprep.subr.bf16.mxu1 %v3062_v48  ;;  %v34_v47 = vld [vmem:[%s5218_s0 + $0x68] sm:$0xff]  ;;  %v3082_v58 = vpack.c.bf16 %v370_v53, %v369_v52  ;;  %v407_v42 = vld [vmem:[%s5219_s1 + $0xb10] sm:$0xff]  ;;  %v408_v43 = vld [vmem:[%s5219_s1 + $0xb18] sm:$0xff] }
  0x89   :  { %3033 = vmatpush3.bf16.msra.mxu0 %v3032_v56  ;;  %v42_v48 = vld [vmem:[%s5218_s0 + $0xa8] sm:$0xff]  ;;  %v339_v56 = vld [vmem:[%s5219_s1 + $0x8f0] sm:$0xff]  ;;  %v784_v62 = vcombine.low %v26_v54, %v34_v47  ;;  %v785_v6 = vcombine.high %v26_v54, %v34_v47  ;;  %v377_v54 = vld [vmem:[%s5219_s1 + $0xa20] sm:$0xff]  ;;  %v3128_v47 = vpack.c.bf16 %v408_v43, %v407_v42 }
  0x8a   :  { %3035 = vmatprep.subr.bf16.mxu0 %v3034_v59  ;;  %v353_v59 = vld [vmem:[%s5219_s1 + $0x960] sm:$0xff]  ;;  %v3054_v0 = vpack.c.bf16 %v340_v57, %v339_v56  ;;  %v787_v7 = vcombine.high %v42_v48, %v50_v17  ;;  %v426_v52 = vld [vmem:[%s5219_s1 + $0xba8] sm:$0xff]  ;;  %v51_v42 = vld [vmem:[%s5218_s0 + $0xf0] sm:$0xff] }
  0x8b   :  { %3065 = vmatpush3.bf16.msra.mxu1 %v3064_v18  ;;  %v371_v18 = vld [vmem:[%s5219_s1 + $0x9f0] sm:$0xff]  ;;  %v3084_v3 = vpack.c.bf16 %v354_v61, %v353_v59  ;;  %v4519_v27 = vrot.slane %v785_v6, %v3545_v22  ;;  %v409_v56 = vld [vmem:[%s5219_s1 + $0xb20] sm:$0xff]  ;;  %v410_v57 = vld [vmem:[%s5219_s1 + $0xb28] sm:$0xff] }
  0x8c   :  { %3067 = vmatprep.subr.bf16.mxu1 %v3066_v63  ;;  %v786_v63 = vcombine.low %v42_v48, %v50_v17  ;;  %v395_v48 = vld [vmem:[%s5219_s1 + $0xab0] sm:$0xff]  ;;  %v396_v17 = vld [vmem:[%s5219_s1 + $0xab8] sm:$0xff]  ;;  %v430_v6 = vld [vmem:[%s5219_s1 + $0xbc8] sm:$0xff] }
  0x8d   :  { %3037 = vmatpush3.bf16.msra.mxu0 %v3036_v2  ;;  %v324_v2 = vld [vmem:[%s5219_s1 + $0x878] sm:$0xff]  ;;  %v427_v59 = vld [vmem:[%s5219_s1 + $0xbb0] sm:$0xff] }
  0x8e   :  { %3039 = vmatprep.subr.bf16.mxu0 %v3038_v5  ;;  %v390_v5 = vld [vmem:[%s5219_s1 + $0xa88] sm:$0xff]  ;;  %v4504_v15 = vrot.slane %v786_v63, %v3545_v22  ;;  %v428_v61 = vld [vmem:[%s5219_s1 + $0xbb8] sm:$0xff]  ;;  %v397_v63 = vld [vmem:[%s5219_s1 + $0xac0] sm:$0xff] }
  0x8f   :  { %3069 = vmatpush3.bf16.msra.mxu1 %v3068_v8  ;;  %v3086_v8 = vpack.c.bf16 %v372_v24, %v371_v18  ;;  %v3090_v16 = vpack.c.bf16 %v390_v5, %v389_v4  ;;  %v379_v18 = vld [vmem:[%s5219_s1 + $0xa30] sm:$0xff]  ;;  %v380_v24 = vld [vmem:[%s5219_s1 + $0xa38] sm:$0xff]  ;;  %v429_v5 = vld [vmem:[%s5219_s1 + $0xbc0] sm:$0xff] }
  0x90   :  { %3071 = vmatprep.subr.bf16.mxu1 %v3070_v11  ;;  %v3056_v11 = vpack.c.bf16 %v324_v2, %v323_v1  ;;  %v3134_v1 = vpack.c.bf16 %v428_v61, %v427_v59  ;;  %v411_v2 = vld [vmem:[%s5219_s1 + $0xb30] sm:$0xff]  ;;  %v3104_v4 = vpack.c.bf16 %v380_v24, %v379_v18  ;;  %v3138_v13 = vpack.c.bf16 %v430_v6, %v429_v5  ;;  %v453_v61 = vld [vmem:[%s5219_s1 + $0xc80] sm:$0xff] }
  0x91   :  { %3041 = vmatpush3.bf16.msra.mxu0 %v3040_v14  ;;  %v4501_v14 = vrot.slane %v784_v62, %v3545_v22  ;;  %v3132_v62 = vpack.c.bf16 %v410_v57, %v409_v56  ;;  %v387_v57 = vld [vmem:[%s5219_s1 + $0xa70] sm:$0xff] }
  0x92   :  { %3043 = vmatprep.subr.bf16.mxu0 %v3042_v19  ;;  %v373_v19 = vld [vmem:[%s5219_s1 + $0xa00] sm:$0xff] }
  0x93   :  { %3073 = vmatpush3.bf16.msra.mxu1 %v3072_v25  ;;  %v391_v25 = vld [vmem:[%s5219_s1 + $0xa90] sm:$0xff]  ;;  %v3092_v35 = vpack.c.bf16 %v374_v20, %v373_v19  ;;  %v817_v29 = vcombine.high %v4501_v14, %v4504_v15  ;;  %v414_v19 = vld [vmem:[%s5219_s1 + $0xb48] sm:$0xff] }
  0x94   :  { %3075 = vmatprep.subr.bf16.mxu1 %v3074_v28  ;;  %v4522_v28 = vrot.slane %v787_v7, %v3545_v22  ;;  %v3094_v40 = vpack.c.bf16 %v392_v26, %v391_v25  ;;  %v432_v25 = vld [vmem:[%s5219_s1 + $0xbd8] sm:$0xff] }
  0x95   :  { %3045 = vmatpush3.bf16.msra.mxu0 %v3044_v33  ;;  %v405_v33 = vld [vmem:[%s5219_s1 + $0xb00] sm:$0xff] }
  0x96   :  { %3047 = vmatprep.subr.bf16.mxu0 %v3046_v36  ;;  %v423_v36 = vld [vmem:[%s5219_s1 + $0xb90] sm:$0xff]  ;;  %v3124_v45 = vpack.c.bf16 %v406_v34, %v405_v33  ;;  %v819_v37 = vcombine.high %v4519_v27, %v4522_v28 }
  0x97   :  { %3077 = vmatpush3.bf16.msra.mxu1 %v3076_v41  ;;  %v375_v41 = vld [vmem:[%s5219_s1 + $0xa10] sm:$0xff]  ;;  %v3126_v38 = vpack.c.bf16 %v424_v39, %v423_v36  ;;  %v402_v36 = vld [vmem:[%s5219_s1 + $0xae8] sm:$0xff] }
  0x98   :  { %3079 = vmatprep.subr.bf16.mxu1 %v3078_v49  ;;  %v394_v49 = vld [vmem:[%s5219_s1 + $0xaa8] sm:$0xff]  ;;  %v3096_v50 = vpack.c.bf16 %v376_v44, %v375_v41  ;;  %v415_v34 = vld [vmem:[%s5219_s1 + $0xb50] sm:$0xff]  ;;  %v433_v44 = vld [vmem:[%s5219_s1 + $0xbe0] sm:$0xff] }
  0x99   :  { %3049 = vmatpush3.bf16.msra.mxu0 %v3048_v51  ;;  %v425_v51 = vld [vmem:[%s5219_s1 + $0xba0] sm:$0xff]  ;;  %v3098_v53 = vpack.c.bf16 %v394_v49, %v393_v46  ;;  %v27_v46 = vld [vmem:[%s5218_s0 + $0x30] sm:$0xff] }
  0x9a   :  { %3051 = vmatprep.subr.bf16.mxu0 %v3050_v55  ;;  %v378_v55 = vld [vmem:[%s5219_s1 + $0xa28] sm:$0xff] }
  0x9b   :  { %3081 = vmatpush3.bf16.msra.mxu1 %v3080_v23  ;;  %v3130_v23 = vpack.c.bf16 %v426_v52, %v425_v51  ;;  %v404_v51 = vld [vmem:[%s5219_s1 + $0xaf8] sm:$0xff] }
  0x9c   :  { %3083 = vmatprep.subr.bf16.mxu1 %v3082_v58  ;;  %v3100_v58 = vpack.c.bf16 %v378_v55, %v377_v54  ;;  %v418_v54 = vld [vmem:[%s5219_s1 + $0xb68] sm:$0xff] }
  0x9d   :  { %3053 = vmatpush3.bf16.msra.mxu0 %v3052_v60  ;;  %v3102_v60 = vpack.c.bf16 %v396_v17, %v395_v48  ;;  %v436_v48 = vld [vmem:[%s5219_s1 + $0xbf8] sm:$0xff] }
  0x9e   :  { %3055 = vmatprep.subr.bf16.mxu0 %v3054_v0  ;;  %v398_v0 = vld [vmem:[%s5219_s1 + $0xac8] sm:$0xff] }
  0x9f   :  { %3085 = vmatpush3.bf16.msra.mxu1 %v3084_v3  ;;  %v412_v3 = vld [vmem:[%s5219_s1 + $0xb38] sm:$0xff]  ;;  %v3106_v7 = vpack.c.bf16 %v398_v0, %v397_v63  ;;  %v419_v63 = vld [vmem:[%s5219_s1 + $0xb70] sm:$0xff] }
  0xa0   :  { %3087 = vmatprep.subr.bf16.mxu1 %v3086_v8  ;;  %v381_v8 = vld [vmem:[%s5219_s1 + $0xa40] sm:$0xff]  ;;  %v3136_v10 = vpack.c.bf16 %v412_v3, %v411_v2  ;;  %v420_v0 = vld [vmem:[%s5219_s1 + $0xb78] sm:$0xff]  ;;  %v486_v3 = vld [vmem:[%s5219_s1 + $0xd88] sm:$0xff] }
  0xa1   :  { %3057 = vmatpush3.bf16.msra.mxu0 %v3056_v11  ;;  %v399_v11 = vld [vmem:[%s5219_s1 + $0xad0] sm:$0xff]  ;;  %v3108_v20 = vpack.c.bf16 %v382_v9, %v381_v8  ;;  %v485_v2 = vld [vmem:[%s5219_s1 + $0xd80] sm:$0xff]  ;;  %v438_v8 = vld [vmem:[%s5219_s1 + $0xc08] sm:$0xff]  ;;  %v3152_v9 = vpack.c.bf16 %v420_v0, %v419_v63 }
  0xa2   :  { %3091 = vmatprep.subr.bf16.mxu0 %v3090_v16  ;;  %v413_v16 = vld [vmem:[%s5219_s1 + $0xb40] sm:$0xff]  ;;  %v3110_v26 = vpack.c.bf16 %v400_v12, %v399_v11  ;;  %v456_v11 = vld [vmem:[%s5219_s1 + $0xc98] sm:$0xff]  ;;  %v446_v63 = vld [vmem:[%s5219_s1 + $0xc48] sm:$0xff] }
  0xa3   :  { %3089 = vmatpush3.bf16.msra.mxu1 %v3088_v21  ;;  %v431_v21 = vld [vmem:[%s5219_s1 + $0xbd0] sm:$0xff]  ;;  %v3140_v33 = vpack.c.bf16 %v414_v19, %v413_v16  ;;  %v816_v16 = vcombine.low %v4501_v14, %v4504_v15  ;;  %v3186_v19 = vpack.c.bf16 %v486_v3, %v485_v2  ;;  %v818_v15 = vcombine.low %v4519_v27, %v4522_v28  ;;  %v464_v2 = vld [vmem:[%s5219_s1 + $0xcd8] sm:$0xff] }
  0xa4   :  { %1549 = vmatmul.mubr.f32.vlgmr.msra.gmra.mrb[8].mxu0 %v780_v31  ;;  %3123 = vmatprep.subr.bf16.mxu1 %v3122_v32  ;;  %v383_v31 = vld [vmem:[%s5219_s1 + $0xa50] sm:$0xff]  ;;  %v384_v32 = vld [vmem:[%s5219_s1 + $0xa58] sm:$0xff]  ;;  %v3142_v39 = vpack.c.bf16 %v432_v25, %v431_v21  ;;  %v470_v21 = vld [vmem:[%s5219_s1 + $0xd08] sm:$0xff] }
  0xa5   :  { %3093 = vmatpush3.bf16.msra.mxu0 %v3092_v35  ;;  %1688 = vmatprep.mubr.f32.mxu0 %v817_v29  ;;  %v401_v35 = vld [vmem:[%s5219_s1 + $0xae0] sm:$0xff]  ;;  %v416_v29 = vld [vmem:[%s5219_s1 + $0xb58] sm:$0xff]  ;;  %v3112_v41 = vpack.c.bf16 %v384_v32, %v383_v31 }
  0xa6   :  { %1619 = vmatmul.mubr.f32.vlgmr.msra.gmra.mrb[8].mxu1 %v782_v30  ;;  %3095 = vmatprep.subr.bf16.mxu0 %v3094_v40  ;;  %v385_v30 = vld [vmem:[%s5219_s1 + $0xa60] sm:$0xff]  ;;  %v386_v40 = vld [vmem:[%s5219_s1 + $0xa68] sm:$0xff]  ;;  %v3114_v49 = vpack.c.bf16 %v402_v36, %v401_v35  ;;  %v3144_v43 = vpack.c.bf16 %v416_v29, %v415_v34  ;;  %v488_v31 = vld [vmem:[%s5219_s1 + $0xd98] sm:$0xff] }
  0xa7   :  { %3125 = vmatpush3.bf16.msra.mxu1 %v3124_v45  ;;  %1758 = vmatprep.mubr.f32.mxu1 %v819_v37  ;;  %v434_v45 = vld [vmem:[%s5219_s1 + $0xbe8] sm:$0xff]  ;;  %v35_v37 = vld [vmem:[%s5218_s0 + $0x70] sm:$0xff]  ;;  %v3116_v55 = vpack.c.bf16 %v386_v40, %v385_v30  ;;  %v440_v34 = vld [vmem:[%s5219_s1 + $0xc18] sm:$0xff] }
  0xa8   :  { %3127 = vmatprep.subr.bf16.mxu1 %v3126_v38  ;;  %v43_v38 = vld [vmem:[%s5218_s0 + $0xb0] sm:$0xff]  ;;  %v3146_v52 = vpack.c.bf16 %v434_v45, %v433_v44  ;;  %v820_v17 = vcombine.low %v27_v46, %v35_v37  ;;  %v821_v18 = vcombine.high %v27_v46, %v35_v37  ;;  %v457_v36 = vld [vmem:[%s5219_s1 + $0xca0] sm:$0xff]  ;;  %v472_v30 = vld [vmem:[%s5219_s1 + $0xd18] sm:$0xff] }
  0xa9   :  { %3097 = vmatpush3.bf16.msra.mxu0 %v3096_v50  ;;  %v403_v50 = vld [vmem:[%s5219_s1 + $0xaf0] sm:$0xff]  ;;  %v823_v24 = vcombine.high %v43_v38, %v51_v42  ;;  %v490_v44 = vld [vmem:[%s5219_s1 + $0xda8] sm:$0xff]  ;;  %v441_v46 = vld [vmem:[%s5219_s1 + $0xc20] sm:$0xff] }
  0xaa   :  { %3099 = vmatprep.subr.bf16.mxu0 %v3098_v53  ;;  %v417_v53 = vld [vmem:[%s5219_s1 + $0xb60] sm:$0xff]  ;;  %v3118_v56 = vpack.c.bf16 %v404_v51, %v403_v50  ;;  %v4743_v12 = vrot.slane %v821_v18, %v3545_v22  ;;  %v471_v29 = vld [vmem:[%s5219_s1 + $0xd10] sm:$0xff]  ;;  %v474_v51 = vld [vmem:[%s5219_s1 + $0xd28] sm:$0xff] }
  0xab   :  { %3129 = vmatpush3.bf16.msra.mxu1 %v3128_v47  ;;  %v435_v47 = vld [vmem:[%s5219_s1 + $0xbf0] sm:$0xff]  ;;  %v3148_v59 = vpack.c.bf16 %v418_v54, %v417_v53  ;;  %v3192_v37 = vpack.c.bf16 %v472_v30, %v471_v29  ;;  %v473_v50 = vld [vmem:[%s5219_s1 + $0xd20] sm:$0xff]  ;;  %v492_v54 = vld [vmem:[%s5219_s1 + $0xdb8] sm:$0xff] }
  0xac   :  { %3131 = vmatprep.subr.bf16.mxu1 %v3130_v23  ;;  %v822_v23 = vcombine.low %v43_v38, %v51_v42  ;;  %v459_v38 = vld [vmem:[%s5219_s1 + $0xcb0] sm:$0xff]  ;;  %v460_v42 = vld [vmem:[%s5219_s1 + $0xcb8] sm:$0xff]  ;;  %v494_v18 = vld [vmem:[%s5219_s1 + $0xdc8] sm:$0xff] }
  0xad   :  { %3101 = vmatpush3.bf16.msra.mxu0 %v3100_v58  ;;  %v388_v58 = vld [vmem:[%s5219_s1 + $0xa78] sm:$0xff]  ;;  %v491_v53 = vld [vmem:[%s5219_s1 + $0xdb0] sm:$0xff] }
  0xae   :  { %3103 = vmatprep.subr.bf16.mxu0 %v3102_v60  ;;  %v454_v60 = vld [vmem:[%s5219_s1 + $0xc88] sm:$0xff]  ;;  %v4728_v5 = vrot.slane %v822_v23, %v3545_v22  ;;  %v461_v23 = vld [vmem:[%s5219_s1 + $0xcc0] sm:$0xff]  ;;  %v52_v29 = vld [vmem:[%s5218_s0 + $0xf8] sm:$0xff] }
  0xaf   :  { %3133 = vmatpush3.bf16.msra.mxu1 %v3132_v62  ;;  %v3150_v62 = vpack.c.bf16 %v436_v48, %v435_v47  ;;  %v3154_v6 = vpack.c.bf16 %v454_v60, %v453_v61  ;;  %v443_v47 = vld [vmem:[%s5219_s1 + $0xc30] sm:$0xff]  ;;  %v444_v48 = vld [vmem:[%s5219_s1 + $0xc38] sm:$0xff]  ;;  %v493_v60 = vld [vmem:[%s5219_s1 + $0xdc0] sm:$0xff] }
  0xb0   :  { %3135 = vmatprep.subr.bf16.mxu1 %v3134_v1  ;;  %v3120_v1 = vpack.c.bf16 %v388_v58, %v387_v57  ;;  %v3198_v57 = vpack.c.bf16 %v492_v54, %v491_v53  ;;  %v475_v58 = vld [vmem:[%s5219_s1 + $0xd30] sm:$0xff]  ;;  %v3168_v61 = vpack.c.bf16 %v444_v48, %v443_v47  ;;  %v3202_v3 = vpack.c.bf16 %v494_v18, %v493_v60  ;;  %v517_v54 = vld [vmem:[%s5219_s1 + $0xe80] sm:$0xff] }
  0xb1   :  { %3105 = vmatpush3.bf16.msra.mxu0 %v3104_v4  ;;  %v4725_v4 = vrot.slane %v820_v17, %v3545_v22  ;;  %v3196_v17 = vpack.c.bf16 %v474_v51, %v473_v50  ;;  %v451_v51 = vld [vmem:[%s5219_s1 + $0xc70] sm:$0xff] }
  0xb2   :  { %3107 = vmatprep.subr.bf16.mxu0 %v3106_v7  ;;  %v437_v7 = vld [vmem:[%s5219_s1 + $0xc00] sm:$0xff] }
  0xb3   :  { %3137 = vmatpush3.bf16.msra.mxu1 %v3136_v10  ;;  %v455_v10 = vld [vmem:[%s5219_s1 + $0xc90] sm:$0xff]  ;;  %v3156_v25 = vpack.c.bf16 %v438_v8, %v437_v7  ;;  %v853_v14 = vcombine.high %v4725_v4, %v4728_v5  ;;  %v478_v7 = vld [vmem:[%s5219_s1 + $0xd48] sm:$0xff] }
  0xb4   :  { %3139 = vmatprep.subr.bf16.mxu1 %v3138_v13  ;;  %v4746_v13 = vrot.slane %v823_v24, %v3545_v22  ;;  %v3158_v32 = vpack.c.bf16 %v456_v11, %v455_v10  ;;  %v496_v10 = vld [vmem:[%s5219_s1 + $0xdd8] sm:$0xff] }
  0xb5   :  { %3109 = vmatpush3.bf16.msra.mxu0 %v3108_v20  ;;  %v469_v20 = vld [vmem:[%s5219_s1 + $0xd00] sm:$0xff] }
  0xb6   :  { %3111 = vmatprep.subr.bf16.mxu0 %v3110_v26  ;;  %v487_v26 = vld [vmem:[%s5219_s1 + $0xd90] sm:$0xff]  ;;  %v3188_v35 = vpack.c.bf16 %v470_v21, %v469_v20  ;;  %v855_v27 = vcombine.high %v4743_v12, %v4746_v13 }
  0xb7   :  { %3141 = vmatpush3.bf16.msra.mxu1 %v3140_v33  ;;  %v439_v33 = vld [vmem:[%s5219_s1 + $0xc10] sm:$0xff]  ;;  %v3190_v28 = vpack.c.bf16 %v488_v31, %v487_v26  ;;  %v466_v26 = vld [vmem:[%s5219_s1 + $0xce8] sm:$0xff] }
  0xb8   :  { %3143 = vmatprep.subr.bf16.mxu1 %v3142_v39  ;;  %v458_v39 = vld [vmem:[%s5219_s1 + $0xca8] sm:$0xff]  ;;  %v3160_v40 = vpack.c.bf16 %v440_v34, %v439_v33  ;;  %v479_v21 = vld [vmem:[%s5219_s1 + $0xd50] sm:$0xff]  ;;  %v497_v34 = vld [vmem:[%s5219_s1 + $0xde0] sm:$0xff] }
  0xb9   :  { %3113 = vmatpush3.bf16.msra.mxu0 %v3112_v41  ;;  %v489_v41 = vld [vmem:[%s5219_s1 + $0xda0] sm:$0xff]  ;;  %v3162_v45 = vpack.c.bf16 %v458_v39, %v457_v36  ;;  %v28_v36 = vld [vmem:[%s5218_s0 + $0x38] sm:$0xff] }
  0xba   :  { %3115 = vmatprep.subr.bf16.mxu0 %v3114_v49  ;;  %v442_v49 = vld [vmem:[%s5219_s1 + $0xc28] sm:$0xff] }
  0xbb   :  { %3145 = vmatpush3.bf16.msra.mxu1 %v3144_v43  ;;  %v3194_v43 = vpack.c.bf16 %v490_v44, %v489_v41  ;;  %v468_v41 = vld [vmem:[%s5219_s1 + $0xcf8] sm:$0xff] }
  0xbc   :  { %3147 = vmatprep.subr.bf16.mxu1 %v3146_v52  ;;  %v3164_v52 = vpack.c.bf16 %v442_v49, %v441_v46  ;;  %v482_v46 = vld [vmem:[%s5219_s1 + $0xd68] sm:$0xff] }
  0xbd   :  { %3117 = vmatpush3.bf16.msra.mxu0 %v3116_v55  ;;  %v3166_v55 = vpack.c.bf16 %v460_v42, %v459_v38  ;;  %v500_v38 = vld [vmem:[%s5219_s1 + $0xdf8] sm:$0xff] }
  0xbe   :  { %3119 = vmatprep.subr.bf16.mxu0 %v3118_v56  ;;  %v462_v56 = vld [vmem:[%s5219_s1 + $0xcc8] sm:$0xff] }
  0xbf   :  { %3149 = vmatpush3.bf16.msra.mxu1 %v3148_v59  ;;  %v476_v59 = vld [vmem:[%s5219_s1 + $0xd38] sm:$0xff]  ;;  %v3170_v24 = vpack.c.bf16 %v462_v56, %v461_v23  ;;  %v483_v23 = vld [vmem:[%s5219_s1 + $0xd70] sm:$0xff] }
  0xc0   :  { %3151 = vmatprep.subr.bf16.mxu1 %v3150_v62  ;;  %v445_v62 = vld [vmem:[%s5219_s1 + $0xc40] sm:$0xff]  ;;  %v3200_v0 = vpack.c.bf16 %v476_v59, %v475_v58  ;;  %v484_v56 = vld [vmem:[%s5219_s1 + $0xd78] sm:$0xff]  ;;  %v550_v59 = vld [vmem:[%s5219_s1 + $0xf88] sm:$0xff] }
  0xc1   :  { %3121 = vmatpush3.bf16.msra.mxu0 %v3120_v1  ;;  %v463_v1 = vld [vmem:[%s5219_s1 + $0xcd0] sm:$0xff]  ;;  %v3172_v8 = vpack.c.bf16 %v446_v63, %v445_v62  ;;  %v549_v58 = vld [vmem:[%s5219_s1 + $0xf80] sm:$0xff]  ;;  %v502_v62 = vld [vmem:[%s5219_s1 + $0xe08] sm:$0xff]  ;;  %v3216_v63 = vpack.c.bf16 %v484_v56, %v483_v23 }
  0xc2   :  { %3155 = vmatprep.subr.bf16.mxu0 %v3154_v6  ;;  %v477_v6 = vld [vmem:[%s5219_s1 + $0xd40] sm:$0xff]  ;;  %v3174_v11 = vpack.c.bf16 %v464_v2, %v463_v1  ;;  %v520_v1 = vld [vmem:[%s5219_s1 + $0xe98] sm:$0xff]  ;;  %v527_v56 = vld [vmem:[%s5219_s1 + $0xed0] sm:$0xff] }
  0xc3   :  { %3153 = vmatpush3.bf16.msra.mxu1 %v3152_v9  ;;  %v495_v9 = vld [vmem:[%s5219_s1 + $0xdd0] sm:$0xff]  ;;  %v3204_v20 = vpack.c.bf16 %v478_v7, %v477_v6  ;;  %v852_v6 = vcombine.low %v4725_v4, %v4728_v5  ;;  %v3250_v7 = vpack.c.bf16 %v550_v59, %v549_v58  ;;  %v854_v5 = vcombine.low %v4743_v12, %v4746_v13  ;;  %v541_v59 = vld [vmem:[%s5219_s1 + $0xf40] sm:$0xff] }
  0xc4   :  { %1689 = vmatmul.mubr.f32.vlgmr.msra.gmra.mrb[10].mxu0 %v816_v16  ;;  %3187 = vmatprep.subr.bf16.mxu1 %v3186_v19  ;;  %v447_v16 = vld [vmem:[%s5219_s1 + $0xc50] sm:$0xff]  ;;  %v448_v19 = vld [vmem:[%s5219_s1 + $0xc58] sm:$0xff]  ;;  %v3206_v31 = vpack.c.bf16 %v496_v10, %v495_v9  ;;  %v534_v9 = vld [vmem:[%s5219_s1 + $0xf08] sm:$0xff] }
  0xc5   :  { %3157 = vmatpush3.bf16.msra.mxu0 %v3156_v25  ;;  %1828 = vmatprep.mubr.f32.mxu0 %v853_v14  ;;  %v465_v25 = vld [vmem:[%s5219_s1 + $0xce0] sm:$0xff]  ;;  %v480_v14 = vld [vmem:[%s5219_s1 + $0xd58] sm:$0xff]  ;;  %v3176_v33 = vpack.c.bf16 %v448_v19, %v447_v16  ;;  %v503_v19 = vld [vmem:[%s5219_s1 + $0xe10] sm:$0xff] }
  0xc6   :  { %1759 = vmatmul.mubr.f32.vlgmr.msra.gmra.mrb[10].mxu1 %v818_v15  ;;  %3159 = vmatprep.subr.bf16.mxu0 %v3158_v32  ;;  %v449_v15 = vld [vmem:[%s5219_s1 + $0xc60] sm:$0xff]  ;;  %v450_v32 = vld [vmem:[%s5219_s1 + $0xc68] sm:$0xff]  ;;  %v3178_v39 = vpack.c.bf16 %v466_v26, %v465_v25  ;;  %v3208_v30 = vpack.c.bf16 %v480_v14, %v479_v21  ;;  %v536_v14 = vld [vmem:[%s5219_s1 + $0xf18] sm:$0xff] }
  0xc7   :  { %3189 = vmatpush3.bf16.msra.mxu1 %v3188_v35  ;;  %1898 = vmatprep.mubr.f32.mxu1 %v855_v27  ;;  %v498_v35 = vld [vmem:[%s5219_s1 + $0xde8] sm:$0xff]  ;;  %v36_v27 = vld [vmem:[%s5218_s0 + $0x78] sm:$0xff]  ;;  %v3180_v49 = vpack.c.bf16 %v450_v32, %v449_v15  ;;  %v521_v25 = vld [vmem:[%s5219_s1 + $0xea0] sm:$0xff] }
  0xc8   :  { %3191 = vmatprep.subr.bf16.mxu1 %v3190_v28  ;;  %v44_v28 = vld [vmem:[%s5218_s0 + $0xb8] sm:$0xff]  ;;  %v3210_v44 = vpack.c.bf16 %v498_v35, %v497_v34  ;;  %v856_v42 = vcombine.low %v28_v36, %v36_v27  ;;  %v857_v47 = vcombine.high %v28_v36, %v36_v27  ;;  %v522_v26 = vld [vmem:[%s5219_s1 + $0xea8] sm:$0xff]  ;;  %v553_v32 = vld [vmem:[%s5219_s1 + $0xfa0] sm:$0xff] }
  0xc9   :  { %3161 = vmatpush3.bf16.msra.mxu0 %v3160_v40  ;;  %v467_v40 = vld [vmem:[%s5219_s1 + $0xcf0] sm:$0xff]  ;;  %v859_v48 = vcombine.high %v44_v28, %v52_v29  ;;  %v3226_v34 = vpack.c.bf16 %v522_v26, %v521_v25  ;;  %v505_v35 = vld [vmem:[%s5219_s1 + $0xe20] sm:$0xff]  ;;  %v506_v36 = vld [vmem:[%s5219_s1 + $0xe28] sm:$0xff] }
  0xca   :  { %3163 = vmatprep.subr.bf16.mxu0 %v3162_v45  ;;  %v481_v45 = vld [vmem:[%s5219_s1 + $0xd60] sm:$0xff]  ;;  %v3182_v50 = vpack.c.bf16 %v468_v41, %v467_v40  ;;  %v4967_v2 = vrot.slane %v857_v47, %v3545_v22  ;;  %v523_v27 = vld [vmem:[%s5219_s1 + $0xeb0] sm:$0xff]  ;;  %v538_v40 = vld [vmem:[%s5219_s1 + $0xf28] sm:$0xff]  ;;  %v3228_v41 = vpack.c.bf16 %v506_v36, %v505_v35 }
  0xcb   :  { %3193 = vmatpush3.bf16.msra.mxu1 %v3192_v37  ;;  %v499_v37 = vld [vmem:[%s5219_s1 + $0xdf0] sm:$0xff]  ;;  %v3212_v53 = vpack.c.bf16 %v482_v46, %v481_v45  ;;  %v556_v45 = vld [vmem:[%s5219_s1 + $0xfb8] sm:$0xff] }
  0xcc   :  { %3195 = vmatprep.subr.bf16.mxu1 %v3194_v43  ;;  %v858_v43 = vcombine.low %v44_v28, %v52_v29  ;;  %v524_v28 = vld [vmem:[%s5219_s1 + $0xeb8] sm:$0xff] }
  0xcd   :  { %3165 = vmatpush3.bf16.msra.mxu0 %v3164_v52  ;;  %v452_v52 = vld [vmem:[%s5219_s1 + $0xc78] sm:$0xff]  ;;  %v3230_v46 = vpack.c.bf16 %v524_v28, %v523_v27 }
  0xce   :  { %3167 = vmatprep.subr.bf16.mxu0 %v3166_v55  ;;  %v518_v55 = vld [vmem:[%s5219_s1 + $0xe88] sm:$0xff]  ;;  %v4952_v60 = vrot.slane %v858_v43, %v3545_v22  ;;  %v564_v27 = vld [vmem:[%s5219_s1 + $0xff8] sm:$0xff] }
  0xcf   :  { %3197 = vmatpush3.bf16.msra.mxu1 %v3196_v17  ;;  %v3214_v17 = vpack.c.bf16 %v500_v38, %v499_v37  ;;  %v3218_v18 = vpack.c.bf16 %v518_v55, %v517_v54  ;;  %v508_v37 = vld [vmem:[%s5219_s1 + $0xe38] sm:$0xff]  ;;  %v526_v43 = vld [vmem:[%s5219_s1 + $0xec8] sm:$0xff]  ;;  %v557_v54 = vld [vmem:[%s5219_s1 + $0xfc0] sm:$0xff] }
  0xd0   :  { %3199 = vmatprep.subr.bf16.mxu1 %v3198_v57  ;;  %v3184_v57 = vpack.c.bf16 %v452_v52, %v451_v51  ;;  %v539_v51 = vld [vmem:[%s5219_s1 + $0xf30] sm:$0xff]  ;;  %v540_v52 = vld [vmem:[%s5219_s1 + $0xf38] sm:$0xff]  ;;  %v558_v55 = vld [vmem:[%s5219_s1 + $0xfc8] sm:$0xff] }
  0xd1   :  { %3169 = vmatpush3.bf16.msra.mxu0 %v3168_v61  ;;  %v4949_v61 = vrot.slane %v856_v42, %v3545_v22  ;;  %v525_v42 = vld [vmem:[%s5219_s1 + $0xec0] sm:$0xff]  ;;  %v3264_v23 = vpack.c.bf16 %v540_v52, %v539_v51  ;;  %v3266_v58 = vpack.c.bf16 %v558_v55, %v557_v54 }
  0xd2   :  { %3171 = vmatprep.subr.bf16.mxu0 %v3170_v24  ;;  %v501_v24 = vld [vmem:[%s5219_s1 + $0xe00] sm:$0xff]  ;;  %v3234_v47 = vpack.c.bf16 %v526_v43, %v525_v42 }
  0xd3   :  { %3201 = vmatpush3.bf16.msra.mxu1 %v3200_v0  ;;  %v519_v0 = vld [vmem:[%s5219_s1 + $0xe90] sm:$0xff]  ;;  %v3220_v10 = vpack.c.bf16 %v502_v62, %v501_v24  ;;  %v889_v4 = vcombine.high %v4949_v61, %v4952_v60 }
  0xd4   :  { %3203 = vmatprep.subr.bf16.mxu1 %v3202_v3  ;;  %v4970_v3 = vrot.slane %v859_v48, %v3545_v22  ;;  %v551_v22 = vld [vmem:[%s5219_s1 + $0xf90] sm:$0xff]  ;;  %v3222_v16 = vpack.c.bf16 %v520_v1, %v519_v0  ;;  %v509_v48 = vld [vmem:[%s5219_s1 + $0xe40] sm:$0xff] }
  0xd5   :  { %3173 = vmatpush3.bf16.msra.mxu0 %v3172_v8  ;;  %v533_v8 = vld [vmem:[%s5219_s1 + $0xf00] sm:$0xff]  ;;  %v559_v62 = vld [vmem:[%s5219_s1 + $0xfd0] sm:$0xff] }
  0xd6   :  { %3175 = vmatprep.subr.bf16.mxu0 %v3174_v11  ;;  %v552_v11 = vld [vmem:[%s5219_s1 + $0xf98] sm:$0xff]  ;;  %v3252_v21 = vpack.c.bf16 %v534_v9, %v533_v8  ;;  %v891_v12 = vcombine.high %v4967_v2, %v4970_v3  ;;  %v511_v1 = vld [vmem:[%s5219_s1 + $0xe50] sm:$0xff]  ;;  %v529_v8 = vld [vmem:[%s5219_s1 + $0xee0] sm:$0xff]  ;;  %v890_v51 = vcombine.low %v4967_v2, %v4970_v3 }
  0xd7   :  { %3205 = vmatpush3.bf16.msra.mxu1 %v3204_v20  ;;  %v504_v20 = vld [vmem:[%s5219_s1 + $0xe18] sm:$0xff]  ;;  %v3254_v13 = vpack.c.bf16 %v552_v11, %v551_v22  ;;  %v530_v9 = vld [vmem:[%s5219_s1 + $0xee8] sm:$0xff]  ;;  %v543_v22 = vld [vmem:[%s5219_s1 + $0xf50] sm:$0xff] }
  0xd8   :  { %3207 = vmatprep.subr.bf16.mxu1 %v3206_v31  ;;  %v535_v31 = vld [vmem:[%s5219_s1 + $0xf10] sm:$0xff]  ;;  %v3224_v15 = vpack.c.bf16 %v504_v20, %v503_v19  ;;  %v544_v11 = vld [vmem:[%s5219_s1 + $0xf58] sm:$0xff]  ;;  %v3242_v19 = vpack.c.bf16 %v530_v9, %v529_v8  ;;  %v513_v20 = vld [vmem:[%s5219_s1 + $0xe60] sm:$0xff] }
  0xd9   :  { %3177 = vmatpush3.bf16.msra.mxu0 %v3176_v33  ;;  %v554_v33 = vld [vmem:[%s5219_s1 + $0xfa8] sm:$0xff]  ;;  %v3272_v26 = vpack.c.bf16 %v544_v11, %v543_v22  ;;  %v2045_v2 = vld [vmem:[%s5221_s3] sm:$0xff]  ;;  %v2052_v22 = vld [vmem:[%s5221_s3 + $0x38] sm:$0xff] }
  0xda   :  { %3179 = vmatprep.subr.bf16.mxu0 %v3178_v39  ;;  %v3256_v39 = vpack.c.bf16 %v536_v14, %v535_v31  ;;  %v3258_v29 = vpack.c.bf16 %v554_v33, %v553_v32  ;;  %v2156_v31 = vld [vmem:[%s5220_s2] ss:$0 sm:$0xff]  ;;  %v546_v33 = vld [vmem:[%s5219_s1 + $0xf68] sm:$0xff] }
  0xdb   :  { %3209 = vmatpush3.bf16.msra.mxu1 %v3208_v30  ;;  %v537_v30 = vld [vmem:[%s5219_s1 + $0xf20] sm:$0xff]  ;;  %v2046_v3 = vld [vmem:[%s5221_s3 + $0x8] sm:$0xff] }
  0xdc   :  { %3211 = vmatprep.subr.bf16.mxu1 %v3210_v44  ;;  %v555_v44 = vld [vmem:[%s5219_s1 + $0xfb0] sm:$0xff]  ;;  %v3260_v38 = vpack.c.bf16 %v538_v40, %v537_v30  ;;  %v545_v32 = vld [vmem:[%s5219_s1 + $0xf60] sm:$0xff]  ;;  %v516_v40 = vld [vmem:[%s5219_s1 + $0xe78] sm:$0xff] }
  0xdd   :  { %3181 = vmatpush3.bf16.msra.mxu0 %v3180_v49  ;;  %v507_v49 = vld [vmem:[%s5219_s1 + $0xe30] sm:$0xff]  ;;  %v2050_v8 = vld [vmem:[%s5221_s3 + $0x28] sm:$0xff] }
  0xde   :  { %3183 = vmatprep.subr.bf16.mxu0 %v3182_v50  ;;  %v3262_v50 = vpack.c.bf16 %v556_v45, %v555_v44  ;;  %v515_v30 = vld [vmem:[%s5219_s1 + $0xe70] sm:$0xff]  ;;  %v3276_v45 = vpack.c.bf16 %v546_v33, %v545_v32 }
  0xdf   :  { %3213 = vmatpush3.bf16.msra.mxu1 %v3212_v53  ;;  %v3232_v53 = vpack.c.bf16 %v508_v37, %v507_v49  ;;  %v547_v49 = vld [vmem:[%s5219_s1 + $0xf70] sm:$0xff]  ;;  %v548_v37 = vld [vmem:[%s5219_s1 + $0xf78] sm:$0xff]  ;;  %v3248_v42 = vpack.c.bf16 %v516_v40, %v515_v30 }
  0xe0   :  { %3215 = vmatprep.subr.bf16.mxu1 %v3214_v17  ;;  %v510_v17 = vld [vmem:[%s5219_s1 + $0xe48] sm:$0xff]  ;;  %v3280_v43 = vpack.c.bf16 %v548_v37, %v547_v49 }
  0xe1   :  { %3185 = vmatpush3.bf16.msra.mxu0 %v3184_v57  ;;  %v528_v57 = vld [vmem:[%s5219_s1 + $0xed8] sm:$0xff]  ;;  %v3236_v24 = vpack.c.bf16 %v510_v17, %v509_v48 }
  0xe2   :  { %3219 = vmatprep.subr.bf16.mxu0 %v3218_v18  ;;  %v542_v18 = vld [vmem:[%s5219_s1 + $0xf48] sm:$0xff]  ;;  %v3238_v0 = vpack.c.bf16 %v528_v57, %v527_v56 }
  0xe3   :  { %3217 = vmatpush3.bf16.msra.mxu1 %v3216_v63  ;;  %v560_v63 = vld [vmem:[%s5219_s1 + $0xfd8] sm:$0xff] }
  0xe4   :  { %1829 = vmatmul.mubr.f32.vlgmr.msra.gmra.mrb[12].mxu0 %v852_v6  ;;  %3251 = vmatprep.subr.bf16.mxu1 %v3250_v7  ;;  %v512_v6 = vld [vmem:[%s5219_s1 + $0xe58] sm:$0xff]  ;;  %v3268_v7 = vpack.c.bf16 %v542_v18, %v541_v59 }
  0xe5   :  { %3221 = vmatpush3.bf16.msra.mxu0 %v3220_v10  ;;  %1968 = vmatprep.mubr.f32.mxu0 %v889_v4  ;;  %v3270_v10 = vpack.c.bf16 %v560_v63, %v559_v62  ;;  %v3240_v4 = vpack.c.bf16 %v512_v6, %v511_v1  ;;  %v2047_v62 = vld [vmem:[%s5221_s3 + $0x10] sm:$0xff]  ;;  %v3338_v63 = vmov 0.0|0.0   ;;  %v2048_v1 = vld [vmem:[%s5221_s3 + $0x18] sm:$0xff] }
  0xe6   :  { %1899 = vmatmul.mubr.f32.vlgmr.msra.gmra.mrb[12].mxu1 %v854_v5  ;;  %3223 = vmatprep.subr.bf16.mxu0 %v3222_v16  ;;  %v561_v5 = vld [vmem:[%s5219_s1 + $0xfe0] sm:$0xff]  ;;  %v562_v16 = vld [vmem:[%s5219_s1 + $0xfe8] sm:$0xff]  ;;  %v3286_v6 = vpack.c.bf16 %v2048_v1, %v2047_v62 }
  0xe7   :  { %3253 = vmatpush3.bf16.msra.mxu1 %v3252_v21  ;;  %2038 = vmatprep.mubr.f32.mxu1 %v891_v12  ;;  %v514_v21 = vld [vmem:[%s5219_s1 + $0xe68] sm:$0xff]  ;;  %v531_v12 = vld [vmem:[%s5219_s1 + $0xef0] sm:$0xff] }
  0xe8   :  { %3255 = vmatprep.subr.bf16.mxu1 %v3254_v13  ;;  %v532_v13 = vld [vmem:[%s5219_s1 + $0xef8] sm:$0xff]  ;;  %v3244_v36 = vpack.c.bf16 %v514_v21, %v513_v20 }
  0xe9   :  { %3225 = vmatpush3.bf16.msra.mxu0 %v3224_v15  ;;  %v3274_v15 = vpack.c.bf16 %v562_v16, %v561_v5  ;;  %v2054_v5 = vld [vmem:[%s5221_s3 + $0x48] sm:$0xff]  ;;  %v2056_v20 = vld [vmem:[%s5221_s3 + $0x58] sm:$0xff] }
  0xea   :  { %3227 = vmatprep.subr.bf16.mxu0 %v3226_v34 }
  0xeb   :  { %3257 = vmatpush3.bf16.msra.mxu1 %v3256_v39  ;;  %v563_v39 = vld [vmem:[%s5219_s1 + $0xff0] sm:$0xff] }
  0xec   :  { %3259 = vmatprep.subr.bf16.mxu1 %v3258_v29  ;;  %v3246_v29 = vpack.c.bf16 %v532_v13, %v531_v12  ;;  %v2057_v12 = vld [vmem:[%s5221_s3 + $0x60] sm:$0xff]  ;;  %v2058_v13 = vld [vmem:[%s5221_s3 + $0x68] sm:$0xff] }
  0xed   :  { %3229 = vmatpush3.bf16.msra.mxu0 %v3228_v41 }
  0xee   :  { %3231 = vmatprep.subr.bf16.mxu0 %v3230_v46  ;;  %v3278_v46 = vpack.c.bf16 %v564_v27, %v563_v39 }
  0xef   :  { %3261 = vmatpush3.bf16.msra.mxu1 %v3260_v38 }
  0xf0   :  { %3263 = vmatprep.subr.bf16.mxu1 %v3262_v50  ;;  %v888_v50 = vcombine.low %v4949_v61, %v4952_v60 }
  0xf1   :  { %3233 = vmatpush3.bf16.msra.mxu0 %v3232_v53 }
  0xf2   :  { %3235 = vmatprep.subr.bf16.mxu0 %v3234_v47 }
  0xf3   :  { %3265 = vmatpush3.bf16.msra.mxu1 %v3264_v23 }
  0xf4   :  { %3267 = vmatprep.subr.bf16.mxu1 %v3266_v58 }
  0xf5   :  { %3237 = vmatpush3.bf16.msra.mxu0 %v3236_v24 }
  0xf6   :  { %3239 = vmatprep.subr.bf16.mxu0 %v3238_v0  ;;  %v3283_v0 = vpack.c.bf16 %v2046_v3, %v2045_v2 }
  0xf7   :  { %3269 = vmatpush3.bf16.msra.mxu1 %v3268_v7  ;;  %v2190_v25 = vpop.f32.mrb[0].mxu0  ;;  %v2049_v7 = vld [vmem:[%s5221_s3 + $0x20] sm:$0xff] }
  0xf8   :  { %v2191_v14 = vpop.f32.mrb[1].mxu0  ;;  %3271 = vmatprep.subr.bf16.mxu1 %v3270_v10  ;;  %v3289_v9 = vpack.c.bf16 %v2050_v8, %v2049_v7  ;;  %v2051_v10 = vld [vmem:[%s5221_s3 + $0x30] sm:$0xff] }
  0xf9   :  { %v2192_v34 = vadd.f32 %v2191_v14, %v2190_v25  ;;  %v2225_v35 = vpop.f32.mrb[0].mxu1  ;;  %3241 = vmatpush3.bf16.msra.mxu0 %v3240_v4  ;;  %v3292_v11 = vpack.c.bf16 %v2052_v22, %v2051_v10  ;;  %v2053_v4 = vld [vmem:[%s5221_s3 + $0x40] sm:$0xff] }
  0xfa   :  { %v2226_v28 = vpop.f32.mrb[1].mxu1  ;;  %3243 = vmatprep.subr.bf16.mxu0 %v3242_v19  ;;  %v3295_v16 = vpack.c.bf16 %v2054_v5, %v2053_v4  ;;  %v2055_v19 = vld [vmem:[%s5221_s3 + $0x50] sm:$0xff] }
  0xfb   :  { %v991_v41 = vadd.f32 %v2192_v34, %v2156_v31  ;;  %v2227_v44 = vadd.f32 %v2226_v28, %v2225_v35  ;;  %3273 = vmatpush3.bf16.msra.mxu1 %v3272_v26  ;;  %v3298_v21 = vpack.c.bf16 %v2056_v20, %v2055_v19  ;;  %v2059_v35 = vld [vmem:[%s5221_s3 + $0x70] sm:$0xff]  ;;  %v3340_v28 = vmov 0.0  }
  0xfc   :  { %3275 = vmatprep.subr.bf16.mxu1 %v3274_v15  ;;  %v3301_v15 = vpack.c.bf16 %v2058_v13, %v2057_v12 }
  0xfd   :  { %v1061_v38 = vadd.f32 %v2227_v44, %v991_v41  ;;  %3245 = vmatpush3.bf16.msra.mxu0 %v3244_v36  ;;  %v2060_v36 = vld [vmem:[%s5221_s3 + $0x78] sm:$0xff] }
  0xfe   :  { %3247 = vmatprep.subr.bf16.mxu0 %v3246_v29  ;;  %v3304_v27 = vpack.c.bf16 %v2060_v36, %v2059_v35 }
  0xff   :  { %3277 = vmatpush3.bf16.msra.mxu1 %v3276_v45 }
 0x100   :  { %3279 = vmatprep.subr.bf16.mxu1 %v3278_v46 }
 0x101   :  { %3249 = vmatpush3.bf16.msra.mxu0 %v3248_v42 }
 0x102   :  { %3282 = vmatprep.subr.bf16.mxu0 %v3338_v63 }
 0x103   :  { %3281 = vmatpush3.bf16.msra.mxu1 %v3280_v43 }
 0x104   :  { %1969 = vmatmul.mubr.f32.vlgmr.msra.gmra.mrb[14].mxu0 %v888_v50 }
 0x105   :  { %3284 = vmatpush3.bf16.msra.mxu0 %v3283_v0  ;;  %2767 = vmatprep.mubr.msk.f32.mxu0 %vm3339_vm0, %v3340_v28 }
 0x106   :  { %2039 = vmatmul.mubr.f32.vlgmr.msra.gmra.mrb[14].mxu1 %v890_v51  ;;  %3285 = vmatprep.subr.bf16.mxu0 %v3338_v63 }
 0x109   :  { %3287 = vmatpush3.bf16.msra.mxu0 %v3286_v6 }
 0x10a   :  { %3288 = vmatprep.subr.bf16.mxu0 %v3338_v63 }
 0x10d   :  { %3290 = vmatpush3.bf16.msra.mxu0 %v3289_v9 }
 0x10e   :  { %3291 = vmatprep.subr.bf16.mxu0 %v3338_v63 }
 0x111   :  { %3293 = vmatpush3.bf16.msra.mxu0 %v3292_v11 }
 0x112   :  { %3294 = vmatprep.subr.bf16.mxu0 %v3338_v63 }
 0x115   :  { %3296 = vmatpush3.bf16.msra.mxu0 %v3295_v16 }
 0x116   :  { %3297 = vmatprep.subr.bf16.mxu0 %v3338_v63 }
 0x117   :  { %v2260_v52 = vpop.f32.mrb[2].mxu0 }
 0x118   :  { %v2261_v53 = vpop.f32.mrb[3].mxu0 }
 0x119   :  { %v2262_v54 = vadd.f32 %v2261_v53, %v2260_v52  ;;  %v2295_v55 = vpop.f32.mrb[2].mxu1  ;;  %3299 = vmatpush3.bf16.msra.mxu0 %v3298_v21 }
 0x11a   :  { %v2296_v47 = vpop.f32.mrb[3].mxu1  ;;  %3300 = vmatprep.subr.bf16.mxu0 %v3338_v63 }
 0x11b   :  { %v1131_v48 = vadd.f32 %v2262_v54, %v1061_v38  ;;  %v2297_v17 = vadd.f32 %v2296_v47, %v2295_v55 }
 0x11d   :  { %v1201_v23 = vadd.f32 %v2297_v17, %v1131_v48  ;;  %3302 = vmatpush3.bf16.msra.mxu0 %v3301_v15 }
 0x11e   :  { %3303 = vmatprep.subr.bf16.mxu0 %v3338_v63  ;;  %v2157_v63 = vld [vmem:[%s5222_s4] ss:$0 sm:$0xff] }
 0x121   :  { %3305 = vmatpush3.bf16.msra.mxu0 %v3304_v27 }
 0x137   :  { %v2330_v56 = vpop.f32.mrb[4].mxu0 }
 0x138   :  { %v2331_v57 = vpop.f32.mrb[5].mxu0 }
 0x139   :  { %v2332_v58 = vadd.f32 %v2331_v57, %v2330_v56  ;;  %v2365_v59 = vpop.f32.mrb[4].mxu1 }
 0x13a   :  { %v2366_v61 = vpop.f32.mrb[5].mxu1 }
 0x13b   :  { %v1271_v60 = vadd.f32 %v2332_v58, %v1201_v23  ;;  %v2367_v18 = vadd.f32 %v2366_v61, %v2365_v59 }
 0x13d   :  { %v1341_v24 = vadd.f32 %v2367_v18, %v1271_v60 }
 0x157   :  { %v2400_v25 = vpop.f32.mrb[6].mxu0 }
 0x158   :  { %v2401_v26 = vpop.f32.mrb[7].mxu0 }
 0x159   :  { %v2402_v31 = vadd.f32 %v2401_v26, %v2400_v25  ;;  %v2435_v14 = vpop.f32.mrb[6].mxu1 }
 0x15a   :  { %v2436_v32 = vpop.f32.mrb[7].mxu1 }
 0x15b   :  { %v1411_v33 = vadd.f32 %v2402_v31, %v1341_v24  ;;  %v2437_v34 = vadd.f32 %v2436_v32, %v2435_v14 }
 0x15d   :  { %v1481_v39 = vadd.f32 %v2437_v34, %v1411_v33 }
 0x177   :  { %v2470_v29 = vpop.f32.mrb[8].mxu0 }
 0x178   :  { %v2471_v30 = vpop.f32.mrb[9].mxu0 }
 0x179   :  { %v2472_v40 = vadd.f32 %v2471_v30, %v2470_v29  ;;  %v2505_v41 = vpop.f32.mrb[8].mxu1 }
 0x17a   :  { %v2506_v44 = vpop.f32.mrb[9].mxu1 }
 0x17b   :  { %v1551_v45 = vadd.f32 %v2472_v40, %v1481_v39  ;;  %v2507_v46 = vadd.f32 %v2506_v44, %v2505_v41 }
 0x17d   :  { %v1621_v49 = vadd.f32 %v2507_v46, %v1551_v45 }
 0x197   :  { %v2540_v37 = vpop.f32.mrb[10].mxu0 }
 0x198   :  { %v2541_v38 = vpop.f32.mrb[11].mxu0 }
 0x199   :  { %v2542_v42 = vadd.f32 %v2541_v38, %v2540_v37  ;;  %v2575_v43 = vpop.f32.mrb[10].mxu1 }
 0x19a   :  { %v2576_v50 = vpop.f32.mrb[11].mxu1 }
 0x19b   :  { %v1691_v51 = vadd.f32 %v2542_v42, %v1621_v49  ;;  %v2577_v52 = vadd.f32 %v2576_v50, %v2575_v43 }
 0x19d   :  { %v1761_v53 = vadd.f32 %v2577_v52, %v1691_v51 }
 0x1b7   :  { %v2610_v54 = vpop.f32.mrb[12].mxu0 }
 0x1b8   :  { %v2611_v55 = vpop.f32.mrb[13].mxu0 }
 0x1b9   :  { %v2612_v47 = vadd.f32 %v2611_v55, %v2610_v54  ;;  %v2645_v48 = vpop.f32.mrb[12].mxu1 }
 0x1ba   :  { %v2646_v17 = vpop.f32.mrb[13].mxu1 }
 0x1bb   :  { %v1831_v23 = vadd.f32 %v2612_v47, %v1761_v53  ;;  %v2647_v56 = vadd.f32 %v2646_v17, %v2645_v48 }
 0x1bd   :  { %v1901_v57 = vadd.f32 %v2647_v56, %v1831_v23 }
 0x1d7   :  { %v2680_v58 = vpop.f32.mrb[14].mxu0 }
 0x1d8   :  { %v2681_v59 = vpop.f32.mrb[15].mxu0 }
 0x1d9   :  { %v2682_v61 = vadd.f32 %v2681_v59, %v2680_v58  ;;  %v2715_v60 = vpop.f32.mrb[14].mxu1 }
 0x1da   :  { %v2716_v18 = vpop.f32.mrb[15].mxu1 }
 0x1db   :  { %v1971_v24 = vadd.f32 %v2682_v61, %v1901_v57  ;;  %v2717_v2 = vadd.f32 %v2716_v18, %v2715_v60 }
 0x1dd   :  { %v2041_v3 = vadd.f32 %v2717_v2, %v1971_v24 }
 0x1df   :  { %v2044_v62 = vmax.f32 %v2041_v3, 0.0 }
 0x1e1   :  { %2768 = vmatmul.mubr.f32.vlgmr.msra.gmra.mrb[16].mxu0 %v2044_v62 }
 0x2b4   :  { %v2134_v0 = vpop.f32.mrb[16].mxu0 }
 0x2b5   :  { %v2135_v1 = vadd.f32 %v2157_v63, %v2134_v0  ;;  %v2769_v6 = vpop.f32.mrb[17].mxu0 }
 0x2b7   :  { %2139 = vst.msk [vmem:[#allocation2] sm:$0xff] %vm2138_vm1, %v2135_v1 }
 0x2b8   :  { %2144 = vsyncadd [#allocation3], 96  ;;  %s3341_s30 = smov [#allocation2]  }
 0x2b9   :  { %s2145_s6 = sshll.u32 %s3341_s30, 4  ;;  %s2146_s6 = int_to_ptr.vmem [resolvable:$true] %s2145_s6 }
 0x2ba   :  { %s3313_s7 = scalar_lea.vmem %s2146_s6, 32  ;;  %s3317_s8 = scalar_lea.vmem %s2146_s6, 128 }
 0x2bb   :  { %p3314_p0 = scmp.ne.s32.totalorder %s2146_s6, %s3313_s7  ;;  %p3318_p1 = scmp.lt.s32.totalorder %s2146_s6, %s2146_s6 }
 0x2bc   :  { %p3319_p2 = scmp.lt.s32.totalorder %s3317_s8, %s3313_s7 }
 0x2be   :  { %p3320_p3 = por %p3319_p2, %p3318_p1 }
 0x2c0   :  { %p3321_p4 = pnand %p3320_p3, %p3314_p0 }
 0x2c2   :  { %3324 = shalt.err (!%p3321_p4)
}
 0x2c3   :  { %s3325_s4 = scalar_lea.hbm %s5223_s5, 32 }
 0x2c4   :  { %p3326_p5 = scmp.ne.s32.totalorder %s5223_s5, %s3325_s4  ;;  %p3329_p6 = scmp.lt.u32.totalorder %s3325_s4, %s5223_s5 }
 0x2c6   :  { %p3331_p7 = pnand %p3329_p6, %p3326_p5 }
 0x2c8   :  { %3334 = shalt.err (!%p3331_p7)
}
 0x2c9   :  { %s3342_s15 = smov 32   ;;  %s3343_s0 = smov 2  }
 0x2ca   :  { %2151 = dma.vmem_to_hbm [thread:$0]  %s2146_s6, 32, %s5223_s5, [#allocation3], %s3342_s15, %s3342_s15, %s3343_s0  }
 0x2cb   :  { %3335 = dma.done.wait [#allocation3], 128  }
 0x2cc   :  { %3336 = vsyncadd [#allocation3], 4294967168 }
 0x2cd   :  { %2155 = vsyncpa [#allocation3], 1 }

// kernel: net_forward.4
= control target key start
LH: loop header
LB: loop body
LE: loop exit
PB: predicated region body
PF: predicated region fallthrough
CT: control target
= control target key end

     0   :  { %s6666_s12 = smov 0   ;;  %s7648_s0 = inlined_call_operand.vmem [shape: f32[2,332,32], index: 0, kind: input, shape index: {}]   ;;  %s7649_s1 = inlined_call_operand.vmem [shape: f32[288,64], index: 1, kind: input, shape index: {}]   ;;  %s7650_s2 = inlined_call_operand.vmem [shape: f32[1,64], index: 2, kind: input, shape index: {}]   ;;  %s7651_s3 = inlined_call_operand.vmem [shape: f32[2,64,64], index: 3, kind: output, shape index: {}]  }
   0x1 LB: > { %s4835_s13 = sadd.s32 4294967295, %s6644_s12   ;;  %p4839_p0 = scmp.ge.s32.totalorder %s6644_s12, 1  ;;  %s6644_s12 = sphi %s6666_s12, %s13_s12  }
   0x2   : > { %p137_p1 = scmp.lt.s32.totalorder %s6644_s12, 3 }
   0x4   : > { %p138_p2 = pnand %p4839_p0, %p137_p1 }
   0x5   : > { %v211_v0 = vld [vmem:[%s7649_s1 + $0x20] sm:$0xff] (!%p138_p2)  ;;  %v212_v1 = vld [vmem:[%s7649_s1 + $0x28] sm:$0xff] (!%p138_p2)  ;;  %v213_v2 = vld [vmem:[%s7649_s1 + $0x30] sm:$0xff] (!%p138_p2)  ;;  %p161_p3 = scmp.lt.s32.totalorder (!%p138_p2), %s4835_s13, 1  ;;  %vm215_vm0 = vcmask (!%p138_p2), 261120   ;;  %vm2380_vm1 = vcmask (!%p138_p2), 1045504  }
   0x6   : > { %141 = sbr.rel (%p138_p2) target bundleno = 575 (0x23f), region = 32  ;;  %v6197_v3 = vpack.c.bf16 (!%p138_p2), %v212_v1, %v211_v0  ;;  %v214_v4 = vld [vmem:[%s7649_s1 + $0x38] sm:$0xff] (!%p138_p2)  ;;  %v189_v6 = vld [vmem:[%s7649_s1] sm:$0xff] (!%p138_p2)  ;;  %v190_v7 = vld [vmem:[%s7649_s1 + $0x8] sm:$0xff] (!%p138_p2)  ;;  %vm2390_vm2 = vcmask (!%p138_p2), 523264   ;;  %vm2407_vm3 = vcmask (!%p138_p2), 523268  }
   0x7   : > { %v6201_v5 = vpack.c.bf16 (!%p138_p2), %v214_v4, %v213_v2  ;;  %v6205_v8 = vpack.c.bf16 (!%p138_p2), %v190_v7, %v189_v6  ;;  %v191_v9 = vld [vmem:[%s7649_s1 + $0x10] sm:$0xff] (!%p138_p2)  ;;  %v192_v12 = vld [vmem:[%s7649_s1 + $0x18] sm:$0xff] (!%p138_p2)  ;;  %v652_v18 = vld [vmem:[%s7649_s1 + $0x40] sm:$0xff] (!%p138_p2)  ;;  %vm2410_vm4 = vcmask (!%p138_p2), 519168  }
   0x8   : > { %6198 = vmatprep.subr.bf16.mxu0 (!%p138_p2), %v6197_v3  ;;  %6270 = vmatprep.subr.bf16.mxu1 (!%p138_p2), %v6197_v3  ;;  %v6209_v17 = vpack.c.bf16 (!%p138_p2), %v192_v12, %v191_v9  ;;  %v653_v19 = vld [vmem:[%s7649_s1 + $0x48] sm:$0xff] (!%p138_p2)  ;;  %v654_v53 = vld [vmem:[%s7649_s1 + $0x50] sm:$0xff] (!%p138_p2)  ;;  %v655_v54 = vld [vmem:[%s7649_s1 + $0x58] sm:$0xff] (!%p138_p2) }
   0x9   : > { %6200 = vmatpush3.bf16.msra.mxu0 (!%p138_p2), %v6197_v3  ;;  %6272 = vmatpush3.bf16.msra.mxu1 (!%p138_p2), %v6197_v3  ;;  %v6728_v24 = vpack.c.bf16 (!%p138_p2), %v653_v19, %v652_v18  ;;  %v6217_v59 = vpack.c.bf16 (!%p138_p2), %v655_v54, %v654_v53  ;;  %v901_v60 = vld [vmem:[%s7649_s1 + $0x60] sm:$0xff] (!%p138_p2)  ;;  %v902_v61 = vld [vmem:[%s7649_s1 + $0x68] sm:$0xff] (!%p138_p2) }
   0xa   : > { %6202 = vmatprep.subr.bf16.mxu0 (!%p138_p2), %v6201_v5  ;;  %6274 = vmatprep.subr.bf16.mxu1 (!%p138_p2), %v6201_v5  ;;  %v6818_v2 = vpack.c.bf16 (!%p138_p2), %v902_v61, %v901_v60 }
   0xd   : > { %s7653_s13 = smov (!%p161_p3, %s4835_s13), 1  ;;  %6204 = vmatpush3.bf16.msra.mxu0 %v6201_v5  ;;  %6276 = vmatpush3.bf16.msra.mxu1 %v6201_v5 }
   0xe   : > { %s6629_s26 = smul.u32 336, %s7653_s13  ;;  %6206 = vmatprep.subr.bf16.mxu0 %v6205_v8  ;;  %6278 = vmatprep.subr.bf16.mxu1 %v6205_v8  ;;  %s5170_s18 = sshll.u32 %s7653_s13, 6 }
   0xf   : > { %s7598_s20 = scalar_lea.vmem %s7651_s3, %s5170_s18 }
  0x10   : > { %s6698_s29 = scalar_lea.vmem %s7648_s0, %s6629_s26 }
  0x11   : > { %v193_v10 = vld [vmem:[%s6698_s29 + $0x1] sm:$0xff]  ;;  %v2465_v11 = vld [vmem:[%s6698_s29 + $0x91] sm:$0xff]  ;;  %v194_v13 = vld [vmem:[%s6698_s29 + $0x9] sm:$0xff] }
  0x12   : > { %v2466_v14 = vld [vmem:[%s6698_s29 + $0x99] sm:$0xff]  ;;  %5575 = vmatprep.mubr.msk.f32.mxu0 %vm215_vm0, %v193_v10  ;;  %5890 = vmatprep.mubr.msk.f32.mxu1 %vm215_vm0, %v2465_v11  ;;  %v195_v15 = vld [vmem:[%s6698_s29 + $0x11] sm:$0xff]  ;;  %v2467_v16 = vld [vmem:[%s6698_s29 + $0xa1] sm:$0xff] }
  0x13   : > { %5576 = vmatmul.mubr.msk.f32.vlgmr.msra.gmra.mrb[0].mxu0 %vm215_vm0, %v194_v13  ;;  %5891 = vmatmul.mubr.msk.f32.vlgmr.msra.gmra.mrb[0].mxu1 %vm215_vm0, %v2466_v14  ;;  %v196_v20 = vld [vmem:[%s6698_s29 + $0x19] sm:$0xff]  ;;  %v2468_v21 = vld [vmem:[%s6698_s29 + $0xa9] sm:$0xff]  ;;  %v197_v22 = vld [vmem:[%s6698_s29 + $0x21] sm:$0xff] }
  0x14   : > { %6208 = vmatpush3.bf16.msra.mxu0 %v6205_v8  ;;  %6280 = vmatpush3.bf16.msra.mxu1 %v6205_v8  ;;  %v2469_v23 = vld [vmem:[%s6698_s29 + $0xb1] sm:$0xff]  ;;  %v198_v25 = vld [vmem:[%s6698_s29 + $0x29] sm:$0xff]  ;;  %v2470_v26 = vld [vmem:[%s6698_s29 + $0xb9] sm:$0xff] }
  0x15   : > { %5578 = vmatprep.mubr.msk.f32.mxu0 %vm215_vm0, %v195_v15  ;;  %5893 = vmatprep.mubr.msk.f32.mxu1 %vm215_vm0, %v2467_v16  ;;  %v199_v27 = vld [vmem:[%s6698_s29 + $0x31] sm:$0xff]  ;;  %v2471_v28 = vld [vmem:[%s6698_s29 + $0xc1] sm:$0xff]  ;;  %v200_v29 = vld [vmem:[%s6698_s29 + $0x39] sm:$0xff] }
  0x16   : > { %6210 = vmatprep.subr.bf16.mxu0 %v6209_v17  ;;  %6282 = vmatprep.subr.bf16.mxu1 %v6209_v17  ;;  %v2472_v30 = vld [vmem:[%s6698_s29 + $0xc9] sm:$0xff]  ;;  %v201_v31 = vld [vmem:[%s6698_s29 + $0x41] sm:$0xff]  ;;  %v2473_v32 = vld [vmem:[%s6698_s29 + $0xd1] sm:$0xff] }
  0x17   : > { %5579 = vmatmul.mubr.msk.f32.gmra.mrb[2].mxu0 %vm215_vm0, %v196_v20  ;;  %5894 = vmatmul.mubr.msk.f32.gmra.mrb[2].mxu1 %vm215_vm0, %v2468_v21  ;;  %v202_v33 = vld [vmem:[%s6698_s29 + $0x49] sm:$0xff]  ;;  %v2474_v34 = vld [vmem:[%s6698_s29 + $0xd9] sm:$0xff]  ;;  %v203_v35 = vld [vmem:[%s6698_s29 + $0x51] sm:$0xff] }
  0x18   : > { %5581 = vmatprep.mubr.msk.f32.mxu0 %vm215_vm0, %v197_v22  ;;  %5896 = vmatprep.mubr.msk.f32.mxu1 %vm215_vm0, %v2469_v23  ;;  %v2475_v36 = vld [vmem:[%s6698_s29 + $0xe1] sm:$0xff]  ;;  %v204_v37 = vld [vmem:[%s6698_s29 + $0x59] sm:$0xff]  ;;  %v2476_v38 = vld [vmem:[%s6698_s29 + $0xe9] sm:$0xff] }
  0x19   : > { %6212 = vmatpush3.bf16.msra.mxu0 %v6209_v17  ;;  %6284 = vmatpush3.bf16.msra.mxu1 %v6209_v17  ;;  %v205_v39 = vld [vmem:[%s6698_s29 + $0x61] sm:$0xff]  ;;  %v2477_v40 = vld [vmem:[%s6698_s29 + $0xf1] sm:$0xff]  ;;  %v206_v41 = vld [vmem:[%s6698_s29 + $0x69] sm:$0xff] }
  0x1a   : > { %6214 = vmatprep.subr.bf16.mxu0 %v6728_v24  ;;  %6286 = vmatprep.subr.bf16.mxu1 %v6728_v24  ;;  %v2478_v42 = vld [vmem:[%s6698_s29 + $0xf9] sm:$0xff]  ;;  %v207_v43 = vld [vmem:[%s6698_s29 + $0x71] sm:$0xff]  ;;  %v2479_v44 = vld [vmem:[%s6698_s29 + $0x101] sm:$0xff] }
  0x1b   : > { %5582 = vmatmul.mubr.msk.f32.gmra.mrb[4].mxu0 %vm215_vm0, %v198_v25  ;;  %5897 = vmatmul.mubr.msk.f32.gmra.mrb[4].mxu1 %vm215_vm0, %v2470_v26  ;;  %v208_v45 = vld [vmem:[%s6698_s29 + $0x79] sm:$0xff]  ;;  %v2480_v46 = vld [vmem:[%s6698_s29 + $0x109] sm:$0xff]  ;;  %v209_v47 = vld [vmem:[%s6698_s29 + $0x81] sm:$0xff] }
  0x1c   : > { %5584 = vmatprep.mubr.msk.f32.mxu0 %vm215_vm0, %v199_v27  ;;  %5899 = vmatprep.mubr.msk.f32.mxu1 %vm215_vm0, %v2471_v28  ;;  %v2481_v48 = vld [vmem:[%s6698_s29 + $0x111] sm:$0xff]  ;;  %v210_v49 = vld [vmem:[%s6698_s29 + $0x89] sm:$0xff]  ;;  %v2482_v50 = vld [vmem:[%s6698_s29 + $0x119] sm:$0xff] }
  0x1d   : > { %v171_v51 = vld [vmem:[%s6698_s29] sm:$0xff]  ;;  %v2443_v52 = vld [vmem:[%s6698_s29 + $0x90] sm:$0xff]  ;;  %v172_v55 = vld [vmem:[%s6698_s29 + $0x8] sm:$0xff] }
  0x1e   : > { %v2444_v56 = vld [vmem:[%s6698_s29 + $0x98] sm:$0xff]  ;;  %v173_v57 = vld [vmem:[%s6698_s29 + $0x10] sm:$0xff]  ;;  %v2445_v58 = vld [vmem:[%s6698_s29 + $0xa0] sm:$0xff] }
  0x1f   : > { %5585 = vmatmul.mubr.msk.f32.gmra.mrb[6].mxu0 %vm215_vm0, %v200_v29  ;;  %5900 = vmatmul.mubr.msk.f32.gmra.mrb[6].mxu1 %vm215_vm0, %v2472_v30  ;;  %v174_v62 = vld [vmem:[%s6698_s29 + $0x18] sm:$0xff]  ;;  %v2446_v63 = vld [vmem:[%s6698_s29 + $0xa8] sm:$0xff]  ;;  %v175_v0 = vld [vmem:[%s6698_s29 + $0x20] sm:$0xff] }
  0x20   : > { %5587 = vmatprep.mubr.msk.f32.mxu0 %vm215_vm0, %v201_v31  ;;  %5902 = vmatprep.mubr.msk.f32.mxu1 %vm215_vm0, %v2473_v32  ;;  %v2447_v1 = vld [vmem:[%s6698_s29 + $0xb0] sm:$0xff]  ;;  %v176_v3 = vld [vmem:[%s6698_s29 + $0x28] sm:$0xff]  ;;  %v2448_v4 = vld [vmem:[%s6698_s29 + $0xb8] sm:$0xff] }
  0x21   : > { %v177_v5 = vld [vmem:[%s6698_s29 + $0x30] sm:$0xff]  ;;  %v2449_v6 = vld [vmem:[%s6698_s29 + $0xc0] sm:$0xff]  ;;  %v178_v7 = vld [vmem:[%s6698_s29 + $0x38] sm:$0xff] }
  0x22   : > { %v2450_v8 = vld [vmem:[%s6698_s29 + $0xc8] sm:$0xff]  ;;  %v179_v9 = vld [vmem:[%s6698_s29 + $0x40] sm:$0xff]  ;;  %v2451_v10 = vld [vmem:[%s6698_s29 + $0xd0] sm:$0xff] }
  0x23   : > { %5588 = vmatmul.mubr.msk.f32.gmra.mrb[8].mxu0 %vm215_vm0, %v202_v33  ;;  %5903 = vmatmul.mubr.msk.f32.gmra.mrb[8].mxu1 %vm215_vm0, %v2474_v34  ;;  %v180_v11 = vld [vmem:[%s6698_s29 + $0x48] sm:$0xff]  ;;  %v2452_v12 = vld [vmem:[%s6698_s29 + $0xd8] sm:$0xff]  ;;  %v181_v13 = vld [vmem:[%s6698_s29 + $0x50] sm:$0xff] }
  0x24   : > { %5590 = vmatprep.mubr.msk.f32.mxu0 %vm215_vm0, %v203_v35  ;;  %5905 = vmatprep.mubr.msk.f32.mxu1 %vm215_vm0, %v2475_v36  ;;  %v2453_v14 = vld [vmem:[%s6698_s29 + $0xe0] sm:$0xff]  ;;  %v182_v15 = vld [vmem:[%s6698_s29 + $0x58] sm:$0xff]  ;;  %v2454_v16 = vld [vmem:[%s6698_s29 + $0xe8] sm:$0xff] }
  0x25   : > { %v183_v17 = vld [vmem:[%s6698_s29 + $0x60] sm:$0xff]  ;;  %v2455_v18 = vld [vmem:[%s6698_s29 + $0xf0] sm:$0xff]  ;;  %v184_v19 = vld [vmem:[%s6698_s29 + $0x68] sm:$0xff] }
  0x26   : > { %v2456_v20 = vld [vmem:[%s6698_s29 + $0xf8] sm:$0xff]  ;;  %v185_v21 = vld [vmem:[%s6698_s29 + $0x70] sm:$0xff]  ;;  %v2457_v22 = vld [vmem:[%s6698_s29 + $0x100] sm:$0xff] }
  0x27   : > { %5591 = vmatmul.mubr.msk.f32.gmra.mrb[10].mxu0 %vm215_vm0, %v204_v37  ;;  %5906 = vmatmul.mubr.msk.f32.gmra.mrb[10].mxu1 %vm215_vm0, %v2476_v38  ;;  %v186_v23 = vld [vmem:[%s6698_s29 + $0x78] sm:$0xff]  ;;  %v187_v25 = vld [vmem:[%s6698_s29 + $0x80] sm:$0xff]  ;;  %v2459_v26 = vld [vmem:[%s6698_s29 + $0x110] sm:$0xff] }
  0x28   : > { %5593 = vmatprep.mubr.msk.f32.mxu0 %vm215_vm0, %v205_v39  ;;  %5908 = vmatprep.mubr.msk.f32.mxu1 %vm215_vm0, %v2477_v40  ;;  %v188_v27 = vld [vmem:[%s6698_s29 + $0x88] sm:$0xff]  ;;  %v2460_v28 = vld [vmem:[%s6698_s29 + $0x118] sm:$0xff]  ;;  %v903_v31 = vld [vmem:[%s7649_s1 + $0x70] sm:$0xff] }
  0x29   : > { %v634_v29 = vld [vmem:[%s6698_s29 + $0x2] sm:$0xff]  ;;  %v6878_v30 = vld [vmem:[%s6698_s29 + $0x92] sm:$0xff]  ;;  %v635_v33 = vld [vmem:[%s6698_s29 + $0xa] sm:$0xff] }
  0x2a   : > { %v904_v32 = vld [vmem:[%s7649_s1 + $0x78] sm:$0xff]  ;;  %v6899_v36 = vld [vmem:[%s6698_s29 + $0xa2] sm:$0xff]  ;;  %v6981_v53 = vld [vmem:[%s6698_s29 + $0x4a] sm:$0xff] }
  0x2b   : > { %5594 = vmatmul.mubr.msk.f32.gmra.mrb[12].mxu0 %vm215_vm0, %v206_v41  ;;  %5909 = vmatmul.mubr.msk.f32.gmra.mrb[12].mxu1 %vm215_vm0, %v2478_v42  ;;  %v6893_v34 = vld [vmem:[%s6698_s29 + $0x9a] sm:$0xff]  ;;  %v6896_v35 = vld [vmem:[%s6698_s29 + $0x12] sm:$0xff]  ;;  %v6225_v37 = vpack.c.bf16 %v904_v32, %v903_v31  ;;  %v1151_v39 = vld [vmem:[%s7649_s1 + $0x88] sm:$0xff] }
  0x2c   : > { %5596 = vmatprep.mubr.msk.f32.mxu0 %vm215_vm0, %v207_v43  ;;  %5911 = vmatprep.mubr.msk.f32.mxu1 %vm215_vm0, %v2479_v44  ;;  %v1150_v38 = vld [vmem:[%s7649_s1 + $0x80] sm:$0xff]  ;;  %v6916_v41 = vld [vmem:[%s6698_s29 + $0xaa] sm:$0xff]  ;;  %v6926_v43 = vld [vmem:[%s6698_s29 + $0xb2] sm:$0xff] }
  0x2d   : > { %v6913_v40 = vld [vmem:[%s6698_s29 + $0x1a] sm:$0xff]  ;;  %v6923_v42 = vld [vmem:[%s6698_s29 + $0x22] sm:$0xff]  ;;  %v6928_v44 = vpack.c.bf16 %v1151_v39, %v1150_v38  ;;  %v2917_v60 = vld [vmem:[%s6698_s29 + $0xf2] sm:$0xff] }
  0x2e   : > { %v6984_v54 = vld [vmem:[%s6698_s29 + $0xda] sm:$0xff]  ;;  %v647_v61 = vld [vmem:[%s6698_s29 + $0x6a] sm:$0xff] }
  0x2f   : > { %5597 = vmatmul.mubr.msk.f32.gmra.mrb[14].mxu0 %vm215_vm0, %v208_v45  ;;  %5912 = vmatmul.mubr.msk.f32.gmra.mrb[14].mxu1 %vm215_vm0, %v2480_v46  ;;  %v6939_v45 = vld [vmem:[%s6698_s29 + $0x2a] sm:$0xff]  ;;  %v6942_v46 = vld [vmem:[%s6698_s29 + $0xba] sm:$0xff] }
  0x30   : > { %5599 = vmatprep.mubr.msk.f32.mxu0 %vm215_vm0, %v209_v47  ;;  %5914 = vmatprep.mubr.msk.f32.mxu1 %vm215_vm0, %v2481_v48  ;;  %v6945_v47 = vld [vmem:[%s6698_s29 + $0x32] sm:$0xff]  ;;  %v6948_v48 = vld [vmem:[%s6698_s29 + $0xc2] sm:$0xff] }
  0x31   : > { %v1137_v31 = vld [vmem:[%s6698_s29 + $0x3b] sm:$0xff]  ;;  %v3408_v32 = vld [vmem:[%s6698_s29 + $0xcb] sm:$0xff]  ;;  %v3411_v38 = vld [vmem:[%s6698_s29 + $0xe3] sm:$0xff] }
  0x32   : > { %v1141_v39 = vld [vmem:[%s6698_s29 + $0x5b] sm:$0xff] }
  0x33   : > { %5600 = vmatmul.mubr.msk.f32.gmra.mrb[16].mxu0 %vm215_vm0, %v210_v49  ;;  %5915 = vmatmul.mubr.msk.f32.gmra.mrb[16].mxu1 %vm215_vm0, %v2482_v50  ;;  %v6961_v49 = vld [vmem:[%s6698_s29 + $0x3a] sm:$0xff]  ;;  %v6964_v50 = vld [vmem:[%s6698_s29 + $0xca] sm:$0xff] }
  0x34   : > { %5610 = vmatprep.mubr.msk.f32.mxu0 %vm215_vm0, %v171_v51  ;;  %5925 = vmatprep.mubr.msk.f32.mxu1 %vm215_vm0, %v2443_v52  ;;  %v6967_v51 = vld [vmem:[%s6698_s29 + $0x42] sm:$0xff]  ;;  %v6970_v52 = vld [vmem:[%s6698_s29 + $0xd2] sm:$0xff] }
  0x37   : > { %5611 = vmatmul.mubr.msk.f32.vlgmr.msra.gmra.mrb[0].mxu0 %vm215_vm0, %v172_v55  ;;  %5926 = vmatmul.mubr.msk.f32.vlgmr.msra.gmra.mrb[0].mxu1 %vm215_vm0, %v2444_v56  ;;  %v6987_v55 = vld [vmem:[%s6698_s29 + $0x52] sm:$0xff]  ;;  %v6990_v56 = vld [vmem:[%s6698_s29 + $0xe2] sm:$0xff] }
  0x38   : > { %6216 = vmatpush3.bf16.msra.mxu0 %v6728_v24  ;;  %6288 = vmatpush3.bf16.msra.mxu1 %v6728_v24  ;;  %v2458_v24 = vld [vmem:[%s6698_s29 + $0x108] sm:$0xff] }
  0x39   : > { %5613 = vmatprep.mubr.msk.f32.mxu0 %vm215_vm0, %v173_v57  ;;  %5928 = vmatprep.mubr.msk.f32.mxu1 %vm215_vm0, %v2445_v58  ;;  %v645_v57 = vld [vmem:[%s6698_s29 + $0x5a] sm:$0xff]  ;;  %v2916_v58 = vld [vmem:[%s6698_s29 + $0xea] sm:$0xff] }
  0x3a   : > { %6218 = vmatprep.subr.bf16.mxu0 %v6217_v59  ;;  %6290 = vmatprep.subr.bf16.mxu1 %v6217_v59 }
  0x3b   : > { %5614 = vmatmul.mubr.msk.f32.gmra.mrb[2].mxu0 %vm215_vm0, %v174_v62  ;;  %5929 = vmatmul.mubr.msk.f32.gmra.mrb[2].mxu1 %vm215_vm0, %v2446_v63  ;;  %v2918_v62 = vld [vmem:[%s6698_s29 + $0xfa] sm:$0xff]  ;;  %v648_v63 = vld [vmem:[%s6698_s29 + $0x72] sm:$0xff] }
  0x3c   : > { %5616 = vmatprep.mubr.msk.f32.mxu0 %vm215_vm0, %v175_v0  ;;  %5931 = vmatprep.mubr.msk.f32.mxu1 %vm215_vm0, %v2447_v1  ;;  %v2919_v0 = vld [vmem:[%s6698_s29 + $0x102] sm:$0xff]  ;;  %v649_v1 = vld [vmem:[%s6698_s29 + $0x7a] sm:$0xff] }
  0x3d   : > { %6220 = vmatpush3.bf16.msra.mxu0 %v6217_v59  ;;  %6292 = vmatpush3.bf16.msra.mxu1 %v6217_v59  ;;  %v646_v59 = vld [vmem:[%s6698_s29 + $0x62] sm:$0xff] }
  0x3e   : > { %6222 = vmatprep.subr.bf16.mxu0 %v6818_v2  ;;  %6294 = vmatprep.subr.bf16.mxu1 %v6818_v2 }
  0x3f   : > { %5617 = vmatmul.mubr.msk.f32.gmra.mrb[4].mxu0 %vm215_vm0, %v176_v3  ;;  %5932 = vmatmul.mubr.msk.f32.gmra.mrb[4].mxu1 %vm215_vm0, %v2448_v4  ;;  %v650_v3 = vld [vmem:[%s6698_s29 + $0x82] sm:$0xff]  ;;  %v2921_v4 = vld [vmem:[%s6698_s29 + $0x112] sm:$0xff] }
  0x40   : > { %5619 = vmatprep.mubr.msk.f32.mxu0 %vm215_vm0, %v177_v5  ;;  %5934 = vmatprep.mubr.msk.f32.mxu1 %vm215_vm0, %v2449_v6  ;;  %v651_v5 = vld [vmem:[%s6698_s29 + $0x8a] sm:$0xff]  ;;  %v2922_v6 = vld [vmem:[%s6698_s29 + $0x11a] sm:$0xff] }
  0x43   : > { %5620 = vmatmul.mubr.msk.f32.gmra.mrb[6].mxu0 %vm215_vm0, %v178_v7  ;;  %5935 = vmatmul.mubr.msk.f32.gmra.mrb[6].mxu1 %vm215_vm0, %v2450_v8  ;;  %v1152_v7 = vld [vmem:[%s7649_s1 + $0x90] sm:$0xff]  ;;  %v1153_v8 = vld [vmem:[%s7649_s1 + $0x98] sm:$0xff] }
  0x44   : > { %5622 = vmatprep.mubr.msk.f32.mxu0 %vm215_vm0, %v179_v9  ;;  %5937 = vmatprep.mubr.msk.f32.mxu1 %vm215_vm0, %v2451_v10  ;;  %v6233_v9 = vpack.c.bf16 %v1153_v8, %v1152_v7  ;;  %v1399_v10 = vld [vmem:[%s7649_s1 + $0xa0] sm:$0xff] }
  0x45   : > { %v7236_v7 = vld [vmem:[%s6698_s29 + $0xc4] sm:$0xff] }
  0x47   : > { %5623 = vmatmul.mubr.msk.f32.gmra.mrb[8].mxu0 %vm215_vm0, %v180_v11  ;;  %5938 = vmatmul.mubr.msk.f32.gmra.mrb[8].mxu1 %vm215_vm0, %v2452_v12  ;;  %v1400_v11 = vld [vmem:[%s7649_s1 + $0xa8] sm:$0xff] }
  0x48   : > { %5625 = vmatprep.mubr.msk.f32.mxu0 %vm215_vm0, %v181_v13  ;;  %5940 = vmatprep.mubr.msk.f32.mxu1 %vm215_vm0, %v2453_v14  ;;  %v6237_v12 = vpack.c.bf16 %v1400_v11, %v1399_v10  ;;  %v3170_v13 = vld [vmem:[%s6698_s29 + $0x122] sm:$0xff]  ;;  %v3171_v14 = vld [vmem:[%s6698_s29 + $0x12a] sm:$0xff] }
  0x49   : > { %v7252_v10 = vld [vmem:[%s6698_s29 + $0xcc] sm:$0xff]  ;;  %v7255_v11 = vld [vmem:[%s6698_s29 + $0x44] sm:$0xff] }
  0x4b   : > { %5626 = vmatmul.mubr.msk.f32.gmra.mrb[10].mxu0 %vm215_vm0, %v182_v15  ;;  %5941 = vmatmul.mubr.msk.f32.gmra.mrb[10].mxu1 %vm215_vm0, %v2454_v16  ;;  %v1132_v15 = vld [vmem:[%s6698_s29 + $0x13] sm:$0xff]  ;;  %v3403_v16 = vld [vmem:[%s6698_s29 + $0xa3] sm:$0xff] }
  0x4c   : > { %5628 = vmatprep.mubr.msk.f32.mxu0 %vm215_vm0, %v183_v17  ;;  %5943 = vmatprep.mubr.msk.f32.mxu1 %vm215_vm0, %v2455_v18  ;;  %v1401_v17 = vld [vmem:[%s7649_s1 + $0xb0] sm:$0xff]  ;;  %v1402_v18 = vld [vmem:[%s7649_s1 + $0xb8] sm:$0xff] }
  0x4f   : > { %5629 = vmatmul.mubr.msk.f32.gmra.mrb[12].mxu0 %vm215_vm0, %v184_v19  ;;  %5944 = vmatmul.mubr.msk.f32.gmra.mrb[12].mxu1 %vm215_vm0, %v2456_v20  ;;  %v1133_v19 = vld [vmem:[%s6698_s29 + $0x1b] sm:$0xff]  ;;  %v3404_v20 = vld [vmem:[%s6698_s29 + $0xab] sm:$0xff] }
  0x50   : > { %5631 = vmatprep.mubr.msk.f32.mxu0 %vm215_vm0, %v185_v21  ;;  %5946 = vmatprep.mubr.msk.f32.mxu1 %vm215_vm0, %v2457_v22  ;;  %v1134_v21 = vld [vmem:[%s6698_s29 + $0x23] sm:$0xff]  ;;  %v3405_v22 = vld [vmem:[%s6698_s29 + $0xb3] sm:$0xff] }
  0x53   : > { %5632 = vmatmul.mubr.msk.f32.gmra.mrb[14].mxu0 %vm215_vm0, %v186_v23  ;;  %5947 = vmatmul.mubr.msk.f32.gmra.mrb[14].mxu1 %vm215_vm0, %v2458_v24  ;;  %v6241_v23 = vpack.c.bf16 %v1402_v18, %v1401_v17  ;;  %v1648_v24 = vld [vmem:[%s7649_s1 + $0xc0] sm:$0xff]  ;;  %v7294_v18 = vld [vmem:[%s6698_s29 + $0xec] sm:$0xff] }
  0x54   : > { %5634 = vmatprep.mubr.msk.f32.mxu0 %vm215_vm0, %v187_v25  ;;  %5949 = vmatprep.mubr.msk.f32.mxu1 %vm215_vm0, %v2459_v26  ;;  %v1649_v25 = vld [vmem:[%s7649_s1 + $0xc8] sm:$0xff]  ;;  %v7291_v17 = vld [vmem:[%s6698_s29 + $0x5c] sm:$0xff] }
  0x55   : > { %v1135_v26 = vld [vmem:[%s6698_s29 + $0x2b] sm:$0xff] }
  0x57   : > { %5635 = vmatmul.mubr.msk.f32.gmra.mrb[16].mxu0 %vm215_vm0, %v188_v27  ;;  %5950 = vmatmul.mubr.msk.f32.gmra.mrb[16].mxu1 %vm215_vm0, %v2460_v28  ;;  %v3406_v27 = vld [vmem:[%s6698_s29 + $0xbb] sm:$0xff]  ;;  %v1136_v28 = vld [vmem:[%s6698_s29 + $0x33] sm:$0xff] }
  0x58   : > { %5645 = vmatprep.mubr.msk.f32.mxu0 %vm215_vm0, %v634_v29  ;;  %5960 = vmatprep.mubr.msk.f32.mxu1 %vm215_vm0, %v6878_v30  ;;  %v3407_v29 = vld [vmem:[%s6698_s29 + $0xc3] sm:$0xff] }
  0x5b   : > { %5646 = vmatmul.mubr.msk.f32.vlgmr.msra.gmra.mrb[0].mxu0 %vm215_vm0, %v635_v33  ;;  %5961 = vmatmul.mubr.msk.f32.vlgmr.msra.gmra.mrb[0].mxu1 %vm215_vm0, %v6893_v34  ;;  %v1138_v33 = vld [vmem:[%s6698_s29 + $0x43] sm:$0xff] }
  0x5c   : > { %6224 = vmatpush3.bf16.msra.mxu0 %v6818_v2  ;;  %6296 = vmatpush3.bf16.msra.mxu1 %v6818_v2  ;;  %v2920_v2 = vld [vmem:[%s6698_s29 + $0x10a] sm:$0xff] }
  0x5d   : > { %5648 = vmatprep.mubr.msk.f32.mxu0 %vm215_vm0, %v6896_v35  ;;  %5963 = vmatprep.mubr.msk.f32.mxu1 %vm215_vm0, %v6899_v36 }
  0x5e   : > { %6226 = vmatprep.subr.bf16.mxu0 %v6225_v37  ;;  %6298 = vmatprep.subr.bf16.mxu1 %v6225_v37 }
  0x5f   : > { %5649 = vmatmul.mubr.msk.f32.gmra.mrb[2].mxu0 %vm215_vm0, %v6913_v40  ;;  %5964 = vmatmul.mubr.msk.f32.gmra.mrb[2].mxu1 %vm215_vm0, %v6916_v41 }
  0x60   : > { %5651 = vmatprep.mubr.msk.f32.mxu0 %vm215_vm0, %v6923_v42  ;;  %5966 = vmatprep.mubr.msk.f32.mxu1 %vm215_vm0, %v6926_v43 }
  0x61   : > { %6228 = vmatpush3.bf16.msra.mxu0 %v6225_v37  ;;  %6300 = vmatpush3.bf16.msra.mxu1 %v6225_v37  ;;  %v1140_v37 = vld [vmem:[%s6698_s29 + $0x53] sm:$0xff] }
  0x62   : > { %6230 = vmatprep.subr.bf16.mxu0 %v6928_v44  ;;  %6302 = vmatprep.subr.bf16.mxu1 %v6928_v44 }
  0x63   : > { %5652 = vmatmul.mubr.msk.f32.gmra.mrb[4].mxu0 %vm215_vm0, %v6939_v45  ;;  %5967 = vmatmul.mubr.msk.f32.gmra.mrb[4].mxu1 %vm215_vm0, %v6942_v46 }
  0x64   : > { %5654 = vmatprep.mubr.msk.f32.mxu0 %vm215_vm0, %v6945_v47  ;;  %5969 = vmatprep.mubr.msk.f32.mxu1 %vm215_vm0, %v6948_v48 }
  0x67   : > { %5655 = vmatmul.mubr.msk.f32.gmra.mrb[6].mxu0 %vm215_vm0, %v6961_v49  ;;  %5970 = vmatmul.mubr.msk.f32.gmra.mrb[6].mxu1 %vm215_vm0, %v6964_v50 }
  0x68   : > { %5657 = vmatprep.mubr.msk.f32.mxu0 %vm215_vm0, %v6967_v51  ;;  %5972 = vmatprep.mubr.msk.f32.mxu1 %vm215_vm0, %v6970_v52 }
  0x6b   : > { %5658 = vmatmul.mubr.msk.f32.gmra.mrb[8].mxu0 %vm215_vm0, %v6981_v53  ;;  %5973 = vmatmul.mubr.msk.f32.gmra.mrb[8].mxu1 %vm215_vm0, %v6984_v54 }
  0x6c   : > { %5660 = vmatprep.mubr.msk.f32.mxu0 %vm215_vm0, %v6987_v55  ;;  %5975 = vmatprep.mubr.msk.f32.mxu1 %vm215_vm0, %v6990_v56 }
  0x6f   : > { %5661 = vmatmul.mubr.msk.f32.gmra.mrb[10].mxu0 %vm215_vm0, %v645_v57  ;;  %5976 = vmatmul.mubr.msk.f32.gmra.mrb[10].mxu1 %vm215_vm0, %v2916_v58 }
  0x70   : > { %5663 = vmatprep.mubr.msk.f32.mxu0 %vm215_vm0, %v646_v59  ;;  %5978 = vmatprep.mubr.msk.f32.mxu1 %vm215_vm0, %v2917_v60 }
  0x73   : > { %5664 = vmatmul.mubr.msk.f32.gmra.mrb[12].mxu0 %vm215_vm0, %v647_v61  ;;  %5979 = vmatmul.mubr.msk.f32.gmra.mrb[12].mxu1 %vm215_vm0, %v2918_v62 }
  0x74   : > { %5666 = vmatprep.mubr.msk.f32.mxu0 %vm215_vm0, %v648_v63  ;;  %5981 = vmatprep.mubr.msk.f32.mxu1 %vm215_vm0, %v2919_v0 }
  0x77   : > { %5667 = vmatmul.mubr.msk.f32.gmra.mrb[14].mxu0 %vm215_vm0, %v649_v1  ;;  %5982 = vmatmul.mubr.msk.f32.gmra.mrb[14].mxu1 %vm215_vm0, %v2920_v2 }
  0x78   : > { %5669 = vmatprep.mubr.msk.f32.mxu0 %vm215_vm0, %v650_v3  ;;  %5984 = vmatprep.mubr.msk.f32.mxu1 %vm215_vm0, %v2921_v4 }
  0x7b   : > { %5670 = vmatmul.mubr.msk.f32.gmra.mrb[16].mxu0 %vm215_vm0, %v651_v5  ;;  %5985 = vmatmul.mubr.msk.f32.gmra.mrb[16].mxu1 %vm215_vm0, %v2922_v6 }
  0x7c   : > { %5680 = vmatprep.mubr.msk.f32.mxu0 %vm215_vm0, %v6896_v35  ;;  %5995 = vmatprep.mubr.msk.f32.mxu1 %vm215_vm0, %v6899_v36  ;;  %v1139_v35 = vld [vmem:[%s6698_s29 + $0x4b] sm:$0xff]  ;;  %v3410_v36 = vld [vmem:[%s6698_s29 + $0xdb] sm:$0xff] }
  0x7f   : > { %5681 = vmatmul.mubr.msk.f32.vlgmr.msra.gmra.mrb[0].mxu0 %vm215_vm0, %v6913_v40  ;;  %5996 = vmatmul.mubr.msk.f32.vlgmr.msra.gmra.mrb[0].mxu1 %vm215_vm0, %v6916_v41  ;;  %v3412_v40 = vld [vmem:[%s6698_s29 + $0xeb] sm:$0xff]  ;;  %v1142_v41 = vld [vmem:[%s6698_s29 + $0x63] sm:$0xff] }
  0x80   : > { %6232 = vmatpush3.bf16.msra.mxu0 %v6928_v44  ;;  %6304 = vmatpush3.bf16.msra.mxu1 %v6928_v44  ;;  %v3414_v44 = vld [vmem:[%s6698_s29 + $0xfb] sm:$0xff] }
  0x81   : > { %5683 = vmatprep.mubr.msk.f32.mxu0 %vm215_vm0, %v6923_v42  ;;  %5998 = vmatprep.mubr.msk.f32.mxu1 %vm215_vm0, %v6926_v43  ;;  %v3413_v42 = vld [vmem:[%s6698_s29 + $0xf3] sm:$0xff]  ;;  %v1143_v43 = vld [vmem:[%s6698_s29 + $0x6b] sm:$0xff] }
  0x82   : > { %6234 = vmatprep.subr.bf16.mxu0 %v6233_v9  ;;  %6306 = vmatprep.subr.bf16.mxu1 %v6233_v9 }
  0x83   : > { %5684 = vmatmul.mubr.msk.f32.gmra.mrb[2].mxu0 %vm215_vm0, %v6939_v45  ;;  %5999 = vmatmul.mubr.msk.f32.gmra.mrb[2].mxu1 %vm215_vm0, %v6942_v46  ;;  %v1144_v45 = vld [vmem:[%s6698_s29 + $0x73] sm:$0xff]  ;;  %v3415_v46 = vld [vmem:[%s6698_s29 + $0x103] sm:$0xff] }
  0x84   : > { %5686 = vmatprep.mubr.msk.f32.mxu0 %vm215_vm0, %v6945_v47  ;;  %6001 = vmatprep.mubr.msk.f32.mxu1 %vm215_vm0, %v6948_v48  ;;  %v1145_v47 = vld [vmem:[%s6698_s29 + $0x7b] sm:$0xff]  ;;  %v3416_v48 = vld [vmem:[%s6698_s29 + $0x10b] sm:$0xff] }
  0x85   : > { %6236 = vmatpush3.bf16.msra.mxu0 %v6233_v9  ;;  %6308 = vmatpush3.bf16.msra.mxu1 %v6233_v9  ;;  %v7249_v9 = vld [vmem:[%s6698_s29 + $0x3c] sm:$0xff] }
  0x86   : > { %6238 = vmatprep.subr.bf16.mxu0 %v6237_v12  ;;  %6310 = vmatprep.subr.bf16.mxu1 %v6237_v12 }
  0x87   : > { %5687 = vmatmul.mubr.msk.f32.gmra.mrb[4].mxu0 %vm215_vm0, %v6961_v49  ;;  %6002 = vmatmul.mubr.msk.f32.gmra.mrb[4].mxu1 %vm215_vm0, %v6964_v50  ;;  %v1146_v49 = vld [vmem:[%s6698_s29 + $0x83] sm:$0xff]  ;;  %v3417_v50 = vld [vmem:[%s6698_s29 + $0x113] sm:$0xff] }
  0x88   : > { %5689 = vmatprep.mubr.msk.f32.mxu0 %vm215_vm0, %v6967_v51  ;;  %6004 = vmatprep.mubr.msk.f32.mxu1 %vm215_vm0, %v6970_v52  ;;  %v1147_v51 = vld [vmem:[%s6698_s29 + $0x8b] sm:$0xff]  ;;  %v3418_v52 = vld [vmem:[%s6698_s29 + $0x11b] sm:$0xff] }
  0x8b   : > { %5690 = vmatmul.mubr.msk.f32.gmra.mrb[6].mxu0 %vm215_vm0, %v6981_v53  ;;  %6005 = vmatmul.mubr.msk.f32.gmra.mrb[6].mxu1 %vm215_vm0, %v6984_v54  ;;  %v1148_v53 = vld [vmem:[%s6698_s29 + $0x93] sm:$0xff]  ;;  %v3419_v54 = vld [vmem:[%s6698_s29 + $0x123] sm:$0xff] }
  0x8c   : > { %5692 = vmatprep.mubr.msk.f32.mxu0 %vm215_vm0, %v6987_v55  ;;  %6007 = vmatprep.mubr.msk.f32.mxu1 %vm215_vm0, %v6990_v56  ;;  %v1149_v55 = vld [vmem:[%s6698_s29 + $0x9b] sm:$0xff]  ;;  %v3420_v56 = vld [vmem:[%s6698_s29 + $0x12b] sm:$0xff] }
  0x8f   : > { %5693 = vmatmul.mubr.msk.f32.gmra.mrb[8].mxu0 %vm215_vm0, %v645_v57  ;;  %6008 = vmatmul.mubr.msk.f32.gmra.mrb[8].mxu1 %vm215_vm0, %v2916_v58  ;;  %v1381_v57 = vld [vmem:[%s6698_s29 + $0x14] sm:$0xff]  ;;  %v7188_v58 = vld [vmem:[%s6698_s29 + $0xa4] sm:$0xff] }
  0x90   : > { %5695 = vmatprep.mubr.msk.f32.mxu0 %vm215_vm0, %v646_v59  ;;  %6010 = vmatprep.mubr.msk.f32.mxu1 %vm215_vm0, %v2917_v60  ;;  %v1650_v59 = vld [vmem:[%s7649_s1 + $0xd0] sm:$0xff]  ;;  %v1651_v60 = vld [vmem:[%s7649_s1 + $0xd8] sm:$0xff] }
  0x93   : > { %5696 = vmatmul.mubr.msk.f32.gmra.mrb[10].mxu0 %vm215_vm0, %v647_v61  ;;  %6011 = vmatmul.mubr.msk.f32.gmra.mrb[10].mxu1 %vm215_vm0, %v2918_v62  ;;  %v1382_v61 = vld [vmem:[%s6698_s29 + $0x1c] sm:$0xff]  ;;  %v7203_v62 = vld [vmem:[%s6698_s29 + $0xac] sm:$0xff] }
  0x94   : > { %5698 = vmatprep.mubr.msk.f32.mxu0 %vm215_vm0, %v648_v63  ;;  %6013 = vmatprep.mubr.msk.f32.mxu1 %vm215_vm0, %v2919_v0  ;;  %v7206_v63 = vld [vmem:[%s6698_s29 + $0x24] sm:$0xff]  ;;  %v7209_v0 = vld [vmem:[%s6698_s29 + $0xb4] sm:$0xff] }
  0x97   : > { %5699 = vmatmul.mubr.msk.f32.gmra.mrb[12].mxu0 %vm215_vm0, %v649_v1  ;;  %6014 = vmatmul.mubr.msk.f32.gmra.mrb[12].mxu1 %vm215_vm0, %v2920_v2  ;;  %v6249_v1 = vpack.c.bf16 %v1651_v60, %v1650_v59  ;;  %v1897_v2 = vld [vmem:[%s7649_s1 + $0xe0] sm:$0xff] }
  0x98   : > { %5701 = vmatprep.mubr.msk.f32.mxu0 %vm215_vm0, %v650_v3  ;;  %6016 = vmatprep.mubr.msk.f32.mxu1 %vm215_vm0, %v2921_v4  ;;  %v1898_v3 = vld [vmem:[%s7649_s1 + $0xe8] sm:$0xff]  ;;  %v1886_v60 = vld [vmem:[%s6698_s29 + $0x5d] sm:$0xff] }
  0x99   : > { %v7223_v4 = vld [vmem:[%s6698_s29 + $0x2c] sm:$0xff]  ;;  %v7238_v8 = vpack.c.bf16 %v1898_v3, %v1897_v2  ;;  %v1889_v2 = vld [vmem:[%s6698_s29 + $0x75] sm:$0xff] }
  0x9a   : > { %v4156_v59 = vld [vmem:[%s6698_s29 + $0xe5] sm:$0xff] }
  0x9b   : > { %5702 = vmatmul.mubr.msk.f32.gmra.mrb[14].mxu0 %vm215_vm0, %v651_v5  ;;  %6017 = vmatmul.mubr.msk.f32.gmra.mrb[14].mxu1 %vm215_vm0, %v2922_v6  ;;  %v7226_v5 = vld [vmem:[%s6698_s29 + $0xbc] sm:$0xff]  ;;  %v7233_v6 = vld [vmem:[%s6698_s29 + $0x34] sm:$0xff]  ;;  %v4160_v3 = vld [vmem:[%s6698_s29 + $0x105] sm:$0xff] }
  0x9c   : > { %5704 = vmatprep.mubr.msk.f32.mxu0 %vm215_vm0, %v6878_v30  ;;  %6019 = vmatprep.mubr.msk.f32.mxu1 %vm215_vm0, %v3170_v13  ;;  %v7128_v30 = vpack.c.bf16 %v1649_v25, %v1648_v24  ;;  %v7271_v13 = vld [vmem:[%s6698_s29 + $0x4c] sm:$0xff]  ;;  %v3664_v24 = vld [vmem:[%s6698_s29 + $0x104] sm:$0xff]  ;;  %v1394_v25 = vld [vmem:[%s6698_s29 + $0x7c] sm:$0xff] }
  0x9f   : > { %5705 = vmatmul.mubr.msk.f32.gmra.mrb[16].mxu0 %vm215_vm0, %v6893_v34  ;;  %6020 = vmatmul.mubr.msk.f32.gmra.mrb[16].mxu1 %vm215_vm0, %v3171_v14  ;;  %v3409_v34 = vld [vmem:[%s6698_s29 + $0xd3] sm:$0xff]  ;;  %v7274_v14 = vld [vmem:[%s6698_s29 + $0xdc] sm:$0xff] }
  0xa0   : > { %5715 = vmatprep.mubr.msk.f32.mxu0 %vm215_vm0, %v1132_v15  ;;  %6030 = vmatprep.mubr.msk.f32.mxu1 %vm215_vm0, %v3403_v16  ;;  %v7277_v15 = vld [vmem:[%s6698_s29 + $0x54] sm:$0xff]  ;;  %v7280_v16 = vld [vmem:[%s6698_s29 + $0xe4] sm:$0xff] }
  0xa3   : > { %5716 = vmatmul.mubr.msk.f32.vlgmr.msra.gmra.mrb[0].mxu0 %vm215_vm0, %v1133_v19  ;;  %6031 = vmatmul.mubr.msk.f32.vlgmr.msra.gmra.mrb[0].mxu1 %vm215_vm0, %v3404_v20  ;;  %v7297_v19 = vld [vmem:[%s6698_s29 + $0x64] sm:$0xff]  ;;  %v7300_v20 = vld [vmem:[%s6698_s29 + $0xf4] sm:$0xff] }
  0xa4   : > { %6240 = vmatpush3.bf16.msra.mxu0 %v6237_v12  ;;  %6312 = vmatpush3.bf16.msra.mxu1 %v6237_v12  ;;  %v7258_v12 = vld [vmem:[%s6698_s29 + $0xd4] sm:$0xff] }
  0xa5   : > { %5718 = vmatprep.mubr.msk.f32.mxu0 %vm215_vm0, %v1134_v21  ;;  %6033 = vmatprep.mubr.msk.f32.mxu1 %vm215_vm0, %v3405_v22  ;;  %v1392_v21 = vld [vmem:[%s6698_s29 + $0x6c] sm:$0xff]  ;;  %v3663_v22 = vld [vmem:[%s6698_s29 + $0xfc] sm:$0xff] }
  0xa6   : > { %6242 = vmatprep.subr.bf16.mxu0 %v6241_v23  ;;  %6314 = vmatprep.subr.bf16.mxu1 %v6241_v23 }
  0xa7   : > { %5719 = vmatmul.mubr.msk.f32.gmra.mrb[2].mxu0 %vm215_vm0, %v1135_v26  ;;  %6034 = vmatmul.mubr.msk.f32.gmra.mrb[2].mxu1 %vm215_vm0, %v3406_v27  ;;  %v3665_v26 = vld [vmem:[%s6698_s29 + $0x10c] sm:$0xff]  ;;  %v1395_v27 = vld [vmem:[%s6698_s29 + $0x84] sm:$0xff] }
  0xa8   : > { %5721 = vmatprep.mubr.msk.f32.mxu0 %vm215_vm0, %v1136_v28  ;;  %6036 = vmatprep.mubr.msk.f32.mxu1 %vm215_vm0, %v3407_v29  ;;  %v3666_v28 = vld [vmem:[%s6698_s29 + $0x114] sm:$0xff]  ;;  %v1396_v29 = vld [vmem:[%s6698_s29 + $0x8c] sm:$0xff] }
  0xa9   : > { %6244 = vmatpush3.bf16.msra.mxu0 %v6241_v23  ;;  %6316 = vmatpush3.bf16.msra.mxu1 %v6241_v23  ;;  %v1393_v23 = vld [vmem:[%s6698_s29 + $0x74] sm:$0xff] }
  0xaa   : > { %6246 = vmatprep.subr.bf16.mxu0 %v7128_v30  ;;  %6318 = vmatprep.subr.bf16.mxu1 %v7128_v30 }
  0xab   : > { %5722 = vmatmul.mubr.msk.f32.gmra.mrb[4].mxu0 %vm215_vm0, %v1137_v31  ;;  %6037 = vmatmul.mubr.msk.f32.gmra.mrb[4].mxu1 %vm215_vm0, %v3408_v32  ;;  %v1397_v31 = vld [vmem:[%s6698_s29 + $0x94] sm:$0xff]  ;;  %v3668_v32 = vld [vmem:[%s6698_s29 + $0x124] sm:$0xff] }
  0xac   : > { %5724 = vmatprep.mubr.msk.f32.mxu0 %vm215_vm0, %v1138_v33  ;;  %6039 = vmatprep.mubr.msk.f32.mxu1 %vm215_vm0, %v3409_v34  ;;  %v1398_v33 = vld [vmem:[%s6698_s29 + $0x9c] sm:$0xff]  ;;  %v3669_v34 = vld [vmem:[%s6698_s29 + $0x12c] sm:$0xff] }
  0xaf   : > { %5725 = vmatmul.mubr.msk.f32.gmra.mrb[6].mxu0 %vm215_vm0, %v1139_v35  ;;  %6040 = vmatmul.mubr.msk.f32.gmra.mrb[6].mxu1 %vm215_vm0, %v3410_v36  ;;  %v1899_v35 = vld [vmem:[%s7649_s1 + $0xf0] sm:$0xff]  ;;  %v1900_v36 = vld [vmem:[%s7649_s1 + $0xf8] sm:$0xff] }
  0xb0   : > { %5727 = vmatprep.mubr.msk.f32.mxu0 %vm215_vm0, %v1140_v37  ;;  %6042 = vmatprep.mubr.msk.f32.mxu1 %vm215_vm0, %v3411_v38  ;;  %v6257_v37 = vpack.c.bf16 %v1900_v36, %v1899_v35  ;;  %v2146_v38 = vld [vmem:[%s7649_s1 + $0x100] sm:$0xff]  ;;  %v4407_v35 = vld [vmem:[%s6698_s29 + $0xf6] sm:$0xff]  ;;  %v2137_v36 = vld [vmem:[%s6698_s29 + $0x6e] sm:$0xff] }
  0xb3   : > { %5728 = vmatmul.mubr.msk.f32.gmra.mrb[8].mxu0 %vm215_vm0, %v1141_v39  ;;  %6043 = vmatmul.mubr.msk.f32.gmra.mrb[8].mxu1 %vm215_vm0, %v3412_v40  ;;  %v2147_v39 = vld [vmem:[%s7649_s1 + $0x108] sm:$0xff] }
  0xb4   : > { %5730 = vmatprep.mubr.msk.f32.mxu0 %vm215_vm0, %v1142_v41  ;;  %6045 = vmatprep.mubr.msk.f32.mxu1 %vm215_vm0, %v3413_v42  ;;  %v6261_v40 = vpack.c.bf16 %v2147_v39, %v2146_v38  ;;  %v3917_v41 = vld [vmem:[%s6698_s29 + $0x134] sm:$0xff]  ;;  %v3918_v42 = vld [vmem:[%s6698_s29 + $0x13c] sm:$0xff]  ;;  %v4409_v39 = vld [vmem:[%s6698_s29 + $0x106] sm:$0xff] }
  0xb5   : > { %v2138_v38 = vld [vmem:[%s6698_s29 + $0x76] sm:$0xff] }
  0xb7   : > { %5731 = vmatmul.mubr.msk.f32.gmra.mrb[10].mxu0 %vm215_vm0, %v1143_v43  ;;  %6046 = vmatmul.mubr.msk.f32.gmra.mrb[10].mxu1 %vm215_vm0, %v3414_v44  ;;  %v1879_v43 = vld [vmem:[%s6698_s29 + $0x25] sm:$0xff]  ;;  %v4150_v44 = vld [vmem:[%s6698_s29 + $0xb5] sm:$0xff] }
  0xb8   : > { %5733 = vmatprep.mubr.msk.f32.mxu0 %vm215_vm0, %v1144_v45  ;;  %6048 = vmatprep.mubr.msk.f32.mxu1 %vm215_vm0, %v3415_v46  ;;  %v2148_v45 = vld [vmem:[%s7649_s1 + $0x110] sm:$0xff]  ;;  %v2149_v46 = vld [vmem:[%s7649_s1 + $0x118] sm:$0xff] }
  0xbb   : > { %5734 = vmatmul.mubr.msk.f32.gmra.mrb[12].mxu0 %vm215_vm0, %v1145_v47  ;;  %6049 = vmatmul.mubr.msk.f32.gmra.mrb[12].mxu1 %vm215_vm0, %v3416_v48  ;;  %v1880_v47 = vld [vmem:[%s6698_s29 + $0x2d] sm:$0xff]  ;;  %v4151_v48 = vld [vmem:[%s6698_s29 + $0xbd] sm:$0xff] }
  0xbc   : > { %5736 = vmatprep.mubr.msk.f32.mxu0 %vm215_vm0, %v1146_v49  ;;  %6051 = vmatprep.mubr.msk.f32.mxu1 %vm215_vm0, %v3417_v50  ;;  %v1881_v49 = vld [vmem:[%s6698_s29 + $0x35] sm:$0xff]  ;;  %v4152_v50 = vld [vmem:[%s6698_s29 + $0xc5] sm:$0xff] }
  0xbf   : > { %5737 = vmatmul.mubr.msk.f32.gmra.mrb[14].mxu0 %vm215_vm0, %v1147_v51  ;;  %6052 = vmatmul.mubr.msk.f32.gmra.mrb[14].mxu1 %vm215_vm0, %v3418_v52  ;;  %v6265_v51 = vpack.c.bf16 %v2149_v46, %v2148_v45  ;;  %v1882_v52 = vld [vmem:[%s6698_s29 + $0x3d] sm:$0xff] }
  0xc0   : > { %5739 = vmatprep.mubr.msk.f32.mxu0 %vm215_vm0, %v1148_v53  ;;  %6054 = vmatprep.mubr.msk.f32.mxu1 %vm215_vm0, %v3419_v54  ;;  %v4153_v53 = vld [vmem:[%s6698_s29 + $0xcd] sm:$0xff]  ;;  %v1883_v54 = vld [vmem:[%s6698_s29 + $0x45] sm:$0xff]  ;;  %v2142_v46 = vld [vmem:[%s6698_s29 + $0x96] sm:$0xff] }
  0xc1   : > { %v4412_v45 = vld [vmem:[%s6698_s29 + $0x11e] sm:$0xff] }
  0xc3   : > { %5740 = vmatmul.mubr.msk.f32.gmra.mrb[16].mxu0 %vm215_vm0, %v1149_v55  ;;  %6055 = vmatmul.mubr.msk.f32.gmra.mrb[16].mxu1 %vm215_vm0, %v3420_v56  ;;  %v4154_v55 = vld [vmem:[%s6698_s29 + $0xd5] sm:$0xff]  ;;  %v1884_v56 = vld [vmem:[%s6698_s29 + $0x4d] sm:$0xff] }
  0xc4   : > { %5750 = vmatprep.mubr.msk.f32.mxu0 %vm215_vm0, %v1381_v57  ;;  %6065 = vmatprep.mubr.msk.f32.mxu1 %vm215_vm0, %v7188_v58  ;;  %v4155_v57 = vld [vmem:[%s6698_s29 + $0xdd] sm:$0xff] }
  0xc7   : > { %5751 = vmatmul.mubr.msk.f32.vlgmr.msra.gmra.mrb[0].mxu0 %vm215_vm0, %v1382_v61  ;;  %6066 = vmatmul.mubr.msk.f32.vlgmr.msra.gmra.mrb[0].mxu1 %vm215_vm0, %v7203_v62  ;;  %v4157_v61 = vld [vmem:[%s6698_s29 + $0xed] sm:$0xff] }
  0xc8   : > { %6248 = vmatpush3.bf16.msra.mxu0 %v7128_v30  ;;  %6320 = vmatpush3.bf16.msra.mxu1 %v7128_v30  ;;  %v3667_v30 = vld [vmem:[%s6698_s29 + $0x11c] sm:$0xff] }
  0xc9   : > { %5753 = vmatprep.mubr.msk.f32.mxu0 %vm215_vm0, %v7206_v63  ;;  %6068 = vmatprep.mubr.msk.f32.mxu1 %vm215_vm0, %v7209_v0 }
  0xca   : > { %6250 = vmatprep.subr.bf16.mxu0 %v6249_v1  ;;  %6322 = vmatprep.subr.bf16.mxu1 %v6249_v1 }
  0xcb   : > { %5754 = vmatmul.mubr.msk.f32.gmra.mrb[2].mxu0 %vm215_vm0, %v7223_v4  ;;  %6069 = vmatmul.mubr.msk.f32.gmra.mrb[2].mxu1 %vm215_vm0, %v7226_v5 }
  0xcc   : > { %5756 = vmatprep.mubr.msk.f32.mxu0 %vm215_vm0, %v7233_v6  ;;  %6071 = vmatprep.mubr.msk.f32.mxu1 %vm215_vm0, %v7236_v7 }
  0xcd   : > { %6252 = vmatpush3.bf16.msra.mxu0 %v6249_v1  ;;  %6324 = vmatpush3.bf16.msra.mxu1 %v6249_v1  ;;  %v4159_v1 = vld [vmem:[%s6698_s29 + $0xfd] sm:$0xff] }
  0xce   : > { %6254 = vmatprep.subr.bf16.mxu0 %v7238_v8  ;;  %6326 = vmatprep.subr.bf16.mxu1 %v7238_v8 }
  0xcf   : > { %5757 = vmatmul.mubr.msk.f32.gmra.mrb[4].mxu0 %vm215_vm0, %v7249_v9  ;;  %6072 = vmatmul.mubr.msk.f32.gmra.mrb[4].mxu1 %vm215_vm0, %v7252_v10 }
  0xd0   : > { %5759 = vmatprep.mubr.msk.f32.mxu0 %vm215_vm0, %v7255_v11  ;;  %6074 = vmatprep.mubr.msk.f32.mxu1 %vm215_vm0, %v7258_v12 }
  0xd3   : > { %5760 = vmatmul.mubr.msk.f32.gmra.mrb[6].mxu0 %vm215_vm0, %v7271_v13  ;;  %6075 = vmatmul.mubr.msk.f32.gmra.mrb[6].mxu1 %vm215_vm0, %v7274_v14 }
  0xd4   : > { %5762 = vmatprep.mubr.msk.f32.mxu0 %vm215_vm0, %v7277_v15  ;;  %6077 = vmatprep.mubr.msk.f32.mxu1 %vm215_vm0, %v7280_v16 }
  0xd7   : > { %5763 = vmatmul.mubr.msk.f32.gmra.mrb[8].mxu0 %vm215_vm0, %v7291_v17  ;;  %6078 = vmatmul.mubr.msk.f32.gmra.mrb[8].mxu1 %vm215_vm0, %v7294_v18 }
  0xd8   : > { %5765 = vmatprep.mubr.msk.f32.mxu0 %vm215_vm0, %v7297_v19  ;;  %6080 = vmatprep.mubr.msk.f32.mxu1 %vm215_vm0, %v7300_v20 }
  0xdb   : > { %5766 = vmatmul.mubr.msk.f32.gmra.mrb[10].mxu0 %vm215_vm0, %v1392_v21  ;;  %6081 = vmatmul.mubr.msk.f32.gmra.mrb[10].mxu1 %vm215_vm0, %v3663_v22 }
  0xdc   : > { %5768 = vmatprep.mubr.msk.f32.mxu0 %vm215_vm0, %v1393_v23  ;;  %6083 = vmatprep.mubr.msk.f32.mxu1 %vm215_vm0, %v3664_v24 }
  0xdf   : > { %5769 = vmatmul.mubr.msk.f32.gmra.mrb[12].mxu0 %vm215_vm0, %v1394_v25  ;;  %6084 = vmatmul.mubr.msk.f32.gmra.mrb[12].mxu1 %vm215_vm0, %v3665_v26 }
  0xe0   : > { %5771 = vmatprep.mubr.msk.f32.mxu0 %vm215_vm0, %v1395_v27  ;;  %6086 = vmatprep.mubr.msk.f32.mxu1 %vm215_vm0, %v3666_v28 }
  0xe3   : > { %5772 = vmatmul.mubr.msk.f32.gmra.mrb[14].mxu0 %vm215_vm0, %v1396_v29  ;;  %6087 = vmatmul.mubr.msk.f32.gmra.mrb[14].mxu1 %vm215_vm0, %v3667_v30 }
  0xe4   : > { %5774 = vmatprep.mubr.msk.f32.mxu0 %vm215_vm0, %v1397_v31  ;;  %6089 = vmatprep.mubr.msk.f32.mxu1 %vm215_vm0, %v3668_v32 }
  0xe7   : > { %5775 = vmatmul.mubr.msk.f32.gmra.mrb[16].mxu0 %vm215_vm0, %v1398_v33  ;;  %6090 = vmatmul.mubr.msk.f32.gmra.mrb[16].mxu1 %vm215_vm0, %v3669_v34 }
  0xe8   : > { %5785 = vmatprep.mubr.msk.f32.mxu0 %vm215_vm0, %v7206_v63  ;;  %6100 = vmatprep.mubr.msk.f32.mxu1 %vm215_vm0, %v7209_v0  ;;  %v4158_v63 = vld [vmem:[%s6698_s29 + $0xf5] sm:$0xff]  ;;  %v1888_v0 = vld [vmem:[%s6698_s29 + $0x6d] sm:$0xff] }
  0xeb   : > { %5786 = vmatmul.mubr.msk.f32.vlgmr.msra.gmra.mrb[0].mxu0 %vm215_vm0, %v7223_v4  ;;  %6101 = vmatmul.mubr.msk.f32.vlgmr.msra.gmra.mrb[0].mxu1 %vm215_vm0, %v7226_v5  ;;  %v1890_v4 = vld [vmem:[%s6698_s29 + $0x7d] sm:$0xff]  ;;  %v4161_v5 = vld [vmem:[%s6698_s29 + $0x10d] sm:$0xff] }
  0xec   : > { %6256 = vmatpush3.bf16.msra.mxu0 %v7238_v8  ;;  %6328 = vmatpush3.bf16.msra.mxu1 %v7238_v8  ;;  %v1892_v8 = vld [vmem:[%s6698_s29 + $0x8d] sm:$0xff] }
  0xed   : > { %5788 = vmatprep.mubr.msk.f32.mxu0 %vm215_vm0, %v7233_v6  ;;  %6103 = vmatprep.mubr.msk.f32.mxu1 %vm215_vm0, %v7236_v7  ;;  %v1891_v6 = vld [vmem:[%s6698_s29 + $0x85] sm:$0xff]  ;;  %v4162_v7 = vld [vmem:[%s6698_s29 + $0x115] sm:$0xff] }
  0xee   : > { %6258 = vmatprep.subr.bf16.mxu0 %v6257_v37  ;;  %6330 = vmatprep.subr.bf16.mxu1 %v6257_v37 }
  0xef   : > { %5789 = vmatmul.mubr.msk.f32.gmra.mrb[2].mxu0 %vm215_vm0, %v7249_v9  ;;  %6104 = vmatmul.mubr.msk.f32.gmra.mrb[2].mxu1 %vm215_vm0, %v7252_v10  ;;  %v4163_v9 = vld [vmem:[%s6698_s29 + $0x11d] sm:$0xff]  ;;  %v1893_v10 = vld [vmem:[%s6698_s29 + $0x95] sm:$0xff] }
  0xf0   : > { %5791 = vmatprep.mubr.msk.f32.mxu0 %vm215_vm0, %v7255_v11  ;;  %6106 = vmatprep.mubr.msk.f32.mxu1 %vm215_vm0, %v7258_v12  ;;  %v4164_v11 = vld [vmem:[%s6698_s29 + $0x125] sm:$0xff]  ;;  %v1894_v12 = vld [vmem:[%s6698_s29 + $0x9d] sm:$0xff] }
  0xf1   : > { %6260 = vmatpush3.bf16.msra.mxu0 %v6257_v37  ;;  %6332 = vmatpush3.bf16.msra.mxu1 %v6257_v37  ;;  %v4408_v37 = vld [vmem:[%s6698_s29 + $0xfe] sm:$0xff] }
  0xf2   : > { %6262 = vmatprep.subr.bf16.mxu0 %v6261_v40  ;;  %6334 = vmatprep.subr.bf16.mxu1 %v6261_v40 }
  0xf3   : > { %5792 = vmatmul.mubr.msk.f32.gmra.mrb[4].mxu0 %vm215_vm0, %v7271_v13  ;;  %6107 = vmatmul.mubr.msk.f32.gmra.mrb[4].mxu1 %vm215_vm0, %v7274_v14  ;;  %v4165_v13 = vld [vmem:[%s6698_s29 + $0x12d] sm:$0xff]  ;;  %v1895_v14 = vld [vmem:[%s6698_s29 + $0xa5] sm:$0xff] }
  0xf4   : > { %5794 = vmatprep.mubr.msk.f32.mxu0 %vm215_vm0, %v7277_v15  ;;  %6109 = vmatprep.mubr.msk.f32.mxu1 %vm215_vm0, %v7280_v16  ;;  %v4166_v15 = vld [vmem:[%s6698_s29 + $0x135] sm:$0xff]  ;;  %v1896_v16 = vld [vmem:[%s6698_s29 + $0xad] sm:$0xff] }
  0xf7   : > { %5795 = vmatmul.mubr.msk.f32.gmra.mrb[6].mxu0 %vm215_vm0, %v7291_v17  ;;  %6110 = vmatmul.mubr.msk.f32.gmra.mrb[6].mxu1 %vm215_vm0, %v7294_v18  ;;  %v4167_v17 = vld [vmem:[%s6698_s29 + $0x13d] sm:$0xff]  ;;  %v2128_v18 = vld [vmem:[%s6698_s29 + $0x26] sm:$0xff] }
  0xf8   : > { %5797 = vmatprep.mubr.msk.f32.mxu0 %vm215_vm0, %v7297_v19  ;;  %6112 = vmatprep.mubr.msk.f32.mxu1 %vm215_vm0, %v7300_v20  ;;  %v4399_v19 = vld [vmem:[%s6698_s29 + $0xb6] sm:$0xff]  ;;  %v2129_v20 = vld [vmem:[%s6698_s29 + $0x2e] sm:$0xff] }
  0xfb   : > { %5798 = vmatmul.mubr.msk.f32.gmra.mrb[8].mxu0 %vm215_vm0, %v1392_v21  ;;  %6113 = vmatmul.mubr.msk.f32.gmra.mrb[8].mxu1 %vm215_vm0, %v3663_v22  ;;  %v4400_v21 = vld [vmem:[%s6698_s29 + $0xbe] sm:$0xff]  ;;  %v2130_v22 = vld [vmem:[%s6698_s29 + $0x36] sm:$0xff] }
  0xfc   : > { %5800 = vmatprep.mubr.msk.f32.mxu0 %vm215_vm0, %v1393_v23  ;;  %6115 = vmatprep.mubr.msk.f32.mxu1 %vm215_vm0, %v3664_v24  ;;  %v4401_v23 = vld [vmem:[%s6698_s29 + $0xc6] sm:$0xff]  ;;  %v2131_v24 = vld [vmem:[%s6698_s29 + $0x3e] sm:$0xff] }
  0xff   : > { %5801 = vmatmul.mubr.msk.f32.gmra.mrb[10].mxu0 %vm215_vm0, %v1394_v25  ;;  %6116 = vmatmul.mubr.msk.f32.gmra.mrb[10].mxu1 %vm215_vm0, %v3665_v26  ;;  %v4402_v25 = vld [vmem:[%s6698_s29 + $0xce] sm:$0xff]  ;;  %v2132_v26 = vld [vmem:[%s6698_s29 + $0x46] sm:$0xff] }
 0x100   : > { %5803 = vmatprep.mubr.msk.f32.mxu0 %vm215_vm0, %v1395_v27  ;;  %6118 = vmatprep.mubr.msk.f32.mxu1 %vm215_vm0, %v3666_v28  ;;  %v4403_v27 = vld [vmem:[%s6698_s29 + $0xd6] sm:$0xff]  ;;  %v2133_v28 = vld [vmem:[%s6698_s29 + $0x4e] sm:$0xff] }
 0x103   : > { %5804 = vmatmul.mubr.msk.f32.gmra.mrb[12].mxu0 %vm215_vm0, %v1396_v29  ;;  %6119 = vmatmul.mubr.msk.f32.gmra.mrb[12].mxu1 %vm215_vm0, %v3667_v30  ;;  %v4404_v29 = vld [vmem:[%s6698_s29 + $0xde] sm:$0xff]  ;;  %v2134_v30 = vld [vmem:[%s6698_s29 + $0x56] sm:$0xff] }
 0x104   : > { %5806 = vmatprep.mubr.msk.f32.mxu0 %vm215_vm0, %v1397_v31  ;;  %6121 = vmatprep.mubr.msk.f32.mxu1 %vm215_vm0, %v3668_v32  ;;  %v4405_v31 = vld [vmem:[%s6698_s29 + $0xe6] sm:$0xff]  ;;  %v2135_v32 = vld [vmem:[%s6698_s29 + $0x5e] sm:$0xff] }
 0x107   : > { %5807 = vmatmul.mubr.msk.f32.gmra.mrb[14].mxu0 %vm215_vm0, %v1398_v33  ;;  %6122 = vmatmul.mubr.msk.f32.gmra.mrb[14].mxu1 %vm215_vm0, %v3669_v34  ;;  %v4406_v33 = vld [vmem:[%s6698_s29 + $0xee] sm:$0xff]  ;;  %v2136_v34 = vld [vmem:[%s6698_s29 + $0x66] sm:$0xff] }
 0x108   : > { %5809 = vmatprep.mubr.msk.f32.mxu0 %vm215_vm0, %v7188_v58  ;;  %6124 = vmatprep.mubr.msk.f32.mxu1 %vm215_vm0, %v3917_v41  ;;  %v1885_v58 = vld [vmem:[%s6698_s29 + $0x55] sm:$0xff] }
 0x109   : > { %v4410_v41 = vld [vmem:[%s6698_s29 + $0x10e] sm:$0xff] }
 0x10b   : > { %5810 = vmatmul.mubr.msk.f32.gmra.mrb[16].mxu0 %vm215_vm0, %v7203_v62  ;;  %6125 = vmatmul.mubr.msk.f32.gmra.mrb[16].mxu1 %vm215_vm0, %v3918_v42  ;;  %v1887_v62 = vld [vmem:[%s6698_s29 + $0x65] sm:$0xff] }
 0x10c   : > { %5820 = vmatprep.mubr.msk.f32.mxu0 %vm215_vm0, %v1879_v43  ;;  %6135 = vmatprep.mubr.msk.f32.mxu1 %vm215_vm0, %v4150_v44  ;;  %v2140_v42 = vld [vmem:[%s6698_s29 + $0x86] sm:$0xff]  ;;  %v4411_v43 = vld [vmem:[%s6698_s29 + $0x116] sm:$0xff]  ;;  %v2141_v44 = vld [vmem:[%s6698_s29 + $0x8e] sm:$0xff] }
 0x10f   : > { %5821 = vmatmul.mubr.msk.f32.vlgmr.msra.gmra.mrb[0].mxu0 %vm215_vm0, %v1880_v47  ;;  %6136 = vmatmul.mubr.msk.f32.vlgmr.msra.gmra.mrb[0].mxu1 %vm215_vm0, %v4151_v48  ;;  %v4413_v47 = vld [vmem:[%s6698_s29 + $0x126] sm:$0xff]  ;;  %v2143_v48 = vld [vmem:[%s6698_s29 + $0x9e] sm:$0xff] }
 0x110   : > { %6264 = vmatpush3.bf16.msra.mxu0 %v6261_v40  ;;  %6336 = vmatpush3.bf16.msra.mxu1 %v6261_v40  ;;  %v2139_v40 = vld [vmem:[%s6698_s29 + $0x7e] sm:$0xff] }
 0x111   : > { %5823 = vmatprep.mubr.msk.f32.mxu0 %vm215_vm0, %v1881_v49  ;;  %6138 = vmatprep.mubr.msk.f32.mxu1 %vm215_vm0, %v4152_v50  ;;  %v4414_v49 = vld [vmem:[%s6698_s29 + $0x12e] sm:$0xff]  ;;  %v2144_v50 = vld [vmem:[%s6698_s29 + $0xa6] sm:$0xff] }
 0x112   : > { %6266 = vmatprep.subr.bf16.mxu0 %v6265_v51  ;;  %6338 = vmatprep.subr.bf16.mxu1 %v6265_v51 }
 0x113   : > { %5824 = vmatmul.mubr.msk.f32.gmra.mrb[2].mxu0 %vm215_vm0, %v1882_v52  ;;  %6139 = vmatmul.mubr.msk.f32.gmra.mrb[2].mxu1 %vm215_vm0, %v4153_v53  ;;  %v2145_v52 = vld [vmem:[%s6698_s29 + $0xae] sm:$0xff]  ;;  %v4416_v53 = vld [vmem:[%s6698_s29 + $0x13e] sm:$0xff] }
 0x114   : > { %5826 = vmatprep.mubr.msk.f32.mxu0 %vm215_vm0, %v1883_v54  ;;  %6141 = vmatprep.mubr.msk.f32.mxu1 %vm215_vm0, %v4154_v55 }
 0x115   : > { %6268 = vmatpush3.bf16.msra.mxu0 %v6265_v51  ;;  %6340 = vmatpush3.bf16.msra.mxu1 %v6265_v51  ;;  %v4415_v51 = vld [vmem:[%s6698_s29 + $0x136] sm:$0xff] }
 0x117   : > { %5827 = vmatmul.mubr.msk.f32.gmra.mrb[4].mxu0 %vm215_vm0, %v1884_v56  ;;  %6142 = vmatmul.mubr.msk.f32.gmra.mrb[4].mxu1 %vm215_vm0, %v4155_v57 }
 0x118   : > { %5829 = vmatprep.mubr.msk.f32.mxu0 %vm215_vm0, %v1885_v58  ;;  %6144 = vmatprep.mubr.msk.f32.mxu1 %vm215_vm0, %v4156_v59 }
 0x11b   : > { %5830 = vmatmul.mubr.msk.f32.gmra.mrb[6].mxu0 %vm215_vm0, %v1886_v60  ;;  %6145 = vmatmul.mubr.msk.f32.gmra.mrb[6].mxu1 %vm215_vm0, %v4157_v61 }
 0x11c   : > { %5832 = vmatprep.mubr.msk.f32.mxu0 %vm215_vm0, %v1887_v62  ;;  %6147 = vmatprep.mubr.msk.f32.mxu1 %vm215_vm0, %v4158_v63 }
 0x11f   : > { %5833 = vmatmul.mubr.msk.f32.gmra.mrb[8].mxu0 %vm215_vm0, %v1888_v0  ;;  %6148 = vmatmul.mubr.msk.f32.gmra.mrb[8].mxu1 %vm215_vm0, %v4159_v1 }
 0x120   : > { %5835 = vmatprep.mubr.msk.f32.mxu0 %vm215_vm0, %v1889_v2  ;;  %6150 = vmatprep.mubr.msk.f32.mxu1 %vm215_vm0, %v4160_v3 }
 0x123   : > { %5836 = vmatmul.mubr.msk.f32.gmra.mrb[10].mxu0 %vm215_vm0, %v1890_v4  ;;  %6151 = vmatmul.mubr.msk.f32.gmra.mrb[10].mxu1 %vm215_vm0, %v4161_v5 }
 0x124   : > { %5838 = vmatprep.mubr.msk.f32.mxu0 %vm215_vm0, %v1891_v6  ;;  %6153 = vmatprep.mubr.msk.f32.mxu1 %vm215_vm0, %v4162_v7 }
 0x127   : > { %5839 = vmatmul.mubr.msk.f32.gmra.mrb[12].mxu0 %vm215_vm0, %v1892_v8  ;;  %6154 = vmatmul.mubr.msk.f32.gmra.mrb[12].mxu1 %vm215_vm0, %v4163_v9 }
 0x128   : > { %5841 = vmatprep.mubr.msk.f32.mxu0 %vm215_vm0, %v1893_v10  ;;  %6156 = vmatprep.mubr.msk.f32.mxu1 %vm215_vm0, %v4164_v11 }
 0x12b   : > { %5842 = vmatmul.mubr.msk.f32.gmra.mrb[14].mxu0 %vm215_vm0, %v1894_v12  ;;  %6157 = vmatmul.mubr.msk.f32.gmra.mrb[14].mxu1 %vm215_vm0, %v4165_v13 }
 0x12c   : > { %5844 = vmatprep.mubr.msk.f32.mxu0 %vm215_vm0, %v1895_v14  ;;  %6159 = vmatprep.mubr.msk.f32.mxu1 %vm215_vm0, %v4166_v15 }
 0x12f   : > { %5845 = vmatmul.mubr.msk.f32.gmra.mrb[16].mxu0 %vm215_vm0, %v1896_v16  ;;  %6160 = vmatmul.mubr.msk.f32.gmra.mrb[16].mxu1 %vm215_vm0, %v4167_v17 }
 0x130   : > { %5855 = vmatprep.mubr.msk.f32.mxu0 %vm215_vm0, %v2128_v18  ;;  %6170 = vmatprep.mubr.msk.f32.mxu1 %vm215_vm0, %v4399_v19 }
 0x133   : > { %5856 = vmatmul.mubr.msk.f32.vlgmr.msra.gmra.mrb[0].mxu0 %vm215_vm0, %v2129_v20  ;;  %6171 = vmatmul.mubr.msk.f32.vlgmr.msra.gmra.mrb[0].mxu1 %vm215_vm0, %v4400_v21 }
 0x134   : > { %5858 = vmatprep.mubr.msk.f32.mxu0 %vm215_vm0, %v2130_v22  ;;  %6173 = vmatprep.mubr.msk.f32.mxu1 %vm215_vm0, %v4401_v23 }
 0x137   : > { %5859 = vmatmul.mubr.msk.f32.gmra.mrb[2].mxu0 %vm215_vm0, %v2131_v24  ;;  %6174 = vmatmul.mubr.msk.f32.gmra.mrb[2].mxu1 %vm215_vm0, %v4402_v25 }
 0x138   : > { %5861 = vmatprep.mubr.msk.f32.mxu0 %vm215_vm0, %v2132_v26  ;;  %6176 = vmatprep.mubr.msk.f32.mxu1 %vm215_vm0, %v4403_v27 }
 0x13b   : > { %5862 = vmatmul.mubr.msk.f32.gmra.mrb[4].mxu0 %vm215_vm0, %v2133_v28  ;;  %6177 = vmatmul.mubr.msk.f32.gmra.mrb[4].mxu1 %vm215_vm0, %v4404_v29 }
 0x13c   : > { %5864 = vmatprep.mubr.msk.f32.mxu0 %vm215_vm0, %v2134_v30  ;;  %6179 = vmatprep.mubr.msk.f32.mxu1 %vm215_vm0, %v4405_v31 }
 0x13f   : > { %5865 = vmatmul.mubr.msk.f32.gmra.mrb[6].mxu0 %vm215_vm0, %v2135_v32  ;;  %6180 = vmatmul.mubr.msk.f32.gmra.mrb[6].mxu1 %vm215_vm0, %v4406_v33 }
 0x140   : > { %5867 = vmatprep.mubr.msk.f32.mxu0 %vm215_vm0, %v2136_v34  ;;  %6182 = vmatprep.mubr.msk.f32.mxu1 %vm215_vm0, %v4407_v35 }
 0x143   : > { %5868 = vmatmul.mubr.msk.f32.gmra.mrb[8].mxu0 %vm215_vm0, %v2137_v36  ;;  %6183 = vmatmul.mubr.msk.f32.gmra.mrb[8].mxu1 %vm215_vm0, %v4408_v37 }
 0x144   : > { %5870 = vmatprep.mubr.msk.f32.mxu0 %vm215_vm0, %v2138_v38  ;;  %6185 = vmatprep.mubr.msk.f32.mxu1 %vm215_vm0, %v4409_v39 }
 0x147   : > { %5871 = vmatmul.mubr.msk.f32.gmra.mrb[10].mxu0 %vm215_vm0, %v2139_v40  ;;  %6186 = vmatmul.mubr.msk.f32.gmra.mrb[10].mxu1 %vm215_vm0, %v4410_v41  ;;  %v7581_v40 = vld [vmem:[%s7650_s2] ss:$0 sm:$0xff] }
 0x148   : > { %5873 = vmatprep.mubr.msk.f32.mxu0 %vm215_vm0, %v2140_v42  ;;  %6188 = vmatprep.mubr.msk.f32.mxu1 %vm215_vm0, %v4411_v43 }
 0x14b   : > { %5874 = vmatmul.mubr.msk.f32.gmra.mrb[12].mxu0 %vm215_vm0, %v2141_v44  ;;  %6189 = vmatmul.mubr.msk.f32.gmra.mrb[12].mxu1 %vm215_vm0, %v4412_v45 }
 0x14c   : > { %5876 = vmatprep.mubr.msk.f32.mxu0 %vm215_vm0, %v2142_v46  ;;  %6191 = vmatprep.mubr.msk.f32.mxu1 %vm215_vm0, %v4413_v47 }
 0x14f   : > { %5877 = vmatmul.mubr.msk.f32.gmra.mrb[14].mxu0 %vm215_vm0, %v2143_v48  ;;  %6192 = vmatmul.mubr.msk.f32.gmra.mrb[14].mxu1 %vm215_vm0, %v4414_v49 }
 0x150   : > { %5879 = vmatprep.mubr.msk.f32.mxu0 %vm215_vm0, %v2144_v50  ;;  %6194 = vmatprep.mubr.msk.f32.mxu1 %vm215_vm0, %v4415_v51 }
 0x153   : > { %5880 = vmatmul.mubr.msk.f32.gmra.mrb[16].mxu0 %vm215_vm0, %v2145_v52  ;;  %6195 = vmatmul.mubr.msk.f32.gmra.mrb[16].mxu1 %vm215_vm0, %v4416_v53 }
 0x206   : > { %v5857_v54 = vpop.f32.mrb[0].mxu0  ;;  %v6172_v55 = vpop.f32.mrb[0].mxu1 }
 0x207   : > { %v2270_v56 = vpop.f32.mrb[1].mxu0  ;;  %v4541_v57 = vpop.f32.mrb[1].mxu1 }
 0x20a   : > { %v5860_v58 = vpop.f32.mrb[2].mxu0  ;;  %v6175_v59 = vpop.f32.mrb[2].mxu1 }
 0x20b   : > { %v2382_v60 = vrot.slane %v5860_v58, 2  ;;  %v4652_v61 = vrot.slane %v6175_v59, 2  ;;  %v2280_v62 = vpop.f32.mrb[3].mxu0  ;;  %v4551_v63 = vpop.f32.mrb[3].mxu1 }
 0x20c   : > { %v2381_v0 = vrot.slane %v2280_v62, 2  ;;  %v4651_v1 = vrot.slane %v4551_v63, 2 }
 0x20e   : > { %v2383_v2 = vsel %vm2380_vm1, %v2381_v0, %v2382_v60  ;;  %v4653_v3 = vsel %vm2380_vm1, %v4651_v1, %v4652_v61  ;;  %v5863_v4 = vpop.f32.mrb[4].mxu0  ;;  %v6178_v5 = vpop.f32.mrb[4].mxu1 }
 0x20f   : > { %v2388_v6 = vmax.f32 %v2270_v56, %v2383_v2  ;;  %v4658_v7 = vmax.f32 %v4541_v57, %v4653_v3  ;;  %v2290_v8 = vpop.f32.mrb[5].mxu0  ;;  %v4561_v9 = vpop.f32.mrb[5].mxu1 }
 0x210   : > { %v2384_v10 = vrot.slane %v2290_v8, 2  ;;  %v4654_v11 = vrot.slane %v4561_v9, 2 }
 0x211   : > { %2391 = vst.msk [vmem:[#allocation2] sm:$0xff] %vm2390_vm2, %v2388_v6  ;;  %4660 = vst.msk [vmem:[#allocation2 + $0x40] sm:$0xff] %vm2390_vm2, %v4658_v7 }
 0x212   : > { %v2385_v12 = vsel %vm2380_vm1, %v2382_v60, %v2384_v10  ;;  %v4655_v13 = vsel %vm2380_vm1, %v4652_v61, %v4654_v11  ;;  %v5866_v14 = vpop.f32.mrb[6].mxu0  ;;  %v6181_v15 = vpop.f32.mrb[6].mxu1 }
 0x213   : > { %v2389_v16 = vmax.f32 %v5857_v54, %v2385_v12  ;;  %v4659_v17 = vmax.f32 %v6172_v55, %v4655_v13  ;;  %v2397_v18 = vrot.slane %v5866_v14, 2  ;;  %v4666_v19 = vrot.slane %v6181_v15, 2  ;;  %v2300_v20 = vpop.f32.mrb[7].mxu0  ;;  %v4571_v21 = vpop.f32.mrb[7].mxu1 }
 0x214   : > { %v2396_v22 = vrot.slane %v2300_v20, 2  ;;  %v4665_v23 = vrot.slane %v4571_v21, 2 }
 0x215   : > { %2392 = vst.msk [vmem:[#allocation2 + $0x8] sm:$0xff] %vm2390_vm2, %v2389_v16  ;;  %4661 = vst.msk [vmem:[#allocation2 + $0x48] sm:$0xff] %vm2390_vm2, %v4659_v17 }
 0x216   : > { %v2398_v24 = vsel %vm2380_vm1, %v2396_v22, %v2397_v18  ;;  %v4667_v25 = vsel %vm2380_vm1, %v4665_v23, %v4666_v19  ;;  %v7570_v26 = vpop.f32.mrb[8].mxu0  ;;  %v7572_v27 = vpop.f32.mrb[8].mxu1 }
 0x217   : > { %v2404_v28 = vmax.f32 %v2290_v8, %v2398_v24  ;;  %v4673_v29 = vmax.f32 %v4561_v9, %v4667_v25  ;;  %v2310_v30 = vpop.f32.mrb[9].mxu0  ;;  %v4581_v31 = vpop.f32.mrb[9].mxu1 }
 0x218   : > { %v2399_v32 = vrot.slane %v2310_v30, 2  ;;  %v4668_v33 = vrot.slane %v4581_v31, 2 }
 0x219   : > { %2408 = vst.msk [vmem:[#allocation2 + $0xc] sm:$0xf0] %vm2407_vm3, %v2404_v28  ;;  %4676 = vst.msk [vmem:[#allocation2 + $0x4c] sm:$0xf0] %vm2407_vm3, %v4673_v29 }
 0x21a   : > { %v2400_v34 = vsel %vm2380_vm1, %v2397_v18, %v2399_v32  ;;  %v2406_v35 = vmax.f32 %v2300_v20, %v2399_v32  ;;  %v4669_v36 = vsel %vm2380_vm1, %v4666_v19, %v4668_v33  ;;  %v4675_v37 = vmax.f32 %v4571_v21, %v4668_v33  ;;  %v5872_v38 = vpop.f32.mrb[10].mxu0  ;;  %v6187_v39 = vpop.f32.mrb[10].mxu1 }
 0x21b   : > { %v2405_v41 = vmax.f32 %v5863_v4, %v2400_v34  ;;  %v4674_v42 = vmax.f32 %v6178_v5, %v4669_v36  ;;  %v2320_v43 = vpop.f32.mrb[11].mxu0  ;;  %v4591_v44 = vpop.f32.mrb[11].mxu1  ;;  %v2415_v54 = vrot.slane %v5872_v38, 2  ;;  %v4682_v60 = vrot.slane %v6187_v39, 2 }
 0x21c   : > { %v4710_v45 = vld [vmem:[#allocation2] ss:$2 sm:$0xff]  ;;  %v4726_v46 = vld [vmem:[#allocation2 + $0x1] ss:$2 sm:$0xff]  ;;  %2411 = vst.msk [vmem:[#allocation2 + $0x1c] sm:$0xf] %vm2410_vm4, %v2406_v35 }
 0x21d   : > { %v4718_v47 = vld [vmem:[#allocation2 + $0x40] ss:$2 sm:$0xff]  ;;  %4678 = vst.msk [vmem:[#allocation2 + $0x5c] sm:$0xf] %vm2410_vm4, %v4675_v37  ;;  %v4741_v48 = vmax.f32 %v4710_v45, %v4726_v46  ;;  %v4734_v49 = vld [vmem:[#allocation2 + $0x41] ss:$2 sm:$0xff] }
 0x21e   : > { %2409 = vst.msk [vmem:[#allocation2 + $0x14] sm:$0xff] %vm2390_vm2, %v2405_v41  ;;  %4677 = vst.msk [vmem:[#allocation2 + $0x54] sm:$0xff] %vm2390_vm2, %v4674_v42  ;;  %v4745_v50 = vmax.f32 %v4718_v47, %v4734_v49  ;;  %v7588_v51 = vpop.f32.mrb[12].mxu0  ;;  %v7590_v52 = vpop.f32.mrb[12].mxu1 }
 0x21f   : > { %v4756_v53 = vadd.f32 %v7581_v40, %v4741_v48  ;;  %v2418_v55 = vrot.slane %v7588_v51, 2  ;;  %v4685_v56 = vrot.slane %v7590_v52, 2  ;;  %v2330_v57 = vpop.f32.mrb[13].mxu0  ;;  %v4601_v58 = vpop.f32.mrb[13].mxu1 }
 0x220   : > { %v4760_v59 = vadd.f32 %v7581_v40, %v4745_v50  ;;  %v2416_v61 = vrot.slane %v2330_v57, 2  ;;  %v4683_v62 = vrot.slane %v4601_v58, 2 }
 0x221   : > { %v4764_v63 = vmax.f32 %v4756_v53, 0.0 }
 0x222   : > { %v4768_v0 = vmax.f32 %v4760_v59, 0.0  ;;  %v2417_v1 = vsel %vm2380_vm1, %v2415_v54, %v2416_v61  ;;  %v2419_v2 = vsel %vm2380_vm1, %v2416_v61, %v2418_v55  ;;  %v4684_v3 = vsel %vm2380_vm1, %v4682_v60, %v4683_v62  ;;  %v5878_v4 = vpop.f32.mrb[14].mxu0  ;;  %v6193_v5 = vpop.f32.mrb[14].mxu1 }
 0x223   : > { %4772 = vst.msk [vmem:[%s7598_s20] sm:$0xff] %vm2390_vm2, %v4764_v63  ;;  %v2422_v6 = vmax.f32 %v7570_v26, %v2417_v1  ;;  %v2423_v7 = vmax.f32 %v2320_v43, %v2419_v2  ;;  %v4686_v8 = vsel %vm2380_vm1, %v4683_v62, %v4685_v56  ;;  %v4689_v9 = vmax.f32 %v7572_v27, %v4684_v3  ;;  %v2340_v10 = vpop.f32.mrb[15].mxu0  ;;  %v4611_v11 = vpop.f32.mrb[15].mxu1 }
 0x224   : > { %4776 = vst.msk [vmem:[%s7598_s20 + $0x20] sm:$0xff] %vm2390_vm2, %v4768_v0  ;;  %v4690_v15 = vmax.f32 %v4591_v44, %v4686_v8  ;;  %v2429_v22 = vrot.slane %v5878_v4, 2  ;;  %v4696_v28 = vrot.slane %v6193_v5, 2 }
 0x225   : > { %v4712_v12 = vld [vmem:[#allocation2 + $0x10] ss:$2 sm:$0xff]  ;;  %v4728_v13 = vld [vmem:[#allocation2 + $0x11] ss:$2 sm:$0xff]  ;;  %2424 = vst.msk [vmem:[#allocation2 + $0x20] sm:$0xff] %vm2390_vm2, %v2422_v6  ;;  %2425 = vst.msk [vmem:[#allocation2 + $0x28] sm:$0xff] %vm2390_vm2, %v2423_v7 }
 0x226   : > { %v4720_v14 = vld [vmem:[#allocation2 + $0x50] ss:$2 sm:$0xff]  ;;  %v4742_v16 = vmax.f32 %v4712_v12, %v4728_v13  ;;  %v4736_v17 = vld [vmem:[#allocation2 + $0x51] ss:$2 sm:$0xff]  ;;  %4691 = vst.msk [vmem:[#allocation2 + $0x60] sm:$0xff] %vm2390_vm2, %v4689_v9  ;;  %4692 = vst.msk [vmem:[#allocation2 + $0x68] sm:$0xff] %vm2390_vm2, %v4690_v15 }
 0x227   : > { %v4746_v18 = vmax.f32 %v4720_v14, %v4736_v17  ;;  %v5881_v19 = vpop.f32.mrb[16].mxu0  ;;  %v6196_v20 = vpop.f32.mrb[16].mxu1 }
 0x228   : > { %v4757_v21 = vadd.f32 %v7581_v40, %v4742_v16  ;;  %v2432_v23 = vrot.slane %v5881_v19, 2  ;;  %v4699_v24 = vrot.slane %v6196_v20, 2  ;;  %v2350_v25 = vpop.f32.mrb[17].mxu0  ;;  %v4621_v26 = vpop.f32.mrb[17].mxu1 }
 0x229   : > { %v4761_v27 = vadd.f32 %v7581_v40, %v4746_v18  ;;  %v2430_v29 = vrot.slane %v2350_v25, 2  ;;  %v4697_v30 = vrot.slane %v4621_v26, 2 }
 0x22a   : > { %v4765_v31 = vmax.f32 %v4757_v21, 0.0  ;;  %v2439_v32 = vmax.f32 %v5878_v4, %v2432_v23  ;;  %v4706_v33 = vmax.f32 %v6193_v5, %v4699_v24 }
 0x22b   : > { %v4769_v34 = vmax.f32 %v4761_v27, 0.0  ;;  %v2431_v35 = vsel %vm2380_vm1, %v2429_v22, %v2430_v29  ;;  %v2433_v36 = vsel %vm2380_vm1, %v2430_v29, %v2432_v23  ;;  %v4698_v37 = vsel %vm2380_vm1, %v4696_v28, %v4697_v30 }
 0x22c   : > { %4773 = vst.msk [vmem:[%s7598_s20 + $0x8] sm:$0xff] %vm2390_vm2, %v4765_v31  ;;  %v2437_v38 = vmax.f32 %v7588_v51, %v2431_v35  ;;  %v2438_v39 = vmax.f32 %v2340_v10, %v2433_v36  ;;  %v4700_v41 = vsel %vm2380_vm1, %v4697_v30, %v4699_v24  ;;  %v4704_v42 = vmax.f32 %v7590_v52, %v4698_v37  ;;  %v4714_v43 = vld [vmem:[#allocation2 + $0x20] ss:$2 sm:$0xff]  ;;  %v4730_v44 = vld [vmem:[#allocation2 + $0x21] ss:$2 sm:$0xff] }
 0x22d   : > { %2442 = vst.msk [vmem:[#allocation2 + $0x3c] sm:$0xf] %vm2410_vm4, %v2439_v32  ;;  %4709 = vst.msk [vmem:[#allocation2 + $0x7c] sm:$0xf] %vm2410_vm4, %v4706_v33  ;;  %v4705_v45 = vmax.f32 %v4611_v11, %v4700_v41  ;;  %v4743_v46 = vmax.f32 %v4714_v43, %v4730_v44  ;;  %v4722_v47 = vld [vmem:[#allocation2 + $0x60] ss:$2 sm:$0xff] }
 0x22e   : > { %4777 = vst.msk [vmem:[%s7598_s20 + $0x28] sm:$0xff] %vm2390_vm2, %v4769_v34  ;;  %v4738_v48 = vld [vmem:[#allocation2 + $0x61] ss:$2 sm:$0xff]  ;;  %2441 = vst.msk [vmem:[#allocation2 + $0x34] sm:$0xff] %vm2390_vm2, %v2438_v39 }
 0x22f   : > { %2440 = vst.msk [vmem:[#allocation2 + $0x2c] sm:$0xf0] %vm2407_vm3, %v2437_v38  ;;  %4707 = vst.msk [vmem:[#allocation2 + $0x6c] sm:$0xf0] %vm2407_vm3, %v4704_v42  ;;  %v4747_v49 = vmax.f32 %v4722_v47, %v4738_v48  ;;  %v4758_v50 = vadd.f32 %v7581_v40, %v4743_v46 }
 0x230   : > { %4708 = vst.msk [vmem:[#allocation2 + $0x74] sm:$0xff] %vm2390_vm2, %v4705_v45 }
 0x231   : > { %v4762_v51 = vadd.f32 %v7581_v40, %v4747_v49  ;;  %v4766_v52 = vmax.f32 %v4758_v50, 0.0 }
 0x233   : > { %v4770_v53 = vmax.f32 %v4762_v51, 0.0  ;;  %4774 = vst.msk [vmem:[%s7598_s20 + $0x10] sm:$0xff] %vm2390_vm2, %v4766_v52 }
 0x235   : > { %4778 = vst.msk [vmem:[%s7598_s20 + $0x30] sm:$0xff] %vm2390_vm2, %v4770_v53 }
 0x236   : > { %v4716_v54 = vld [vmem:[#allocation2 + $0x30] ss:$2 sm:$0xff]  ;;  %v4732_v55 = vld [vmem:[#allocation2 + $0x31] ss:$2 sm:$0xff] }
 0x237   : > { %v4744_v56 = vmax.f32 %v4716_v54, %v4732_v55  ;;  %v4724_v57 = vld [vmem:[#allocation2 + $0x70] ss:$2 sm:$0xff]  ;;  %v4740_v58 = vld [vmem:[#allocation2 + $0x71] ss:$2 sm:$0xff] }
 0x238   : > { %v4748_v59 = vmax.f32 %v4724_v57, %v4740_v58 }
 0x239   : > { %v4759_v60 = vadd.f32 %v7581_v40, %v4744_v56 }
 0x23a   : > { %v4763_v61 = vadd.f32 %v7581_v40, %v4748_v59 }
 0x23b   : > { %v4767_v62 = vmax.f32 %v4759_v60, 0.0 }
 0x23c   : > { %v4771_v63 = vmax.f32 %v4763_v61, 0.0 }
 0x23d   : > { %4775 = vst.msk [vmem:[%s7598_s20 + $0x18] sm:$0xff] %vm2390_vm2, %v4767_v62 }
 0x23e   : > { %4779 = vst.msk [vmem:[%s7598_s20 + $0x38] sm:$0xff] %vm2390_vm2, %v4771_v63 }
 0x23f PF: > { %s13_s12 = sadd.s32 1, %s6644_s12  }
 0x240   : > { %p10_p4 = scmp.ge.s32.totalorder %s13_s12, 4  }
 0x242   :  { %12 = sbr.rel (!%p10_p4) target bundleno = 1 (0x1), region = 77 }

// kernel: net_forward.3
= control target key start
LH: loop header
LB: loop body
LE: loop exit
PB: predicated region body
PF: predicated region fallthrough
CT: control target
= control target key end

     0   :  { %s20952_s12 = smov 0   ;;  %s24945_s0 = inlined_call_operand.vmem [shape: f32[2,1164,3], index: 0, kind: input, shape index: {}]   ;;  %s24946_s1 = inlined_call_operand.vmem [shape: f32[27,32], index: 1, kind: input, shape index: {}]   ;;  %s24947_s2 = inlined_call_operand.vmem [shape: f32[1,32], index: 2, kind: input, shape index: {}]   ;;  %s24948_s3 = inlined_call_operand.vmem [shape: f32[2,256,32], index: 3, kind: output, shape index: {}]  }
   0x1 LB: > { %s15386_s13 = sadd.s32 4294967295, %s20930_s12   ;;  %p15390_p0 = scmp.ge.s32.totalorder %s20930_s12, 1  ;;  %s20930_s12 = sphi %s20952_s12, %s13_s12  }
   0x2   : > { %p137_p1 = scmp.lt.s32.totalorder %s20930_s12, 3 }
   0x4   : > { %p138_p2 = pnand %p15390_p0, %p137_p1 }
   0x6   : > { %141 = sbr.rel (%p138_p2) target bundleno = 1479 (0x5c7), region = 32 }
   0xd   : > { %v240_v0 = vld [vmem:[%s24946_s1 + $0x3] sm:$0x7]  ;;  %vm344_vm0 = vcmask 1042432   ;;  %p161_p3 = scmp.lt.s32.totalorder %s15386_s13, 1  ;;  %v205_v2 = vld [vmem:[%s24946_s1] sm:$0x7] }
   0xe   : > { %v3969_v1 = vld [vmem:[%s24946_s1 + $0x3] sm:$0x7]  ;;  %17918 = vmatprep.subr.msk.mxu0 %vm344_vm0, %v240_v0  ;;  %v3934_v3 = vld [vmem:[%s24946_s1] sm:$0x7]  ;;  %vm241_vm1 = vcmask 23552   ;;  %vm3791_vm2 = vcmask 1045504  }
   0xf   : > { %18395 = vmatprep.subr.msk.mxu1 %vm344_vm0, %v3969_v1  ;;  %17919 = vmatpush3.msk.msra.mxu0 %vm344_vm0, %v240_v0  ;;  %s25066_s13 = smov (!%p161_p3, %s15386_s13), 1  ;;  %v20999_v10 = vld [vmem:[%s24946_s1 + $0x6] sm:$0x7]  ;;  %vm3809_vm3 = vcmask 261120   ;;  %vm3838_vm4 = vcmask 261124   ;;  %vm3843_vm5 = vcmask 257024  }
  0x10   : > { %18396 = vmatpush3.msk.msra.mxu1 %vm344_vm0, %v3969_v1  ;;  %17971 = vmatprep.subr.msk.mxu0 %vm344_vm0, %v205_v2  ;;  %s20914_s22 = smul.u32 1168, %s25066_s13  ;;  %v21004_v11 = vld [vmem:[%s24946_s1 + $0x6] sm:$0x7]  ;;  %s16657_s28 = sshll.u32 %s25066_s13, 8 }
  0x11   : > { %18448 = vmatprep.subr.msk.mxu1 %vm344_vm0, %v3934_v3  ;;  %s23348_s4 = scalar_lea.vmem %s24948_s3, %s16657_s28 }
  0x12   : > { %s20984_s25 = scalar_lea.vmem %s24945_s0, %s20914_s22 }
  0x13   : > { %v206_v4 = vld [vmem:[%s20984_s25 + $0x1] sm:$0xff]  ;;  %v3935_v5 = vld [vmem:[%s20984_s25 + $0x111] sm:$0xff]  ;;  %v207_v6 = vld [vmem:[%s20984_s25 + $0x9] sm:$0xff] }
  0x14   : > { %17920 = vmatprep.mubr.msk.f32.mxu0 %vm241_vm1, %v206_v4  ;;  %18397 = vmatprep.mubr.msk.f32.mxu1 %vm241_vm1, %v3935_v5  ;;  %v3936_v7 = vld [vmem:[%s20984_s25 + $0x119] sm:$0xff]  ;;  %v208_v8 = vld [vmem:[%s20984_s25 + $0x11] sm:$0xff]  ;;  %v3937_v9 = vld [vmem:[%s20984_s25 + $0x121] sm:$0xff] }
  0x15   : > { %17921 = vmatmul.mubr.msk.f32.vlgmr.msra.gmra.mrb[0].mxu0 %vm241_vm1, %v207_v6  ;;  %18398 = vmatmul.mubr.msk.f32.vlgmr.msra.gmra.mrb[0].mxu1 %vm241_vm1, %v3936_v7  ;;  %v209_v12 = vld [vmem:[%s20984_s25 + $0x19] sm:$0xff]  ;;  %v3938_v13 = vld [vmem:[%s20984_s25 + $0x129] sm:$0xff]  ;;  %v210_v14 = vld [vmem:[%s20984_s25 + $0x21] sm:$0xff] }
  0x16   : > { %17972 = vmatpush3.msk.msra.mxu0 %vm344_vm0, %v205_v2  ;;  %18449 = vmatpush3.msk.msra.mxu1 %vm344_vm0, %v3934_v3  ;;  %v3939_v15 = vld [vmem:[%s20984_s25 + $0x131] sm:$0xff]  ;;  %v211_v16 = vld [vmem:[%s20984_s25 + $0x29] sm:$0xff]  ;;  %v3940_v17 = vld [vmem:[%s20984_s25 + $0x139] sm:$0xff] }
  0x17   : > { %17923 = vmatprep.mubr.msk.f32.mxu0 %vm241_vm1, %v208_v8  ;;  %18400 = vmatprep.mubr.msk.f32.mxu1 %vm241_vm1, %v3937_v9  ;;  %v212_v18 = vld [vmem:[%s20984_s25 + $0x31] sm:$0xff]  ;;  %v3941_v19 = vld [vmem:[%s20984_s25 + $0x141] sm:$0xff]  ;;  %v213_v20 = vld [vmem:[%s20984_s25 + $0x39] sm:$0xff] }
  0x18   : > { %18024 = vmatprep.subr.msk.mxu0 %vm344_vm0, %v20999_v10  ;;  %18501 = vmatprep.subr.msk.mxu1 %vm344_vm0, %v21004_v11  ;;  %v3942_v21 = vld [vmem:[%s20984_s25 + $0x149] sm:$0xff]  ;;  %v214_v22 = vld [vmem:[%s20984_s25 + $0x41] sm:$0xff]  ;;  %v3943_v23 = vld [vmem:[%s20984_s25 + $0x151] sm:$0xff] }
  0x19   : > { %17924 = vmatmul.mubr.msk.f32.gmra.mrb[2].mxu0 %vm241_vm1, %v209_v12  ;;  %18401 = vmatmul.mubr.msk.f32.gmra.mrb[2].mxu1 %vm241_vm1, %v3938_v13  ;;  %v215_v24 = vld [vmem:[%s20984_s25 + $0x49] sm:$0xff]  ;;  %v3944_v25 = vld [vmem:[%s20984_s25 + $0x159] sm:$0xff]  ;;  %v216_v26 = vld [vmem:[%s20984_s25 + $0x51] sm:$0xff] }
  0x1a   : > { %17926 = vmatprep.mubr.msk.f32.mxu0 %vm241_vm1, %v210_v14  ;;  %18403 = vmatprep.mubr.msk.f32.mxu1 %vm241_vm1, %v3939_v15  ;;  %v3945_v27 = vld [vmem:[%s20984_s25 + $0x161] sm:$0xff]  ;;  %v217_v28 = vld [vmem:[%s20984_s25 + $0x59] sm:$0xff]  ;;  %v3946_v29 = vld [vmem:[%s20984_s25 + $0x169] sm:$0xff] }
  0x1b   : > { %v218_v30 = vld [vmem:[%s20984_s25 + $0x61] sm:$0xff]  ;;  %v3947_v31 = vld [vmem:[%s20984_s25 + $0x171] sm:$0xff]  ;;  %v219_v32 = vld [vmem:[%s20984_s25 + $0x69] sm:$0xff] }
  0x1c   : > { %v3948_v33 = vld [vmem:[%s20984_s25 + $0x179] sm:$0xff]  ;;  %v220_v34 = vld [vmem:[%s20984_s25 + $0x71] sm:$0xff]  ;;  %v3949_v35 = vld [vmem:[%s20984_s25 + $0x181] sm:$0xff] }
  0x1d   : > { %17927 = vmatmul.mubr.msk.f32.gmra.mrb[4].mxu0 %vm241_vm1, %v211_v16  ;;  %18404 = vmatmul.mubr.msk.f32.gmra.mrb[4].mxu1 %vm241_vm1, %v3940_v17  ;;  %v221_v36 = vld [vmem:[%s20984_s25 + $0x79] sm:$0xff]  ;;  %v3950_v37 = vld [vmem:[%s20984_s25 + $0x189] sm:$0xff]  ;;  %v222_v38 = vld [vmem:[%s20984_s25 + $0x81] sm:$0xff] }
  0x1e   : > { %17929 = vmatprep.mubr.msk.f32.mxu0 %vm241_vm1, %v212_v18  ;;  %18406 = vmatprep.mubr.msk.f32.mxu1 %vm241_vm1, %v3941_v19  ;;  %v3951_v39 = vld [vmem:[%s20984_s25 + $0x191] sm:$0xff]  ;;  %v223_v40 = vld [vmem:[%s20984_s25 + $0x89] sm:$0xff]  ;;  %v3952_v41 = vld [vmem:[%s20984_s25 + $0x199] sm:$0xff] }
  0x1f   : > { %v224_v42 = vld [vmem:[%s20984_s25 + $0x91] sm:$0xff]  ;;  %v3953_v43 = vld [vmem:[%s20984_s25 + $0x1a1] sm:$0xff]  ;;  %v225_v44 = vld [vmem:[%s20984_s25 + $0x99] sm:$0xff] }
  0x20   : > { %v3954_v45 = vld [vmem:[%s20984_s25 + $0x1a9] sm:$0xff]  ;;  %v226_v46 = vld [vmem:[%s20984_s25 + $0xa1] sm:$0xff]  ;;  %v3955_v47 = vld [vmem:[%s20984_s25 + $0x1b1] sm:$0xff] }
  0x21   : > { %17930 = vmatmul.mubr.msk.f32.gmra.mrb[6].mxu0 %vm241_vm1, %v213_v20  ;;  %18407 = vmatmul.mubr.msk.f32.gmra.mrb[6].mxu1 %vm241_vm1, %v3942_v21  ;;  %v227_v48 = vld [vmem:[%s20984_s25 + $0xa9] sm:$0xff]  ;;  %v3956_v49 = vld [vmem:[%s20984_s25 + $0x1b9] sm:$0xff]  ;;  %v228_v50 = vld [vmem:[%s20984_s25 + $0xb1] sm:$0xff] }
  0x22   : > { %17932 = vmatprep.mubr.msk.f32.mxu0 %vm241_vm1, %v214_v22  ;;  %18409 = vmatprep.mubr.msk.f32.mxu1 %vm241_vm1, %v3943_v23  ;;  %v3957_v51 = vld [vmem:[%s20984_s25 + $0x1c1] sm:$0xff]  ;;  %v229_v52 = vld [vmem:[%s20984_s25 + $0xb9] sm:$0xff]  ;;  %v3958_v53 = vld [vmem:[%s20984_s25 + $0x1c9] sm:$0xff] }
  0x23   : > { %v230_v54 = vld [vmem:[%s20984_s25 + $0xc1] sm:$0xff]  ;;  %v3959_v55 = vld [vmem:[%s20984_s25 + $0x1d1] sm:$0xff]  ;;  %v231_v56 = vld [vmem:[%s20984_s25 + $0xc9] sm:$0xff] }
  0x24   : > { %v3960_v57 = vld [vmem:[%s20984_s25 + $0x1d9] sm:$0xff]  ;;  %v232_v58 = vld [vmem:[%s20984_s25 + $0xd1] sm:$0xff]  ;;  %v3961_v59 = vld [vmem:[%s20984_s25 + $0x1e1] sm:$0xff] }
  0x25   : > { %17933 = vmatmul.mubr.msk.f32.gmra.mrb[8].mxu0 %vm241_vm1, %v215_v24  ;;  %18410 = vmatmul.mubr.msk.f32.gmra.mrb[8].mxu1 %vm241_vm1, %v3944_v25  ;;  %v233_v60 = vld [vmem:[%s20984_s25 + $0xd9] sm:$0xff]  ;;  %v3962_v61 = vld [vmem:[%s20984_s25 + $0x1e9] sm:$0xff]  ;;  %v234_v62 = vld [vmem:[%s20984_s25 + $0xe1] sm:$0xff] }
  0x26   : > { %17935 = vmatprep.mubr.msk.f32.mxu0 %vm241_vm1, %v216_v26  ;;  %18412 = vmatprep.mubr.msk.f32.mxu1 %vm241_vm1, %v3945_v27  ;;  %v3963_v63 = vld [vmem:[%s20984_s25 + $0x1f1] sm:$0xff]  ;;  %v235_v0 = vld [vmem:[%s20984_s25 + $0xe9] sm:$0xff]  ;;  %v3964_v1 = vld [vmem:[%s20984_s25 + $0x1f9] sm:$0xff] }
  0x27   : > { %v236_v2 = vld [vmem:[%s20984_s25 + $0xf1] sm:$0xff]  ;;  %v3965_v3 = vld [vmem:[%s20984_s25 + $0x201] sm:$0xff]  ;;  %v237_v4 = vld [vmem:[%s20984_s25 + $0xf9] sm:$0xff] }
  0x28   : > { %v3966_v5 = vld [vmem:[%s20984_s25 + $0x209] sm:$0xff]  ;;  %v238_v6 = vld [vmem:[%s20984_s25 + $0x101] sm:$0xff]  ;;  %v3967_v7 = vld [vmem:[%s20984_s25 + $0x211] sm:$0xff] }
  0x29   : > { %17936 = vmatmul.mubr.msk.f32.gmra.mrb[10].mxu0 %vm241_vm1, %v217_v28  ;;  %18413 = vmatmul.mubr.msk.f32.gmra.mrb[10].mxu1 %vm241_vm1, %v3946_v29  ;;  %v239_v8 = vld [vmem:[%s20984_s25 + $0x109] sm:$0xff]  ;;  %v3968_v9 = vld [vmem:[%s20984_s25 + $0x219] sm:$0xff] }
  0x2a   : > { %17938 = vmatprep.mubr.msk.f32.mxu0 %vm241_vm1, %v218_v30  ;;  %18415 = vmatprep.mubr.msk.f32.mxu1 %vm241_vm1, %v3947_v31  ;;  %v171_v12 = vld [vmem:[%s20984_s25] sm:$0xff]  ;;  %v3900_v13 = vld [vmem:[%s20984_s25 + $0x110] sm:$0xff]  ;;  %v172_v14 = vld [vmem:[%s20984_s25 + $0x8] sm:$0xff] }
  0x2b   : > { %v3901_v15 = vld [vmem:[%s20984_s25 + $0x118] sm:$0xff]  ;;  %v173_v16 = vld [vmem:[%s20984_s25 + $0x10] sm:$0xff]  ;;  %v3902_v17 = vld [vmem:[%s20984_s25 + $0x120] sm:$0xff] }
  0x2c   : > { %v21151_v18 = vld [vmem:[%s24946_s1 + $0x9] sm:$0x7]  ;;  %v174_v20 = vld [vmem:[%s20984_s25 + $0x18] sm:$0xff]  ;;  %v175_v22 = vld [vmem:[%s20984_s25 + $0x20] sm:$0xff] }
  0x2d   : > { %17939 = vmatmul.mubr.msk.f32.gmra.mrb[12].mxu0 %vm241_vm1, %v219_v32  ;;  %18416 = vmatmul.mubr.msk.f32.gmra.mrb[12].mxu1 %vm241_vm1, %v3948_v33  ;;  %v21156_v19 = vld [vmem:[%s24946_s1 + $0x9] sm:$0x7]  ;;  %v3904_v23 = vld [vmem:[%s20984_s25 + $0x130] sm:$0xff]  ;;  %v3906_v25 = vld [vmem:[%s20984_s25 + $0x140] sm:$0xff] }
  0x2e   : > { %17941 = vmatprep.mubr.msk.f32.mxu0 %vm241_vm1, %v220_v34  ;;  %18418 = vmatprep.mubr.msk.f32.mxu1 %vm241_vm1, %v3949_v35  ;;  %v3903_v21 = vld [vmem:[%s20984_s25 + $0x128] sm:$0xff]  ;;  %v177_v24 = vld [vmem:[%s20984_s25 + $0x30] sm:$0xff]  ;;  %v178_v26 = vld [vmem:[%s20984_s25 + $0x38] sm:$0xff] }
  0x2f   : > { %v3907_v27 = vld [vmem:[%s20984_s25 + $0x148] sm:$0xff]  ;;  %v179_v28 = vld [vmem:[%s20984_s25 + $0x40] sm:$0xff]  ;;  %v3908_v29 = vld [vmem:[%s20984_s25 + $0x150] sm:$0xff] }
  0x30   : > { %v180_v30 = vld [vmem:[%s20984_s25 + $0x48] sm:$0xff]  ;;  %v3909_v31 = vld [vmem:[%s20984_s25 + $0x158] sm:$0xff]  ;;  %v181_v32 = vld [vmem:[%s20984_s25 + $0x50] sm:$0xff] }
  0x31   : > { %17942 = vmatmul.mubr.msk.f32.gmra.mrb[14].mxu0 %vm241_vm1, %v221_v36  ;;  %18419 = vmatmul.mubr.msk.f32.gmra.mrb[14].mxu1 %vm241_vm1, %v3950_v37  ;;  %v3910_v33 = vld [vmem:[%s20984_s25 + $0x160] sm:$0xff]  ;;  %v182_v34 = vld [vmem:[%s20984_s25 + $0x58] sm:$0xff]  ;;  %v3911_v35 = vld [vmem:[%s20984_s25 + $0x168] sm:$0xff] }
  0x32   : > { %17944 = vmatprep.mubr.msk.f32.mxu0 %vm241_vm1, %v222_v38  ;;  %18421 = vmatprep.mubr.msk.f32.mxu1 %vm241_vm1, %v3951_v39  ;;  %v183_v36 = vld [vmem:[%s20984_s25 + $0x60] sm:$0xff]  ;;  %v3912_v37 = vld [vmem:[%s20984_s25 + $0x170] sm:$0xff]  ;;  %v184_v38 = vld [vmem:[%s20984_s25 + $0x68] sm:$0xff] }
  0x33   : > { %v3913_v39 = vld [vmem:[%s20984_s25 + $0x178] sm:$0xff] }
  0x35   : > { %17945 = vmatmul.mubr.msk.f32.gmra.mrb[16].mxu0 %vm241_vm1, %v223_v40  ;;  %18422 = vmatmul.mubr.msk.f32.gmra.mrb[16].mxu1 %vm241_vm1, %v3952_v41  ;;  %v185_v40 = vld [vmem:[%s20984_s25 + $0x70] sm:$0xff]  ;;  %v3914_v41 = vld [vmem:[%s20984_s25 + $0x180] sm:$0xff] }
  0x36   : > { %17947 = vmatprep.mubr.msk.f32.mxu0 %vm241_vm1, %v224_v42  ;;  %18424 = vmatprep.mubr.msk.f32.mxu1 %vm241_vm1, %v3953_v43  ;;  %v186_v42 = vld [vmem:[%s20984_s25 + $0x78] sm:$0xff]  ;;  %v3915_v43 = vld [vmem:[%s20984_s25 + $0x188] sm:$0xff] }
  0x39   : > { %17948 = vmatmul.mubr.msk.f32.gmra.mrb[18].mxu0 %vm241_vm1, %v225_v44  ;;  %18425 = vmatmul.mubr.msk.f32.gmra.mrb[18].mxu1 %vm241_vm1, %v3954_v45  ;;  %v187_v44 = vld [vmem:[%s20984_s25 + $0x80] sm:$0xff]  ;;  %v3916_v45 = vld [vmem:[%s20984_s25 + $0x190] sm:$0xff] }
  0x3a   : > { %17950 = vmatprep.mubr.msk.f32.mxu0 %vm241_vm1, %v226_v46  ;;  %18427 = vmatprep.mubr.msk.f32.mxu1 %vm241_vm1, %v3955_v47  ;;  %v188_v46 = vld [vmem:[%s20984_s25 + $0x88] sm:$0xff]  ;;  %v3917_v47 = vld [vmem:[%s20984_s25 + $0x198] sm:$0xff] }
  0x3d   : > { %17951 = vmatmul.mubr.msk.f32.gmra.mrb[20].mxu0 %vm241_vm1, %v227_v48  ;;  %18428 = vmatmul.mubr.msk.f32.gmra.mrb[20].mxu1 %vm241_vm1, %v3956_v49  ;;  %v189_v48 = vld [vmem:[%s20984_s25 + $0x90] sm:$0xff]  ;;  %v3918_v49 = vld [vmem:[%s20984_s25 + $0x1a0] sm:$0xff] }
  0x3e   : > { %17953 = vmatprep.mubr.msk.f32.mxu0 %vm241_vm1, %v228_v50  ;;  %18430 = vmatprep.mubr.msk.f32.mxu1 %vm241_vm1, %v3957_v51  ;;  %v190_v50 = vld [vmem:[%s20984_s25 + $0x98] sm:$0xff]  ;;  %v3919_v51 = vld [vmem:[%s20984_s25 + $0x1a8] sm:$0xff] }
  0x41   : > { %17954 = vmatmul.mubr.msk.f32.gmra.mrb[22].mxu0 %vm241_vm1, %v229_v52  ;;  %18431 = vmatmul.mubr.msk.f32.gmra.mrb[22].mxu1 %vm241_vm1, %v3958_v53  ;;  %v191_v52 = vld [vmem:[%s20984_s25 + $0xa0] sm:$0xff]  ;;  %v3920_v53 = vld [vmem:[%s20984_s25 + $0x1b0] sm:$0xff] }
  0x42   : > { %17956 = vmatprep.mubr.msk.f32.mxu0 %vm241_vm1, %v230_v54  ;;  %18433 = vmatprep.mubr.msk.f32.mxu1 %vm241_vm1, %v3959_v55  ;;  %v192_v54 = vld [vmem:[%s20984_s25 + $0xa8] sm:$0xff]  ;;  %v3921_v55 = vld [vmem:[%s20984_s25 + $0x1b8] sm:$0xff] }
  0x45   : > { %17957 = vmatmul.mubr.msk.f32.gmra.mrb[24].mxu0 %vm241_vm1, %v231_v56  ;;  %18434 = vmatmul.mubr.msk.f32.gmra.mrb[24].mxu1 %vm241_vm1, %v3960_v57  ;;  %v193_v56 = vld [vmem:[%s20984_s25 + $0xb0] sm:$0xff]  ;;  %v3922_v57 = vld [vmem:[%s20984_s25 + $0x1c0] sm:$0xff] }
  0x46   : > { %17959 = vmatprep.mubr.msk.f32.mxu0 %vm241_vm1, %v232_v58  ;;  %18436 = vmatprep.mubr.msk.f32.mxu1 %vm241_vm1, %v3961_v59  ;;  %v194_v58 = vld [vmem:[%s20984_s25 + $0xb8] sm:$0xff]  ;;  %v3923_v59 = vld [vmem:[%s20984_s25 + $0x1c8] sm:$0xff] }
  0x49   : > { %17960 = vmatmul.mubr.msk.f32.gmra.mrb[26].mxu0 %vm241_vm1, %v233_v60  ;;  %18437 = vmatmul.mubr.msk.f32.gmra.mrb[26].mxu1 %vm241_vm1, %v3962_v61  ;;  %v195_v60 = vld [vmem:[%s20984_s25 + $0xc0] sm:$0xff]  ;;  %v3924_v61 = vld [vmem:[%s20984_s25 + $0x1d0] sm:$0xff] }
  0x4a   : > { %17962 = vmatprep.mubr.msk.f32.mxu0 %vm241_vm1, %v234_v62  ;;  %18439 = vmatprep.mubr.msk.f32.mxu1 %vm241_vm1, %v3963_v63  ;;  %v196_v62 = vld [vmem:[%s20984_s25 + $0xc8] sm:$0xff]  ;;  %v3925_v63 = vld [vmem:[%s20984_s25 + $0x1d8] sm:$0xff] }
  0x4d   : > { %17963 = vmatmul.mubr.msk.f32.gmra.mrb[28].mxu0 %vm241_vm1, %v235_v0  ;;  %18440 = vmatmul.mubr.msk.f32.gmra.mrb[28].mxu1 %vm241_vm1, %v3964_v1  ;;  %v197_v0 = vld [vmem:[%s20984_s25 + $0xd0] sm:$0xff]  ;;  %v3926_v1 = vld [vmem:[%s20984_s25 + $0x1e0] sm:$0xff] }
  0x4e   : > { %17965 = vmatprep.mubr.msk.f32.mxu0 %vm241_vm1, %v236_v2  ;;  %18442 = vmatprep.mubr.msk.f32.mxu1 %vm241_vm1, %v3965_v3  ;;  %v198_v2 = vld [vmem:[%s20984_s25 + $0xd8] sm:$0xff]  ;;  %v3927_v3 = vld [vmem:[%s20984_s25 + $0x1e8] sm:$0xff] }
  0x51   : > { %17966 = vmatmul.mubr.msk.f32.gmra.mrb[30].mxu0 %vm241_vm1, %v237_v4  ;;  %18443 = vmatmul.mubr.msk.f32.gmra.mrb[30].mxu1 %vm241_vm1, %v3966_v5  ;;  %v199_v4 = vld [vmem:[%s20984_s25 + $0xe0] sm:$0xff]  ;;  %v3928_v5 = vld [vmem:[%s20984_s25 + $0x1f0] sm:$0xff] }
  0x52   : > { %17968 = vmatprep.mubr.msk.f32.mxu0 %vm241_vm1, %v238_v6  ;;  %18445 = vmatprep.mubr.msk.f32.mxu1 %vm241_vm1, %v3967_v7  ;;  %v200_v6 = vld [vmem:[%s20984_s25 + $0xe8] sm:$0xff]  ;;  %v3929_v7 = vld [vmem:[%s20984_s25 + $0x1f8] sm:$0xff] }
  0x55   : > { %17969 = vmatmul.mubr.msk.f32.gmra.mrb[32].mxu0 %vm241_vm1, %v239_v8  ;;  %18446 = vmatmul.mubr.msk.f32.gmra.mrb[32].mxu1 %vm241_vm1, %v3968_v9  ;;  %v201_v8 = vld [vmem:[%s20984_s25 + $0xf0] sm:$0xff]  ;;  %v3930_v9 = vld [vmem:[%s20984_s25 + $0x200] sm:$0xff] }
  0x56   : > { %17973 = vmatprep.mubr.msk.f32.mxu0 %vm241_vm1, %v171_v12  ;;  %18450 = vmatprep.mubr.msk.f32.mxu1 %vm241_vm1, %v3900_v13  ;;  %v202_v12 = vld [vmem:[%s20984_s25 + $0xf8] sm:$0xff]  ;;  %v3931_v13 = vld [vmem:[%s20984_s25 + $0x208] sm:$0xff] }
  0x59   : > { %17974 = vmatmul.mubr.msk.f32.vlgmr.msra.gmra.mrb[0].mxu0 %vm241_vm1, %v172_v14  ;;  %18451 = vmatmul.mubr.msk.f32.vlgmr.msra.gmra.mrb[0].mxu1 %vm241_vm1, %v3901_v15  ;;  %v203_v14 = vld [vmem:[%s20984_s25 + $0x100] sm:$0xff]  ;;  %v3932_v15 = vld [vmem:[%s20984_s25 + $0x210] sm:$0xff] }
  0x5a   : > { %18025 = vmatpush3.msk.msra.mxu0 %vm344_vm0, %v20999_v10  ;;  %18502 = vmatpush3.msk.msra.mxu1 %vm344_vm0, %v21004_v11  ;;  %v176_v10 = vld [vmem:[%s20984_s25 + $0x28] sm:$0xff]  ;;  %v3905_v11 = vld [vmem:[%s20984_s25 + $0x138] sm:$0xff] }
  0x5b   : > { %17976 = vmatprep.mubr.msk.f32.mxu0 %vm241_vm1, %v173_v16  ;;  %18453 = vmatprep.mubr.msk.f32.mxu1 %vm241_vm1, %v3902_v17  ;;  %v204_v16 = vld [vmem:[%s20984_s25 + $0x108] sm:$0xff]  ;;  %v3933_v17 = vld [vmem:[%s20984_s25 + $0x218] sm:$0xff] }
  0x5c   : > { %18077 = vmatprep.subr.msk.mxu0 %vm344_vm0, %v21151_v18  ;;  %18554 = vmatprep.subr.msk.mxu1 %vm344_vm0, %v21156_v19 }
  0x5d   : > { %17977 = vmatmul.mubr.msk.f32.gmra.mrb[2].mxu0 %vm241_vm1, %v174_v20  ;;  %18454 = vmatmul.mubr.msk.f32.gmra.mrb[2].mxu1 %vm241_vm1, %v3903_v21  ;;  %v923_v20 = vld [vmem:[%s20984_s25 + $0x2] sm:$0xff]  ;;  %v21292_v21 = vld [vmem:[%s20984_s25 + $0x112] sm:$0xff] }
  0x5e   : > { %17979 = vmatprep.mubr.msk.f32.mxu0 %vm241_vm1, %v175_v22  ;;  %18456 = vmatprep.mubr.msk.f32.mxu1 %vm241_vm1, %v3904_v23  ;;  %24986 = vst [vmem:[#allocation3_spill] sm:$0xff] %v21292_v21  ;;  %v924_v22 = vld [vmem:[%s20984_s25 + $0xa] sm:$0xff]  ;;  %v21301_v23 = vld [vmem:[%s20984_s25 + $0x11a] sm:$0xff] }
  0x5f   : > { %24987 = vst [vmem:[#allocation4_spill] sm:$0xff] %v21301_v23 }
  0x61   : > { %17980 = vmatmul.mubr.msk.f32.gmra.mrb[4].mxu0 %vm241_vm1, %v176_v10  ;;  %18457 = vmatmul.mubr.msk.f32.gmra.mrb[4].mxu1 %vm241_vm1, %v3905_v11  ;;  %v925_v10 = vld [vmem:[%s20984_s25 + $0x12] sm:$0xff]  ;;  %v21305_v11 = vld [vmem:[%s20984_s25 + $0x122] sm:$0xff] }
  0x62   : > { %17982 = vmatprep.mubr.msk.f32.mxu0 %vm241_vm1, %v177_v24  ;;  %18459 = vmatprep.mubr.msk.f32.mxu1 %vm241_vm1, %v3906_v25  ;;  %24988 = vst [vmem:[#allocation5_spill] sm:$0xff] %v21305_v11  ;;  %v21313_v24 = vld [vmem:[%s24946_s1 + $0xc] sm:$0x7] }
  0x63   : > { %v21318_v25 = vld [vmem:[%s24946_s1 + $0xc] sm:$0x7] }
  0x65   : > { %17983 = vmatmul.mubr.msk.f32.gmra.mrb[6].mxu0 %vm241_vm1, %v178_v26  ;;  %18460 = vmatmul.mubr.msk.f32.gmra.mrb[6].mxu1 %vm241_vm1, %v3907_v27  ;;  %v926_v26 = vld [vmem:[%s20984_s25 + $0x1a] sm:$0xff]  ;;  %v21326_v27 = vld [vmem:[%s20984_s25 + $0x12a] sm:$0xff] }
  0x66   : > { %17985 = vmatprep.mubr.msk.f32.mxu0 %vm241_vm1, %v179_v28  ;;  %18462 = vmatprep.mubr.msk.f32.mxu1 %vm241_vm1, %v3908_v29  ;;  %24989 = vst [vmem:[#allocation6_spill] sm:$0xff] %v21326_v27  ;;  %v21332_v28 = vld [vmem:[%s20984_s25 + $0x22] sm:$0xff]  ;;  %v21335_v29 = vld [vmem:[%s20984_s25 + $0x132] sm:$0xff] }
  0x69   : > { %17986 = vmatmul.mubr.msk.f32.gmra.mrb[8].mxu0 %vm241_vm1, %v180_v30  ;;  %18463 = vmatmul.mubr.msk.f32.gmra.mrb[8].mxu1 %vm241_vm1, %v3909_v31  ;;  %v21355_v30 = vld [vmem:[%s20984_s25 + $0x32] sm:$0xff]  ;;  %v21358_v31 = vld [vmem:[%s20984_s25 + $0x142] sm:$0xff] }
  0x6a   : > { %17988 = vmatprep.mubr.msk.f32.mxu0 %vm241_vm1, %v181_v32  ;;  %18465 = vmatprep.mubr.msk.f32.mxu1 %vm241_vm1, %v3910_v33  ;;  %v21369_v32 = vld [vmem:[%s20984_s25 + $0x3a] sm:$0xff]  ;;  %v21372_v33 = vld [vmem:[%s20984_s25 + $0x14a] sm:$0xff] }
  0x6d   : > { %17989 = vmatmul.mubr.msk.f32.gmra.mrb[10].mxu0 %vm241_vm1, %v182_v34  ;;  %18466 = vmatmul.mubr.msk.f32.gmra.mrb[10].mxu1 %vm241_vm1, %v3911_v35  ;;  %v21375_v34 = vld [vmem:[%s20984_s25 + $0x42] sm:$0xff]  ;;  %v21378_v35 = vld [vmem:[%s20984_s25 + $0x152] sm:$0xff] }
  0x6e   : > { %17991 = vmatprep.mubr.msk.f32.mxu0 %vm241_vm1, %v183_v36  ;;  %18468 = vmatprep.mubr.msk.f32.mxu1 %vm241_vm1, %v3912_v37  ;;  %v21389_v36 = vld [vmem:[%s20984_s25 + $0x4a] sm:$0xff]  ;;  %v21392_v37 = vld [vmem:[%s20984_s25 + $0x15a] sm:$0xff] }
  0x71   : > { %17992 = vmatmul.mubr.msk.f32.gmra.mrb[12].mxu0 %vm241_vm1, %v184_v38  ;;  %18469 = vmatmul.mubr.msk.f32.gmra.mrb[12].mxu1 %vm241_vm1, %v3913_v39  ;;  %v21395_v38 = vld [vmem:[%s20984_s25 + $0x52] sm:$0xff]  ;;  %v21398_v39 = vld [vmem:[%s20984_s25 + $0x162] sm:$0xff] }
  0x72   : > { %17994 = vmatprep.mubr.msk.f32.mxu0 %vm241_vm1, %v185_v40  ;;  %18471 = vmatprep.mubr.msk.f32.mxu1 %vm241_vm1, %v3914_v41  ;;  %v21409_v40 = vld [vmem:[%s20984_s25 + $0x5a] sm:$0xff]  ;;  %v21412_v41 = vld [vmem:[%s20984_s25 + $0x16a] sm:$0xff] }
  0x75   : > { %17995 = vmatmul.mubr.msk.f32.gmra.mrb[14].mxu0 %vm241_vm1, %v186_v42  ;;  %18472 = vmatmul.mubr.msk.f32.gmra.mrb[14].mxu1 %vm241_vm1, %v3915_v43  ;;  %v21415_v42 = vld [vmem:[%s20984_s25 + $0x62] sm:$0xff]  ;;  %v21418_v43 = vld [vmem:[%s20984_s25 + $0x172] sm:$0xff] }
  0x76   : > { %17997 = vmatprep.mubr.msk.f32.mxu0 %vm241_vm1, %v187_v44  ;;  %18474 = vmatprep.mubr.msk.f32.mxu1 %vm241_vm1, %v3916_v45  ;;  %v21429_v44 = vld [vmem:[%s20984_s25 + $0x6a] sm:$0xff]  ;;  %v21432_v45 = vld [vmem:[%s20984_s25 + $0x17a] sm:$0xff] }
  0x79   : > { %17998 = vmatmul.mubr.msk.f32.gmra.mrb[16].mxu0 %vm241_vm1, %v188_v46  ;;  %18475 = vmatmul.mubr.msk.f32.gmra.mrb[16].mxu1 %vm241_vm1, %v3917_v47  ;;  %v21435_v46 = vld [vmem:[%s20984_s25 + $0x72] sm:$0xff]  ;;  %v21438_v47 = vld [vmem:[%s20984_s25 + $0x182] sm:$0xff] }
  0x7a   : > { %18000 = vmatprep.mubr.msk.f32.mxu0 %vm241_vm1, %v189_v48  ;;  %18477 = vmatprep.mubr.msk.f32.mxu1 %vm241_vm1, %v3918_v49  ;;  %v21449_v48 = vld [vmem:[%s20984_s25 + $0x7a] sm:$0xff]  ;;  %v21452_v49 = vld [vmem:[%s20984_s25 + $0x18a] sm:$0xff] }
  0x7d   : > { %18001 = vmatmul.mubr.msk.f32.gmra.mrb[18].mxu0 %vm241_vm1, %v190_v50  ;;  %18478 = vmatmul.mubr.msk.f32.gmra.mrb[18].mxu1 %vm241_vm1, %v3919_v51  ;;  %v21455_v50 = vld [vmem:[%s20984_s25 + $0x82] sm:$0xff]  ;;  %v21458_v51 = vld [vmem:[%s20984_s25 + $0x192] sm:$0xff] }
  0x7e   : > { %18003 = vmatprep.mubr.msk.f32.mxu0 %vm241_vm1, %v191_v52  ;;  %18480 = vmatprep.mubr.msk.f32.mxu1 %vm241_vm1, %v3920_v53  ;;  %v21469_v52 = vld [vmem:[%s20984_s25 + $0x8a] sm:$0xff]  ;;  %v21472_v53 = vld [vmem:[%s20984_s25 + $0x19a] sm:$0xff] }
  0x81   : > { %18004 = vmatmul.mubr.msk.f32.gmra.mrb[20].mxu0 %vm241_vm1, %v192_v54  ;;  %18481 = vmatmul.mubr.msk.f32.gmra.mrb[20].mxu1 %vm241_vm1, %v3921_v55  ;;  %v21475_v54 = vld [vmem:[%s20984_s25 + $0x92] sm:$0xff]  ;;  %v21478_v55 = vld [vmem:[%s20984_s25 + $0x1a2] sm:$0xff] }
  0x82   : > { %18006 = vmatprep.mubr.msk.f32.mxu0 %vm241_vm1, %v193_v56  ;;  %18483 = vmatprep.mubr.msk.f32.mxu1 %vm241_vm1, %v3922_v57  ;;  %v21489_v56 = vld [vmem:[%s20984_s25 + $0x9a] sm:$0xff]  ;;  %v21492_v57 = vld [vmem:[%s20984_s25 + $0x1aa] sm:$0xff] }
  0x85   : > { %18007 = vmatmul.mubr.msk.f32.gmra.mrb[22].mxu0 %vm241_vm1, %v194_v58  ;;  %18484 = vmatmul.mubr.msk.f32.gmra.mrb[22].mxu1 %vm241_vm1, %v3923_v59  ;;  %v21495_v58 = vld [vmem:[%s20984_s25 + $0xa2] sm:$0xff]  ;;  %v21498_v59 = vld [vmem:[%s20984_s25 + $0x1b2] sm:$0xff] }
  0x86   : > { %18009 = vmatprep.mubr.msk.f32.mxu0 %vm241_vm1, %v195_v60  ;;  %18486 = vmatprep.mubr.msk.f32.mxu1 %vm241_vm1, %v3924_v61  ;;  %v21509_v60 = vld [vmem:[%s20984_s25 + $0xaa] sm:$0xff]  ;;  %v21512_v61 = vld [vmem:[%s20984_s25 + $0x1ba] sm:$0xff] }
  0x89   : > { %18010 = vmatmul.mubr.msk.f32.gmra.mrb[24].mxu0 %vm241_vm1, %v196_v62  ;;  %18487 = vmatmul.mubr.msk.f32.gmra.mrb[24].mxu1 %vm241_vm1, %v3925_v63  ;;  %v21515_v62 = vld [vmem:[%s20984_s25 + $0xb2] sm:$0xff]  ;;  %v21518_v63 = vld [vmem:[%s20984_s25 + $0x1c2] sm:$0xff] }
  0x8a   : > { %18012 = vmatprep.mubr.msk.f32.mxu0 %vm241_vm1, %v197_v0  ;;  %18489 = vmatprep.mubr.msk.f32.mxu1 %vm241_vm1, %v3926_v1  ;;  %v21529_v0 = vld [vmem:[%s20984_s25 + $0xba] sm:$0xff]  ;;  %v21532_v1 = vld [vmem:[%s20984_s25 + $0x1ca] sm:$0xff] }
  0x8d   : > { %18013 = vmatmul.mubr.msk.f32.gmra.mrb[26].mxu0 %vm241_vm1, %v198_v2  ;;  %18490 = vmatmul.mubr.msk.f32.gmra.mrb[26].mxu1 %vm241_vm1, %v3927_v3  ;;  %v21535_v2 = vld [vmem:[%s20984_s25 + $0xc2] sm:$0xff]  ;;  %v21538_v3 = vld [vmem:[%s20984_s25 + $0x1d2] sm:$0xff] }
  0x8e   : > { %18015 = vmatprep.mubr.msk.f32.mxu0 %vm241_vm1, %v199_v4  ;;  %18492 = vmatprep.mubr.msk.f32.mxu1 %vm241_vm1, %v3928_v5  ;;  %v21549_v4 = vld [vmem:[%s20984_s25 + $0xca] sm:$0xff]  ;;  %v21552_v5 = vld [vmem:[%s20984_s25 + $0x1da] sm:$0xff] }
  0x91   : > { %18016 = vmatmul.mubr.msk.f32.gmra.mrb[28].mxu0 %vm241_vm1, %v200_v6  ;;  %18493 = vmatmul.mubr.msk.f32.gmra.mrb[28].mxu1 %vm241_vm1, %v3929_v7  ;;  %v21555_v6 = vld [vmem:[%s20984_s25 + $0xd2] sm:$0xff]  ;;  %v21558_v7 = vld [vmem:[%s20984_s25 + $0x1e2] sm:$0xff] }
  0x92   : > { %18018 = vmatprep.mubr.msk.f32.mxu0 %vm241_vm1, %v201_v8  ;;  %18495 = vmatprep.mubr.msk.f32.mxu1 %vm241_vm1, %v3930_v9  ;;  %v21569_v8 = vld [vmem:[%s20984_s25 + $0xda] sm:$0xff]  ;;  %v21572_v9 = vld [vmem:[%s20984_s25 + $0x1ea] sm:$0xff] }
  0x95   : > { %18019 = vmatmul.mubr.msk.f32.gmra.mrb[30].mxu0 %vm241_vm1, %v202_v12  ;;  %18496 = vmatmul.mubr.msk.f32.gmra.mrb[30].mxu1 %vm241_vm1, %v3931_v13  ;;  %v21575_v12 = vld [vmem:[%s20984_s25 + $0xe2] sm:$0xff]  ;;  %v21578_v13 = vld [vmem:[%s20984_s25 + $0x1f2] sm:$0xff] }
  0x96   : > { %18021 = vmatprep.mubr.msk.f32.mxu0 %vm241_vm1, %v203_v14  ;;  %18498 = vmatprep.mubr.msk.f32.mxu1 %vm241_vm1, %v3932_v15  ;;  %v21589_v14 = vld [vmem:[%s20984_s25 + $0xea] sm:$0xff]  ;;  %v21592_v15 = vld [vmem:[%s20984_s25 + $0x1fa] sm:$0xff] }
  0x99   : > { %18022 = vmatmul.mubr.msk.f32.gmra.mrb[32].mxu0 %vm241_vm1, %v204_v16  ;;  %18499 = vmatmul.mubr.msk.f32.gmra.mrb[32].mxu1 %vm241_vm1, %v3933_v17  ;;  %v21595_v16 = vld [vmem:[%s20984_s25 + $0xf2] sm:$0xff]  ;;  %v21598_v17 = vld [vmem:[%s20984_s25 + $0x202] sm:$0xff] }
  0x9a   : > { %18026 = vmatprep.mubr.msk.f32.mxu0 %vm241_vm1, %v923_v20  ;;  %18503 = vmatprep.mubr.msk.f32.mxu1 %vm241_vm1, %v21292_v21  ;;  %v21609_v20 = vld [vmem:[%s20984_s25 + $0xfa] sm:$0xff]  ;;  %v21654_v21 = vld [vmem:[%s24946_s1 + $0xf] sm:$0x7] }
  0x9d   : > { %18027 = vmatmul.mubr.msk.f32.vlgmr.msra.gmra.mrb[0].mxu0 %vm241_vm1, %v924_v22  ;;  %18504 = vmatmul.mubr.msk.f32.vlgmr.msra.gmra.mrb[0].mxu1 %vm241_vm1, %v21301_v23  ;;  %v21612_v22 = vld [vmem:[%s20984_s25 + $0x20a] sm:$0xff] }
  0x9e   : > { %18078 = vmatpush3.msk.msra.mxu0 %vm344_vm0, %v21151_v18  ;;  %18555 = vmatpush3.msk.msra.mxu1 %vm344_vm0, %v21156_v19  ;;  %v21349_v18 = vld [vmem:[%s20984_s25 + $0x2a] sm:$0xff]  ;;  %v21352_v19 = vld [vmem:[%s20984_s25 + $0x13a] sm:$0xff] }
  0x9f   : > { %18029 = vmatprep.mubr.msk.f32.mxu0 %vm241_vm1, %v925_v10  ;;  %18506 = vmatprep.mubr.msk.f32.mxu1 %vm241_vm1, %v21305_v11  ;;  %v21615_v10 = vld [vmem:[%s20984_s25 + $0x102] sm:$0xff]  ;;  %v21632_v11 = vld [vmem:[%s20984_s25 + $0x21a] sm:$0xff]  ;;  %v21649_v23 = vld [vmem:[%s24946_s1 + $0xf] sm:$0x7] }
  0xa0   : > { %18130 = vmatprep.subr.msk.mxu0 %vm344_vm0, %v21313_v24  ;;  %18607 = vmatprep.subr.msk.mxu1 %vm344_vm0, %v21318_v25 }
  0xa1   : > { %18030 = vmatmul.mubr.msk.f32.gmra.mrb[2].mxu0 %vm241_vm1, %v926_v26  ;;  %18507 = vmatmul.mubr.msk.f32.gmra.mrb[2].mxu1 %vm241_vm1, %v21326_v27  ;;  %v21618_v26 = vld [vmem:[%s20984_s25 + $0x212] sm:$0xff]  ;;  %v21629_v27 = vld [vmem:[%s20984_s25 + $0x10a] sm:$0xff] }
  0xa2   : > { %18032 = vmatprep.mubr.msk.f32.mxu0 %vm241_vm1, %v21332_v28  ;;  %18509 = vmatprep.mubr.msk.f32.mxu1 %vm241_vm1, %v21335_v29 }
  0xa5   : > { %18033 = vmatmul.mubr.msk.f32.gmra.mrb[4].mxu0 %vm241_vm1, %v21349_v18  ;;  %18510 = vmatmul.mubr.msk.f32.gmra.mrb[4].mxu1 %vm241_vm1, %v21352_v19 }
  0xa6   : > { %18035 = vmatprep.mubr.msk.f32.mxu0 %vm241_vm1, %v21355_v30  ;;  %18512 = vmatprep.mubr.msk.f32.mxu1 %vm241_vm1, %v21358_v31 }
  0xa9   : > { %18036 = vmatmul.mubr.msk.f32.gmra.mrb[6].mxu0 %vm241_vm1, %v21369_v32  ;;  %18513 = vmatmul.mubr.msk.f32.gmra.mrb[6].mxu1 %vm241_vm1, %v21372_v33 }
  0xaa   : > { %18038 = vmatprep.mubr.msk.f32.mxu0 %vm241_vm1, %v21375_v34  ;;  %18515 = vmatprep.mubr.msk.f32.mxu1 %vm241_vm1, %v21378_v35 }
  0xad   : > { %18039 = vmatmul.mubr.msk.f32.gmra.mrb[8].mxu0 %vm241_vm1, %v21389_v36  ;;  %18516 = vmatmul.mubr.msk.f32.gmra.mrb[8].mxu1 %vm241_vm1, %v21392_v37 }
  0xae   : > { %18041 = vmatprep.mubr.msk.f32.mxu0 %vm241_vm1, %v21395_v38  ;;  %18518 = vmatprep.mubr.msk.f32.mxu1 %vm241_vm1, %v21398_v39 }
  0xb1   : > { %18042 = vmatmul.mubr.msk.f32.gmra.mrb[10].mxu0 %vm241_vm1, %v21409_v40  ;;  %18519 = vmatmul.mubr.msk.f32.gmra.mrb[10].mxu1 %vm241_vm1, %v21412_v41 }
  0xb2   : > { %18044 = vmatprep.mubr.msk.f32.mxu0 %vm241_vm1, %v21415_v42  ;;  %18521 = vmatprep.mubr.msk.f32.mxu1 %vm241_vm1, %v21418_v43 }
  0xb5   : > { %18045 = vmatmul.mubr.msk.f32.gmra.mrb[12].mxu0 %vm241_vm1, %v21429_v44  ;;  %18522 = vmatmul.mubr.msk.f32.gmra.mrb[12].mxu1 %vm241_vm1, %v21432_v45 }
  0xb6   : > { %18047 = vmatprep.mubr.msk.f32.mxu0 %vm241_vm1, %v21435_v46  ;;  %18524 = vmatprep.mubr.msk.f32.mxu1 %vm241_vm1, %v21438_v47 }
  0xb9   : > { %18048 = vmatmul.mubr.msk.f32.gmra.mrb[14].mxu0 %vm241_vm1, %v21449_v48  ;;  %18525 = vmatmul.mubr.msk.f32.gmra.mrb[14].mxu1 %vm241_vm1, %v21452_v49 }
  0xba   : > { %18050 = vmatprep.mubr.msk.f32.mxu0 %vm241_vm1, %v21455_v50  ;;  %18527 = vmatprep.mubr.msk.f32.mxu1 %vm241_vm1, %v21458_v51 }
  0xbd   : > { %18051 = vmatmul.mubr.msk.f32.gmra.mrb[16].mxu0 %vm241_vm1, %v21469_v52  ;;  %18528 = vmatmul.mubr.msk.f32.gmra.mrb[16].mxu1 %vm241_vm1, %v21472_v53 }
  0xbe   : > { %18053 = vmatprep.mubr.msk.f32.mxu0 %vm241_vm1, %v21475_v54  ;;  %18530 = vmatprep.mubr.msk.f32.mxu1 %vm241_vm1, %v21478_v55 }
  0xc1   : > { %18054 = vmatmul.mubr.msk.f32.gmra.mrb[18].mxu0 %vm241_vm1, %v21489_v56  ;;  %18531 = vmatmul.mubr.msk.f32.gmra.mrb[18].mxu1 %vm241_vm1, %v21492_v57 }
  0xc2   : > { %18056 = vmatprep.mubr.msk.f32.mxu0 %vm241_vm1, %v21495_v58  ;;  %18533 = vmatprep.mubr.msk.f32.mxu1 %vm241_vm1, %v21498_v59 }
  0xc5   : > { %18057 = vmatmul.mubr.msk.f32.gmra.mrb[20].mxu0 %vm241_vm1, %v21509_v60  ;;  %18534 = vmatmul.mubr.msk.f32.gmra.mrb[20].mxu1 %vm241_vm1, %v21512_v61 }
  0xc6   : > { %18059 = vmatprep.mubr.msk.f32.mxu0 %vm241_vm1, %v21515_v62  ;;  %18536 = vmatprep.mubr.msk.f32.mxu1 %vm241_vm1, %v21518_v63 }
  0xc9   : > { %18060 = vmatmul.mubr.msk.f32.gmra.mrb[22].mxu0 %vm241_vm1, %v21529_v0  ;;  %18537 = vmatmul.mubr.msk.f32.gmra.mrb[22].mxu1 %vm241_vm1, %v21532_v1 }
  0xca   : > { %18062 = vmatprep.mubr.msk.f32.mxu0 %vm241_vm1, %v21535_v2  ;;  %18539 = vmatprep.mubr.msk.f32.mxu1 %vm241_vm1, %v21538_v3 }
  0xcd   : > { %18063 = vmatmul.mubr.msk.f32.gmra.mrb[24].mxu0 %vm241_vm1, %v21549_v4  ;;  %18540 = vmatmul.mubr.msk.f32.gmra.mrb[24].mxu1 %vm241_vm1, %v21552_v5 }
  0xce   : > { %18065 = vmatprep.mubr.msk.f32.mxu0 %vm241_vm1, %v21555_v6  ;;  %18542 = vmatprep.mubr.msk.f32.mxu1 %vm241_vm1, %v21558_v7 }
  0xd1   : > { %18066 = vmatmul.mubr.msk.f32.gmra.mrb[26].mxu0 %vm241_vm1, %v21569_v8  ;;  %18543 = vmatmul.mubr.msk.f32.gmra.mrb[26].mxu1 %vm241_vm1, %v21572_v9 }
  0xd2   : > { %18068 = vmatprep.mubr.msk.f32.mxu0 %vm241_vm1, %v21575_v12  ;;  %18545 = vmatprep.mubr.msk.f32.mxu1 %vm241_vm1, %v21578_v13 }
  0xd5   : > { %18069 = vmatmul.mubr.msk.f32.gmra.mrb[28].mxu0 %vm241_vm1, %v21589_v14  ;;  %18546 = vmatmul.mubr.msk.f32.gmra.mrb[28].mxu1 %vm241_vm1, %v21592_v15 }
  0xd6   : > { %18071 = vmatprep.mubr.msk.f32.mxu0 %vm241_vm1, %v21595_v16  ;;  %18548 = vmatprep.mubr.msk.f32.mxu1 %vm241_vm1, %v21598_v17 }
  0xd9   : > { %18072 = vmatmul.mubr.msk.f32.gmra.mrb[30].mxu0 %vm241_vm1, %v21609_v20  ;;  %18549 = vmatmul.mubr.msk.f32.gmra.mrb[30].mxu1 %vm241_vm1, %v21612_v22 }
  0xda   : > { %18074 = vmatprep.mubr.msk.f32.mxu0 %vm241_vm1, %v21615_v10  ;;  %18551 = vmatprep.mubr.msk.f32.mxu1 %vm241_vm1, %v21618_v26 }
  0xdd   : > { %18075 = vmatmul.mubr.msk.f32.gmra.mrb[32].mxu0 %vm241_vm1, %v21629_v27  ;;  %18552 = vmatmul.mubr.msk.f32.gmra.mrb[32].mxu1 %vm241_vm1, %v21632_v11 }
  0xde   : > { %18079 = vmatprep.mubr.msk.f32.mxu0 %vm241_vm1, %v21332_v28  ;;  %18556 = vmatprep.mubr.msk.f32.mxu1 %vm241_vm1, %v21335_v29  ;;  %v5090_v28 = vld [vmem:[%s20984_s25 + $0x22a] sm:$0xff]  ;;  %v5091_v29 = vld [vmem:[%s20984_s25 + $0x232] sm:$0xff] }
  0xe1   : > { %18080 = vmatmul.mubr.msk.f32.vlgmr.msra.gmra.mrb[0].mxu0 %vm241_vm1, %v21349_v18  ;;  %18557 = vmatmul.mubr.msk.f32.vlgmr.msra.gmra.mrb[0].mxu1 %vm241_vm1, %v21352_v19  ;;  %v24991_v18 = vld [vmem:[#allocation4_spill] sm:$0xff] }
  0xe2   : > { %18131 = vmatpush3.msk.msra.mxu0 %vm344_vm0, %v21313_v24  ;;  %18608 = vmatpush3.msk.msra.mxu1 %vm344_vm0, %v21318_v25  ;;  %v5089_v24 = vld [vmem:[%s20984_s25 + $0x222] sm:$0xff] }
  0xe3   : > { %18082 = vmatprep.mubr.msk.f32.mxu0 %vm241_vm1, %v21355_v30  ;;  %18559 = vmatprep.mubr.msk.f32.mxu1 %vm241_vm1, %v21358_v31  ;;  %v24990_v25 = vld [vmem:[#allocation3_spill] sm:$0xff]  ;;  %v5468_v30 = vld [vmem:[%s20984_s25 + $0x133] sm:$0xff] }
  0xe4   : > { %18183 = vmatprep.subr.msk.mxu0 %vm344_vm0, %v21649_v23  ;;  %18660 = vmatprep.subr.msk.mxu1 %vm344_vm0, %v21654_v21  ;;  %v1741_v19 = vld [vmem:[%s20984_s25 + $0x23] sm:$0xff]  ;;  %v24993_v31 = vld [vmem:[#allocation6_spill] sm:$0xff] }
  0xe5   : > { %18083 = vmatmul.mubr.msk.f32.gmra.mrb[2].mxu0 %vm241_vm1, %v21369_v32  ;;  %18560 = vmatmul.mubr.msk.f32.gmra.mrb[2].mxu1 %vm241_vm1, %v21372_v33  ;;  %v1742_v32 = vld [vmem:[%s20984_s25 + $0x2b] sm:$0xff]  ;;  %v5469_v33 = vld [vmem:[%s20984_s25 + $0x13b] sm:$0xff] }
  0xe6   : > { %18085 = vmatprep.mubr.msk.f32.mxu0 %vm241_vm1, %v21375_v34  ;;  %18562 = vmatprep.mubr.msk.f32.mxu1 %vm241_vm1, %v21378_v35  ;;  %v1743_v34 = vld [vmem:[%s20984_s25 + $0x33] sm:$0xff]  ;;  %v5470_v35 = vld [vmem:[%s20984_s25 + $0x143] sm:$0xff] }
  0xe9   : > { %18086 = vmatmul.mubr.msk.f32.gmra.mrb[4].mxu0 %vm241_vm1, %v21389_v36  ;;  %18563 = vmatmul.mubr.msk.f32.gmra.mrb[4].mxu1 %vm241_vm1, %v21392_v37  ;;  %v21805_v36 = vld [vmem:[%s24946_s1 + $0x12] sm:$0x7] }
  0xea   : > { %18088 = vmatprep.mubr.msk.f32.mxu0 %vm241_vm1, %v21395_v38  ;;  %18565 = vmatprep.mubr.msk.f32.mxu1 %vm241_vm1, %v21398_v39  ;;  %v21810_v37 = vld [vmem:[%s24946_s1 + $0x12] sm:$0x7]  ;;  %v1744_v38 = vld [vmem:[%s20984_s25 + $0x3b] sm:$0xff] }
  0xeb   : > { %v5471_v39 = vld [vmem:[%s20984_s25 + $0x14b] sm:$0xff] }
  0xed   : > { %18089 = vmatmul.mubr.msk.f32.gmra.mrb[6].mxu0 %vm241_vm1, %v21409_v40  ;;  %18566 = vmatmul.mubr.msk.f32.gmra.mrb[6].mxu1 %vm241_vm1, %v21412_v41  ;;  %v1745_v40 = vld [vmem:[%s20984_s25 + $0x43] sm:$0xff]  ;;  %v5472_v41 = vld [vmem:[%s20984_s25 + $0x153] sm:$0xff] }
  0xee   : > { %18091 = vmatprep.mubr.msk.f32.mxu0 %vm241_vm1, %v21415_v42  ;;  %18568 = vmatprep.mubr.msk.f32.mxu1 %vm241_vm1, %v21418_v43  ;;  %v1747_v42 = vld [vmem:[%s20984_s25 + $0x53] sm:$0xff]  ;;  %v5474_v43 = vld [vmem:[%s20984_s25 + $0x163] sm:$0xff] }
  0xf1   : > { %18092 = vmatmul.mubr.msk.f32.gmra.mrb[8].mxu0 %vm241_vm1, %v21429_v44  ;;  %18569 = vmatmul.mubr.msk.f32.gmra.mrb[8].mxu1 %vm241_vm1, %v21432_v45  ;;  %v1748_v44 = vld [vmem:[%s20984_s25 + $0x5b] sm:$0xff]  ;;  %v5475_v45 = vld [vmem:[%s20984_s25 + $0x16b] sm:$0xff] }
  0xf2   : > { %18094 = vmatprep.mubr.msk.f32.mxu0 %vm241_vm1, %v21435_v46  ;;  %18571 = vmatprep.mubr.msk.f32.mxu1 %vm241_vm1, %v21438_v47  ;;  %v1749_v46 = vld [vmem:[%s20984_s25 + $0x63] sm:$0xff]  ;;  %v5476_v47 = vld [vmem:[%s20984_s25 + $0x173] sm:$0xff] }
  0xf5   : > { %18095 = vmatmul.mubr.msk.f32.gmra.mrb[10].mxu0 %vm241_vm1, %v21449_v48  ;;  %18572 = vmatmul.mubr.msk.f32.gmra.mrb[10].mxu1 %vm241_vm1, %v21452_v49  ;;  %v1750_v48 = vld [vmem:[%s20984_s25 + $0x6b] sm:$0xff]  ;;  %v5477_v49 = vld [vmem:[%s20984_s25 + $0x17b] sm:$0xff] }
  0xf6   : > { %18097 = vmatprep.mubr.msk.f32.mxu0 %vm241_vm1, %v21455_v50  ;;  %18574 = vmatprep.mubr.msk.f32.mxu1 %vm241_vm1, %v21458_v51  ;;  %v1751_v50 = vld [vmem:[%s20984_s25 + $0x73] sm:$0xff]  ;;  %v5478_v51 = vld [vmem:[%s20984_s25 + $0x183] sm:$0xff] }
  0xf9   : > { %18098 = vmatmul.mubr.msk.f32.gmra.mrb[12].mxu0 %vm241_vm1, %v21469_v52  ;;  %18575 = vmatmul.mubr.msk.f32.gmra.mrb[12].mxu1 %vm241_vm1, %v21472_v53  ;;  %v1752_v52 = vld [vmem:[%s20984_s25 + $0x7b] sm:$0xff]  ;;  %v5479_v53 = vld [vmem:[%s20984_s25 + $0x18b] sm:$0xff] }
  0xfa   : > { %18100 = vmatprep.mubr.msk.f32.mxu0 %vm241_vm1, %v21475_v54  ;;  %18577 = vmatprep.mubr.msk.f32.mxu1 %vm241_vm1, %v21478_v55  ;;  %v1753_v54 = vld [vmem:[%s20984_s25 + $0x83] sm:$0xff]  ;;  %v5480_v55 = vld [vmem:[%s20984_s25 + $0x193] sm:$0xff] }
  0xfd   : > { %18101 = vmatmul.mubr.msk.f32.gmra.mrb[14].mxu0 %vm241_vm1, %v21489_v56  ;;  %18578 = vmatmul.mubr.msk.f32.gmra.mrb[14].mxu1 %vm241_vm1, %v21492_v57  ;;  %v1754_v56 = vld [vmem:[%s20984_s25 + $0x8b] sm:$0xff]  ;;  %v5481_v57 = vld [vmem:[%s20984_s25 + $0x19b] sm:$0xff] }
  0xfe   : > { %18103 = vmatprep.mubr.msk.f32.mxu0 %vm241_vm1, %v21495_v58  ;;  %18580 = vmatprep.mubr.msk.f32.mxu1 %vm241_vm1, %v21498_v59  ;;  %v1755_v58 = vld [vmem:[%s20984_s25 + $0x93] sm:$0xff]  ;;  %v5482_v59 = vld [vmem:[%s20984_s25 + $0x1a3] sm:$0xff] }
 0x101   : > { %18104 = vmatmul.mubr.msk.f32.gmra.mrb[16].mxu0 %vm241_vm1, %v21509_v60  ;;  %18581 = vmatmul.mubr.msk.f32.gmra.mrb[16].mxu1 %vm241_vm1, %v21512_v61  ;;  %v1756_v60 = vld [vmem:[%s20984_s25 + $0x9b] sm:$0xff]  ;;  %v5483_v61 = vld [vmem:[%s20984_s25 + $0x1ab] sm:$0xff] }
 0x102   : > { %18106 = vmatprep.mubr.msk.f32.mxu0 %vm241_vm1, %v21515_v62  ;;  %18583 = vmatprep.mubr.msk.f32.mxu1 %vm241_vm1, %v21518_v63  ;;  %v1757_v62 = vld [vmem:[%s20984_s25 + $0xa3] sm:$0xff]  ;;  %v5484_v63 = vld [vmem:[%s20984_s25 + $0x1b3] sm:$0xff] }
 0x105   : > { %18107 = vmatmul.mubr.msk.f32.gmra.mrb[18].mxu0 %vm241_vm1, %v21529_v0  ;;  %18584 = vmatmul.mubr.msk.f32.gmra.mrb[18].mxu1 %vm241_vm1, %v21532_v1  ;;  %v1758_v0 = vld [vmem:[%s20984_s25 + $0xab] sm:$0xff]  ;;  %v5485_v1 = vld [vmem:[%s20984_s25 + $0x1bb] sm:$0xff] }
 0x106   : > { %18109 = vmatprep.mubr.msk.f32.mxu0 %vm241_vm1, %v21535_v2  ;;  %18586 = vmatprep.mubr.msk.f32.mxu1 %vm241_vm1, %v21538_v3  ;;  %v1759_v2 = vld [vmem:[%s20984_s25 + $0xb3] sm:$0xff]  ;;  %v5486_v3 = vld [vmem:[%s20984_s25 + $0x1c3] sm:$0xff] }
 0x109   : > { %18110 = vmatmul.mubr.msk.f32.gmra.mrb[20].mxu0 %vm241_vm1, %v21549_v4  ;;  %18587 = vmatmul.mubr.msk.f32.gmra.mrb[20].mxu1 %vm241_vm1, %v21552_v5  ;;  %v1760_v4 = vld [vmem:[%s20984_s25 + $0xbb] sm:$0xff]  ;;  %v5487_v5 = vld [vmem:[%s20984_s25 + $0x1cb] sm:$0xff] }
 0x10a   : > { %18112 = vmatprep.mubr.msk.f32.mxu0 %vm241_vm1, %v21555_v6  ;;  %18589 = vmatprep.mubr.msk.f32.mxu1 %vm241_vm1, %v21558_v7  ;;  %v1761_v6 = vld [vmem:[%s20984_s25 + $0xc3] sm:$0xff]  ;;  %v5488_v7 = vld [vmem:[%s20984_s25 + $0x1d3] sm:$0xff] }
 0x10d   : > { %18113 = vmatmul.mubr.msk.f32.gmra.mrb[22].mxu0 %vm241_vm1, %v21569_v8  ;;  %18590 = vmatmul.mubr.msk.f32.gmra.mrb[22].mxu1 %vm241_vm1, %v21572_v9  ;;  %v1762_v8 = vld [vmem:[%s20984_s25 + $0xcb] sm:$0xff]  ;;  %v5489_v9 = vld [vmem:[%s20984_s25 + $0x1db] sm:$0xff] }
 0x10e   : > { %18115 = vmatprep.mubr.msk.f32.mxu0 %vm241_vm1, %v21575_v12  ;;  %18592 = vmatprep.mubr.msk.f32.mxu1 %vm241_vm1, %v21578_v13  ;;  %v1763_v12 = vld [vmem:[%s20984_s25 + $0xd3] sm:$0xff]  ;;  %v5490_v13 = vld [vmem:[%s20984_s25 + $0x1e3] sm:$0xff] }
 0x111   : > { %18116 = vmatmul.mubr.msk.f32.gmra.mrb[24].mxu0 %vm241_vm1, %v21589_v14  ;;  %18593 = vmatmul.mubr.msk.f32.gmra.mrb[24].mxu1 %vm241_vm1, %v21592_v15  ;;  %v1764_v14 = vld [vmem:[%s20984_s25 + $0xdb] sm:$0xff]  ;;  %v5491_v15 = vld [vmem:[%s20984_s25 + $0x1eb] sm:$0xff] }
 0x112   : > { %18118 = vmatprep.mubr.msk.f32.mxu0 %vm241_vm1, %v21595_v16  ;;  %18595 = vmatprep.mubr.msk.f32.mxu1 %vm241_vm1, %v21598_v17  ;;  %v1765_v16 = vld [vmem:[%s20984_s25 + $0xe3] sm:$0xff]  ;;  %v5492_v17 = vld [vmem:[%s20984_s25 + $0x1f3] sm:$0xff] }
 0x115   : > { %18119 = vmatmul.mubr.msk.f32.gmra.mrb[26].mxu0 %vm241_vm1, %v21609_v20  ;;  %18596 = vmatmul.mubr.msk.f32.gmra.mrb[26].mxu1 %vm241_vm1, %v21612_v22  ;;  %v1766_v20 = vld [vmem:[%s20984_s25 + $0xeb] sm:$0xff]  ;;  %v5493_v22 = vld [vmem:[%s20984_s25 + $0x1fb] sm:$0xff] }
 0x116   : > { %18121 = vmatprep.mubr.msk.f32.mxu0 %vm241_vm1, %v21615_v10  ;;  %18598 = vmatprep.mubr.msk.f32.mxu1 %vm241_vm1, %v21618_v26  ;;  %v1767_v10 = vld [vmem:[%s20984_s25 + $0xf3] sm:$0xff]  ;;  %v5494_v26 = vld [vmem:[%s20984_s25 + $0x203] sm:$0xff] }
 0x119   : > { %18122 = vmatmul.mubr.msk.f32.gmra.mrb[28].mxu0 %vm241_vm1, %v21629_v27  ;;  %18599 = vmatmul.mubr.msk.f32.gmra.mrb[28].mxu1 %vm241_vm1, %v21632_v11  ;;  %v24992_v27 = vld [vmem:[#allocation5_spill] sm:$0xff]  ;;  %v5092_v11 = vld [vmem:[%s20984_s25 + $0x23a] sm:$0xff] }
 0x11a   : > { %18124 = vmatprep.mubr.msk.f32.mxu0 %vm241_vm1, %v24990_v25  ;;  %18601 = vmatprep.mubr.msk.f32.mxu1 %vm241_vm1, %v5089_v24  ;;  %v1768_v24 = vld [vmem:[%s20984_s25 + $0xfb] sm:$0xff]  ;;  %v5495_v25 = vld [vmem:[%s20984_s25 + $0x20b] sm:$0xff] }
 0x11d   : > { %18125 = vmatmul.mubr.msk.f32.gmra.mrb[30].mxu0 %vm241_vm1, %v24991_v18  ;;  %18602 = vmatmul.mubr.msk.f32.gmra.mrb[30].mxu1 %vm241_vm1, %v5090_v28  ;;  %v1769_v28 = vld [vmem:[%s20984_s25 + $0x103] sm:$0xff]  ;;  %v1770_v18 = vld [vmem:[%s20984_s25 + $0x10b] sm:$0xff] }
 0x11e   : > { %18127 = vmatprep.mubr.msk.f32.mxu0 %vm241_vm1, %v24992_v27  ;;  %18604 = vmatprep.mubr.msk.f32.mxu1 %vm241_vm1, %v5091_v29  ;;  %v5496_v29 = vld [vmem:[%s20984_s25 + $0x213] sm:$0xff]  ;;  %v5497_v27 = vld [vmem:[%s20984_s25 + $0x21b] sm:$0xff] }
 0x121   : > { %18128 = vmatmul.mubr.msk.f32.gmra.mrb[32].mxu0 %vm241_vm1, %v24993_v31  ;;  %18605 = vmatmul.mubr.msk.f32.gmra.mrb[32].mxu1 %vm241_vm1, %v5092_v11  ;;  %v1771_v11 = vld [vmem:[%s20984_s25 + $0x113] sm:$0xff]  ;;  %v5499_v31 = vld [vmem:[%s20984_s25 + $0x22b] sm:$0xff] }
 0x122   : > { %18132 = vmatprep.mubr.msk.f32.mxu0 %vm241_vm1, %v1741_v19  ;;  %18609 = vmatprep.mubr.msk.f32.mxu1 %vm241_vm1, %v5468_v30  ;;  %v5498_v19 = vld [vmem:[%s20984_s25 + $0x223] sm:$0xff]  ;;  %v1772_v30 = vld [vmem:[%s20984_s25 + $0x11b] sm:$0xff] }
 0x125   : > { %18133 = vmatmul.mubr.msk.f32.vlgmr.msra.gmra.mrb[0].mxu0 %vm241_vm1, %v1742_v32  ;;  %18610 = vmatmul.mubr.msk.f32.vlgmr.msra.gmra.mrb[0].mxu1 %vm241_vm1, %v5469_v33  ;;  %v1773_v32 = vld [vmem:[%s20984_s25 + $0x123] sm:$0xff]  ;;  %v5500_v33 = vld [vmem:[%s20984_s25 + $0x233] sm:$0xff] }
 0x126   : > { %18184 = vmatpush3.msk.msra.mxu0 %vm344_vm0, %v21649_v23  ;;  %18661 = vmatpush3.msk.msra.mxu1 %vm344_vm0, %v21654_v21  ;;  %v1746_v21 = vld [vmem:[%s20984_s25 + $0x4b] sm:$0xff]  ;;  %v5473_v23 = vld [vmem:[%s20984_s25 + $0x15b] sm:$0xff] }
 0x127   : > { %18135 = vmatprep.mubr.msk.f32.mxu0 %vm241_vm1, %v1743_v34  ;;  %18612 = vmatprep.mubr.msk.f32.mxu1 %vm241_vm1, %v5470_v35  ;;  %v1774_v34 = vld [vmem:[%s20984_s25 + $0x12b] sm:$0xff]  ;;  %v5501_v35 = vld [vmem:[%s20984_s25 + $0x23b] sm:$0xff] }
 0x128   : > { %18236 = vmatprep.subr.msk.mxu0 %vm344_vm0, %v21805_v36  ;;  %18713 = vmatprep.subr.msk.mxu1 %vm344_vm0, %v21810_v37 }
 0x129   : > { %18136 = vmatmul.mubr.msk.f32.gmra.mrb[2].mxu0 %vm241_vm1, %v1744_v38  ;;  %18613 = vmatmul.mubr.msk.f32.gmra.mrb[2].mxu1 %vm241_vm1, %v5471_v39  ;;  %v2150_v38 = vld [vmem:[%s20984_s25 + $0x24] sm:$0xff]  ;;  %v21946_v39 = vld [vmem:[%s20984_s25 + $0x134] sm:$0xff] }
 0x12a   : > { %18138 = vmatprep.mubr.msk.f32.mxu0 %vm241_vm1, %v1745_v40  ;;  %18615 = vmatprep.mubr.msk.f32.mxu1 %vm241_vm1, %v5472_v41  ;;  %24994 = vst [vmem:[#allocation3_spill] sm:$0xff] %v21946_v39  ;;  %v2151_v40 = vld [vmem:[%s20984_s25 + $0x2c] sm:$0xff]  ;;  %v21955_v41 = vld [vmem:[%s20984_s25 + $0x13c] sm:$0xff] }
 0x12b   : > { %24995 = vst [vmem:[#allocation4_spill] sm:$0xff] %v21955_v41 }
 0x12d   : > { %18139 = vmatmul.mubr.msk.f32.gmra.mrb[4].mxu0 %vm241_vm1, %v1746_v21  ;;  %18616 = vmatmul.mubr.msk.f32.gmra.mrb[4].mxu1 %vm241_vm1, %v5473_v23  ;;  %v2152_v21 = vld [vmem:[%s20984_s25 + $0x34] sm:$0xff]  ;;  %v21959_v23 = vld [vmem:[%s20984_s25 + $0x144] sm:$0xff] }
 0x12e   : > { %18141 = vmatprep.mubr.msk.f32.mxu0 %vm241_vm1, %v1747_v42  ;;  %18618 = vmatprep.mubr.msk.f32.mxu1 %vm241_vm1, %v5474_v43  ;;  %24996 = vst [vmem:[#allocation5_spill] sm:$0xff] %v21959_v23  ;;  %v21967_v42 = vld [vmem:[%s24946_s1 + $0x15] sm:$0x7] }
 0x12f   : > { %v21972_v43 = vld [vmem:[%s24946_s1 + $0x15] sm:$0x7] }
 0x131   : > { %18142 = vmatmul.mubr.msk.f32.gmra.mrb[6].mxu0 %vm241_vm1, %v1748_v44  ;;  %18619 = vmatmul.mubr.msk.f32.gmra.mrb[6].mxu1 %vm241_vm1, %v5475_v45  ;;  %v2153_v44 = vld [vmem:[%s20984_s25 + $0x3c] sm:$0xff]  ;;  %v21980_v45 = vld [vmem:[%s20984_s25 + $0x14c] sm:$0xff] }
 0x132   : > { %18144 = vmatprep.mubr.msk.f32.mxu0 %vm241_vm1, %v1749_v46  ;;  %18621 = vmatprep.mubr.msk.f32.mxu1 %vm241_vm1, %v5476_v47  ;;  %24997 = vst [vmem:[#allocation6_spill] sm:$0xff] %v21980_v45  ;;  %v21986_v46 = vld [vmem:[%s20984_s25 + $0x44] sm:$0xff]  ;;  %v21989_v47 = vld [vmem:[%s20984_s25 + $0x154] sm:$0xff] }
 0x135   : > { %18145 = vmatmul.mubr.msk.f32.gmra.mrb[8].mxu0 %vm241_vm1, %v1750_v48  ;;  %18622 = vmatmul.mubr.msk.f32.gmra.mrb[8].mxu1 %vm241_vm1, %v5477_v49  ;;  %v22009_v48 = vld [vmem:[%s20984_s25 + $0x54] sm:$0xff]  ;;  %v22012_v49 = vld [vmem:[%s20984_s25 + $0x164] sm:$0xff] }
 0x136   : > { %18147 = vmatprep.mubr.msk.f32.mxu0 %vm241_vm1, %v1751_v50  ;;  %18624 = vmatprep.mubr.msk.f32.mxu1 %vm241_vm1, %v5478_v51  ;;  %v22023_v50 = vld [vmem:[%s20984_s25 + $0x5c] sm:$0xff]  ;;  %v22026_v51 = vld [vmem:[%s20984_s25 + $0x16c] sm:$0xff] }
 0x139   : > { %18148 = vmatmul.mubr.msk.f32.gmra.mrb[10].mxu0 %vm241_vm1, %v1752_v52  ;;  %18625 = vmatmul.mubr.msk.f32.gmra.mrb[10].mxu1 %vm241_vm1, %v5479_v53  ;;  %v22029_v52 = vld [vmem:[%s20984_s25 + $0x64] sm:$0xff]  ;;  %v22032_v53 = vld [vmem:[%s20984_s25 + $0x174] sm:$0xff] }
 0x13a   : > { %18150 = vmatprep.mubr.msk.f32.mxu0 %vm241_vm1, %v1753_v54  ;;  %18627 = vmatprep.mubr.msk.f32.mxu1 %vm241_vm1, %v5480_v55  ;;  %v22043_v54 = vld [vmem:[%s20984_s25 + $0x6c] sm:$0xff]  ;;  %v22046_v55 = vld [vmem:[%s20984_s25 + $0x17c] sm:$0xff] }
 0x13d   : > { %18151 = vmatmul.mubr.msk.f32.gmra.mrb[12].mxu0 %vm241_vm1, %v1754_v56  ;;  %18628 = vmatmul.mubr.msk.f32.gmra.mrb[12].mxu1 %vm241_vm1, %v5481_v57  ;;  %v22049_v56 = vld [vmem:[%s20984_s25 + $0x74] sm:$0xff]  ;;  %v22052_v57 = vld [vmem:[%s20984_s25 + $0x184] sm:$0xff] }
 0x13e   : > { %18153 = vmatprep.mubr.msk.f32.mxu0 %vm241_vm1, %v1755_v58  ;;  %18630 = vmatprep.mubr.msk.f32.mxu1 %vm241_vm1, %v5482_v59  ;;  %v22063_v58 = vld [vmem:[%s20984_s25 + $0x7c] sm:$0xff]  ;;  %v22066_v59 = vld [vmem:[%s20984_s25 + $0x18c] sm:$0xff] }
 0x141   : > { %18154 = vmatmul.mubr.msk.f32.gmra.mrb[14].mxu0 %vm241_vm1, %v1756_v60  ;;  %18631 = vmatmul.mubr.msk.f32.gmra.mrb[14].mxu1 %vm241_vm1, %v5483_v61  ;;  %v22069_v60 = vld [vmem:[%s20984_s25 + $0x84] sm:$0xff]  ;;  %v22072_v61 = vld [vmem:[%s20984_s25 + $0x194] sm:$0xff] }
 0x142   : > { %18156 = vmatprep.mubr.msk.f32.mxu0 %vm241_vm1, %v1757_v62  ;;  %18633 = vmatprep.mubr.msk.f32.mxu1 %vm241_vm1, %v5484_v63  ;;  %v22083_v62 = vld [vmem:[%s20984_s25 + $0x8c] sm:$0xff]  ;;  %v22086_v63 = vld [vmem:[%s20984_s25 + $0x19c] sm:$0xff] }
 0x145   : > { %18157 = vmatmul.mubr.msk.f32.gmra.mrb[16].mxu0 %vm241_vm1, %v1758_v0  ;;  %18634 = vmatmul.mubr.msk.f32.gmra.mrb[16].mxu1 %vm241_vm1, %v5485_v1  ;;  %v22089_v0 = vld [vmem:[%s20984_s25 + $0x94] sm:$0xff]  ;;  %v22092_v1 = vld [vmem:[%s20984_s25 + $0x1a4] sm:$0xff] }
 0x146   : > { %18159 = vmatprep.mubr.msk.f32.mxu0 %vm241_vm1, %v1759_v2  ;;  %18636 = vmatprep.mubr.msk.f32.mxu1 %vm241_vm1, %v5486_v3  ;;  %v22103_v2 = vld [vmem:[%s20984_s25 + $0x9c] sm:$0xff]  ;;  %v22106_v3 = vld [vmem:[%s20984_s25 + $0x1ac] sm:$0xff] }
 0x149   : > { %18160 = vmatmul.mubr.msk.f32.gmra.mrb[18].mxu0 %vm241_vm1, %v1760_v4  ;;  %18637 = vmatmul.mubr.msk.f32.gmra.mrb[18].mxu1 %vm241_vm1, %v5487_v5  ;;  %v22109_v4 = vld [vmem:[%s20984_s25 + $0xa4] sm:$0xff]  ;;  %v22112_v5 = vld [vmem:[%s20984_s25 + $0x1b4] sm:$0xff] }
 0x14a   : > { %18162 = vmatprep.mubr.msk.f32.mxu0 %vm241_vm1, %v1761_v6  ;;  %18639 = vmatprep.mubr.msk.f32.mxu1 %vm241_vm1, %v5488_v7  ;;  %v22123_v6 = vld [vmem:[%s20984_s25 + $0xac] sm:$0xff]  ;;  %v22126_v7 = vld [vmem:[%s20984_s25 + $0x1bc] sm:$0xff] }
 0x14d   : > { %18163 = vmatmul.mubr.msk.f32.gmra.mrb[20].mxu0 %vm241_vm1, %v1762_v8  ;;  %18640 = vmatmul.mubr.msk.f32.gmra.mrb[20].mxu1 %vm241_vm1, %v5489_v9  ;;  %v22129_v8 = vld [vmem:[%s20984_s25 + $0xb4] sm:$0xff]  ;;  %v22132_v9 = vld [vmem:[%s20984_s25 + $0x1c4] sm:$0xff] }
 0x14e   : > { %18165 = vmatprep.mubr.msk.f32.mxu0 %vm241_vm1, %v1763_v12  ;;  %18642 = vmatprep.mubr.msk.f32.mxu1 %vm241_vm1, %v5490_v13  ;;  %v22143_v12 = vld [vmem:[%s20984_s25 + $0xbc] sm:$0xff]  ;;  %v22146_v13 = vld [vmem:[%s20984_s25 + $0x1cc] sm:$0xff] }
 0x151   : > { %18166 = vmatmul.mubr.msk.f32.gmra.mrb[22].mxu0 %vm241_vm1, %v1764_v14  ;;  %18643 = vmatmul.mubr.msk.f32.gmra.mrb[22].mxu1 %vm241_vm1, %v5491_v15  ;;  %v22149_v14 = vld [vmem:[%s20984_s25 + $0xc4] sm:$0xff]  ;;  %v22152_v15 = vld [vmem:[%s20984_s25 + $0x1d4] sm:$0xff] }
 0x152   : > { %18168 = vmatprep.mubr.msk.f32.mxu0 %vm241_vm1, %v1765_v16  ;;  %18645 = vmatprep.mubr.msk.f32.mxu1 %vm241_vm1, %v5492_v17  ;;  %v22163_v16 = vld [vmem:[%s20984_s25 + $0xcc] sm:$0xff]  ;;  %v22166_v17 = vld [vmem:[%s20984_s25 + $0x1dc] sm:$0xff] }
 0x155   : > { %18169 = vmatmul.mubr.msk.f32.gmra.mrb[24].mxu0 %vm241_vm1, %v1766_v20  ;;  %18646 = vmatmul.mubr.msk.f32.gmra.mrb[24].mxu1 %vm241_vm1, %v5493_v22  ;;  %v22169_v20 = vld [vmem:[%s20984_s25 + $0xd4] sm:$0xff]  ;;  %v22172_v22 = vld [vmem:[%s20984_s25 + $0x1e4] sm:$0xff] }
 0x156   : > { %18171 = vmatprep.mubr.msk.f32.mxu0 %vm241_vm1, %v1767_v10  ;;  %18648 = vmatprep.mubr.msk.f32.mxu1 %vm241_vm1, %v5494_v26  ;;  %v22183_v10 = vld [vmem:[%s20984_s25 + $0xdc] sm:$0xff]  ;;  %v22186_v26 = vld [vmem:[%s20984_s25 + $0x1ec] sm:$0xff] }
 0x159   : > { %18172 = vmatmul.mubr.msk.f32.gmra.mrb[26].mxu0 %vm241_vm1, %v1768_v24  ;;  %18649 = vmatmul.mubr.msk.f32.gmra.mrb[26].mxu1 %vm241_vm1, %v5495_v25  ;;  %v22189_v24 = vld [vmem:[%s20984_s25 + $0xe4] sm:$0xff]  ;;  %v22192_v25 = vld [vmem:[%s20984_s25 + $0x1f4] sm:$0xff] }
 0x15a   : > { %18174 = vmatprep.mubr.msk.f32.mxu0 %vm241_vm1, %v1769_v28  ;;  %18651 = vmatprep.mubr.msk.f32.mxu1 %vm241_vm1, %v5496_v29  ;;  %v22203_v28 = vld [vmem:[%s20984_s25 + $0xec] sm:$0xff]  ;;  %v22206_v29 = vld [vmem:[%s20984_s25 + $0x1fc] sm:$0xff] }
 0x15d   : > { %18175 = vmatmul.mubr.msk.f32.gmra.mrb[28].mxu0 %vm241_vm1, %v1770_v18  ;;  %18652 = vmatmul.mubr.msk.f32.gmra.mrb[28].mxu1 %vm241_vm1, %v5497_v27  ;;  %v22209_v18 = vld [vmem:[%s20984_s25 + $0xf4] sm:$0xff]  ;;  %v22212_v27 = vld [vmem:[%s20984_s25 + $0x204] sm:$0xff] }
 0x15e   : > { %18177 = vmatprep.mubr.msk.f32.mxu0 %vm241_vm1, %v1771_v11  ;;  %18654 = vmatprep.mubr.msk.f32.mxu1 %vm241_vm1, %v5498_v19  ;;  %v22223_v11 = vld [vmem:[%s20984_s25 + $0xfc] sm:$0xff]  ;;  %v22226_v19 = vld [vmem:[%s20984_s25 + $0x20c] sm:$0xff] }
 0x161   : > { %18178 = vmatmul.mubr.msk.f32.gmra.mrb[30].mxu0 %vm241_vm1, %v1772_v30  ;;  %18655 = vmatmul.mubr.msk.f32.gmra.mrb[30].mxu1 %vm241_vm1, %v5499_v31  ;;  %v22229_v30 = vld [vmem:[%s20984_s25 + $0x104] sm:$0xff]  ;;  %v22232_v31 = vld [vmem:[%s20984_s25 + $0x214] sm:$0xff] }
 0x162   : > { %18180 = vmatprep.mubr.msk.f32.mxu0 %vm241_vm1, %v1773_v32  ;;  %18657 = vmatprep.mubr.msk.f32.mxu1 %vm241_vm1, %v5500_v33  ;;  %v22243_v32 = vld [vmem:[%s20984_s25 + $0x10c] sm:$0xff]  ;;  %v22246_v33 = vld [vmem:[%s20984_s25 + $0x21c] sm:$0xff] }
 0x165   : > { %18181 = vmatmul.mubr.msk.f32.gmra.mrb[32].mxu0 %vm241_vm1, %v1774_v34  ;;  %18658 = vmatmul.mubr.msk.f32.gmra.mrb[32].mxu1 %vm241_vm1, %v5501_v35  ;;  %v22249_v34 = vld [vmem:[%s20984_s25 + $0x114] sm:$0xff]  ;;  %v22252_v35 = vld [vmem:[%s20984_s25 + $0x224] sm:$0xff] }
 0x166   : > { %18185 = vmatprep.mubr.msk.f32.mxu0 %vm241_vm1, %v2150_v38  ;;  %18662 = vmatprep.mubr.msk.f32.mxu1 %vm241_vm1, %v21946_v39  ;;  %v22263_v38 = vld [vmem:[%s20984_s25 + $0x11c] sm:$0xff]  ;;  %v22308_v39 = vld [vmem:[%s24946_s1 + $0x18] sm:$0x7] }
 0x169   : > { %18186 = vmatmul.mubr.msk.f32.vlgmr.msra.gmra.mrb[0].mxu0 %vm241_vm1, %v2151_v40  ;;  %18663 = vmatmul.mubr.msk.f32.vlgmr.msra.gmra.mrb[0].mxu1 %vm241_vm1, %v21955_v41  ;;  %v22266_v40 = vld [vmem:[%s20984_s25 + $0x22c] sm:$0xff]  ;;  %v22303_v41 = vld [vmem:[%s24946_s1 + $0x18] sm:$0x7] }
 0x16a   : > { %18237 = vmatpush3.msk.msra.mxu0 %vm344_vm0, %v21805_v36  ;;  %18714 = vmatpush3.msk.msra.mxu1 %vm344_vm0, %v21810_v37  ;;  %v22003_v36 = vld [vmem:[%s20984_s25 + $0x4c] sm:$0xff]  ;;  %v22006_v37 = vld [vmem:[%s20984_s25 + $0x15c] sm:$0xff] }
 0x16b   : > { %18188 = vmatprep.mubr.msk.f32.mxu0 %vm241_vm1, %v2152_v21  ;;  %18665 = vmatprep.mubr.msk.f32.mxu1 %vm241_vm1, %v21959_v23  ;;  %v22269_v21 = vld [vmem:[%s20984_s25 + $0x124] sm:$0xff]  ;;  %v22286_v23 = vld [vmem:[%s20984_s25 + $0x23c] sm:$0xff] }
 0x16c   : > { %18289 = vmatprep.subr.msk.mxu0 %vm344_vm0, %v21967_v42  ;;  %18766 = vmatprep.subr.msk.mxu1 %vm344_vm0, %v21972_v43 }
 0x16d   : > { %18189 = vmatmul.mubr.msk.f32.gmra.mrb[2].mxu0 %vm241_vm1, %v2153_v44  ;;  %18666 = vmatmul.mubr.msk.f32.gmra.mrb[2].mxu1 %vm241_vm1, %v21980_v45  ;;  %v22272_v44 = vld [vmem:[%s20984_s25 + $0x234] sm:$0xff]  ;;  %v22283_v45 = vld [vmem:[%s20984_s25 + $0x12c] sm:$0xff] }
 0x16e   : > { %18191 = vmatprep.mubr.msk.f32.mxu0 %vm241_vm1, %v21986_v46  ;;  %18668 = vmatprep.mubr.msk.f32.mxu1 %vm241_vm1, %v21989_v47 }
 0x171   : > { %18192 = vmatmul.mubr.msk.f32.gmra.mrb[4].mxu0 %vm241_vm1, %v22003_v36  ;;  %18669 = vmatmul.mubr.msk.f32.gmra.mrb[4].mxu1 %vm241_vm1, %v22006_v37 }
 0x172   : > { %18194 = vmatprep.mubr.msk.f32.mxu0 %vm241_vm1, %v22009_v48  ;;  %18671 = vmatprep.mubr.msk.f32.mxu1 %vm241_vm1, %v22012_v49 }
 0x175   : > { %18195 = vmatmul.mubr.msk.f32.gmra.mrb[6].mxu0 %vm241_vm1, %v22023_v50  ;;  %18672 = vmatmul.mubr.msk.f32.gmra.mrb[6].mxu1 %vm241_vm1, %v22026_v51 }
 0x176   : > { %18197 = vmatprep.mubr.msk.f32.mxu0 %vm241_vm1, %v22029_v52  ;;  %18674 = vmatprep.mubr.msk.f32.mxu1 %vm241_vm1, %v22032_v53 }
 0x179   : > { %18198 = vmatmul.mubr.msk.f32.gmra.mrb[8].mxu0 %vm241_vm1, %v22043_v54  ;;  %18675 = vmatmul.mubr.msk.f32.gmra.mrb[8].mxu1 %vm241_vm1, %v22046_v55 }
 0x17a   : > { %18200 = vmatprep.mubr.msk.f32.mxu0 %vm241_vm1, %v22049_v56  ;;  %18677 = vmatprep.mubr.msk.f32.mxu1 %vm241_vm1, %v22052_v57 }
 0x17d   : > { %18201 = vmatmul.mubr.msk.f32.gmra.mrb[10].mxu0 %vm241_vm1, %v22063_v58  ;;  %18678 = vmatmul.mubr.msk.f32.gmra.mrb[10].mxu1 %vm241_vm1, %v22066_v59 }
 0x17e   : > { %18203 = vmatprep.mubr.msk.f32.mxu0 %vm241_vm1, %v22069_v60  ;;  %18680 = vmatprep.mubr.msk.f32.mxu1 %vm241_vm1, %v22072_v61 }
 0x181   : > { %18204 = vmatmul.mubr.msk.f32.gmra.mrb[12].mxu0 %vm241_vm1, %v22083_v62  ;;  %18681 = vmatmul.mubr.msk.f32.gmra.mrb[12].mxu1 %vm241_vm1, %v22086_v63 }
 0x182   : > { %18206 = vmatprep.mubr.msk.f32.mxu0 %vm241_vm1, %v22089_v0  ;;  %18683 = vmatprep.mubr.msk.f32.mxu1 %vm241_vm1, %v22092_v1 }
 0x185   : > { %18207 = vmatmul.mubr.msk.f32.gmra.mrb[14].mxu0 %vm241_vm1, %v22103_v2  ;;  %18684 = vmatmul.mubr.msk.f32.gmra.mrb[14].mxu1 %vm241_vm1, %v22106_v3 }
 0x186   : > { %18209 = vmatprep.mubr.msk.f32.mxu0 %vm241_vm1, %v22109_v4  ;;  %18686 = vmatprep.mubr.msk.f32.mxu1 %vm241_vm1, %v22112_v5 }
 0x189   : > { %18210 = vmatmul.mubr.msk.f32.gmra.mrb[16].mxu0 %vm241_vm1, %v22123_v6  ;;  %18687 = vmatmul.mubr.msk.f32.gmra.mrb[16].mxu1 %vm241_vm1, %v22126_v7 }
 0x18a   : > { %18212 = vmatprep.mubr.msk.f32.mxu0 %vm241_vm1, %v22129_v8  ;;  %18689 = vmatprep.mubr.msk.f32.mxu1 %vm241_vm1, %v22132_v9 }
 0x18d   : > { %18213 = vmatmul.mubr.msk.f32.gmra.mrb[18].mxu0 %vm241_vm1, %v22143_v12  ;;  %18690 = vmatmul.mubr.msk.f32.gmra.mrb[18].mxu1 %vm241_vm1, %v22146_v13 }
 0x18e   : > { %18215 = vmatprep.mubr.msk.f32.mxu0 %vm241_vm1, %v22149_v14  ;;  %18692 = vmatprep.mubr.msk.f32.mxu1 %vm241_vm1, %v22152_v15 }
 0x191   : > { %18216 = vmatmul.mubr.msk.f32.gmra.mrb[20].mxu0 %vm241_vm1, %v22163_v16  ;;  %18693 = vmatmul.mubr.msk.f32.gmra.mrb[20].mxu1 %vm241_vm1, %v22166_v17 }
 0x192   : > { %18218 = vmatprep.mubr.msk.f32.mxu0 %vm241_vm1, %v22169_v20  ;;  %18695 = vmatprep.mubr.msk.f32.mxu1 %vm241_vm1, %v22172_v22 }
 0x195   : > { %18219 = vmatmul.mubr.msk.f32.gmra.mrb[22].mxu0 %vm241_vm1, %v22183_v10  ;;  %18696 = vmatmul.mubr.msk.f32.gmra.mrb[22].mxu1 %vm241_vm1, %v22186_v26 }
 0x196   : > { %18221 = vmatprep.mubr.msk.f32.mxu0 %vm241_vm1, %v22189_v24  ;;  %18698 = vmatprep.mubr.msk.f32.mxu1 %vm241_vm1, %v22192_v25 }
 0x199   : > { %18222 = vmatmul.mubr.msk.f32.gmra.mrb[24].mxu0 %vm241_vm1, %v22203_v28  ;;  %18699 = vmatmul.mubr.msk.f32.gmra.mrb[24].mxu1 %vm241_vm1, %v22206_v29 }
 0x19a   : > { %18224 = vmatprep.mubr.msk.f32.mxu0 %vm241_vm1, %v22209_v18  ;;  %18701 = vmatprep.mubr.msk.f32.mxu1 %vm241_vm1, %v22212_v27 }
 0x19d   : > { %18225 = vmatmul.mubr.msk.f32.gmra.mrb[26].mxu0 %vm241_vm1, %v22223_v11  ;;  %18702 = vmatmul.mubr.msk.f32.gmra.mrb[26].mxu1 %vm241_vm1, %v22226_v19 }
 0x19e   : > { %18227 = vmatprep.mubr.msk.f32.mxu0 %vm241_vm1, %v22229_v30  ;;  %18704 = vmatprep.mubr.msk.f32.mxu1 %vm241_vm1, %v22232_v31 }
 0x1a1   : > { %18228 = vmatmul.mubr.msk.f32.gmra.mrb[28].mxu0 %vm241_vm1, %v22243_v32  ;;  %18705 = vmatmul.mubr.msk.f32.gmra.mrb[28].mxu1 %vm241_vm1, %v22246_v33 }
 0x1a2   : > { %18230 = vmatprep.mubr.msk.f32.mxu0 %vm241_vm1, %v22249_v34  ;;  %18707 = vmatprep.mubr.msk.f32.mxu1 %vm241_vm1, %v22252_v35 }
 0x1a5   : > { %18231 = vmatmul.mubr.msk.f32.gmra.mrb[30].mxu0 %vm241_vm1, %v22263_v38  ;;  %18708 = vmatmul.mubr.msk.f32.gmra.mrb[30].mxu1 %vm241_vm1, %v22266_v40 }
 0x1a6   : > { %18233 = vmatprep.mubr.msk.f32.mxu0 %vm241_vm1, %v22269_v21  ;;  %18710 = vmatprep.mubr.msk.f32.mxu1 %vm241_vm1, %v22272_v44 }
 0x1a9   : > { %18234 = vmatmul.mubr.msk.f32.gmra.mrb[32].mxu0 %vm241_vm1, %v22283_v45  ;;  %18711 = vmatmul.mubr.msk.f32.gmra.mrb[32].mxu1 %vm241_vm1, %v22286_v23 }
 0x1aa   : > { %18238 = vmatprep.mubr.msk.f32.mxu0 %vm241_vm1, %v21986_v46  ;;  %18715 = vmatprep.mubr.msk.f32.mxu1 %vm241_vm1, %v21989_v47  ;;  %v6317_v46 = vld [vmem:[%s20984_s25 + $0x24c] sm:$0xff]  ;;  %v6318_v47 = vld [vmem:[%s20984_s25 + $0x254] sm:$0xff] }
 0x1ad   : > { %18239 = vmatmul.mubr.msk.f32.vlgmr.msra.gmra.mrb[0].mxu0 %vm241_vm1, %v22003_v36  ;;  %18716 = vmatmul.mubr.msk.f32.vlgmr.msra.gmra.mrb[0].mxu1 %vm241_vm1, %v22006_v37  ;;  %v24999_v36 = vld [vmem:[#allocation4_spill] sm:$0xff] }
 0x1ae   : > { %18290 = vmatpush3.msk.msra.mxu0 %vm344_vm0, %v21967_v42  ;;  %18767 = vmatpush3.msk.msra.mxu1 %vm344_vm0, %v21972_v43  ;;  %v6316_v42 = vld [vmem:[%s20984_s25 + $0x244] sm:$0xff] }
 0x1af   : > { %18241 = vmatprep.mubr.msk.f32.mxu0 %vm241_vm1, %v22009_v48  ;;  %18718 = vmatprep.mubr.msk.f32.mxu1 %vm241_vm1, %v22012_v49  ;;  %v24998_v43 = vld [vmem:[#allocation3_spill] sm:$0xff]  ;;  %v6695_v48 = vld [vmem:[%s20984_s25 + $0x155] sm:$0xff] }
 0x1b0   : > { %18342 = vmatprep.subr.msk.mxu0 %vm344_vm0, %v22303_v41  ;;  %18819 = vmatprep.subr.msk.mxu1 %vm344_vm0, %v22308_v39  ;;  %v2968_v37 = vld [vmem:[%s20984_s25 + $0x45] sm:$0xff]  ;;  %v25001_v49 = vld [vmem:[#allocation6_spill] sm:$0xff] }
 0x1b1   : > { %18242 = vmatmul.mubr.msk.f32.gmra.mrb[2].mxu0 %vm241_vm1, %v22023_v50  ;;  %18719 = vmatmul.mubr.msk.f32.gmra.mrb[2].mxu1 %vm241_vm1, %v22026_v51  ;;  %v2969_v50 = vld [vmem:[%s20984_s25 + $0x4d] sm:$0xff]  ;;  %v6696_v51 = vld [vmem:[%s20984_s25 + $0x15d] sm:$0xff] }
 0x1b2   : > { %18244 = vmatprep.mubr.msk.f32.mxu0 %vm241_vm1, %v22029_v52  ;;  %18721 = vmatprep.mubr.msk.f32.mxu1 %vm241_vm1, %v22032_v53  ;;  %v2970_v52 = vld [vmem:[%s20984_s25 + $0x55] sm:$0xff]  ;;  %v6697_v53 = vld [vmem:[%s20984_s25 + $0x165] sm:$0xff] }
 0x1b5   : > { %18245 = vmatmul.mubr.msk.f32.gmra.mrb[4].mxu0 %vm241_vm1, %v22043_v54  ;;  %18722 = vmatmul.mubr.msk.f32.gmra.mrb[4].mxu1 %vm241_vm1, %v22046_v55  ;;  %v22459_v54 = vld [vmem:[%s24946_s1 + $0x3] sm:$0x7] }
 0x1b6   : > { %18247 = vmatprep.mubr.msk.f32.mxu0 %vm241_vm1, %v22049_v56  ;;  %18724 = vmatprep.mubr.msk.f32.mxu1 %vm241_vm1, %v22052_v57  ;;  %v22464_v55 = vld [vmem:[%s24946_s1 + $0x3] sm:$0x7]  ;;  %v6698_v57 = vld [vmem:[%s20984_s25 + $0x16d] sm:$0xff] }
 0x1b7   : > { %v2971_v56 = vld [vmem:[%s20984_s25 + $0x5d] sm:$0xff] }
 0x1b9   : > { %18248 = vmatmul.mubr.msk.f32.gmra.mrb[6].mxu0 %vm241_vm1, %v22063_v58  ;;  %18725 = vmatmul.mubr.msk.f32.gmra.mrb[6].mxu1 %vm241_vm1, %v22066_v59  ;;  %v2972_v58 = vld [vmem:[%s20984_s25 + $0x65] sm:$0xff]  ;;  %v6699_v59 = vld [vmem:[%s20984_s25 + $0x175] sm:$0xff] }
 0x1ba   : > { %18250 = vmatprep.mubr.msk.f32.mxu0 %vm241_vm1, %v22069_v60  ;;  %18727 = vmatprep.mubr.msk.f32.mxu1 %vm241_vm1, %v22072_v61  ;;  %v2974_v60 = vld [vmem:[%s20984_s25 + $0x75] sm:$0xff]  ;;  %v6701_v61 = vld [vmem:[%s20984_s25 + $0x185] sm:$0xff] }
 0x1bd   : > { %18251 = vmatmul.mubr.msk.f32.gmra.mrb[8].mxu0 %vm241_vm1, %v22083_v62  ;;  %18728 = vmatmul.mubr.msk.f32.gmra.mrb[8].mxu1 %vm241_vm1, %v22086_v63  ;;  %v2975_v62 = vld [vmem:[%s20984_s25 + $0x7d] sm:$0xff]  ;;  %v6702_v63 = vld [vmem:[%s20984_s25 + $0x18d] sm:$0xff] }
 0x1be   : > { %18253 = vmatprep.mubr.msk.f32.mxu0 %vm241_vm1, %v22089_v0  ;;  %18730 = vmatprep.mubr.msk.f32.mxu1 %vm241_vm1, %v22092_v1  ;;  %v2976_v0 = vld [vmem:[%s20984_s25 + $0x85] sm:$0xff]  ;;  %v6703_v1 = vld [vmem:[%s20984_s25 + $0x195] sm:$0xff] }
 0x1c1   : > { %18254 = vmatmul.mubr.msk.f32.gmra.mrb[10].mxu0 %vm241_vm1, %v22103_v2  ;;  %18731 = vmatmul.mubr.msk.f32.gmra.mrb[10].mxu1 %vm241_vm1, %v22106_v3  ;;  %v2977_v2 = vld [vmem:[%s20984_s25 + $0x8d] sm:$0xff]  ;;  %v6704_v3 = vld [vmem:[%s20984_s25 + $0x19d] sm:$0xff] }
 0x1c2   : > { %18256 = vmatprep.mubr.msk.f32.mxu0 %vm241_vm1, %v22109_v4  ;;  %18733 = vmatprep.mubr.msk.f32.mxu1 %vm241_vm1, %v22112_v5  ;;  %v2978_v4 = vld [vmem:[%s20984_s25 + $0x95] sm:$0xff]  ;;  %v6705_v5 = vld [vmem:[%s20984_s25 + $0x1a5] sm:$0xff] }
 0x1c5   : > { %18257 = vmatmul.mubr.msk.f32.gmra.mrb[12].mxu0 %vm241_vm1, %v22123_v6  ;;  %18734 = vmatmul.mubr.msk.f32.gmra.mrb[12].mxu1 %vm241_vm1, %v22126_v7  ;;  %v2979_v6 = vld [vmem:[%s20984_s25 + $0x9d] sm:$0xff]  ;;  %v6706_v7 = vld [vmem:[%s20984_s25 + $0x1ad] sm:$0xff] }
 0x1c6   : > { %18259 = vmatprep.mubr.msk.f32.mxu0 %vm241_vm1, %v22129_v8  ;;  %18736 = vmatprep.mubr.msk.f32.mxu1 %vm241_vm1, %v22132_v9  ;;  %v2980_v8 = vld [vmem:[%s20984_s25 + $0xa5] sm:$0xff]  ;;  %v6707_v9 = vld [vmem:[%s20984_s25 + $0x1b5] sm:$0xff] }
 0x1c9   : > { %18260 = vmatmul.mubr.msk.f32.gmra.mrb[14].mxu0 %vm241_vm1, %v22143_v12  ;;  %18737 = vmatmul.mubr.msk.f32.gmra.mrb[14].mxu1 %vm241_vm1, %v22146_v13  ;;  %v2981_v12 = vld [vmem:[%s20984_s25 + $0xad] sm:$0xff]  ;;  %v6708_v13 = vld [vmem:[%s20984_s25 + $0x1bd] sm:$0xff] }
 0x1ca   : > { %18262 = vmatprep.mubr.msk.f32.mxu0 %vm241_vm1, %v22149_v14  ;;  %18739 = vmatprep.mubr.msk.f32.mxu1 %vm241_vm1, %v22152_v15  ;;  %v2982_v14 = vld [vmem:[%s20984_s25 + $0xb5] sm:$0xff]  ;;  %v6709_v15 = vld [vmem:[%s20984_s25 + $0x1c5] sm:$0xff] }
 0x1cd   : > { %18263 = vmatmul.mubr.msk.f32.gmra.mrb[16].mxu0 %vm241_vm1, %v22163_v16  ;;  %18740 = vmatmul.mubr.msk.f32.gmra.mrb[16].mxu1 %vm241_vm1, %v22166_v17  ;;  %v2983_v16 = vld [vmem:[%s20984_s25 + $0xbd] sm:$0xff]  ;;  %v6710_v17 = vld [vmem:[%s20984_s25 + $0x1cd] sm:$0xff] }
 0x1ce   : > { %18265 = vmatprep.mubr.msk.f32.mxu0 %vm241_vm1, %v22169_v20  ;;  %18742 = vmatprep.mubr.msk.f32.mxu1 %vm241_vm1, %v22172_v22  ;;  %v2984_v20 = vld [vmem:[%s20984_s25 + $0xc5] sm:$0xff]  ;;  %v6711_v22 = vld [vmem:[%s20984_s25 + $0x1d5] sm:$0xff] }
 0x1d1   : > { %18266 = vmatmul.mubr.msk.f32.gmra.mrb[18].mxu0 %vm241_vm1, %v22183_v10  ;;  %18743 = vmatmul.mubr.msk.f32.gmra.mrb[18].mxu1 %vm241_vm1, %v22186_v26  ;;  %v2985_v10 = vld [vmem:[%s20984_s25 + $0xcd] sm:$0xff]  ;;  %v6712_v26 = vld [vmem:[%s20984_s25 + $0x1dd] sm:$0xff] }
 0x1d2   : > { %18268 = vmatprep.mubr.msk.f32.mxu0 %vm241_vm1, %v22189_v24  ;;  %18745 = vmatprep.mubr.msk.f32.mxu1 %vm241_vm1, %v22192_v25  ;;  %v2986_v24 = vld [vmem:[%s20984_s25 + $0xd5] sm:$0xff]  ;;  %v6713_v25 = vld [vmem:[%s20984_s25 + $0x1e5] sm:$0xff] }
 0x1d5   : > { %18269 = vmatmul.mubr.msk.f32.gmra.mrb[20].mxu0 %vm241_vm1, %v22203_v28  ;;  %18746 = vmatmul.mubr.msk.f32.gmra.mrb[20].mxu1 %vm241_vm1, %v22206_v29  ;;  %v2987_v28 = vld [vmem:[%s20984_s25 + $0xdd] sm:$0xff]  ;;  %v6714_v29 = vld [vmem:[%s20984_s25 + $0x1ed] sm:$0xff] }
 0x1d6   : > { %18271 = vmatprep.mubr.msk.f32.mxu0 %vm241_vm1, %v22209_v18  ;;  %18748 = vmatprep.mubr.msk.f32.mxu1 %vm241_vm1, %v22212_v27  ;;  %v2988_v18 = vld [vmem:[%s20984_s25 + $0xe5] sm:$0xff]  ;;  %v6715_v27 = vld [vmem:[%s20984_s25 + $0x1f5] sm:$0xff] }
 0x1d9   : > { %18272 = vmatmul.mubr.msk.f32.gmra.mrb[22].mxu0 %vm241_vm1, %v22223_v11  ;;  %18749 = vmatmul.mubr.msk.f32.gmra.mrb[22].mxu1 %vm241_vm1, %v22226_v19  ;;  %v2989_v11 = vld [vmem:[%s20984_s25 + $0xed] sm:$0xff]  ;;  %v6716_v19 = vld [vmem:[%s20984_s25 + $0x1fd] sm:$0xff] }
 0x1da   : > { %18274 = vmatprep.mubr.msk.f32.mxu0 %vm241_vm1, %v22229_v30  ;;  %18751 = vmatprep.mubr.msk.f32.mxu1 %vm241_vm1, %v22232_v31  ;;  %v2990_v30 = vld [vmem:[%s20984_s25 + $0xf5] sm:$0xff]  ;;  %v6717_v31 = vld [vmem:[%s20984_s25 + $0x205] sm:$0xff] }
 0x1dd   : > { %18275 = vmatmul.mubr.msk.f32.gmra.mrb[24].mxu0 %vm241_vm1, %v22243_v32  ;;  %18752 = vmatmul.mubr.msk.f32.gmra.mrb[24].mxu1 %vm241_vm1, %v22246_v33  ;;  %v2991_v32 = vld [vmem:[%s20984_s25 + $0xfd] sm:$0xff]  ;;  %v6718_v33 = vld [vmem:[%s20984_s25 + $0x20d] sm:$0xff] }
 0x1de   : > { %18277 = vmatprep.mubr.msk.f32.mxu0 %vm241_vm1, %v22249_v34  ;;  %18754 = vmatprep.mubr.msk.f32.mxu1 %vm241_vm1, %v22252_v35  ;;  %v2992_v34 = vld [vmem:[%s20984_s25 + $0x105] sm:$0xff]  ;;  %v6719_v35 = vld [vmem:[%s20984_s25 + $0x215] sm:$0xff] }
 0x1e1   : > { %18278 = vmatmul.mubr.msk.f32.gmra.mrb[26].mxu0 %vm241_vm1, %v22263_v38  ;;  %18755 = vmatmul.mubr.msk.f32.gmra.mrb[26].mxu1 %vm241_vm1, %v22266_v40  ;;  %v2993_v38 = vld [vmem:[%s20984_s25 + $0x10d] sm:$0xff]  ;;  %v6720_v40 = vld [vmem:[%s20984_s25 + $0x21d] sm:$0xff] }
 0x1e2   : > { %18280 = vmatprep.mubr.msk.f32.mxu0 %vm241_vm1, %v22269_v21  ;;  %18757 = vmatprep.mubr.msk.f32.mxu1 %vm241_vm1, %v22272_v44  ;;  %v2994_v21 = vld [vmem:[%s20984_s25 + $0x115] sm:$0xff]  ;;  %v6721_v44 = vld [vmem:[%s20984_s25 + $0x225] sm:$0xff] }
 0x1e5   : > { %18281 = vmatmul.mubr.msk.f32.gmra.mrb[28].mxu0 %vm241_vm1, %v22283_v45  ;;  %18758 = vmatmul.mubr.msk.f32.gmra.mrb[28].mxu1 %vm241_vm1, %v22286_v23  ;;  %v25000_v45 = vld [vmem:[#allocation5_spill] sm:$0xff]  ;;  %v6319_v23 = vld [vmem:[%s20984_s25 + $0x25c] sm:$0xff] }
 0x1e6   : > { %18283 = vmatprep.mubr.msk.f32.mxu0 %vm241_vm1, %v24998_v43  ;;  %18760 = vmatprep.mubr.msk.f32.mxu1 %vm241_vm1, %v6316_v42  ;;  %v2995_v42 = vld [vmem:[%s20984_s25 + $0x11d] sm:$0xff]  ;;  %v6722_v43 = vld [vmem:[%s20984_s25 + $0x22d] sm:$0xff] }
 0x1e9   : > { %18284 = vmatmul.mubr.msk.f32.gmra.mrb[30].mxu0 %vm241_vm1, %v24999_v36  ;;  %18761 = vmatmul.mubr.msk.f32.gmra.mrb[30].mxu1 %vm241_vm1, %v6317_v46  ;;  %v2996_v46 = vld [vmem:[%s20984_s25 + $0x125] sm:$0xff]  ;;  %v2997_v36 = vld [vmem:[%s20984_s25 + $0x12d] sm:$0xff] }
 0x1ea   : > { %18286 = vmatprep.mubr.msk.f32.mxu0 %vm241_vm1, %v25000_v45  ;;  %18763 = vmatprep.mubr.msk.f32.mxu1 %vm241_vm1, %v6318_v47  ;;  %v6723_v47 = vld [vmem:[%s20984_s25 + $0x235] sm:$0xff]  ;;  %v6724_v45 = vld [vmem:[%s20984_s25 + $0x23d] sm:$0xff] }
 0x1ed   : > { %18287 = vmatmul.mubr.msk.f32.gmra.mrb[32].mxu0 %vm241_vm1, %v25001_v49  ;;  %18764 = vmatmul.mubr.msk.f32.gmra.mrb[32].mxu1 %vm241_vm1, %v6319_v23  ;;  %v2998_v23 = vld [vmem:[%s20984_s25 + $0x135] sm:$0xff]  ;;  %v6726_v49 = vld [vmem:[%s20984_s25 + $0x24d] sm:$0xff] }
 0x1ee   : > { %18291 = vmatprep.mubr.msk.f32.mxu0 %vm241_vm1, %v2968_v37  ;;  %18768 = vmatprep.mubr.msk.f32.mxu1 %vm241_vm1, %v6695_v48  ;;  %v6725_v37 = vld [vmem:[%s20984_s25 + $0x245] sm:$0xff]  ;;  %v2999_v48 = vld [vmem:[%s20984_s25 + $0x13d] sm:$0xff] }
 0x1f1   : > { %18292 = vmatmul.mubr.msk.f32.vlgmr.msra.gmra.mrb[0].mxu0 %vm241_vm1, %v2969_v50  ;;  %18769 = vmatmul.mubr.msk.f32.vlgmr.msra.gmra.mrb[0].mxu1 %vm241_vm1, %v6696_v51  ;;  %v3000_v50 = vld [vmem:[%s20984_s25 + $0x145] sm:$0xff]  ;;  %v6727_v51 = vld [vmem:[%s20984_s25 + $0x255] sm:$0xff] }
 0x1f2   : > { %18343 = vmatpush3.msk.msra.mxu0 %vm344_vm0, %v22303_v41  ;;  %18820 = vmatpush3.msk.msra.mxu1 %vm344_vm0, %v22308_v39  ;;  %v2973_v39 = vld [vmem:[%s20984_s25 + $0x6d] sm:$0xff]  ;;  %v6700_v41 = vld [vmem:[%s20984_s25 + $0x17d] sm:$0xff] }
 0x1f3   : > { %18294 = vmatprep.mubr.msk.f32.mxu0 %vm241_vm1, %v2970_v52  ;;  %18771 = vmatprep.mubr.msk.f32.mxu1 %vm241_vm1, %v6697_v53  ;;  %v3001_v52 = vld [vmem:[%s20984_s25 + $0x14d] sm:$0xff]  ;;  %v6728_v53 = vld [vmem:[%s20984_s25 + $0x25d] sm:$0xff] }
 0x1f4   : > { %18872 = vmatprep.subr.msk.mxu0 %vm344_vm0, %v22459_v54  ;;  %19349 = vmatprep.subr.msk.mxu1 %vm344_vm0, %v22464_v55 }
 0x1f5   : > { %18295 = vmatmul.mubr.msk.f32.gmra.mrb[2].mxu0 %vm241_vm1, %v2971_v56  ;;  %18772 = vmatmul.mubr.msk.f32.gmra.mrb[2].mxu1 %vm241_vm1, %v6698_v57  ;;  %v3377_v56 = vld [vmem:[%s20984_s25 + $0x46] sm:$0xff]  ;;  %v7104_v57 = vld [vmem:[%s20984_s25 + $0x156] sm:$0xff] }
 0x1f6   : > { %18297 = vmatprep.mubr.msk.f32.mxu0 %vm241_vm1, %v2972_v58  ;;  %18774 = vmatprep.mubr.msk.f32.mxu1 %vm241_vm1, %v6699_v59  ;;  %v3378_v58 = vld [vmem:[%s20984_s25 + $0x4e] sm:$0xff]  ;;  %v7105_v59 = vld [vmem:[%s20984_s25 + $0x15e] sm:$0xff] }
 0x1f9   : > { %18298 = vmatmul.mubr.msk.f32.gmra.mrb[4].mxu0 %vm241_vm1, %v2973_v39  ;;  %18775 = vmatmul.mubr.msk.f32.gmra.mrb[4].mxu1 %vm241_vm1, %v6700_v41  ;;  %v3379_v39 = vld [vmem:[%s20984_s25 + $0x56] sm:$0xff]  ;;  %v7106_v41 = vld [vmem:[%s20984_s25 + $0x166] sm:$0xff] }
 0x1fa   : > { %18300 = vmatprep.mubr.msk.f32.mxu0 %vm241_vm1, %v2974_v60  ;;  %18777 = vmatprep.mubr.msk.f32.mxu1 %vm241_vm1, %v6701_v61  ;;  %v22613_v60 = vld [vmem:[%s24946_s1] sm:$0x7] }
 0x1fb   : > { %v22618_v61 = vld [vmem:[%s24946_s1] sm:$0x7] }
 0x1fd   : > { %18301 = vmatmul.mubr.msk.f32.gmra.mrb[6].mxu0 %vm241_vm1, %v2975_v62  ;;  %18778 = vmatmul.mubr.msk.f32.gmra.mrb[6].mxu1 %vm241_vm1, %v6702_v63  ;;  %v3380_v62 = vld [vmem:[%s20984_s25 + $0x5e] sm:$0xff]  ;;  %v7107_v63 = vld [vmem:[%s20984_s25 + $0x16e] sm:$0xff] }
 0x1fe   : > { %18303 = vmatprep.mubr.msk.f32.mxu0 %vm241_vm1, %v2976_v0  ;;  %18780 = vmatprep.mubr.msk.f32.mxu1 %vm241_vm1, %v6703_v1  ;;  %v3381_v0 = vld [vmem:[%s20984_s25 + $0x66] sm:$0xff]  ;;  %v7108_v1 = vld [vmem:[%s20984_s25 + $0x176] sm:$0xff] }
 0x201   : > { %18304 = vmatmul.mubr.msk.f32.gmra.mrb[8].mxu0 %vm241_vm1, %v2977_v2  ;;  %18781 = vmatmul.mubr.msk.f32.gmra.mrb[8].mxu1 %vm241_vm1, %v6704_v3  ;;  %v3383_v2 = vld [vmem:[%s20984_s25 + $0x76] sm:$0xff]  ;;  %v7110_v3 = vld [vmem:[%s20984_s25 + $0x186] sm:$0xff] }
 0x202   : > { %18306 = vmatprep.mubr.msk.f32.mxu0 %vm241_vm1, %v2978_v4  ;;  %18783 = vmatprep.mubr.msk.f32.mxu1 %vm241_vm1, %v6705_v5  ;;  %v3384_v4 = vld [vmem:[%s20984_s25 + $0x7e] sm:$0xff]  ;;  %v7111_v5 = vld [vmem:[%s20984_s25 + $0x18e] sm:$0xff] }
 0x205   : > { %18307 = vmatmul.mubr.msk.f32.gmra.mrb[10].mxu0 %vm241_vm1, %v2979_v6  ;;  %18784 = vmatmul.mubr.msk.f32.gmra.mrb[10].mxu1 %vm241_vm1, %v6706_v7  ;;  %v3385_v6 = vld [vmem:[%s20984_s25 + $0x86] sm:$0xff]  ;;  %v7112_v7 = vld [vmem:[%s20984_s25 + $0x196] sm:$0xff] }
 0x206   : > { %18309 = vmatprep.mubr.msk.f32.mxu0 %vm241_vm1, %v2980_v8  ;;  %18786 = vmatprep.mubr.msk.f32.mxu1 %vm241_vm1, %v6707_v9  ;;  %v3386_v8 = vld [vmem:[%s20984_s25 + $0x8e] sm:$0xff]  ;;  %v7113_v9 = vld [vmem:[%s20984_s25 + $0x19e] sm:$0xff] }
 0x209   : > { %18310 = vmatmul.mubr.msk.f32.gmra.mrb[12].mxu0 %vm241_vm1, %v2981_v12  ;;  %18787 = vmatmul.mubr.msk.f32.gmra.mrb[12].mxu1 %vm241_vm1, %v6708_v13  ;;  %v3387_v12 = vld [vmem:[%s20984_s25 + $0x96] sm:$0xff]  ;;  %v7114_v13 = vld [vmem:[%s20984_s25 + $0x1a6] sm:$0xff] }
 0x20a   : > { %18312 = vmatprep.mubr.msk.f32.mxu0 %vm241_vm1, %v2982_v14  ;;  %18789 = vmatprep.mubr.msk.f32.mxu1 %vm241_vm1, %v6709_v15  ;;  %v3388_v14 = vld [vmem:[%s20984_s25 + $0x9e] sm:$0xff]  ;;  %v7115_v15 = vld [vmem:[%s20984_s25 + $0x1ae] sm:$0xff] }
 0x20d   : > { %18313 = vmatmul.mubr.msk.f32.gmra.mrb[14].mxu0 %vm241_vm1, %v2983_v16  ;;  %18790 = vmatmul.mubr.msk.f32.gmra.mrb[14].mxu1 %vm241_vm1, %v6710_v17  ;;  %v3389_v16 = vld [vmem:[%s20984_s25 + $0xa6] sm:$0xff]  ;;  %v7116_v17 = vld [vmem:[%s20984_s25 + $0x1b6] sm:$0xff] }
 0x20e   : > { %18315 = vmatprep.mubr.msk.f32.mxu0 %vm241_vm1, %v2984_v20  ;;  %18792 = vmatprep.mubr.msk.f32.mxu1 %vm241_vm1, %v6711_v22  ;;  %v3390_v20 = vld [vmem:[%s20984_s25 + $0xae] sm:$0xff]  ;;  %v7117_v22 = vld [vmem:[%s20984_s25 + $0x1be] sm:$0xff] }
 0x211   : > { %18316 = vmatmul.mubr.msk.f32.gmra.mrb[16].mxu0 %vm241_vm1, %v2985_v10  ;;  %18793 = vmatmul.mubr.msk.f32.gmra.mrb[16].mxu1 %vm241_vm1, %v6712_v26  ;;  %v3391_v10 = vld [vmem:[%s20984_s25 + $0xb6] sm:$0xff]  ;;  %v7118_v26 = vld [vmem:[%s20984_s25 + $0x1c6] sm:$0xff] }
 0x212   : > { %18318 = vmatprep.mubr.msk.f32.mxu0 %vm241_vm1, %v2986_v24  ;;  %18795 = vmatprep.mubr.msk.f32.mxu1 %vm241_vm1, %v6713_v25  ;;  %v3392_v24 = vld [vmem:[%s20984_s25 + $0xbe] sm:$0xff]  ;;  %v7119_v25 = vld [vmem:[%s20984_s25 + $0x1ce] sm:$0xff] }
 0x215   : > { %18319 = vmatmul.mubr.msk.f32.gmra.mrb[18].mxu0 %vm241_vm1, %v2987_v28  ;;  %18796 = vmatmul.mubr.msk.f32.gmra.mrb[18].mxu1 %vm241_vm1, %v6714_v29  ;;  %v3393_v28 = vld [vmem:[%s20984_s25 + $0xc6] sm:$0xff]  ;;  %v7120_v29 = vld [vmem:[%s20984_s25 + $0x1d6] sm:$0xff] }
 0x216   : > { %18321 = vmatprep.mubr.msk.f32.mxu0 %vm241_vm1, %v2988_v18  ;;  %18798 = vmatprep.mubr.msk.f32.mxu1 %vm241_vm1, %v6715_v27  ;;  %v3394_v18 = vld [vmem:[%s20984_s25 + $0xce] sm:$0xff]  ;;  %v7121_v27 = vld [vmem:[%s20984_s25 + $0x1de] sm:$0xff] }
 0x219   : > { %18322 = vmatmul.mubr.msk.f32.gmra.mrb[20].mxu0 %vm241_vm1, %v2989_v11  ;;  %18799 = vmatmul.mubr.msk.f32.gmra.mrb[20].mxu1 %vm241_vm1, %v6716_v19  ;;  %v3395_v11 = vld [vmem:[%s20984_s25 + $0xd6] sm:$0xff]  ;;  %v7122_v19 = vld [vmem:[%s20984_s25 + $0x1e6] sm:$0xff] }
 0x21a   : > { %18324 = vmatprep.mubr.msk.f32.mxu0 %vm241_vm1, %v2990_v30  ;;  %18801 = vmatprep.mubr.msk.f32.mxu1 %vm241_vm1, %v6717_v31  ;;  %v3396_v30 = vld [vmem:[%s20984_s25 + $0xde] sm:$0xff]  ;;  %v7123_v31 = vld [vmem:[%s20984_s25 + $0x1ee] sm:$0xff] }
 0x21d   : > { %18325 = vmatmul.mubr.msk.f32.gmra.mrb[22].mxu0 %vm241_vm1, %v2991_v32  ;;  %18802 = vmatmul.mubr.msk.f32.gmra.mrb[22].mxu1 %vm241_vm1, %v6718_v33  ;;  %v3397_v32 = vld [vmem:[%s20984_s25 + $0xe6] sm:$0xff]  ;;  %v7124_v33 = vld [vmem:[%s20984_s25 + $0x1f6] sm:$0xff] }
 0x21e   : > { %18327 = vmatprep.mubr.msk.f32.mxu0 %vm241_vm1, %v2992_v34  ;;  %18804 = vmatprep.mubr.msk.f32.mxu1 %vm241_vm1, %v6719_v35  ;;  %v3398_v34 = vld [vmem:[%s20984_s25 + $0xee] sm:$0xff]  ;;  %v7125_v35 = vld [vmem:[%s20984_s25 + $0x1fe] sm:$0xff] }
 0x221   : > { %18328 = vmatmul.mubr.msk.f32.gmra.mrb[24].mxu0 %vm241_vm1, %v2993_v38  ;;  %18805 = vmatmul.mubr.msk.f32.gmra.mrb[24].mxu1 %vm241_vm1, %v6720_v40  ;;  %v3399_v38 = vld [vmem:[%s20984_s25 + $0xf6] sm:$0xff]  ;;  %v7126_v40 = vld [vmem:[%s20984_s25 + $0x206] sm:$0xff] }
 0x222   : > { %18330 = vmatprep.mubr.msk.f32.mxu0 %vm241_vm1, %v2994_v21  ;;  %18807 = vmatprep.mubr.msk.f32.mxu1 %vm241_vm1, %v6721_v44  ;;  %v3400_v21 = vld [vmem:[%s20984_s25 + $0xfe] sm:$0xff]  ;;  %v7127_v44 = vld [vmem:[%s20984_s25 + $0x20e] sm:$0xff] }
 0x225   : > { %18331 = vmatmul.mubr.msk.f32.gmra.mrb[26].mxu0 %vm241_vm1, %v2995_v42  ;;  %18808 = vmatmul.mubr.msk.f32.gmra.mrb[26].mxu1 %vm241_vm1, %v6722_v43  ;;  %v3401_v42 = vld [vmem:[%s20984_s25 + $0x106] sm:$0xff]  ;;  %v7128_v43 = vld [vmem:[%s20984_s25 + $0x216] sm:$0xff] }
 0x226   : > { %18333 = vmatprep.mubr.msk.f32.mxu0 %vm241_vm1, %v2996_v46  ;;  %18810 = vmatprep.mubr.msk.f32.mxu1 %vm241_vm1, %v6723_v47  ;;  %v3402_v46 = vld [vmem:[%s20984_s25 + $0x10e] sm:$0xff]  ;;  %v7129_v47 = vld [vmem:[%s20984_s25 + $0x21e] sm:$0xff] }
 0x229   : > { %18334 = vmatmul.mubr.msk.f32.gmra.mrb[28].mxu0 %vm241_vm1, %v2997_v36  ;;  %18811 = vmatmul.mubr.msk.f32.gmra.mrb[28].mxu1 %vm241_vm1, %v6724_v45  ;;  %v3403_v36 = vld [vmem:[%s20984_s25 + $0x116] sm:$0xff]  ;;  %v7130_v45 = vld [vmem:[%s20984_s25 + $0x226] sm:$0xff] }
 0x22a   : > { %18336 = vmatprep.mubr.msk.f32.mxu0 %vm241_vm1, %v2998_v23  ;;  %18813 = vmatprep.mubr.msk.f32.mxu1 %vm241_vm1, %v6725_v37  ;;  %v3404_v23 = vld [vmem:[%s20984_s25 + $0x11e] sm:$0xff]  ;;  %v7131_v37 = vld [vmem:[%s20984_s25 + $0x22e] sm:$0xff] }
 0x22d   : > { %18337 = vmatmul.mubr.msk.f32.gmra.mrb[30].mxu0 %vm241_vm1, %v2999_v48  ;;  %18814 = vmatmul.mubr.msk.f32.gmra.mrb[30].mxu1 %vm241_vm1, %v6726_v49  ;;  %v3405_v48 = vld [vmem:[%s20984_s25 + $0x126] sm:$0xff]  ;;  %v7132_v49 = vld [vmem:[%s20984_s25 + $0x236] sm:$0xff] }
 0x22e   : > { %18339 = vmatprep.mubr.msk.f32.mxu0 %vm241_vm1, %v3000_v50  ;;  %18816 = vmatprep.mubr.msk.f32.mxu1 %vm241_vm1, %v6727_v51  ;;  %v3406_v50 = vld [vmem:[%s20984_s25 + $0x12e] sm:$0xff]  ;;  %v7133_v51 = vld [vmem:[%s20984_s25 + $0x23e] sm:$0xff] }
 0x231   : > { %18340 = vmatmul.mubr.msk.f32.gmra.mrb[32].mxu0 %vm241_vm1, %v3001_v52  ;;  %18817 = vmatmul.mubr.msk.f32.gmra.mrb[32].mxu1 %vm241_vm1, %v6728_v53  ;;  %v3407_v52 = vld [vmem:[%s20984_s25 + $0x136] sm:$0xff]  ;;  %v7134_v53 = vld [vmem:[%s20984_s25 + $0x246] sm:$0xff] }
 0x232   : > { %18344 = vmatprep.mubr.msk.f32.mxu0 %vm241_vm1, %v3377_v56  ;;  %18821 = vmatprep.mubr.msk.f32.mxu1 %vm241_vm1, %v7104_v57  ;;  %v3408_v56 = vld [vmem:[%s20984_s25 + $0x13e] sm:$0xff]  ;;  %v7135_v57 = vld [vmem:[%s20984_s25 + $0x24e] sm:$0xff] }
 0x235   : > { %18345 = vmatmul.mubr.msk.f32.vlgmr.msra.gmra.mrb[0].mxu0 %vm241_vm1, %v3378_v58  ;;  %18822 = vmatmul.mubr.msk.f32.vlgmr.msra.gmra.mrb[0].mxu1 %vm241_vm1, %v7105_v59  ;;  %v3409_v58 = vld [vmem:[%s20984_s25 + $0x146] sm:$0xff]  ;;  %v7136_v59 = vld [vmem:[%s20984_s25 + $0x256] sm:$0xff] }
 0x236   : > { %18873 = vmatpush3.msk.msra.mxu0 %vm344_vm0, %v22459_v54  ;;  %19350 = vmatpush3.msk.msra.mxu1 %vm344_vm0, %v22464_v55  ;;  %v3382_v54 = vld [vmem:[%s20984_s25 + $0x6e] sm:$0xff]  ;;  %v7109_v55 = vld [vmem:[%s20984_s25 + $0x17e] sm:$0xff] }
 0x237   : > { %18347 = vmatprep.mubr.msk.f32.mxu0 %vm241_vm1, %v3379_v39  ;;  %18824 = vmatprep.mubr.msk.f32.mxu1 %vm241_vm1, %v7106_v41  ;;  %v3410_v39 = vld [vmem:[%s20984_s25 + $0x14e] sm:$0xff]  ;;  %v7137_v41 = vld [vmem:[%s20984_s25 + $0x25e] sm:$0xff] }
 0x238   : > { %18925 = vmatprep.subr.msk.mxu0 %vm344_vm0, %v22613_v60  ;;  %19402 = vmatprep.subr.msk.mxu1 %vm344_vm0, %v22618_v61 }
 0x239   : > { %18348 = vmatmul.mubr.msk.f32.gmra.mrb[2].mxu0 %vm241_vm1, %v3380_v62  ;;  %18825 = vmatmul.mubr.msk.f32.gmra.mrb[2].mxu1 %vm241_vm1, %v7107_v63  ;;  %v7658_v62 = vld [vmem:[%s20984_s25 + $0x221] sm:$0xff]  ;;  %v11381_v63 = vld [vmem:[%s20984_s25 + $0x331] sm:$0xff] }
 0x23a   : > { %18350 = vmatprep.mubr.msk.f32.mxu0 %vm241_vm1, %v3381_v0  ;;  %18827 = vmatprep.mubr.msk.f32.mxu1 %vm241_vm1, %v7108_v1  ;;  %v7659_v0 = vld [vmem:[%s20984_s25 + $0x229] sm:$0xff]  ;;  %v11382_v1 = vld [vmem:[%s20984_s25 + $0x339] sm:$0xff] }
 0x23d   : > { %18351 = vmatmul.mubr.msk.f32.gmra.mrb[4].mxu0 %vm241_vm1, %v3382_v54  ;;  %18828 = vmatmul.mubr.msk.f32.gmra.mrb[4].mxu1 %vm241_vm1, %v7109_v55  ;;  %v7660_v54 = vld [vmem:[%s20984_s25 + $0x231] sm:$0xff]  ;;  %v11383_v55 = vld [vmem:[%s20984_s25 + $0x341] sm:$0xff] }
 0x23e   : > { %18353 = vmatprep.mubr.msk.f32.mxu0 %vm241_vm1, %v3383_v2  ;;  %18830 = vmatprep.mubr.msk.f32.mxu1 %vm241_vm1, %v7110_v3  ;;  %v22767_v2 = vld [vmem:[%s24946_s1 + $0x6] sm:$0x7] }
 0x23f   : > { %v22772_v3 = vld [vmem:[%s24946_s1 + $0x6] sm:$0x7] }
 0x241   : > { %18354 = vmatmul.mubr.msk.f32.gmra.mrb[6].mxu0 %vm241_vm1, %v3384_v4  ;;  %18831 = vmatmul.mubr.msk.f32.gmra.mrb[6].mxu1 %vm241_vm1, %v7111_v5  ;;  %v7661_v4 = vld [vmem:[%s20984_s25 + $0x239] sm:$0xff]  ;;  %v11384_v5 = vld [vmem:[%s20984_s25 + $0x349] sm:$0xff] }
 0x242   : > { %18356 = vmatprep.mubr.msk.f32.mxu0 %vm241_vm1, %v3385_v6  ;;  %18833 = vmatprep.mubr.msk.f32.mxu1 %vm241_vm1, %v7112_v7  ;;  %v7662_v6 = vld [vmem:[%s20984_s25 + $0x241] sm:$0xff]  ;;  %v11385_v7 = vld [vmem:[%s20984_s25 + $0x351] sm:$0xff] }
 0x245   : > { %18357 = vmatmul.mubr.msk.f32.gmra.mrb[8].mxu0 %vm241_vm1, %v3386_v8  ;;  %18834 = vmatmul.mubr.msk.f32.gmra.mrb[8].mxu1 %vm241_vm1, %v7113_v9  ;;  %v7664_v8 = vld [vmem:[%s20984_s25 + $0x251] sm:$0xff]  ;;  %v11387_v9 = vld [vmem:[%s20984_s25 + $0x361] sm:$0xff] }
 0x246   : > { %18359 = vmatprep.mubr.msk.f32.mxu0 %vm241_vm1, %v3387_v12  ;;  %18836 = vmatprep.mubr.msk.f32.mxu1 %vm241_vm1, %v7114_v13  ;;  %v7665_v12 = vld [vmem:[%s20984_s25 + $0x259] sm:$0xff]  ;;  %v11388_v13 = vld [vmem:[%s20984_s25 + $0x369] sm:$0xff] }
 0x249   : > { %18360 = vmatmul.mubr.msk.f32.gmra.mrb[10].mxu0 %vm241_vm1, %v3388_v14  ;;  %18837 = vmatmul.mubr.msk.f32.gmra.mrb[10].mxu1 %vm241_vm1, %v7115_v15  ;;  %v7666_v14 = vld [vmem:[%s20984_s25 + $0x261] sm:$0xff]  ;;  %v11389_v15 = vld [vmem:[%s20984_s25 + $0x371] sm:$0xff] }
 0x24a   : > { %18362 = vmatprep.mubr.msk.f32.mxu0 %vm241_vm1, %v3389_v16  ;;  %18839 = vmatprep.mubr.msk.f32.mxu1 %vm241_vm1, %v7116_v17  ;;  %v7667_v16 = vld [vmem:[%s20984_s25 + $0x269] sm:$0xff]  ;;  %v11390_v17 = vld [vmem:[%s20984_s25 + $0x379] sm:$0xff] }
 0x24d   : > { %18363 = vmatmul.mubr.msk.f32.gmra.mrb[12].mxu0 %vm241_vm1, %v3390_v20  ;;  %18840 = vmatmul.mubr.msk.f32.gmra.mrb[12].mxu1 %vm241_vm1, %v7117_v22  ;;  %v7668_v20 = vld [vmem:[%s20984_s25 + $0x271] sm:$0xff]  ;;  %v11391_v22 = vld [vmem:[%s20984_s25 + $0x381] sm:$0xff] }
 0x24e   : > { %18365 = vmatprep.mubr.msk.f32.mxu0 %vm241_vm1, %v3391_v10  ;;  %18842 = vmatprep.mubr.msk.f32.mxu1 %vm241_vm1, %v7118_v26  ;;  %v7669_v10 = vld [vmem:[%s20984_s25 + $0x279] sm:$0xff]  ;;  %v11392_v26 = vld [vmem:[%s20984_s25 + $0x389] sm:$0xff] }
 0x251   : > { %18366 = vmatmul.mubr.msk.f32.gmra.mrb[14].mxu0 %vm241_vm1, %v3392_v24  ;;  %18843 = vmatmul.mubr.msk.f32.gmra.mrb[14].mxu1 %vm241_vm1, %v7119_v25  ;;  %v7670_v24 = vld [vmem:[%s20984_s25 + $0x281] sm:$0xff]  ;;  %v11393_v25 = vld [vmem:[%s20984_s25 + $0x391] sm:$0xff] }
 0x252   : > { %18368 = vmatprep.mubr.msk.f32.mxu0 %vm241_vm1, %v3393_v28  ;;  %18845 = vmatprep.mubr.msk.f32.mxu1 %vm241_vm1, %v7120_v29  ;;  %v7671_v28 = vld [vmem:[%s20984_s25 + $0x289] sm:$0xff]  ;;  %v11394_v29 = vld [vmem:[%s20984_s25 + $0x399] sm:$0xff] }
 0x255   : > { %18369 = vmatmul.mubr.msk.f32.gmra.mrb[16].mxu0 %vm241_vm1, %v3394_v18  ;;  %18846 = vmatmul.mubr.msk.f32.gmra.mrb[16].mxu1 %vm241_vm1, %v7121_v27  ;;  %v7672_v18 = vld [vmem:[%s20984_s25 + $0x291] sm:$0xff]  ;;  %v11395_v27 = vld [vmem:[%s20984_s25 + $0x3a1] sm:$0xff] }
 0x256   : > { %18371 = vmatprep.mubr.msk.f32.mxu0 %vm241_vm1, %v3395_v11  ;;  %18848 = vmatprep.mubr.msk.f32.mxu1 %vm241_vm1, %v7122_v19  ;;  %v7673_v11 = vld [vmem:[%s20984_s25 + $0x299] sm:$0xff]  ;;  %v11396_v19 = vld [vmem:[%s20984_s25 + $0x3a9] sm:$0xff] }
 0x259   : > { %18372 = vmatmul.mubr.msk.f32.gmra.mrb[18].mxu0 %vm241_vm1, %v3396_v30  ;;  %18849 = vmatmul.mubr.msk.f32.gmra.mrb[18].mxu1 %vm241_vm1, %v7123_v31  ;;  %v7674_v30 = vld [vmem:[%s20984_s25 + $0x2a1] sm:$0xff]  ;;  %v11397_v31 = vld [vmem:[%s20984_s25 + $0x3b1] sm:$0xff] }
 0x25a   : > { %18374 = vmatprep.mubr.msk.f32.mxu0 %vm241_vm1, %v3397_v32  ;;  %18851 = vmatprep.mubr.msk.f32.mxu1 %vm241_vm1, %v7124_v33  ;;  %v7675_v32 = vld [vmem:[%s20984_s25 + $0x2a9] sm:$0xff]  ;;  %v11398_v33 = vld [vmem:[%s20984_s25 + $0x3b9] sm:$0xff] }
 0x25d   : > { %18375 = vmatmul.mubr.msk.f32.gmra.mrb[20].mxu0 %vm241_vm1, %v3398_v34  ;;  %18852 = vmatmul.mubr.msk.f32.gmra.mrb[20].mxu1 %vm241_vm1, %v7125_v35  ;;  %v7676_v34 = vld [vmem:[%s20984_s25 + $0x2b1] sm:$0xff]  ;;  %v11399_v35 = vld [vmem:[%s20984_s25 + $0x3c1] sm:$0xff] }
 0x25e   : > { %18377 = vmatprep.mubr.msk.f32.mxu0 %vm241_vm1, %v3399_v38  ;;  %18854 = vmatprep.mubr.msk.f32.mxu1 %vm241_vm1, %v7126_v40  ;;  %v7677_v38 = vld [vmem:[%s20984_s25 + $0x2b9] sm:$0xff]  ;;  %v11400_v40 = vld [vmem:[%s20984_s25 + $0x3c9] sm:$0xff] }
 0x261   : > { %18378 = vmatmul.mubr.msk.f32.gmra.mrb[22].mxu0 %vm241_vm1, %v3400_v21  ;;  %18855 = vmatmul.mubr.msk.f32.gmra.mrb[22].mxu1 %vm241_vm1, %v7127_v44  ;;  %v7678_v21 = vld [vmem:[%s20984_s25 + $0x2c1] sm:$0xff]  ;;  %v11401_v44 = vld [vmem:[%s20984_s25 + $0x3d1] sm:$0xff] }
 0x262   : > { %18380 = vmatprep.mubr.msk.f32.mxu0 %vm241_vm1, %v3401_v42  ;;  %18857 = vmatprep.mubr.msk.f32.mxu1 %vm241_vm1, %v7128_v43  ;;  %v7679_v42 = vld [vmem:[%s20984_s25 + $0x2c9] sm:$0xff]  ;;  %v11402_v43 = vld [vmem:[%s20984_s25 + $0x3d9] sm:$0xff] }
 0x265   : > { %18381 = vmatmul.mubr.msk.f32.gmra.mrb[24].mxu0 %vm241_vm1, %v3402_v46  ;;  %18858 = vmatmul.mubr.msk.f32.gmra.mrb[24].mxu1 %vm241_vm1, %v7129_v47  ;;  %v7680_v46 = vld [vmem:[%s20984_s25 + $0x2d1] sm:$0xff]  ;;  %v11403_v47 = vld [vmem:[%s20984_s25 + $0x3e1] sm:$0xff] }
 0x266   : > { %18383 = vmatprep.mubr.msk.f32.mxu0 %vm241_vm1, %v3403_v36  ;;  %18860 = vmatprep.mubr.msk.f32.mxu1 %vm241_vm1, %v7130_v45  ;;  %v7681_v36 = vld [vmem:[%s20984_s25 + $0x2d9] sm:$0xff]  ;;  %v11404_v45 = vld [vmem:[%s20984_s25 + $0x3e9] sm:$0xff] }
 0x269   : > { %18384 = vmatmul.mubr.msk.f32.gmra.mrb[26].mxu0 %vm241_vm1, %v3404_v23  ;;  %18861 = vmatmul.mubr.msk.f32.gmra.mrb[26].mxu1 %vm241_vm1, %v7131_v37  ;;  %v7682_v23 = vld [vmem:[%s20984_s25 + $0x2e1] sm:$0xff]  ;;  %v11405_v37 = vld [vmem:[%s20984_s25 + $0x3f1] sm:$0xff] }
 0x26a   : > { %18386 = vmatprep.mubr.msk.f32.mxu0 %vm241_vm1, %v3405_v48  ;;  %18863 = vmatprep.mubr.msk.f32.mxu1 %vm241_vm1, %v7132_v49  ;;  %v7683_v48 = vld [vmem:[%s20984_s25 + $0x2e9] sm:$0xff]  ;;  %v11406_v49 = vld [vmem:[%s20984_s25 + $0x3f9] sm:$0xff] }
 0x26d   : > { %18387 = vmatmul.mubr.msk.f32.gmra.mrb[28].mxu0 %vm241_vm1, %v3406_v50  ;;  %18864 = vmatmul.mubr.msk.f32.gmra.mrb[28].mxu1 %vm241_vm1, %v7133_v51  ;;  %v7684_v50 = vld [vmem:[%s20984_s25 + $0x2f1] sm:$0xff]  ;;  %v11407_v51 = vld [vmem:[%s20984_s25 + $0x401] sm:$0xff] }
 0x26e   : > { %18389 = vmatprep.mubr.msk.f32.mxu0 %vm241_vm1, %v3407_v52  ;;  %18866 = vmatprep.mubr.msk.f32.mxu1 %vm241_vm1, %v7134_v53  ;;  %v7685_v52 = vld [vmem:[%s20984_s25 + $0x2f9] sm:$0xff]  ;;  %v11408_v53 = vld [vmem:[%s20984_s25 + $0x409] sm:$0xff] }
 0x271   : > { %18390 = vmatmul.mubr.msk.f32.gmra.mrb[30].mxu0 %vm241_vm1, %v3408_v56  ;;  %18867 = vmatmul.mubr.msk.f32.gmra.mrb[30].mxu1 %vm241_vm1, %v7135_v57  ;;  %v7686_v56 = vld [vmem:[%s20984_s25 + $0x301] sm:$0xff]  ;;  %v11409_v57 = vld [vmem:[%s20984_s25 + $0x411] sm:$0xff] }
 0x272   : > { %18392 = vmatprep.mubr.msk.f32.mxu0 %vm241_vm1, %v3409_v58  ;;  %18869 = vmatprep.mubr.msk.f32.mxu1 %vm241_vm1, %v7136_v59  ;;  %v7687_v58 = vld [vmem:[%s20984_s25 + $0x309] sm:$0xff]  ;;  %v11410_v59 = vld [vmem:[%s20984_s25 + $0x419] sm:$0xff] }
 0x275   : > { %18393 = vmatmul.mubr.msk.f32.gmra.mrb[32].mxu0 %vm241_vm1, %v3410_v39  ;;  %18870 = vmatmul.mubr.msk.f32.gmra.mrb[32].mxu1 %vm241_vm1, %v7137_v41  ;;  %v7688_v39 = vld [vmem:[%s20984_s25 + $0x311] sm:$0xff]  ;;  %v11411_v41 = vld [vmem:[%s20984_s25 + $0x421] sm:$0xff] }
 0x276   : > { %18874 = vmatprep.mubr.msk.f32.mxu0 %vm241_vm1, %v7658_v62  ;;  %19351 = vmatprep.mubr.msk.f32.mxu1 %vm241_vm1, %v11381_v63  ;;  %v7689_v62 = vld [vmem:[%s20984_s25 + $0x319] sm:$0xff]  ;;  %v11412_v63 = vld [vmem:[%s20984_s25 + $0x429] sm:$0xff] }
 0x279   : > { %18875 = vmatmul.mubr.msk.f32.vlgmr.msra.gmra.mrb[34].mxu0 %vm241_vm1, %v7659_v0  ;;  %19352 = vmatmul.mubr.msk.f32.vlgmr.msra.gmra.mrb[34].mxu1 %vm241_vm1, %v11382_v1  ;;  %v7690_v0 = vld [vmem:[%s20984_s25 + $0x321] sm:$0xff]  ;;  %v11413_v1 = vld [vmem:[%s20984_s25 + $0x431] sm:$0xff] }
 0x27a   : > { %18926 = vmatpush3.msk.msra.mxu0 %vm344_vm0, %v22613_v60  ;;  %19403 = vmatpush3.msk.msra.mxu1 %vm344_vm0, %v22618_v61  ;;  %v7663_v60 = vld [vmem:[%s20984_s25 + $0x249] sm:$0xff]  ;;  %v11386_v61 = vld [vmem:[%s20984_s25 + $0x359] sm:$0xff] }
 0x27b   : > { %18877 = vmatprep.mubr.msk.f32.mxu0 %vm241_vm1, %v7660_v54  ;;  %19354 = vmatprep.mubr.msk.f32.mxu1 %vm241_vm1, %v11383_v55  ;;  %v7691_v54 = vld [vmem:[%s20984_s25 + $0x329] sm:$0xff]  ;;  %v11414_v55 = vld [vmem:[%s20984_s25 + $0x439] sm:$0xff] }
 0x27c   : > { %18978 = vmatprep.subr.msk.mxu0 %vm344_vm0, %v22767_v2  ;;  %19455 = vmatprep.subr.msk.mxu1 %vm344_vm0, %v22772_v3 }
 0x27d   : > { %18878 = vmatmul.mubr.msk.f32.gmra.mrb[36].mxu0 %vm241_vm1, %v7661_v4  ;;  %19355 = vmatmul.mubr.msk.f32.gmra.mrb[36].mxu1 %vm241_vm1, %v11384_v5  ;;  %v7623_v4 = vld [vmem:[%s20984_s25 + $0x220] sm:$0xff]  ;;  %v11346_v5 = vld [vmem:[%s20984_s25 + $0x330] sm:$0xff] }
 0x27e   : > { %18880 = vmatprep.mubr.msk.f32.mxu0 %vm241_vm1, %v7662_v6  ;;  %19357 = vmatprep.mubr.msk.f32.mxu1 %vm241_vm1, %v11385_v7  ;;  %v7624_v6 = vld [vmem:[%s20984_s25 + $0x228] sm:$0xff]  ;;  %v11347_v7 = vld [vmem:[%s20984_s25 + $0x338] sm:$0xff] }
 0x281   : > { %18881 = vmatmul.mubr.msk.f32.gmra.mrb[38].mxu0 %vm241_vm1, %v7663_v60  ;;  %19358 = vmatmul.mubr.msk.f32.gmra.mrb[38].mxu1 %vm241_vm1, %v11386_v61  ;;  %v7625_v60 = vld [vmem:[%s20984_s25 + $0x230] sm:$0xff]  ;;  %v11348_v61 = vld [vmem:[%s20984_s25 + $0x340] sm:$0xff] }
 0x282   : > { %18883 = vmatprep.mubr.msk.f32.mxu0 %vm241_vm1, %v7664_v8  ;;  %19360 = vmatprep.mubr.msk.f32.mxu1 %vm241_vm1, %v11387_v9  ;;  %v22921_v8 = vld [vmem:[%s24946_s1 + $0x9] sm:$0x7] }
 0x283   : > { %v22926_v9 = vld [vmem:[%s24946_s1 + $0x9] sm:$0x7] }
 0x285   : > { %18884 = vmatmul.mubr.msk.f32.gmra.mrb[40].mxu0 %vm241_vm1, %v7665_v12  ;;  %19361 = vmatmul.mubr.msk.f32.gmra.mrb[40].mxu1 %vm241_vm1, %v11388_v13  ;;  %v7626_v12 = vld [vmem:[%s20984_s25 + $0x238] sm:$0xff]  ;;  %v11349_v13 = vld [vmem:[%s20984_s25 + $0x348] sm:$0xff] }
 0x286   : > { %18886 = vmatprep.mubr.msk.f32.mxu0 %vm241_vm1, %v7666_v14  ;;  %19363 = vmatprep.mubr.msk.f32.mxu1 %vm241_vm1, %v11389_v15  ;;  %v7627_v14 = vld [vmem:[%s20984_s25 + $0x240] sm:$0xff]  ;;  %v11350_v15 = vld [vmem:[%s20984_s25 + $0x350] sm:$0xff] }
 0x289   : > { %18887 = vmatmul.mubr.msk.f32.gmra.mrb[42].mxu0 %vm241_vm1, %v7667_v16  ;;  %19364 = vmatmul.mubr.msk.f32.gmra.mrb[42].mxu1 %vm241_vm1, %v11390_v17  ;;  %v7629_v16 = vld [vmem:[%s20984_s25 + $0x250] sm:$0xff]  ;;  %v11352_v17 = vld [vmem:[%s20984_s25 + $0x360] sm:$0xff] }
 0x28a   : > { %18889 = vmatprep.mubr.msk.f32.mxu0 %vm241_vm1, %v7668_v20  ;;  %19366 = vmatprep.mubr.msk.f32.mxu1 %vm241_vm1, %v11391_v22  ;;  %v7630_v20 = vld [vmem:[%s20984_s25 + $0x258] sm:$0xff]  ;;  %v11353_v22 = vld [vmem:[%s20984_s25 + $0x368] sm:$0xff] }
 0x28d   : > { %18890 = vmatmul.mubr.msk.f32.gmra.mrb[44].mxu0 %vm241_vm1, %v7669_v10  ;;  %19367 = vmatmul.mubr.msk.f32.gmra.mrb[44].mxu1 %vm241_vm1, %v11392_v26  ;;  %v7631_v10 = vld [vmem:[%s20984_s25 + $0x260] sm:$0xff]  ;;  %v11354_v26 = vld [vmem:[%s20984_s25 + $0x370] sm:$0xff] }
 0x28e   : > { %18892 = vmatprep.mubr.msk.f32.mxu0 %vm241_vm1, %v7670_v24  ;;  %19369 = vmatprep.mubr.msk.f32.mxu1 %vm241_vm1, %v11393_v25  ;;  %v7632_v24 = vld [vmem:[%s20984_s25 + $0x268] sm:$0xff]  ;;  %v11355_v25 = vld [vmem:[%s20984_s25 + $0x378] sm:$0xff] }
 0x291   : > { %18893 = vmatmul.mubr.msk.f32.gmra.mrb[46].mxu0 %vm241_vm1, %v7671_v28  ;;  %19370 = vmatmul.mubr.msk.f32.gmra.mrb[46].mxu1 %vm241_vm1, %v11394_v29  ;;  %v7633_v28 = vld [vmem:[%s20984_s25 + $0x270] sm:$0xff]  ;;  %v11356_v29 = vld [vmem:[%s20984_s25 + $0x380] sm:$0xff] }
 0x292   : > { %18895 = vmatprep.mubr.msk.f32.mxu0 %vm241_vm1, %v7672_v18  ;;  %19372 = vmatprep.mubr.msk.f32.mxu1 %vm241_vm1, %v11395_v27  ;;  %v7634_v18 = vld [vmem:[%s20984_s25 + $0x278] sm:$0xff]  ;;  %v11357_v27 = vld [vmem:[%s20984_s25 + $0x388] sm:$0xff] }
 0x295   : > { %18896 = vmatmul.mubr.msk.f32.gmra.mrb[48].mxu0 %vm241_vm1, %v7673_v11  ;;  %19373 = vmatmul.mubr.msk.f32.gmra.mrb[48].mxu1 %vm241_vm1, %v11396_v19  ;;  %v7635_v11 = vld [vmem:[%s20984_s25 + $0x280] sm:$0xff]  ;;  %v11358_v19 = vld [vmem:[%s20984_s25 + $0x390] sm:$0xff] }
 0x296   : > { %18898 = vmatprep.mubr.msk.f32.mxu0 %vm241_vm1, %v7674_v30  ;;  %19375 = vmatprep.mubr.msk.f32.mxu1 %vm241_vm1, %v11397_v31  ;;  %v7636_v30 = vld [vmem:[%s20984_s25 + $0x288] sm:$0xff]  ;;  %v11359_v31 = vld [vmem:[%s20984_s25 + $0x398] sm:$0xff] }
 0x299   : > { %18899 = vmatmul.mubr.msk.f32.gmra.mrb[50].mxu0 %vm241_vm1, %v7675_v32  ;;  %19376 = vmatmul.mubr.msk.f32.gmra.mrb[50].mxu1 %vm241_vm1, %v11398_v33  ;;  %v7637_v32 = vld [vmem:[%s20984_s25 + $0x290] sm:$0xff]  ;;  %v11360_v33 = vld [vmem:[%s20984_s25 + $0x3a0] sm:$0xff] }
 0x29a   : > { %18901 = vmatprep.mubr.msk.f32.mxu0 %vm241_vm1, %v7676_v34  ;;  %19378 = vmatprep.mubr.msk.f32.mxu1 %vm241_vm1, %v11399_v35  ;;  %v7638_v34 = vld [vmem:[%s20984_s25 + $0x298] sm:$0xff]  ;;  %v11361_v35 = vld [vmem:[%s20984_s25 + $0x3a8] sm:$0xff] }
 0x29d   : > { %18902 = vmatmul.mubr.msk.f32.gmra.mrb[52].mxu0 %vm241_vm1, %v7677_v38  ;;  %19379 = vmatmul.mubr.msk.f32.gmra.mrb[52].mxu1 %vm241_vm1, %v11400_v40  ;;  %v7639_v38 = vld [vmem:[%s20984_s25 + $0x2a0] sm:$0xff]  ;;  %v11362_v40 = vld [vmem:[%s20984_s25 + $0x3b0] sm:$0xff] }
 0x29e   : > { %18904 = vmatprep.mubr.msk.f32.mxu0 %vm241_vm1, %v7678_v21  ;;  %19381 = vmatprep.mubr.msk.f32.mxu1 %vm241_vm1, %v11401_v44  ;;  %v7640_v21 = vld [vmem:[%s20984_s25 + $0x2a8] sm:$0xff]  ;;  %v11363_v44 = vld [vmem:[%s20984_s25 + $0x3b8] sm:$0xff] }
 0x2a1   : > { %18905 = vmatmul.mubr.msk.f32.gmra.mrb[54].mxu0 %vm241_vm1, %v7679_v42  ;;  %19382 = vmatmul.mubr.msk.f32.gmra.mrb[54].mxu1 %vm241_vm1, %v11402_v43  ;;  %v7641_v42 = vld [vmem:[%s20984_s25 + $0x2b0] sm:$0xff]  ;;  %v11364_v43 = vld [vmem:[%s20984_s25 + $0x3c0] sm:$0xff] }
 0x2a2   : > { %18907 = vmatprep.mubr.msk.f32.mxu0 %vm241_vm1, %v7680_v46  ;;  %19384 = vmatprep.mubr.msk.f32.mxu1 %vm241_vm1, %v11403_v47  ;;  %v7642_v46 = vld [vmem:[%s20984_s25 + $0x2b8] sm:$0xff]  ;;  %v11365_v47 = vld [vmem:[%s20984_s25 + $0x3c8] sm:$0xff] }
 0x2a5   : > { %18908 = vmatmul.mubr.msk.f32.gmra.mrb[56].mxu0 %vm241_vm1, %v7681_v36  ;;  %19385 = vmatmul.mubr.msk.f32.gmra.mrb[56].mxu1 %vm241_vm1, %v11404_v45  ;;  %v7643_v36 = vld [vmem:[%s20984_s25 + $0x2c0] sm:$0xff]  ;;  %v11366_v45 = vld [vmem:[%s20984_s25 + $0x3d0] sm:$0xff] }
 0x2a6   : > { %18910 = vmatprep.mubr.msk.f32.mxu0 %vm241_vm1, %v7682_v23  ;;  %19387 = vmatprep.mubr.msk.f32.mxu1 %vm241_vm1, %v11405_v37  ;;  %v7644_v23 = vld [vmem:[%s20984_s25 + $0x2c8] sm:$0xff]  ;;  %v11367_v37 = vld [vmem:[%s20984_s25 + $0x3d8] sm:$0xff] }
 0x2a9   : > { %18911 = vmatmul.mubr.msk.f32.gmra.mrb[58].mxu0 %vm241_vm1, %v7683_v48  ;;  %19388 = vmatmul.mubr.msk.f32.gmra.mrb[58].mxu1 %vm241_vm1, %v11406_v49  ;;  %v7645_v48 = vld [vmem:[%s20984_s25 + $0x2d0] sm:$0xff]  ;;  %v11368_v49 = vld [vmem:[%s20984_s25 + $0x3e0] sm:$0xff] }
 0x2aa   : > { %18913 = vmatprep.mubr.msk.f32.mxu0 %vm241_vm1, %v7684_v50  ;;  %19390 = vmatprep.mubr.msk.f32.mxu1 %vm241_vm1, %v11407_v51  ;;  %v7646_v50 = vld [vmem:[%s20984_s25 + $0x2d8] sm:$0xff]  ;;  %v11369_v51 = vld [vmem:[%s20984_s25 + $0x3e8] sm:$0xff] }
 0x2ad   : > { %18914 = vmatmul.mubr.msk.f32.gmra.mrb[60].mxu0 %vm241_vm1, %v7685_v52  ;;  %19391 = vmatmul.mubr.msk.f32.gmra.mrb[60].mxu1 %vm241_vm1, %v11408_v53  ;;  %v7647_v52 = vld [vmem:[%s20984_s25 + $0x2e0] sm:$0xff]  ;;  %v11370_v53 = vld [vmem:[%s20984_s25 + $0x3f0] sm:$0xff] }
 0x2ae   : > { %18916 = vmatprep.mubr.msk.f32.mxu0 %vm241_vm1, %v7686_v56  ;;  %19393 = vmatprep.mubr.msk.f32.mxu1 %vm241_vm1, %v11409_v57  ;;  %v7648_v56 = vld [vmem:[%s20984_s25 + $0x2e8] sm:$0xff]  ;;  %v11371_v57 = vld [vmem:[%s20984_s25 + $0x3f8] sm:$0xff] }
 0x2b1   : > { %18917 = vmatmul.mubr.msk.f32.gmra.mrb[62].mxu0 %vm241_vm1, %v7687_v58  ;;  %19394 = vmatmul.mubr.msk.f32.gmra.mrb[62].mxu1 %vm241_vm1, %v11410_v59  ;;  %v7649_v58 = vld [vmem:[%s20984_s25 + $0x2f0] sm:$0xff]  ;;  %v11372_v59 = vld [vmem:[%s20984_s25 + $0x400] sm:$0xff] }
 0x2b2   : > { %18919 = vmatprep.mubr.msk.f32.mxu0 %vm241_vm1, %v7688_v39  ;;  %19396 = vmatprep.mubr.msk.f32.mxu1 %vm241_vm1, %v11411_v41  ;;  %v7650_v39 = vld [vmem:[%s20984_s25 + $0x2f8] sm:$0xff]  ;;  %v11373_v41 = vld [vmem:[%s20984_s25 + $0x408] sm:$0xff] }
 0x2b5   : > { %18920 = vmatmul.mubr.msk.f32.gmra.mrb[64].mxu0 %vm241_vm1, %v7689_v62  ;;  %19397 = vmatmul.mubr.msk.f32.gmra.mrb[64].mxu1 %vm241_vm1, %v11412_v63  ;;  %v7651_v62 = vld [vmem:[%s20984_s25 + $0x300] sm:$0xff]  ;;  %v11374_v63 = vld [vmem:[%s20984_s25 + $0x410] sm:$0xff] }
 0x2b6   : > { %18922 = vmatprep.mubr.msk.f32.mxu0 %vm241_vm1, %v7690_v0  ;;  %19399 = vmatprep.mubr.msk.f32.mxu1 %vm241_vm1, %v11413_v1  ;;  %v7652_v0 = vld [vmem:[%s20984_s25 + $0x308] sm:$0xff]  ;;  %v11375_v1 = vld [vmem:[%s20984_s25 + $0x418] sm:$0xff] }
 0x2b9   : > { %18923 = vmatmul.mubr.msk.f32.gmra.mrb[66].mxu0 %vm241_vm1, %v7691_v54  ;;  %19400 = vmatmul.mubr.msk.f32.gmra.mrb[66].mxu1 %vm241_vm1, %v11414_v55  ;;  %v7653_v54 = vld [vmem:[%s20984_s25 + $0x310] sm:$0xff]  ;;  %v11376_v55 = vld [vmem:[%s20984_s25 + $0x420] sm:$0xff] }
 0x2ba   : > { %18927 = vmatprep.mubr.msk.f32.mxu0 %vm241_vm1, %v7623_v4  ;;  %19404 = vmatprep.mubr.msk.f32.mxu1 %vm241_vm1, %v11346_v5  ;;  %v7654_v4 = vld [vmem:[%s20984_s25 + $0x318] sm:$0xff]  ;;  %v11377_v5 = vld [vmem:[%s20984_s25 + $0x428] sm:$0xff] }
 0x2bd   : > { %18928 = vmatmul.mubr.msk.f32.vlgmr.msra.gmra.mrb[34].mxu0 %vm241_vm1, %v7624_v6  ;;  %19405 = vmatmul.mubr.msk.f32.vlgmr.msra.gmra.mrb[34].mxu1 %vm241_vm1, %v11347_v7  ;;  %v7655_v6 = vld [vmem:[%s20984_s25 + $0x320] sm:$0xff]  ;;  %v11378_v7 = vld [vmem:[%s20984_s25 + $0x430] sm:$0xff] }
 0x2be   : > { %18979 = vmatpush3.msk.msra.mxu0 %vm344_vm0, %v22767_v2  ;;  %19456 = vmatpush3.msk.msra.mxu1 %vm344_vm0, %v22772_v3  ;;  %v7628_v2 = vld [vmem:[%s20984_s25 + $0x248] sm:$0xff]  ;;  %v11351_v3 = vld [vmem:[%s20984_s25 + $0x358] sm:$0xff] }
 0x2bf   : > { %18930 = vmatprep.mubr.msk.f32.mxu0 %vm241_vm1, %v7625_v60  ;;  %19407 = vmatprep.mubr.msk.f32.mxu1 %vm241_vm1, %v11348_v61  ;;  %v7656_v60 = vld [vmem:[%s20984_s25 + $0x328] sm:$0xff]  ;;  %v11379_v61 = vld [vmem:[%s20984_s25 + $0x438] sm:$0xff] }
 0x2c0   : > { %19031 = vmatprep.subr.msk.mxu0 %vm344_vm0, %v22921_v8  ;;  %19508 = vmatprep.subr.msk.mxu1 %vm344_vm0, %v22926_v9 }
 0x2c1   : > { %18931 = vmatmul.mubr.msk.f32.gmra.mrb[36].mxu0 %vm241_vm1, %v7626_v12  ;;  %19408 = vmatmul.mubr.msk.f32.gmra.mrb[36].mxu1 %vm241_vm1, %v11349_v13  ;;  %v8373_v12 = vld [vmem:[%s20984_s25 + $0x222] sm:$0xff]  ;;  %v12096_v13 = vld [vmem:[%s20984_s25 + $0x332] sm:$0xff] }
 0x2c2   : > { %18933 = vmatprep.mubr.msk.f32.mxu0 %vm241_vm1, %v7627_v14  ;;  %19410 = vmatprep.mubr.msk.f32.mxu1 %vm241_vm1, %v11350_v15  ;;  %v8374_v14 = vld [vmem:[%s20984_s25 + $0x22a] sm:$0xff]  ;;  %v12097_v15 = vld [vmem:[%s20984_s25 + $0x33a] sm:$0xff] }
 0x2c5   : > { %18934 = vmatmul.mubr.msk.f32.gmra.mrb[38].mxu0 %vm241_vm1, %v7628_v2  ;;  %19411 = vmatmul.mubr.msk.f32.gmra.mrb[38].mxu1 %vm241_vm1, %v11351_v3  ;;  %v8375_v2 = vld [vmem:[%s20984_s25 + $0x232] sm:$0xff]  ;;  %v12098_v3 = vld [vmem:[%s20984_s25 + $0x342] sm:$0xff] }
 0x2c6   : > { %18936 = vmatprep.mubr.msk.f32.mxu0 %vm241_vm1, %v7629_v16  ;;  %19413 = vmatprep.mubr.msk.f32.mxu1 %vm241_vm1, %v11352_v17  ;;  %v23075_v16 = vld [vmem:[%s24946_s1 + $0xc] sm:$0x7] }
 0x2c7   : > { %v23080_v17 = vld [vmem:[%s24946_s1 + $0xc] sm:$0x7] }
 0x2c9   : > { %18937 = vmatmul.mubr.msk.f32.gmra.mrb[40].mxu0 %vm241_vm1, %v7630_v20  ;;  %19414 = vmatmul.mubr.msk.f32.gmra.mrb[40].mxu1 %vm241_vm1, %v11353_v22  ;;  %v8376_v20 = vld [vmem:[%s20984_s25 + $0x23a] sm:$0xff]  ;;  %v12099_v22 = vld [vmem:[%s20984_s25 + $0x34a] sm:$0xff] }
 0x2ca   : > { %18939 = vmatprep.mubr.msk.f32.mxu0 %vm241_vm1, %v7631_v10  ;;  %19416 = vmatprep.mubr.msk.f32.mxu1 %vm241_vm1, %v11354_v26  ;;  %v23091_v10 = vld [vmem:[%s20984_s25 + $0x242] sm:$0xff]  ;;  %v23094_v26 = vld [vmem:[%s20984_s25 + $0x352] sm:$0xff] }
 0x2cd   : > { %18940 = vmatmul.mubr.msk.f32.gmra.mrb[42].mxu0 %vm241_vm1, %v7632_v24  ;;  %19417 = vmatmul.mubr.msk.f32.gmra.mrb[42].mxu1 %vm241_vm1, %v11355_v25  ;;  %v23113_v24 = vld [vmem:[%s20984_s25 + $0x252] sm:$0xff]  ;;  %v23116_v25 = vld [vmem:[%s20984_s25 + $0x362] sm:$0xff] }
 0x2ce   : > { %18942 = vmatprep.mubr.msk.f32.mxu0 %vm241_vm1, %v7633_v28  ;;  %19419 = vmatprep.mubr.msk.f32.mxu1 %vm241_vm1, %v11356_v29 }
 0x2d1   : > { %18943 = vmatmul.mubr.msk.f32.gmra.mrb[44].mxu0 %vm241_vm1, %v7634_v18  ;;  %19420 = vmatmul.mubr.msk.f32.gmra.mrb[44].mxu1 %vm241_vm1, %v11357_v27 }
 0x2d2   : > { %18945 = vmatprep.mubr.msk.f32.mxu0 %vm241_vm1, %v7635_v11  ;;  %19422 = vmatprep.mubr.msk.f32.mxu1 %vm241_vm1, %v11358_v19  ;;  %v23131_v11 = vld [vmem:[%s20984_s25 + $0x25a] sm:$0xff]  ;;  %v23134_v19 = vld [vmem:[%s20984_s25 + $0x36a] sm:$0xff] }
 0x2d5   : > { %18946 = vmatmul.mubr.msk.f32.gmra.mrb[46].mxu0 %vm241_vm1, %v7636_v30  ;;  %19423 = vmatmul.mubr.msk.f32.gmra.mrb[46].mxu1 %vm241_vm1, %v11359_v31  ;;  %v23137_v30 = vld [vmem:[%s20984_s25 + $0x262] sm:$0xff]  ;;  %v23140_v31 = vld [vmem:[%s20984_s25 + $0x372] sm:$0xff] }
 0x2d6   : > { %18948 = vmatprep.mubr.msk.f32.mxu0 %vm241_vm1, %v7637_v32  ;;  %19425 = vmatprep.mubr.msk.f32.mxu1 %vm241_vm1, %v11360_v33 }
 0x2d9   : > { %18949 = vmatmul.mubr.msk.f32.gmra.mrb[48].mxu0 %vm241_vm1, %v7638_v34  ;;  %19426 = vmatmul.mubr.msk.f32.gmra.mrb[48].mxu1 %vm241_vm1, %v11361_v35 }
 0x2da   : > { %18951 = vmatprep.mubr.msk.f32.mxu0 %vm241_vm1, %v7639_v38  ;;  %19428 = vmatprep.mubr.msk.f32.mxu1 %vm241_vm1, %v11362_v40  ;;  %v23159_v38 = vld [vmem:[%s20984_s25 + $0x26a] sm:$0xff]  ;;  %v23162_v40 = vld [vmem:[%s20984_s25 + $0x37a] sm:$0xff] }
 0x2dd   : > { %18952 = vmatmul.mubr.msk.f32.gmra.mrb[50].mxu0 %vm241_vm1, %v7640_v21  ;;  %19429 = vmatmul.mubr.msk.f32.gmra.mrb[50].mxu1 %vm241_vm1, %v11363_v44  ;;  %v23165_v21 = vld [vmem:[%s20984_s25 + $0x272] sm:$0xff]  ;;  %v23168_v44 = vld [vmem:[%s20984_s25 + $0x382] sm:$0xff] }
 0x2de   : > { %18954 = vmatprep.mubr.msk.f32.mxu0 %vm241_vm1, %v7641_v42  ;;  %19431 = vmatprep.mubr.msk.f32.mxu1 %vm241_vm1, %v11364_v43 }
 0x2e1   : > { %18955 = vmatmul.mubr.msk.f32.gmra.mrb[52].mxu0 %vm241_vm1, %v7642_v46  ;;  %19432 = vmatmul.mubr.msk.f32.gmra.mrb[52].mxu1 %vm241_vm1, %v11365_v47 }
 0x2e2   : > { %18957 = vmatprep.mubr.msk.f32.mxu0 %vm241_vm1, %v7643_v36  ;;  %19434 = vmatprep.mubr.msk.f32.mxu1 %vm241_vm1, %v11366_v45 }
 0x2e5   : > { %18958 = vmatmul.mubr.msk.f32.gmra.mrb[54].mxu0 %vm241_vm1, %v7644_v23  ;;  %19435 = vmatmul.mubr.msk.f32.gmra.mrb[54].mxu1 %vm241_vm1, %v11367_v37 }
 0x2e6   : > { %18960 = vmatprep.mubr.msk.f32.mxu0 %vm241_vm1, %v7645_v48  ;;  %19437 = vmatprep.mubr.msk.f32.mxu1 %vm241_vm1, %v11368_v49  ;;  %v23179_v48 = vld [vmem:[%s20984_s25 + $0x27a] sm:$0xff]  ;;  %v23182_v49 = vld [vmem:[%s20984_s25 + $0x38a] sm:$0xff] }
 0x2e9   : > { %18961 = vmatmul.mubr.msk.f32.gmra.mrb[56].mxu0 %vm241_vm1, %v7646_v50  ;;  %19438 = vmatmul.mubr.msk.f32.gmra.mrb[56].mxu1 %vm241_vm1, %v11369_v51  ;;  %v23185_v50 = vld [vmem:[%s20984_s25 + $0x282] sm:$0xff]  ;;  %v23188_v51 = vld [vmem:[%s20984_s25 + $0x392] sm:$0xff] }
 0x2ea   : > { %18963 = vmatprep.mubr.msk.f32.mxu0 %vm241_vm1, %v7647_v52  ;;  %19440 = vmatprep.mubr.msk.f32.mxu1 %vm241_vm1, %v11370_v53 }
 0x2ed   : > { %18964 = vmatmul.mubr.msk.f32.gmra.mrb[58].mxu0 %vm241_vm1, %v7648_v56  ;;  %19441 = vmatmul.mubr.msk.f32.gmra.mrb[58].mxu1 %vm241_vm1, %v11371_v57 }
 0x2ee   : > { %18966 = vmatprep.mubr.msk.f32.mxu0 %vm241_vm1, %v7649_v58  ;;  %19443 = vmatprep.mubr.msk.f32.mxu1 %vm241_vm1, %v11372_v59 }
 0x2f1   : > { %18967 = vmatmul.mubr.msk.f32.gmra.mrb[60].mxu0 %vm241_vm1, %v7650_v39  ;;  %19444 = vmatmul.mubr.msk.f32.gmra.mrb[60].mxu1 %vm241_vm1, %v11373_v41 }
 0x2f2   : > { %18969 = vmatprep.mubr.msk.f32.mxu0 %vm241_vm1, %v7651_v62  ;;  %19446 = vmatprep.mubr.msk.f32.mxu1 %vm241_vm1, %v11374_v63 }
 0x2f5   : > { %18970 = vmatmul.mubr.msk.f32.gmra.mrb[62].mxu0 %vm241_vm1, %v7652_v0  ;;  %19447 = vmatmul.mubr.msk.f32.gmra.mrb[62].mxu1 %vm241_vm1, %v11375_v1 }
 0x2f6   : > { %18972 = vmatprep.mubr.msk.f32.mxu0 %vm241_vm1, %v7653_v54  ;;  %19449 = vmatprep.mubr.msk.f32.mxu1 %vm241_vm1, %v11376_v55  ;;  %v23201_v54 = vld [vmem:[%s20984_s25 + $0x28a] sm:$0xff]  ;;  %v23206_v55 = vld [vmem:[%s20984_s25 + $0x39a] sm:$0xff] }
 0x2f9   : > { %18973 = vmatmul.mubr.msk.f32.gmra.mrb[64].mxu0 %vm241_vm1, %v7654_v4  ;;  %19450 = vmatmul.mubr.msk.f32.gmra.mrb[64].mxu1 %vm241_vm1, %v11377_v5  ;;  %v23209_v4 = vld [vmem:[%s20984_s25 + $0x292] sm:$0xff] }
 0x2fa   : > { %18975 = vmatprep.mubr.msk.f32.mxu0 %vm241_vm1, %v7655_v6  ;;  %19452 = vmatprep.mubr.msk.f32.mxu1 %vm241_vm1, %v11378_v7 }
 0x2fd   : > { %18976 = vmatmul.mubr.msk.f32.gmra.mrb[66].mxu0 %vm241_vm1, %v7656_v60  ;;  %19453 = vmatmul.mubr.msk.f32.gmra.mrb[66].mxu1 %vm241_vm1, %v11379_v61 }
 0x2fe   : > { %18980 = vmatprep.mubr.msk.f32.mxu0 %vm241_vm1, %v8373_v12  ;;  %19457 = vmatprep.mubr.msk.f32.mxu1 %vm241_vm1, %v12096_v13  ;;  %v23220_v13 = vld [vmem:[%s20984_s25 + $0x3a2] sm:$0xff] }
 0x301   : > { %18981 = vmatmul.mubr.msk.f32.vlgmr.msra.gmra.mrb[34].mxu0 %vm241_vm1, %v8374_v14  ;;  %19458 = vmatmul.mubr.msk.f32.vlgmr.msra.gmra.mrb[34].mxu1 %vm241_vm1, %v12097_v15 }
 0x302   : > { %19032 = vmatpush3.msk.msra.mxu0 %vm344_vm0, %v22921_v8  ;;  %19509 = vmatpush3.msk.msra.mxu1 %vm344_vm0, %v22926_v9  ;;  %v23107_v8 = vld [vmem:[%s20984_s25 + $0x24a] sm:$0xff]  ;;  %v23110_v9 = vld [vmem:[%s20984_s25 + $0x35a] sm:$0xff] }
 0x303   : > { %18983 = vmatprep.mubr.msk.f32.mxu0 %vm241_vm1, %v8375_v2  ;;  %19460 = vmatprep.mubr.msk.f32.mxu1 %vm241_vm1, %v12098_v3 }
 0x304   : > { %19084 = vmatprep.subr.msk.mxu0 %vm344_vm0, %v23075_v16  ;;  %19561 = vmatprep.subr.msk.mxu1 %vm344_vm0, %v23080_v17 }
 0x305   : > { %18984 = vmatmul.mubr.msk.f32.gmra.mrb[36].mxu0 %vm241_vm1, %v8376_v20  ;;  %19461 = vmatmul.mubr.msk.f32.gmra.mrb[36].mxu1 %vm241_vm1, %v12099_v22 }
 0x306   : > { %18986 = vmatprep.mubr.msk.f32.mxu0 %vm241_vm1, %v23091_v10  ;;  %19463 = vmatprep.mubr.msk.f32.mxu1 %vm241_vm1, %v23094_v26 }
 0x308   : > { %v23118_v28 = vpop.f32.mrb[0].mxu0  ;;  %v23120_v29 = vpop.f32.mrb[0].mxu1 }
 0x309   : > { %v3583_v18 = vpop.f32.mrb[1].mxu0  ;;  %v7310_v27 = vpop.f32.mrb[1].mxu1  ;;  %18987 = vmatmul.mubr.msk.f32.gmra.mrb[38].mxu0 %vm241_vm1, %v23107_v8  ;;  %19464 = vmatmul.mubr.msk.f32.gmra.mrb[38].mxu1 %vm241_vm1, %v23110_v9 }
 0x30a   : > { %18989 = vmatprep.mubr.msk.f32.mxu0 %vm241_vm1, %v23113_v24  ;;  %19466 = vmatprep.mubr.msk.f32.mxu1 %vm241_vm1, %v23116_v25 }
 0x30c   : > { %v23142_v32 = vpop.f32.mrb[2].mxu0  ;;  %v23144_v33 = vpop.f32.mrb[2].mxu1 }
 0x30d   : > { %v23146_v34 = vpop.f32.mrb[3].mxu0  ;;  %v23148_v35 = vpop.f32.mrb[3].mxu1  ;;  %18990 = vmatmul.mubr.msk.f32.gmra.mrb[40].mxu0 %vm241_vm1, %v23131_v11  ;;  %19467 = vmatmul.mubr.msk.f32.gmra.mrb[40].mxu1 %vm241_vm1, %v23134_v19 }
 0x30e   : > { %18992 = vmatprep.mubr.msk.f32.mxu0 %vm241_vm1, %v23137_v30  ;;  %19469 = vmatprep.mubr.msk.f32.mxu1 %vm241_vm1, %v23140_v31 }
 0x310   : > { %v18352_v42 = vpop.f32.mrb[4].mxu0  ;;  %v18829_v43 = vpop.f32.mrb[4].mxu1 }
 0x311   : > { %v3793_v46 = vrot.slane %v18352_v42, 2  ;;  %v7519_v47 = vrot.slane %v18829_v43, 2  ;;  %v3603_v36 = vpop.f32.mrb[5].mxu0  ;;  %v7330_v45 = vpop.f32.mrb[5].mxu1  ;;  %18993 = vmatmul.mubr.msk.f32.gmra.mrb[42].mxu0 %vm241_vm1, %v23159_v38  ;;  %19470 = vmatmul.mubr.msk.f32.gmra.mrb[42].mxu1 %vm241_vm1, %v23162_v40 }
 0x312   : > { %v3792_v23 = vrot.slane %v3603_v36, 2  ;;  %v7518_v37 = vrot.slane %v7330_v45, 2  ;;  %18995 = vmatprep.mubr.msk.f32.mxu0 %vm241_vm1, %v23165_v21  ;;  %19472 = vmatprep.mubr.msk.f32.mxu1 %vm241_vm1, %v23168_v44 }
 0x314   : > { %v3794_v52 = vsel %vm3791_vm2, %v3792_v23, %v3793_v46  ;;  %v7520_v53 = vsel %vm3791_vm2, %v7518_v37, %v7519_v47  ;;  %v18355_v56 = vpop.f32.mrb[6].mxu0  ;;  %v18832_v57 = vpop.f32.mrb[6].mxu1 }
 0x315   : > { %v3805_v58 = vmax.f32 %v3583_v18, %v3794_v52  ;;  %v7531_v59 = vmax.f32 %v7310_v27, %v7520_v53  ;;  %v3797_v39 = vrot.slane %v18355_v56, 2  ;;  %v7523_v41 = vrot.slane %v18832_v57, 2  ;;  %v3613_v62 = vpop.f32.mrb[7].mxu0  ;;  %v7340_v63 = vpop.f32.mrb[7].mxu1  ;;  %18996 = vmatmul.mubr.msk.f32.gmra.mrb[44].mxu0 %vm241_vm1, %v23179_v48  ;;  %19473 = vmatmul.mubr.msk.f32.gmra.mrb[44].mxu1 %vm241_vm1, %v23182_v49  ;;  %v23248_v27 = vld [vmem:[%s20984_s25 + $0x3aa] sm:$0xff] }
 0x316   : > { %v3795_v0 = vrot.slane %v3613_v62, 2  ;;  %v7521_v1 = vrot.slane %v7340_v63, 2  ;;  %18998 = vmatprep.mubr.msk.f32.mxu0 %vm241_vm1, %v23185_v50  ;;  %19475 = vmatprep.mubr.msk.f32.mxu1 %vm241_vm1, %v23188_v51  ;;  %v23275_v52 = vld [vmem:[%s20984_s25 + $0x2aa] sm:$0xff]  ;;  %v23290_v53 = vld [vmem:[%s24947_s2] ss:$0 sm:$0xff] }
 0x317   : > { %3810 = vst.msk [vmem:[#allocation2] sm:$0xff] %vm3809_vm3, %v3805_v58  ;;  %7535 = vst.msk [vmem:[#allocation2 + $0x80] sm:$0xff] %vm3809_vm3, %v7531_v59  ;;  %v23297_v58 = vld [vmem:[%s20984_s25 + $0x3c2] sm:$0xff]  ;;  %v23309_v63 = vld [vmem:[%s20984_s25 + $0x2ba] sm:$0xff] }
 0x318   : > { %v3796_v5 = vsel %vm3791_vm2, %v3793_v46, %v3795_v0  ;;  %v3798_v6 = vsel %vm3791_vm2, %v3795_v0, %v3797_v39  ;;  %v7522_v7 = vsel %vm3791_vm2, %v7519_v47, %v7521_v1  ;;  %v7524_v60 = vsel %vm3791_vm2, %v7521_v1, %v7523_v41  ;;  %v23215_v61 = vpop.f32.mrb[8].mxu0  ;;  %v23217_v12 = vpop.f32.mrb[8].mxu1  ;;  %v23260_v47 = vld [vmem:[%s20984_s25 + $0x3b2] sm:$0xff]  ;;  %25002 = vst [vmem:[#allocation3_spill] sm:$0xff] %v23275_v52 }
 0x319   : > { %v3806_v14 = vmax.f32 %v23118_v28, %v3796_v5  ;;  %v3807_v15 = vmax.f32 %v23146_v34, %v3798_v6  ;;  %v7532_v2 = vmax.f32 %v23120_v29, %v7522_v7  ;;  %v7533_v3 = vmax.f32 %v23148_v35, %v7524_v60  ;;  %v23226_v20 = vpop.f32.mrb[9].mxu0  ;;  %v23228_v22 = vpop.f32.mrb[9].mxu1  ;;  %18999 = vmatmul.mubr.msk.f32.gmra.mrb[46].mxu0 %vm241_vm1, %v23201_v54  ;;  %v23239_v29 = vld [vmem:[%s20984_s25 + $0x29a] sm:$0xff]  ;;  %v23251_v34 = vld [vmem:[%s20984_s25 + $0x2a2] sm:$0xff] }
 0x31a   : > { %v3799_v18 = vrot.slane %v23226_v20, 2  ;;  %v7525_v28 = vrot.slane %v23228_v22, 2  ;;  %19476 = vmatmul.mubr.msk.f32.gmra.mrb[46].mxu1 %vm241_vm1, %v23206_v55  ;;  %19001 = vmatprep.mubr.msk.f32.mxu0 %vm241_vm1, %v23209_v4  ;;  %25005 = vst [vmem:[#allocation6_spill] sm:$0xff] %v23297_v58  ;;  %25006 = vst [vmem:[#allocation7_spill] sm:$0xff] %v23309_v63 }
 0x31b   : > { %3811 = vst.msk [vmem:[#allocation2 + $0x8] sm:$0xff] %vm3809_vm3, %v3806_v14  ;;  %3812 = vst.msk [vmem:[#allocation2 + $0x10] sm:$0xff] %vm3809_vm3, %v3807_v15  ;;  %19478 = vmatprep.mubr.msk.f32.mxu1 %vm241_vm1, %v23220_v13  ;;  %v23320_v15 = vld [vmem:[%s20984_s25 + $0x3ca] sm:$0xff] }
 0x31c   : > { %7536 = vst.msk [vmem:[#allocation2 + $0x88] sm:$0xff] %vm3809_vm3, %v7532_v2  ;;  %7537 = vst.msk [vmem:[#allocation2 + $0x90] sm:$0xff] %vm3809_vm3, %v7533_v3  ;;  %v3800_v35 = vsel %vm3791_vm2, %v3797_v39, %v3799_v18  ;;  %v7526_v42 = vsel %vm3791_vm2, %v7523_v41, %v7525_v28  ;;  %v23255_v43 = vpop.f32.mrb[10].mxu0  ;;  %v23257_v46 = vpop.f32.mrb[10].mxu1  ;;  %v23323_v2 = vld [vmem:[%s20984_s25 + $0x2c2] sm:$0xff] }
 0x31d   : > { %v3808_v36 = vmax.f32 %v23142_v32, %v3800_v35  ;;  %v7534_v45 = vmax.f32 %v23144_v33, %v7526_v42  ;;  %v23264_v23 = vpop.f32.mrb[11].mxu0  ;;  %v23266_v37 = vpop.f32.mrb[11].mxu1  ;;  %19002 = vmatmul.mubr.msk.f32.gmra.mrb[48].mxu0 %vm241_vm1, %v23239_v29  ;;  %v23282_v32 = vld [vmem:[%s20984_s25 + $0x3ba] sm:$0xff]  ;;  %v23285_v33 = vld [vmem:[%s20984_s25 + $0x2b2] sm:$0xff]  ;;  %25007 = vst [vmem:[#allocation8_spill] sm:$0xff] %v23320_v15  ;;  %25008 = vst [vmem:[#allocation9_spill] sm:$0xff] %v23323_v2 }
 0x31e   : > { %19479 = vmatmul.mubr.msk.f32.gmra.mrb[48].mxu1 %vm241_vm1, %v23248_v27  ;;  %19004 = vmatprep.mubr.msk.f32.mxu0 %vm241_vm1, %v23251_v34  ;;  %25003 = vst [vmem:[#allocation4_spill] sm:$0xff] %v23282_v32  ;;  %25004 = vst [vmem:[#allocation5_spill] sm:$0xff] %v23285_v33  ;;  %v23330_v35 = vld [vmem:[%s20984_s25 + $0x3d2] sm:$0xff] }
 0x31f   : > { %3813 = vst.msk [vmem:[#allocation2 + $0x18] sm:$0xff] %vm3809_vm3, %v3808_v36  ;;  %7538 = vst.msk [vmem:[#allocation2 + $0x98] sm:$0xff] %vm3809_vm3, %v7534_v45  ;;  %19481 = vmatprep.mubr.msk.f32.mxu1 %vm241_vm1, %v23260_v47 }
 0x320   : > { %v23292_v56 = vpop.f32.mrb[12].mxu0  ;;  %v23294_v57 = vpop.f32.mrb[12].mxu1  ;;  %25009 = vst [vmem:[#allocation10_spill] sm:$0xff] %v23330_v35 }
 0x321   : > { %v3820_v59 = vrot.slane %v23292_v56, 2  ;;  %v24957_v39 = vrot.slane %v23294_v57, 2  ;;  %v23302_v41 = vpop.f32.mrb[13].mxu0  ;;  %v23304_v62 = vpop.f32.mrb[13].mxu1  ;;  %19005 = vmatmul.mubr.msk.f32.gmra.mrb[50].mxu0 %vm241_vm1, %v23275_v52 }
 0x322   : > { %v15069_v0 = vld [vmem:[#allocation2] ss:$2 sm:$0xff]  ;;  %v15133_v1 = vld [vmem:[#allocation2 + $0x1] ss:$2 sm:$0xff]  ;;  %19482 = vmatmul.mubr.msk.f32.gmra.mrb[50].mxu1 %vm241_vm1, %v23282_v32  ;;  %19007 = vmatprep.mubr.msk.f32.mxu0 %vm241_vm1, %v23285_v33  ;;  %v3819_v60 = vrot.slane %v23302_v41, 2  ;;  %v7544_v14 = vrot.slane %v23304_v62, 2 }
 0x323   : > { %v15085_v5 = vld [vmem:[#allocation2 + $0x80] ss:$2 sm:$0xff]  ;;  %v15196_v6 = vmax.f32 %v15069_v0, %v15133_v1  ;;  %v15149_v7 = vld [vmem:[#allocation2 + $0x81] ss:$2 sm:$0xff]  ;;  %19484 = vmatprep.mubr.msk.f32.mxu1 %vm241_vm1, %v23297_v58 }
 0x324   : > { %v15204_v3 = vmax.f32 %v15085_v5, %v15149_v7  ;;  %v23325_v18 = vpop.f32.mrb[14].mxu0  ;;  %v23327_v28 = vpop.f32.mrb[14].mxu1  ;;  %v3821_v36 = vsel %vm3791_vm2, %v3819_v60, %v3820_v59  ;;  %v7546_v45 = vsel %vm3791_vm2, %v7544_v14, %v24957_v39  ;;  %v23341_v5 = vld [vmem:[%s20984_s25 + $0x2ca] sm:$0xff] }
 0x325   : > { %v15235_v42 = vadd.f32 %v23290_v53, %v15196_v6  ;;  %v3653_v0 = vpop.f32.mrb[15].mxu0  ;;  %v7380_v1 = vpop.f32.mrb[15].mxu1  ;;  %19008 = vmatmul.mubr.msk.f32.gmra.mrb[52].mxu0 %vm241_vm1, %v23309_v63  ;;  %25010 = vst [vmem:[#allocation11_spill] sm:$0xff] %v23341_v5  ;;  %v3833_v39 = vmax.f32 %v23226_v20, %v3821_v36  ;;  %v7558_v56 = vmax.f32 %v23228_v22, %v7546_v45  ;;  %v23361_v20 = vld [vmem:[%s20984_s25 + $0x3da] sm:$0xff] }
 0x326   : > { %v15243_v6 = vadd.f32 %v23290_v53, %v15204_v3  ;;  %v15071_v7 = vld [vmem:[#allocation2 + $0x10] ss:$2 sm:$0xff]  ;;  %v15135_v60 = vld [vmem:[#allocation2 + $0x11] ss:$2 sm:$0xff]  ;;  %19485 = vmatmul.mubr.msk.f32.gmra.mrb[52].mxu1 %vm241_vm1, %v23320_v15  ;;  %19010 = vmatprep.mubr.msk.f32.mxu0 %vm241_vm1, %v23323_v2  ;;  %v7549_v3 = vrot.slane %v23327_v28, 2  ;;  %v3822_v32 = vrot.slane %v3653_v0, 2 }
 0x327   : > { %v15087_v14 = vld [vmem:[#allocation2 + $0x90] ss:$2 sm:$0xff]  ;;  %v15267_v63 = vmax.f32 %v15235_v42, 0.0  ;;  %v15197_v58 = vmax.f32 %v15071_v7, %v15135_v60  ;;  %v15151_v33 = vld [vmem:[#allocation2 + $0x91] ss:$2 sm:$0xff]  ;;  %19487 = vmatprep.mubr.msk.f32.mxu1 %vm241_vm1, %v23330_v35  ;;  %25011 = vst [vmem:[#allocation12_spill] sm:$0xff] %v23361_v20 }
 0x328   : > { %v15275_v22 = vmax.f32 %v15243_v6, 0.0  ;;  %v15205_v36 = vmax.f32 %v15087_v14, %v15151_v33  ;;  %3839 = vst.msk [vmem:[#allocation2 + $0x1c] sm:$0xf0] %vm3838_vm4, %v3833_v39  ;;  %7563 = vst.msk [vmem:[#allocation2 + $0x9c] sm:$0xf0] %vm3838_vm4, %v7558_v56  ;;  %v7547_v45 = vrot.slane %v7380_v1, 2  ;;  %v3823_v33 = vsel %vm3791_vm2, %v3820_v59, %v3822_v32 }
 0x329   : > { %v23365_v42 = vpop.f32.mrb[16].mxu0  ;;  %v23367_v7 = vpop.f32.mrb[16].mxu1  ;;  %v23370_v28 = vld [vmem:[%s20984_s25 + $0x2d2] sm:$0xff]  ;;  %v23373_v0 = vld [vmem:[%s20984_s25 + $0x3e2] sm:$0xff]  ;;  %15299 = vst.msk [vmem:[%s23348_s4] sm:$0xff] %vm3809_vm3, %v15267_v63  ;;  %v15236_v6 = vadd.f32 %v23290_v53, %v15197_v58  ;;  %v25014_v39 = vrot.slane %v23325_v18, 2  ;;  %19011 = vmatmul.mubr.msk.f32.gmra.mrb[54].mxu0 %vm241_vm1, %v23341_v5  ;;  %v3834_v63 = vmax.f32 %v23215_v61, %v3823_v33 }
 0x32a   : > { %25012 = vst [vmem:[#allocation13_spill] sm:$0xff] %v23370_v28  ;;  %25013 = vst [vmem:[#allocation14_spill] sm:$0xff] %v23373_v0  ;;  %v3663_v1 = vpop.f32.mrb[17].mxu0  ;;  %v7390_v60 = vpop.f32.mrb[17].mxu1  ;;  %v15244_v14 = vadd.f32 %v23290_v53, %v15205_v36  ;;  %v25015_v59 = vrot.slane %v23294_v57, 2  ;;  %19488 = vmatmul.mubr.msk.f32.gmra.mrb[54].mxu1 %vm241_vm1, %v23361_v20  ;;  %v7550_v5 = vsel %vm3791_vm2, %v7547_v45, %v7549_v3  ;;  %19013 = vmatprep.mubr.msk.f32.mxu0 %vm241_vm1, %v23370_v28  ;;  %v23404_v61 = vld [vmem:[%s20984_s25 + $0x3ea] sm:$0xff] }
 0x32b   : > { %v3825_v56 = vsel %vm3791_vm2, %v3822_v32, %v25014_v39  ;;  %15307 = vst.msk [vmem:[%s23348_s4 + $0x40] sm:$0xff] %vm3809_vm3, %v15275_v22  ;;  %v23395_v32 = vld [vmem:[%s20984_s25 + $0x2da] sm:$0xff]  ;;  %v15268_v39 = vmax.f32 %v15236_v6, 0.0  ;;  %v3826_v36 = vrot.slane %v3663_v1, 2  ;;  %19490 = vmatprep.mubr.msk.f32.mxu1 %vm241_vm1, %v23373_v0  ;;  %25017 = vst [vmem:[#allocation16_spill] sm:$0xff] %v23404_v61  ;;  %v23417_v33 = vld [vmem:[%s20984_s25 + $0x3f2] sm:$0xff] }
 0x32c   : > { %v3835_v58 = vmax.f32 %v23264_v23, %v3825_v56  ;;  %v7548_v35 = vsel %vm3791_vm2, %v25015_v59, %v7547_v45  ;;  %25016 = vst [vmem:[#allocation15_spill] sm:$0xff] %v23395_v32  ;;  %v23407_v23 = vld [vmem:[%s20984_s25 + $0x2e2] sm:$0xff]  ;;  %v15276_v57 = vmax.f32 %v15244_v14, 0.0  ;;  %3840 = vst.msk [vmem:[#allocation2 + $0x24] sm:$0xff] %vm3809_vm3, %v3834_v63  ;;  %v7560_v45 = vmax.f32 %v23266_v37, %v7550_v5  ;;  %v23414_v6 = vpop.f32.mrb[18].mxu1 }
 0x32d   : > { %v7559_v22 = vmax.f32 %v23217_v12, %v7548_v35  ;;  %25018 = vst [vmem:[#allocation17_spill] sm:$0xff] %v23407_v23  ;;  %v7551_v12 = vrot.slane %v7390_v60, 2  ;;  %v23412_v35 = vpop.f32.mrb[18].mxu0  ;;  %25019 = vst [vmem:[#allocation18_spill] sm:$0xff] %v23417_v33  ;;  %v25020_v56 = vrot.slane %v23325_v18, 2  ;;  %v3837_v37 = vmax.f32 %v23302_v41, %v3826_v36  ;;  %v23428_v60 = vpop.f32.mrb[19].mxu1  ;;  %19014 = vmatmul.mubr.msk.f32.gmra.mrb[56].mxu0 %vm241_vm1, %v23395_v32 }
 0x32e   : > { %3841 = vst.msk [vmem:[#allocation2 + $0x2c] sm:$0xff] %vm3809_vm3, %v3835_v58  ;;  %15300 = vst.msk [vmem:[%s23348_s4 + $0x8] sm:$0xff] %vm3809_vm3, %v15268_v39  ;;  %v23426_v5 = vpop.f32.mrb[19].mxu0  ;;  %19491 = vmatmul.mubr.msk.f32.gmra.mrb[56].mxu1 %vm241_vm1, %v23404_v61  ;;  %19016 = vmatprep.mubr.msk.f32.mxu0 %vm241_vm1, %v23407_v23  ;;  %v23443_v41 = vld [vmem:[%s20984_s25 + $0x2ea] sm:$0xff]  ;;  %v23458_v39 = vld [vmem:[%s20984_s25 + $0x402] sm:$0xff] }
 0x32f   : > { %7564 = vst.msk [vmem:[#allocation2 + $0xa4] sm:$0xff] %vm3809_vm3, %v7559_v22  ;;  %v3827_v1 = vsel %vm3791_vm2, %v25020_v56, %v3826_v36  ;;  %15308 = vst.msk [vmem:[%s23348_s4 + $0x48] sm:$0xff] %vm3809_vm3, %v15276_v57  ;;  %v7552_v14 = vsel %vm3791_vm2, %v7549_v3, %v7551_v12  ;;  %v7562_v63 = vmax.f32 %v23304_v62, %v7551_v12  ;;  %19493 = vmatprep.mubr.msk.f32.mxu1 %vm241_vm1, %v23417_v33  ;;  %v23453_v62 = vld [vmem:[%s20984_s25 + $0x2f2] sm:$0xff]  ;;  %v23472_v36 = vld [vmem:[%s20984_s25 + $0x2fa] sm:$0xff] }
 0x330   : > { %7565 = vst.msk [vmem:[#allocation2 + $0xac] sm:$0xff] %vm3809_vm3, %v7560_v45  ;;  %v3836_v18 = vmax.f32 %v23255_v43, %v3827_v1  ;;  %25021 = vst [vmem:[#allocation19_spill] sm:$0xff] %v23443_v41  ;;  %v7561_v58 = vmax.f32 %v23257_v46, %v7552_v14  ;;  %v23450_v43 = vld [vmem:[%s20984_s25 + $0x3fa] sm:$0xff]  ;;  %v18376_v3 = vpop.f32.mrb[20].mxu0  ;;  %v18853_v59 = vpop.f32.mrb[20].mxu1  ;;  %v23475_v57 = vld [vmem:[%s20984_s25 + $0x40a] sm:$0xff] }
 0x331   : > { %3844 = vst.msk [vmem:[#allocation2 + $0x3c] sm:$0xf] %vm3843_vm5, %v3837_v37  ;;  %25022 = vst [vmem:[#allocation20_spill] sm:$0xff] %v23450_v43  ;;  %v23461_v46 = vpop.f32.mrb[21].mxu0  ;;  %v23463_v22 = vpop.f32.mrb[21].mxu1  ;;  %19017 = vmatmul.mubr.msk.f32.gmra.mrb[58].mxu0 %vm241_vm1, %v23443_v41  ;;  %v23480_v56 = vld [vmem:[%s20984_s25 + $0x302] sm:$0xff] }
 0x332   : > { %25023 = vst [vmem:[#allocation21_spill] sm:$0xff] %v23453_v62  ;;  %3842 = vst.msk [vmem:[#allocation2 + $0x34] sm:$0xff] %vm3809_vm3, %v3836_v18  ;;  %19494 = vmatmul.mubr.msk.f32.gmra.mrb[58].mxu1 %vm241_vm1, %v23450_v43  ;;  %19019 = vmatprep.mubr.msk.f32.mxu0 %vm241_vm1, %v23453_v62  ;;  %v23487_v14 = vld [vmem:[%s20984_s25 + $0x412] sm:$0xff]  ;;  %v3850_v43 = vrot.slane %v18376_v3, 2  ;;  %v7573_v33 = vrot.slane %v18853_v59, 2  ;;  %v23508_v41 = vld [vmem:[%s20984_s25 + $0x422] sm:$0xff] }
 0x333   : > { %7567 = vst.msk [vmem:[#allocation2 + $0xbc] sm:$0xf] %vm3843_vm5, %v7562_v63  ;;  %25024 = vst [vmem:[#allocation22_spill] sm:$0xff] %v23458_v39  ;;  %19496 = vmatprep.mubr.msk.f32.mxu1 %vm241_vm1, %v23458_v39  ;;  %v23490_v63 = vld [vmem:[%s20984_s25 + $0x30a] sm:$0xff]  ;;  %v23496_v39 = vld [vmem:[%s20984_s25 + $0x41a] sm:$0xff] }
 0x334   : > { %7566 = vst.msk [vmem:[#allocation2 + $0xb4] sm:$0xff] %vm3809_vm3, %v7561_v58  ;;  %25025 = vst [vmem:[#allocation23_spill] sm:$0xff] %v23472_v36  ;;  %v23482_v37 = vpop.f32.mrb[22].mxu0  ;;  %v23484_v18 = vpop.f32.mrb[22].mxu1  ;;  %v23505_v3 = vld [vmem:[%s20984_s25 + $0x312] sm:$0xff] }
 0x335   : > { %25026 = vst [vmem:[#allocation24_spill] sm:$0xff] %v23475_v57  ;;  %v15073_v45 = vld [vmem:[#allocation2 + $0x20] ss:$2 sm:$0xff]  ;;  %v15137_v12 = vld [vmem:[#allocation2 + $0x21] ss:$2 sm:$0xff]  ;;  %25027 = vst [vmem:[#allocation25_spill] sm:$0xff] %v23480_v56  ;;  %19020 = vmatmul.mubr.msk.f32.gmra.mrb[60].mxu0 %vm241_vm1, %v23472_v36 }
 0x336   : > { %v15198_v1 = vmax.f32 %v15073_v45, %v15137_v12  ;;  %v3693_v61 = vpop.f32.mrb[23].mxu0  ;;  %v7420_v32 = vpop.f32.mrb[23].mxu1  ;;  %19497 = vmatmul.mubr.msk.f32.gmra.mrb[60].mxu1 %vm241_vm1, %v23475_v57  ;;  %19022 = vmatprep.mubr.msk.f32.mxu0 %vm241_vm1, %v23480_v56  ;;  %v25028_v15 = vrot.slane %v23482_v37, 2 }
 0x337   : > { %v15089_v58 = vld [vmem:[#allocation2 + $0xa0] ss:$2 sm:$0xff]  ;;  %v15153_v62 = vld [vmem:[#allocation2 + $0xa1] ss:$2 sm:$0xff]  ;;  %v3851_v28 = vrot.slane %v3693_v61, 2  ;;  %19499 = vmatprep.mubr.msk.f32.mxu1 %vm241_vm1, %v23487_v14 }
 0x338   : > { %v15237_v45 = vadd.f32 %v23290_v53, %v15198_v1  ;;  %v15206_v12 = vmax.f32 %v15089_v58, %v15153_v62  ;;  %v7574_v62 = vrot.slane %v7420_v32, 2  ;;  %v23513_v20 = vpop.f32.mrb[24].mxu0  ;;  %v23520_v52 = vpop.f32.mrb[24].mxu1 }
 0x339   : > { %v15075_v36 = vld [vmem:[#allocation2 + $0x30] ss:$2 sm:$0xff]  ;;  %v15139_v0 = vld [vmem:[#allocation2 + $0x31] ss:$2 sm:$0xff]  ;;  %v3852_v2 = vsel %vm3791_vm2, %v3850_v43, %v3851_v28  ;;  %v3854_v61 = vsel %vm3791_vm2, %v3851_v28, %v25028_v15  ;;  %19023 = vmatmul.mubr.msk.f32.gmra.mrb[62].mxu0 %vm241_vm1, %v23490_v63  ;;  %v7430_v28 = vpop.f32.mrb[25].mxu1 }
 0x33a   : > { %v15269_v59 = vmax.f32 %v15237_v45, 0.0  ;;  %v15245_v1 = vadd.f32 %v23290_v53, %v15206_v12  ;;  %v15199_v58 = vmax.f32 %v15075_v36, %v15139_v0  ;;  %v7575_v32 = vsel %vm3791_vm2, %v7573_v33, %v7574_v62  ;;  %v3703_v45 = vpop.f32.mrb[25].mxu0  ;;  %19500 = vmatmul.mubr.msk.f32.gmra.mrb[62].mxu1 %vm241_vm1, %v23496_v39  ;;  %19025 = vmatprep.mubr.msk.f32.mxu0 %vm241_vm1, %v23505_v3  ;;  %v23534_v33 = vld [vmem:[%s20984_s25 + $0x31a] sm:$0xff] }
 0x33b   : > { %v15091_v23 = vld [vmem:[#allocation2 + $0xb0] ss:$2 sm:$0xff]  ;;  %v15155_v57 = vld [vmem:[#allocation2 + $0xb1] ss:$2 sm:$0xff]  ;;  %v3863_v43 = vmax.f32 %v23365_v42, %v3852_v2  ;;  %v3864_v15 = vmax.f32 %v23426_v5, %v3854_v61  ;;  %v7586_v2 = vmax.f32 %v23367_v7, %v7575_v32  ;;  %v3857_v42 = vrot.slane %v23513_v20, 2  ;;  %19502 = vmatprep.mubr.msk.f32.mxu1 %vm241_vm1, %v23508_v41 }
 0x33c   : > { %v15207_v56 = vmax.f32 %v15091_v23, %v15155_v57  ;;  %15301 = vst.msk [vmem:[%s23348_s4 + $0x10] sm:$0xff] %vm3809_vm3, %v15269_v59  ;;  %v15277_v0 = vmax.f32 %v15245_v1, 0.0  ;;  %v15238_v23 = vadd.f32 %v23290_v53, %v15199_v58  ;;  %v25029_v57 = vrot.slane %v23484_v18, 2  ;;  %v23545_v5 = vld [vmem:[%s20984_s25 + $0x42a] sm:$0xff]  ;;  %v23548_v59 = vld [vmem:[%s20984_s25 + $0x322] sm:$0xff]  ;;  %v23556_v58 = vpop.f32.mrb[26].mxu0 }
 0x33d   : > { %3867 = vst.msk [vmem:[#allocation2 + $0x40] sm:$0xff] %vm3809_vm3, %v3863_v43  ;;  %3868 = vst.msk [vmem:[#allocation2 + $0x48] sm:$0xff] %vm3809_vm3, %v3864_v15  ;;  %v7580_v7 = vrot.slane %v23520_v52, 2  ;;  %v3855_v1 = vrot.slane %v3703_v45, 2  ;;  %v23558_v61 = vpop.f32.mrb[26].mxu1  ;;  %v23561_v32 = vld [vmem:[%s20984_s25 + $0x432] sm:$0xff]  ;;  %19026 = vmatmul.mubr.msk.f32.gmra.mrb[64].mxu0 %vm241_vm1, %v23534_v33 }
 0x33e   : > { %v15246_v36 = vadd.f32 %v23290_v53, %v15207_v56  ;;  %v7577_v12 = vsel %vm3791_vm2, %v7574_v62, %v25029_v57  ;;  %15309 = vst.msk [vmem:[%s23348_s4 + $0x50] sm:$0xff] %vm3809_vm3, %v15277_v0  ;;  %v15270_v56 = vmax.f32 %v15238_v23, 0.0  ;;  %7590 = vst.msk [vmem:[#allocation2 + $0xc0] sm:$0xff] %vm3809_vm3, %v7586_v2  ;;  %v7578_v23 = vrot.slane %v7430_v28, 2  ;;  %v23564_v43 = vpop.f32.mrb[27].mxu0  ;;  %v23566_v15 = vpop.f32.mrb[27].mxu1  ;;  %19503 = vmatmul.mubr.msk.f32.gmra.mrb[64].mxu1 %vm241_vm1, %v23545_v5 }
 0x33f   : > { %v7587_v62 = vmax.f32 %v23428_v60, %v7577_v12  ;;  %v25030_v60 = vrot.slane %v23482_v37, 2  ;;  %19028 = vmatprep.mubr.msk.f32.mxu0 %vm241_vm1, %v23548_v59  ;;  %v23582_v28 = vld [vmem:[%s20984_s25 + $0x32a] sm:$0xff]  ;;  %v25031_v37 = vrot.slane %v23484_v18, 2  ;;  %19505 = vmatprep.mubr.msk.f32.mxu1 %vm241_vm1, %v23561_v32 }
 0x340   : > { %v15278_v0 = vmax.f32 %v15246_v36, 0.0  ;;  %15302 = vst.msk [vmem:[%s23348_s4 + $0x18] sm:$0xff] %vm3809_vm3, %v15270_v56  ;;  %v3858_v36 = vsel %vm3791_vm2, %v3855_v1, %v3857_v42  ;;  %v7581_v42 = vsel %vm3791_vm2, %v7578_v23, %v7580_v7  ;;  %v23595_v56 = vld [vmem:[%s20984_s25 + $0x43a] sm:$0xff] }
 0x341   : > { %7591 = vst.msk [vmem:[#allocation2 + $0xc8] sm:$0xff] %vm3809_vm3, %v7587_v62  ;;  %v3856_v45 = vsel %vm3791_vm2, %v25030_v60, %v3855_v1  ;;  %v3866_v12 = vmax.f32 %v23461_v46, %v3858_v36  ;;  %v7579_v2 = vsel %vm3791_vm2, %v25031_v37, %v7578_v23  ;;  %25032 = vst [vmem:[#allocation26_spill] sm:$0xff] %v23595_v56  ;;  %19029 = vmatmul.mubr.msk.f32.gmra.mrb[66].mxu0 %vm241_vm1, %v23582_v28 }
 0x342   : > { %15310 = vst.msk [vmem:[%s23348_s4 + $0x58] sm:$0xff] %vm3809_vm3, %v15278_v0  ;;  %v3865_v57 = vmax.f32 %v23412_v35, %v3856_v45  ;;  %v7588_v62 = vmax.f32 %v23414_v6, %v7579_v2  ;;  %v7589_v1 = vmax.f32 %v23463_v22, %v7581_v42  ;;  %v23599_v0 = vpop.f32.mrb[28].mxu0  ;;  %v23601_v35 = vpop.f32.mrb[28].mxu1  ;;  %19506 = vmatmul.mubr.msk.f32.gmra.mrb[66].mxu1 %vm241_vm1, %v23595_v56  ;;  %v23626_v45 = vld [vmem:[%s24946_s1 + $0xf] sm:$0x7] }
 0x343   : > { %3870 = vst.msk [vmem:[#allocation2 + $0x58] sm:$0xff] %vm3809_vm3, %v3866_v12  ;;  %v23605_v46 = vpop.f32.mrb[29].mxu0  ;;  %v23607_v18 = vpop.f32.mrb[29].mxu1  ;;  %19033 = vmatprep.mubr.msk.f32.mxu0 %vm241_vm1, %v23091_v10  ;;  %19510 = vmatprep.mubr.msk.f32.mxu1 %vm241_vm1, %v23094_v26  ;;  %25033 = vst [vmem:[#allocation27_spill] sm:$0xff] %v23626_v45  ;;  %v3876_v37 = vrot.slane %v23599_v0, 2 }
 0x344   : > { %3869 = vst.msk [vmem:[#allocation2 + $0x50] sm:$0xff] %vm3809_vm3, %v3865_v57  ;;  %7592 = vst.msk [vmem:[#allocation2 + $0xd0] sm:$0xff] %vm3809_vm3, %v7588_v62  ;;  %v15077_v6 = vld [vmem:[#allocation2 + $0x40] ss:$2 sm:$0xff]  ;;  %v15141_v22 = vld [vmem:[#allocation2 + $0x41] ss:$2 sm:$0xff] }
 0x345   : > { %7593 = vst.msk [vmem:[#allocation2 + $0xd8] sm:$0xff] %vm3809_vm3, %v7589_v1  ;;  %v15200_v7 = vmax.f32 %v15077_v6, %v15141_v22  ;;  %v23619_v23 = vpop.f32.mrb[30].mxu0  ;;  %v23621_v60 = vpop.f32.mrb[30].mxu1  ;;  %19034 = vmatmul.mubr.msk.f32.vlgmr.msra.gmra.mrb[34].mxu0 %vm241_vm1, %v23107_v8  ;;  %v7599_v62 = vrot.slane %v23601_v35, 2  ;;  %v23646_v8 = vld [vmem:[%s24946_s1 + $0xf] sm:$0x7] }
 0x346   : > { %v3879_v12 = vrot.slane %v23619_v23, 2  ;;  %v3733_v2 = vpop.f32.mrb[31].mxu0  ;;  %v7460_v42 = vpop.f32.mrb[31].mxu1  ;;  %19085 = vmatpush3.msk.msra.mxu0 %vm344_vm0, %v23075_v16  ;;  %19511 = vmatmul.mubr.msk.f32.vlgmr.msra.gmra.mrb[34].mxu1 %vm241_vm1, %v23110_v9  ;;  %v7602_v1 = vrot.slane %v23621_v60, 2 }
 0x347   : > { %v15239_v10 = vadd.f32 %v23290_v53, %v15200_v7  ;;  %v3877_v6 = vrot.slane %v3733_v2, 2  ;;  %v7600_v22 = vrot.slane %v7460_v42, 2  ;;  %19562 = vmatpush3.msk.msra.mxu1 %vm344_vm0, %v23080_v17  ;;  %19036 = vmatprep.mubr.msk.f32.mxu0 %vm241_vm1, %v23113_v24 }
 0x348   : > { %v15093_v36 = vld [vmem:[#allocation2 + $0xc0] ss:$2 sm:$0xff]  ;;  %v15157_v57 = vld [vmem:[#allocation2 + $0xc1] ss:$2 sm:$0xff]  ;;  %v18394_v60 = vpop.f32.mrb[32].mxu0  ;;  %19513 = vmatprep.mubr.msk.f32.mxu1 %vm241_vm1, %v23116_v25  ;;  %19137 = vmatprep.subr.msk.mxu0 %vm344_vm0, %v23626_v45  ;;  %v18871_v42 = vpop.f32.mrb[32].mxu1 }
 0x349   : > { %v15208_v26 = vmax.f32 %v15093_v36, %v15157_v57  ;;  %v15271_v16 = vmax.f32 %v15239_v10, 0.0  ;;  %v3878_v57 = vsel %vm3791_vm2, %v3876_v37, %v3877_v6  ;;  %v3880_v2 = vsel %vm3791_vm2, %v3877_v6, %v3879_v12  ;;  %19037 = vmatmul.mubr.msk.f32.gmra.mrb[36].mxu0 %vm241_vm1, %v23131_v11  ;;  %v7470_v45 = vpop.f32.mrb[33].mxu1  ;;  %19614 = vmatprep.subr.msk.mxu1 %vm344_vm0, %v23646_v8 }
 0x34a   : > { %v7601_v10 = vsel %vm3791_vm2, %v7599_v62, %v7600_v22  ;;  %19514 = vmatmul.mubr.msk.f32.gmra.mrb[36].mxu1 %vm241_vm1, %v23134_v19  ;;  %19039 = vmatprep.mubr.msk.f32.mxu0 %vm241_vm1, %v23137_v30  ;;  %v7603_v62 = vsel %vm3791_vm2, %v7600_v22, %v7602_v1  ;;  %v3883_v6 = vrot.slane %v18394_v60, 2  ;;  %v7604_v22 = vrot.slane %v7470_v45, 2  ;;  %v25034_v60 = vld [vmem:[#allocation3_spill] sm:$0xff] }
 0x34b   : > { %v15247_v9 = vadd.f32 %v23290_v53, %v15208_v26  ;;  %v15079_v7 = vld [vmem:[#allocation2 + $0x50] ss:$2 sm:$0xff]  ;;  %v15143_v23 = vld [vmem:[#allocation2 + $0x51] ss:$2 sm:$0xff]  ;;  %v3743_v26 = vpop.f32.mrb[33].mxu0  ;;  %15303 = vst.msk [vmem:[%s23348_s4 + $0x20] sm:$0xff] %vm3809_vm3, %v15271_v16  ;;  %v7613_v11 = vmax.f32 %v23520_v52, %v7601_v10  ;;  %19516 = vmatprep.mubr.msk.f32.mxu1 %vm241_vm1, %v23140_v31  ;;  %v7614_v30 = vmax.f32 %v23566_v15, %v7603_v62 }
 0x34c   : > { %v15201_v17 = vmax.f32 %v15079_v7, %v15143_v23  ;;  %v15095_v24 = vld [vmem:[#allocation2 + $0xd0] ss:$2 sm:$0xff]  ;;  %v15159_v36 = vld [vmem:[#allocation2 + $0xd1] ss:$2 sm:$0xff]  ;;  %v3890_v7 = vmax.f32 %v23513_v20, %v3878_v57  ;;  %v3891_v23 = vmax.f32 %v23564_v43, %v3880_v2  ;;  %v7606_v20 = vrot.slane %v18871_v42, 2  ;;  %v25039_v2 = vld [vmem:[#allocation8_spill] sm:$0xff] }
 0x34d   : > { %v15279_v25 = vmax.f32 %v15247_v9, 0.0  ;;  %v15209_v56 = vmax.f32 %v15095_v24, %v15159_v36  ;;  %v3881_v52 = vrot.slane %v3743_v26, 2  ;;  %7618 = vst.msk [vmem:[#allocation2 + $0xdc] sm:$0xf0] %vm3838_vm4, %v7613_v11  ;;  %v3894_v31 = vmax.f32 %v23599_v0, %v3883_v6  ;;  %19040 = vmatmul.mubr.msk.f32.gmra.mrb[38].mxu0 %vm241_vm1, %v23159_v38  ;;  %v25036_v24 = vld [vmem:[#allocation5_spill] sm:$0xff]  ;;  %v25037_v57 = vld [vmem:[#allocation6_spill] sm:$0xff] }
 0x34e   : > { %v15240_v37 = vadd.f32 %v23290_v53, %v15201_v17  ;;  %3895 = vst.msk [vmem:[#allocation2 + $0x5c] sm:$0xf0] %vm3838_vm4, %v3890_v7  ;;  %v7617_v16 = vmax.f32 %v23601_v35, %v7606_v20  ;;  %19517 = vmatmul.mubr.msk.f32.gmra.mrb[38].mxu1 %vm241_vm1, %v23162_v40  ;;  %19042 = vmatprep.mubr.msk.f32.mxu0 %vm241_vm1, %v23165_v21  ;;  %v25035_v17 = vld [vmem:[#allocation4_spill] sm:$0xff]  ;;  %v25040_v10 = vld [vmem:[#allocation9_spill] sm:$0xff]  ;;  %v25041_v42 = vld [vmem:[#allocation10_spill] sm:$0xff] }
 0x34f   : > { %15311 = vst.msk [vmem:[%s23348_s4 + $0x60] sm:$0xff] %vm3809_vm3, %v15279_v25  ;;  %v15248_v19 = vadd.f32 %v23290_v53, %v15209_v56  ;;  %3896 = vst.msk [vmem:[#allocation2 + $0x64] sm:$0xff] %vm3809_vm3, %v3891_v23  ;;  %v3882_v9 = vsel %vm3791_vm2, %v3879_v12, %v3881_v52  ;;  %v3884_v15 = vsel %vm3791_vm2, %v3881_v52, %v3883_v6  ;;  %19519 = vmatprep.mubr.msk.f32.mxu1 %vm241_vm1, %v23168_v44  ;;  %v25042_v26 = vld [vmem:[#allocation11_spill] sm:$0xff]  ;;  %v25043_v25 = vld [vmem:[#allocation12_spill] sm:$0xff] }
 0x350   : > { %v15272_v43 = vmax.f32 %v15240_v37, 0.0  ;;  %7619 = vst.msk [vmem:[#allocation2 + $0xe4] sm:$0xff] %vm3809_vm3, %v7614_v30  ;;  %v3892_v38 = vmax.f32 %v23556_v58, %v3882_v9  ;;  %v3893_v0 = vmax.f32 %v23605_v46, %v3884_v15  ;;  %v7605_v35 = vsel %vm3791_vm2, %v7602_v1, %v7604_v22  ;;  %v25044_v7 = vld [vmem:[#allocation13_spill] sm:$0xff]  ;;  %v25045_v23 = vld [vmem:[#allocation14_spill] sm:$0xff]  ;;  %v25046_v37 = vld [vmem:[#allocation15_spill] sm:$0xff] }
 0x351   : > { %v15280_v56 = vmax.f32 %v15248_v19, 0.0  ;;  %3899 = vst.msk [vmem:[#allocation2 + $0x7c] sm:$0xf] %vm3843_vm5, %v3894_v31  ;;  %v7607_v45 = vsel %vm3791_vm2, %v7604_v22, %v7606_v20  ;;  %7622 = vst.msk [vmem:[#allocation2 + $0xfc] sm:$0xf] %vm3843_vm5, %v7617_v16  ;;  %v7615_v40 = vmax.f32 %v23558_v61, %v7605_v35  ;;  %19043 = vmatmul.mubr.msk.f32.gmra.mrb[40].mxu0 %vm241_vm1, %v23179_v48  ;;  %v25047_v62 = vld [vmem:[#allocation16_spill] sm:$0xff] }
 0x352   : > { %15304 = vst.msk [vmem:[%s23348_s4 + $0x28] sm:$0xff] %vm3809_vm3, %v15272_v43  ;;  %v7616_v21 = vmax.f32 %v23607_v18, %v7607_v45  ;;  %3897 = vst.msk [vmem:[#allocation2 + $0x6c] sm:$0xff] %vm3809_vm3, %v3892_v38  ;;  %19520 = vmatmul.mubr.msk.f32.gmra.mrb[40].mxu1 %vm241_vm1, %v23182_v49  ;;  %19045 = vmatprep.mubr.msk.f32.mxu0 %vm241_vm1, %v23185_v50  ;;  %v25048_v11 = vld [vmem:[#allocation17_spill] sm:$0xff]  ;;  %v25049_v6 = vld [vmem:[#allocation18_spill] sm:$0xff] }
 0x353   : > { %15312 = vst.msk [vmem:[%s23348_s4 + $0x68] sm:$0xff] %vm3809_vm3, %v15280_v56  ;;  %3898 = vst.msk [vmem:[#allocation2 + $0x74] sm:$0xff] %vm3809_vm3, %v3893_v0  ;;  %19522 = vmatprep.mubr.msk.f32.mxu1 %vm241_vm1, %v23188_v51  ;;  %v25050_v19 = vld [vmem:[#allocation19_spill] sm:$0xff]  ;;  %v25051_v30 = vld [vmem:[#allocation20_spill] sm:$0xff] }
 0x354   : > { %7620 = vst.msk [vmem:[#allocation2 + $0xec] sm:$0xff] %vm3809_vm3, %v7615_v40  ;;  %7621 = vst.msk [vmem:[#allocation2 + $0xf4] sm:$0xff] %vm3809_vm3, %v7616_v21  ;;  %v25052_v20 = vld [vmem:[#allocation21_spill] sm:$0xff]  ;;  %v25053_v52 = vld [vmem:[#allocation22_spill] sm:$0xff] }
 0x355   : > { %19046 = vmatmul.mubr.msk.f32.gmra.mrb[42].mxu0 %vm241_vm1, %v23201_v54  ;;  %v25054_v43 = vld [vmem:[#allocation23_spill] sm:$0xff]  ;;  %v25055_v31 = vld [vmem:[#allocation24_spill] sm:$0xff]  ;;  %v25056_v22 = vld [vmem:[#allocation25_spill] sm:$0xff] }
 0x356   : > { %19523 = vmatmul.mubr.msk.f32.gmra.mrb[42].mxu1 %vm241_vm1, %v23206_v55  ;;  %19048 = vmatprep.mubr.msk.f32.mxu0 %vm241_vm1, %v23209_v4  ;;  %v12914_v56 = vld [vmem:[%s20984_s25 + $0x353] sm:$0xff]  ;;  %v9192_v16 = vld [vmem:[%s20984_s25 + $0x24b] sm:$0xff]  ;;  %v12915_v9 = vld [vmem:[%s20984_s25 + $0x35b] sm:$0xff] }
 0x357   : > { %19525 = vmatprep.mubr.msk.f32.mxu1 %vm241_vm1, %v23220_v13  ;;  %v9193_v15 = vld [vmem:[%s20984_s25 + $0x253] sm:$0xff]  ;;  %v12916_v38 = vld [vmem:[%s20984_s25 + $0x363] sm:$0xff]  ;;  %v9194_v45 = vld [vmem:[%s20984_s25 + $0x25b] sm:$0xff] }
 0x358   : > { %v23841_v0 = vld [vmem:[%s24946_s1 + $0x12] sm:$0x7]  ;;  %v25058_v35 = vld [vmem:[#allocation27_spill] sm:$0xff] }
 0x359   : > { %v15081_v44 = vld [vmem:[#allocation2 + $0x60] ss:$2 sm:$0xff]  ;;  %v15145_v49 = vld [vmem:[#allocation2 + $0x61] ss:$2 sm:$0xff]  ;;  %19049 = vmatmul.mubr.msk.f32.gmra.mrb[44].mxu0 %vm241_vm1, %v23239_v29  ;;  %v23850_v40 = vld [vmem:[%s24946_s1 + $0x12] sm:$0x7] }
 0x35a   : > { %v15083_v48 = vld [vmem:[#allocation2 + $0x70] ss:$2 sm:$0xff]  ;;  %v15147_v58 = vld [vmem:[#allocation2 + $0x71] ss:$2 sm:$0xff]  ;;  %v15202_v50 = vmax.f32 %v15081_v44, %v15145_v49  ;;  %19526 = vmatmul.mubr.msk.f32.gmra.mrb[44].mxu1 %vm241_vm1, %v23248_v27  ;;  %19051 = vmatprep.mubr.msk.f32.mxu0 %vm241_vm1, %v23251_v34  ;;  %v9195_v44 = vld [vmem:[%s20984_s25 + $0x263] sm:$0xff] }
 0x35b   : > { %v15097_v61 = vld [vmem:[#allocation2 + $0xe0] ss:$2 sm:$0xff]  ;;  %v15099_v46 = vld [vmem:[#allocation2 + $0xf0] ss:$2 sm:$0xff]  ;;  %v15203_v51 = vmax.f32 %v15083_v48, %v15147_v58  ;;  %v15161_v54 = vld [vmem:[#allocation2 + $0xe1] ss:$2 sm:$0xff]  ;;  %19528 = vmatprep.mubr.msk.f32.mxu1 %vm241_vm1, %v23260_v47 }
 0x35c   : > { %v15163_v55 = vld [vmem:[#allocation2 + $0xf1] ss:$2 sm:$0xff]  ;;  %v15241_v4 = vadd.f32 %v23290_v53, %v15202_v50  ;;  %v15210_v13 = vmax.f32 %v15097_v61, %v15161_v54  ;;  %v12920_v50 = vld [vmem:[%s20984_s25 + $0x383] sm:$0xff] }
 0x35d   : > { %v15211_v18 = vmax.f32 %v15099_v46, %v15163_v55  ;;  %v15242_v29 = vadd.f32 %v23290_v53, %v15203_v51  ;;  %19052 = vmatmul.mubr.msk.f32.gmra.mrb[46].mxu0 %vm241_vm1, %v25034_v60  ;;  %v12917_v21 = vld [vmem:[%s20984_s25 + $0x36b] sm:$0xff]  ;;  %v12918_v48 = vld [vmem:[%s20984_s25 + $0x373] sm:$0xff]  ;;  %v12919_v49 = vld [vmem:[%s20984_s25 + $0x37b] sm:$0xff] }
 0x35e   : > { %v15273_v12 = vmax.f32 %v15241_v4, 0.0  ;;  %v15249_v1 = vadd.f32 %v23290_v53, %v15210_v13  ;;  %19529 = vmatmul.mubr.msk.f32.gmra.mrb[46].mxu1 %vm241_vm1, %v25035_v17  ;;  %19054 = vmatprep.mubr.msk.f32.mxu0 %vm241_vm1, %v25036_v24  ;;  %v9197_v58 = vld [vmem:[%s20984_s25 + $0x273] sm:$0xff]  ;;  %v9198_v61 = vld [vmem:[%s20984_s25 + $0x27b] sm:$0xff]  ;;  %v12921_v46 = vld [vmem:[%s20984_s25 + $0x38b] sm:$0xff] }
 0x35f   : > { %v15250_v27 = vadd.f32 %v23290_v53, %v15211_v18  ;;  %v15274_v34 = vmax.f32 %v15242_v29, 0.0  ;;  %19531 = vmatprep.mubr.msk.f32.mxu1 %vm241_vm1, %v25037_v57  ;;  %v25038_v53 = vld [vmem:[#allocation7_spill] sm:$0xff]  ;;  %v12922_v54 = vld [vmem:[%s20984_s25 + $0x393] sm:$0xff]  ;;  %v9200_v55 = vld [vmem:[%s20984_s25 + $0x28b] sm:$0xff] }
 0x360   : > { %15305 = vst.msk [vmem:[%s23348_s4 + $0x30] sm:$0xff] %vm3809_vm3, %v15273_v12  ;;  %v15281_v47 = vmax.f32 %v15249_v1, 0.0  ;;  %v9199_v51 = vld [vmem:[%s20984_s25 + $0x283] sm:$0xff]  ;;  %v12923_v4 = vld [vmem:[%s20984_s25 + $0x39b] sm:$0xff]  ;;  %v9201_v13 = vld [vmem:[%s20984_s25 + $0x293] sm:$0xff] }
 0x361   : > { %v15282_v36 = vmax.f32 %v15250_v27, 0.0  ;;  %15306 = vst.msk [vmem:[%s23348_s4 + $0x38] sm:$0xff] %vm3809_vm3, %v15274_v34  ;;  %19055 = vmatmul.mubr.msk.f32.gmra.mrb[48].mxu0 %vm241_vm1, %v25038_v53  ;;  %v12924_v18 = vld [vmem:[%s20984_s25 + $0x3a3] sm:$0xff]  ;;  %v9202_v29 = vld [vmem:[%s20984_s25 + $0x29b] sm:$0xff]  ;;  %v12925_v12 = vld [vmem:[%s20984_s25 + $0x3ab] sm:$0xff] }
 0x362   : > { %15313 = vst.msk [vmem:[%s23348_s4 + $0x70] sm:$0xff] %vm3809_vm3, %v15281_v47  ;;  %19532 = vmatmul.mubr.msk.f32.gmra.mrb[48].mxu1 %vm241_vm1, %v25039_v2  ;;  %19057 = vmatprep.mubr.msk.f32.mxu0 %vm241_vm1, %v25040_v10  ;;  %v9203_v1 = vld [vmem:[%s20984_s25 + $0x2a3] sm:$0xff]  ;;  %v12926_v27 = vld [vmem:[%s20984_s25 + $0x3b3] sm:$0xff]  ;;  %v9204_v60 = vld [vmem:[%s20984_s25 + $0x2ab] sm:$0xff] }
 0x363   : > { %15314 = vst.msk [vmem:[%s23348_s4 + $0x78] sm:$0xff] %vm3809_vm3, %v15282_v36  ;;  %19534 = vmatprep.mubr.msk.f32.mxu1 %vm241_vm1, %v25041_v42  ;;  %v12927_v34 = vld [vmem:[%s20984_s25 + $0x3bb] sm:$0xff]  ;;  %v9205_v17 = vld [vmem:[%s20984_s25 + $0x2b3] sm:$0xff]  ;;  %v12928_v24 = vld [vmem:[%s20984_s25 + $0x3c3] sm:$0xff] }
 0x364   : > { %v9206_v47 = vld [vmem:[%s20984_s25 + $0x2bb] sm:$0xff]  ;;  %v12929_v36 = vld [vmem:[%s20984_s25 + $0x3cb] sm:$0xff]  ;;  %v9207_v57 = vld [vmem:[%s20984_s25 + $0x2c3] sm:$0xff] }
 0x365   : > { %19058 = vmatmul.mubr.msk.f32.gmra.mrb[50].mxu0 %vm241_vm1, %v25042_v26  ;;  %v12930_v53 = vld [vmem:[%s20984_s25 + $0x3d3] sm:$0xff]  ;;  %v9208_v2 = vld [vmem:[%s20984_s25 + $0x2cb] sm:$0xff]  ;;  %v12931_v10 = vld [vmem:[%s20984_s25 + $0x3db] sm:$0xff] }
 0x366   : > { %19535 = vmatmul.mubr.msk.f32.gmra.mrb[50].mxu1 %vm241_vm1, %v25043_v25  ;;  %19060 = vmatprep.mubr.msk.f32.mxu0 %vm241_vm1, %v25044_v7  ;;  %v9209_v42 = vld [vmem:[%s20984_s25 + $0x2d3] sm:$0xff]  ;;  %v12932_v26 = vld [vmem:[%s20984_s25 + $0x3e3] sm:$0xff]  ;;  %v9210_v25 = vld [vmem:[%s20984_s25 + $0x2db] sm:$0xff] }
 0x367   : > { %19537 = vmatprep.mubr.msk.f32.mxu1 %vm241_vm1, %v25045_v23  ;;  %v12933_v7 = vld [vmem:[%s20984_s25 + $0x3eb] sm:$0xff]  ;;  %v9211_v23 = vld [vmem:[%s20984_s25 + $0x2e3] sm:$0xff] }
 0x369   : > { %19061 = vmatmul.mubr.msk.f32.gmra.mrb[52].mxu0 %vm241_vm1, %v25046_v37  ;;  %v12934_v37 = vld [vmem:[%s20984_s25 + $0x3f3] sm:$0xff] }
 0x36a   : > { %19538 = vmatmul.mubr.msk.f32.gmra.mrb[52].mxu1 %vm241_vm1, %v25047_v62  ;;  %19063 = vmatprep.mubr.msk.f32.mxu0 %vm241_vm1, %v25048_v11  ;;  %v9212_v62 = vld [vmem:[%s20984_s25 + $0x2eb] sm:$0xff]  ;;  %v12935_v11 = vld [vmem:[%s20984_s25 + $0x3fb] sm:$0xff] }
 0x36b   : > { %19540 = vmatprep.mubr.msk.f32.mxu1 %vm241_vm1, %v25049_v6  ;;  %v9213_v6 = vld [vmem:[%s20984_s25 + $0x2f3] sm:$0xff] }
 0x36d   : > { %19064 = vmatmul.mubr.msk.f32.gmra.mrb[54].mxu0 %vm241_vm1, %v25050_v19  ;;  %v12936_v19 = vld [vmem:[%s20984_s25 + $0x403] sm:$0xff] }
 0x36e   : > { %19541 = vmatmul.mubr.msk.f32.gmra.mrb[54].mxu1 %vm241_vm1, %v25051_v30  ;;  %19066 = vmatprep.mubr.msk.f32.mxu0 %vm241_vm1, %v25052_v20  ;;  %v9214_v30 = vld [vmem:[%s20984_s25 + $0x2fb] sm:$0xff]  ;;  %v12937_v20 = vld [vmem:[%s20984_s25 + $0x40b] sm:$0xff] }
 0x36f   : > { %19543 = vmatprep.mubr.msk.f32.mxu1 %vm241_vm1, %v25053_v52  ;;  %v9215_v52 = vld [vmem:[%s20984_s25 + $0x303] sm:$0xff] }
 0x371   : > { %19067 = vmatmul.mubr.msk.f32.gmra.mrb[56].mxu0 %vm241_vm1, %v25054_v43  ;;  %v12938_v43 = vld [vmem:[%s20984_s25 + $0x413] sm:$0xff] }
 0x372   : > { %19544 = vmatmul.mubr.msk.f32.gmra.mrb[56].mxu1 %vm241_vm1, %v25055_v31  ;;  %19069 = vmatprep.mubr.msk.f32.mxu0 %vm241_vm1, %v25056_v22  ;;  %v9216_v31 = vld [vmem:[%s20984_s25 + $0x30b] sm:$0xff]  ;;  %v12939_v22 = vld [vmem:[%s20984_s25 + $0x41b] sm:$0xff] }
 0x373   : > { %19546 = vmatprep.mubr.msk.f32.mxu1 %vm241_vm1, %v23487_v14  ;;  %v12535_v14 = vld [vmem:[%s20984_s25 + $0x442] sm:$0xff] }
 0x375   : > { %19070 = vmatmul.mubr.msk.f32.gmra.mrb[58].mxu0 %vm241_vm1, %v23490_v63  ;;  %v8813_v63 = vld [vmem:[%s20984_s25 + $0x33a] sm:$0xff] }
 0x376   : > { %19547 = vmatmul.mubr.msk.f32.gmra.mrb[58].mxu1 %vm241_vm1, %v23496_v39  ;;  %19072 = vmatprep.mubr.msk.f32.mxu0 %vm241_vm1, %v23505_v3  ;;  %v8812_v39 = vld [vmem:[%s20984_s25 + $0x332] sm:$0xff]  ;;  %v12536_v3 = vld [vmem:[%s20984_s25 + $0x44a] sm:$0xff] }
 0x377   : > { %19549 = vmatprep.mubr.msk.f32.mxu1 %vm241_vm1, %v23508_v41  ;;  %v25057_v41 = vld [vmem:[#allocation26_spill] sm:$0xff] }
 0x379   : > { %19073 = vmatmul.mubr.msk.f32.gmra.mrb[60].mxu0 %vm241_vm1, %v23534_v33  ;;  %v8814_v33 = vld [vmem:[%s20984_s25 + $0x342] sm:$0xff] }
 0x37a   : > { %19550 = vmatmul.mubr.msk.f32.gmra.mrb[60].mxu1 %vm241_vm1, %v23545_v5  ;;  %19075 = vmatprep.mubr.msk.f32.mxu0 %vm241_vm1, %v23548_v59  ;;  %v12537_v5 = vld [vmem:[%s20984_s25 + $0x452] sm:$0xff]  ;;  %v8815_v59 = vld [vmem:[%s20984_s25 + $0x34a] sm:$0xff] }
 0x37b   : > { %19552 = vmatprep.mubr.msk.f32.mxu1 %vm241_vm1, %v23561_v32  ;;  %v12538_v32 = vld [vmem:[%s20984_s25 + $0x45a] sm:$0xff] }
 0x37d   : > { %19076 = vmatmul.mubr.msk.f32.gmra.mrb[62].mxu0 %vm241_vm1, %v23582_v28  ;;  %v9191_v28 = vld [vmem:[%s20984_s25 + $0x243] sm:$0xff] }
 0x37e   : > { %19553 = vmatmul.mubr.msk.f32.gmra.mrb[62].mxu1 %vm241_vm1, %v25057_v41  ;;  %19078 = vmatprep.mubr.msk.f32.mxu0 %vm241_vm1, %v8812_v39  ;;  %v9217_v39 = vld [vmem:[%s20984_s25 + $0x313] sm:$0xff]  ;;  %v9218_v41 = vld [vmem:[%s20984_s25 + $0x31b] sm:$0xff] }
 0x37f   : > { %19555 = vmatprep.mubr.msk.f32.mxu1 %vm241_vm1, %v12535_v14  ;;  %v12940_v14 = vld [vmem:[%s20984_s25 + $0x423] sm:$0xff] }
 0x381   : > { %19079 = vmatmul.mubr.msk.f32.gmra.mrb[64].mxu0 %vm241_vm1, %v8813_v63  ;;  %v12941_v63 = vld [vmem:[%s20984_s25 + $0x42b] sm:$0xff] }
 0x382   : > { %19556 = vmatmul.mubr.msk.f32.gmra.mrb[64].mxu1 %vm241_vm1, %v12536_v3  ;;  %19081 = vmatprep.mubr.msk.f32.mxu0 %vm241_vm1, %v8814_v33  ;;  %v9219_v3 = vld [vmem:[%s20984_s25 + $0x323] sm:$0xff]  ;;  %v12942_v33 = vld [vmem:[%s20984_s25 + $0x433] sm:$0xff] }
 0x383   : > { %19558 = vmatprep.mubr.msk.f32.mxu1 %vm241_vm1, %v12537_v5  ;;  %v9220_v5 = vld [vmem:[%s20984_s25 + $0x32b] sm:$0xff] }
 0x385   : > { %19082 = vmatmul.mubr.msk.f32.gmra.mrb[66].mxu0 %vm241_vm1, %v8815_v59  ;;  %v12943_v59 = vld [vmem:[%s20984_s25 + $0x43b] sm:$0xff] }
 0x386   : > { %19559 = vmatmul.mubr.msk.f32.gmra.mrb[66].mxu1 %vm241_vm1, %v12538_v32  ;;  %19086 = vmatprep.mubr.msk.f32.mxu0 %vm241_vm1, %v9191_v28  ;;  %v9221_v32 = vld [vmem:[%s20984_s25 + $0x333] sm:$0xff]  ;;  %v12944_v28 = vld [vmem:[%s20984_s25 + $0x443] sm:$0xff] }
 0x387   : > { %19563 = vmatprep.mubr.msk.f32.mxu1 %vm241_vm1, %v12914_v56  ;;  %v9222_v56 = vld [vmem:[%s20984_s25 + $0x33b] sm:$0xff] }
 0x389   : > { %19087 = vmatmul.mubr.msk.f32.vlgmr.msra.gmra.mrb[34].mxu0 %vm241_vm1, %v9192_v16  ;;  %v12945_v16 = vld [vmem:[%s20984_s25 + $0x44b] sm:$0xff] }
 0x38a   : > { %19138 = vmatpush3.msk.msra.mxu0 %vm344_vm0, %v25058_v35  ;;  %19564 = vmatmul.mubr.msk.f32.vlgmr.msra.gmra.mrb[34].mxu1 %vm241_vm1, %v12915_v9  ;;  %v9223_v9 = vld [vmem:[%s20984_s25 + $0x343] sm:$0xff]  ;;  %v12947_v35 = vld [vmem:[%s20984_s25 + $0x45b] sm:$0xff] }
 0x38b   : > { %19615 = vmatpush3.msk.msra.mxu1 %vm344_vm0, %v23646_v8  ;;  %19089 = vmatprep.mubr.msk.f32.mxu0 %vm241_vm1, %v9193_v15  ;;  %v9196_v8 = vld [vmem:[%s20984_s25 + $0x26b] sm:$0xff]  ;;  %v12946_v15 = vld [vmem:[%s20984_s25 + $0x453] sm:$0xff] }
 0x38c   : > { %19566 = vmatprep.mubr.msk.f32.mxu1 %vm241_vm1, %v12916_v38  ;;  %19190 = vmatprep.subr.msk.mxu0 %vm344_vm0, %v23841_v0  ;;  %v9224_v38 = vld [vmem:[%s20984_s25 + $0x34b] sm:$0xff] }
 0x38d   : > { %19090 = vmatmul.mubr.msk.f32.gmra.mrb[36].mxu0 %vm241_vm1, %v9194_v45  ;;  %19667 = vmatprep.subr.msk.mxu1 %vm344_vm0, %v23850_v40  ;;  %v9600_v45 = vld [vmem:[%s20984_s25 + $0x244] sm:$0xff] }
 0x38e   : > { %19567 = vmatmul.mubr.msk.f32.gmra.mrb[36].mxu1 %vm241_vm1, %v12917_v21  ;;  %19092 = vmatprep.mubr.msk.f32.mxu0 %vm241_vm1, %v9195_v44  ;;  %v23983_v21 = vld [vmem:[%s20984_s25 + $0x354] sm:$0xff]  ;;  %v9601_v44 = vld [vmem:[%s20984_s25 + $0x24c] sm:$0xff] }
 0x38f   : > { %19569 = vmatprep.mubr.msk.f32.mxu1 %vm241_vm1, %v12918_v48  ;;  %v23992_v48 = vld [vmem:[%s20984_s25 + $0x35c] sm:$0xff] }
 0x390   : > { %25059 = vst [vmem:[#allocation3_spill] sm:$0xff] %v23992_v48 }
 0x391   : > { %19093 = vmatmul.mubr.msk.f32.gmra.mrb[38].mxu0 %vm241_vm1, %v9196_v8  ;;  %v9602_v8 = vld [vmem:[%s20984_s25 + $0x254] sm:$0xff] }
 0x392   : > { %19570 = vmatmul.mubr.msk.f32.gmra.mrb[38].mxu1 %vm241_vm1, %v12919_v49  ;;  %19095 = vmatprep.mubr.msk.f32.mxu0 %vm241_vm1, %v9197_v58  ;;  %v23997_v49 = vld [vmem:[%s20984_s25 + $0x364] sm:$0xff]  ;;  %v24002_v58 = vld [vmem:[%s24946_s1 + $0x15] sm:$0x7] }
 0x393   : > { %19572 = vmatprep.mubr.msk.f32.mxu1 %vm241_vm1, %v12920_v50  ;;  %25060 = vst [vmem:[#allocation4_spill] sm:$0xff] %v23997_v49  ;;  %v9603_v50 = vld [vmem:[%s20984_s25 + $0x25c] sm:$0xff] }
 0x395   : > { %19096 = vmatmul.mubr.msk.f32.gmra.mrb[40].mxu0 %vm241_vm1, %v9198_v61  ;;  %v24012_v61 = vld [vmem:[%s24946_s1 + $0x15] sm:$0x7] }
 0x396   : > { %19573 = vmatmul.mubr.msk.f32.gmra.mrb[40].mxu1 %vm241_vm1, %v12921_v46  ;;  %19098 = vmatprep.mubr.msk.f32.mxu0 %vm241_vm1, %v9199_v51  ;;  %v24018_v46 = vld [vmem:[%s20984_s25 + $0x36c] sm:$0xff]  ;;  %v24026_v51 = vld [vmem:[%s20984_s25 + $0x374] sm:$0xff] }
 0x397   : > { %19575 = vmatprep.mubr.msk.f32.mxu1 %vm241_vm1, %v12922_v54  ;;  %25061 = vst [vmem:[#allocation5_spill] sm:$0xff] %v24018_v46  ;;  %v24043_v54 = vld [vmem:[%s20984_s25 + $0x37c] sm:$0xff] }
 0x399   : > { %19099 = vmatmul.mubr.msk.f32.gmra.mrb[42].mxu0 %vm241_vm1, %v9200_v55  ;;  %v24046_v55 = vld [vmem:[%s20984_s25 + $0x274] sm:$0xff] }
 0x39a   : > { %19576 = vmatmul.mubr.msk.f32.gmra.mrb[42].mxu1 %vm241_vm1, %v12923_v4  ;;  %19101 = vmatprep.mubr.msk.f32.mxu0 %vm241_vm1, %v9201_v13  ;;  %v24049_v4 = vld [vmem:[%s20984_s25 + $0x384] sm:$0xff]  ;;  %v24058_v13 = vld [vmem:[%s20984_s25 + $0x27c] sm:$0xff] }
 0x39b   : > { %19578 = vmatprep.mubr.msk.f32.mxu1 %vm241_vm1, %v12924_v18  ;;  %v24063_v18 = vld [vmem:[%s20984_s25 + $0x38c] sm:$0xff] }
 0x39d   : > { %19102 = vmatmul.mubr.msk.f32.gmra.mrb[44].mxu0 %vm241_vm1, %v9202_v29  ;;  %v24066_v29 = vld [vmem:[%s20984_s25 + $0x284] sm:$0xff] }
 0x39e   : > { %19579 = vmatmul.mubr.msk.f32.gmra.mrb[44].mxu1 %vm241_vm1, %v12925_v12  ;;  %19104 = vmatprep.mubr.msk.f32.mxu0 %vm241_vm1, %v9203_v1  ;;  %v24069_v12 = vld [vmem:[%s20984_s25 + $0x394] sm:$0xff]  ;;  %v24078_v1 = vld [vmem:[%s20984_s25 + $0x28c] sm:$0xff] }
 0x39f   : > { %19581 = vmatprep.mubr.msk.f32.mxu1 %vm241_vm1, %v12926_v27  ;;  %v24083_v27 = vld [vmem:[%s20984_s25 + $0x39c] sm:$0xff] }
 0x3a1   : > { %19105 = vmatmul.mubr.msk.f32.gmra.mrb[46].mxu0 %vm241_vm1, %v9204_v60  ;;  %v24086_v60 = vld [vmem:[%s20984_s25 + $0x294] sm:$0xff] }
 0x3a2   : > { %19582 = vmatmul.mubr.msk.f32.gmra.mrb[46].mxu1 %vm241_vm1, %v12927_v34  ;;  %19107 = vmatprep.mubr.msk.f32.mxu0 %vm241_vm1, %v9205_v17  ;;  %v24089_v34 = vld [vmem:[%s20984_s25 + $0x3a4] sm:$0xff]  ;;  %v24098_v17 = vld [vmem:[%s20984_s25 + $0x29c] sm:$0xff] }
 0x3a3   : > { %19584 = vmatprep.mubr.msk.f32.mxu1 %vm241_vm1, %v12928_v24  ;;  %v24103_v24 = vld [vmem:[%s20984_s25 + $0x3ac] sm:$0xff] }
 0x3a5   : > { %19108 = vmatmul.mubr.msk.f32.gmra.mrb[48].mxu0 %vm241_vm1, %v9206_v47  ;;  %v24106_v47 = vld [vmem:[%s20984_s25 + $0x2a4] sm:$0xff] }
 0x3a6   : > { %19585 = vmatmul.mubr.msk.f32.gmra.mrb[48].mxu1 %vm241_vm1, %v12929_v36  ;;  %19110 = vmatprep.mubr.msk.f32.mxu0 %vm241_vm1, %v9207_v57  ;;  %v24109_v36 = vld [vmem:[%s20984_s25 + $0x3b4] sm:$0xff]  ;;  %v24118_v57 = vld [vmem:[%s20984_s25 + $0x2ac] sm:$0xff] }
 0x3a7   : > { %19587 = vmatprep.mubr.msk.f32.mxu1 %vm241_vm1, %v12930_v53  ;;  %v24123_v53 = vld [vmem:[%s20984_s25 + $0x3bc] sm:$0xff] }
 0x3a9   : > { %19111 = vmatmul.mubr.msk.f32.gmra.mrb[50].mxu0 %vm241_vm1, %v9208_v2  ;;  %v24126_v2 = vld [vmem:[%s20984_s25 + $0x2b4] sm:$0xff] }
 0x3aa   : > { %19588 = vmatmul.mubr.msk.f32.gmra.mrb[50].mxu1 %vm241_vm1, %v12931_v10  ;;  %19113 = vmatprep.mubr.msk.f32.mxu0 %vm241_vm1, %v9209_v42  ;;  %v24129_v10 = vld [vmem:[%s20984_s25 + $0x3c4] sm:$0xff]  ;;  %v24138_v42 = vld [vmem:[%s20984_s25 + $0x2bc] sm:$0xff] }
 0x3ab   : > { %19590 = vmatprep.mubr.msk.f32.mxu1 %vm241_vm1, %v12932_v26  ;;  %v24143_v26 = vld [vmem:[%s20984_s25 + $0x3cc] sm:$0xff] }
 0x3ad   : > { %19114 = vmatmul.mubr.msk.f32.gmra.mrb[52].mxu0 %vm241_vm1, %v9210_v25  ;;  %v24146_v25 = vld [vmem:[%s20984_s25 + $0x2c4] sm:$0xff] }
 0x3ae   : > { %19591 = vmatmul.mubr.msk.f32.gmra.mrb[52].mxu1 %vm241_vm1, %v12933_v7  ;;  %19116 = vmatprep.mubr.msk.f32.mxu0 %vm241_vm1, %v9211_v23  ;;  %v24149_v7 = vld [vmem:[%s20984_s25 + $0x3d4] sm:$0xff]  ;;  %v24158_v23 = vld [vmem:[%s20984_s25 + $0x2cc] sm:$0xff] }
 0x3af   : > { %19593 = vmatprep.mubr.msk.f32.mxu1 %vm241_vm1, %v12934_v37  ;;  %v24163_v37 = vld [vmem:[%s20984_s25 + $0x3dc] sm:$0xff] }
 0x3b1   : > { %19117 = vmatmul.mubr.msk.f32.gmra.mrb[54].mxu0 %vm241_vm1, %v9212_v62  ;;  %v24166_v62 = vld [vmem:[%s20984_s25 + $0x2d4] sm:$0xff] }
 0x3b2   : > { %19594 = vmatmul.mubr.msk.f32.gmra.mrb[54].mxu1 %vm241_vm1, %v12935_v11  ;;  %19119 = vmatprep.mubr.msk.f32.mxu0 %vm241_vm1, %v9213_v6  ;;  %v24169_v11 = vld [vmem:[%s20984_s25 + $0x3e4] sm:$0xff]  ;;  %v24178_v6 = vld [vmem:[%s20984_s25 + $0x2dc] sm:$0xff] }
 0x3b3   : > { %19596 = vmatprep.mubr.msk.f32.mxu1 %vm241_vm1, %v12936_v19  ;;  %v24183_v19 = vld [vmem:[%s20984_s25 + $0x3ec] sm:$0xff] }
 0x3b5   : > { %19120 = vmatmul.mubr.msk.f32.gmra.mrb[56].mxu0 %vm241_vm1, %v9214_v30  ;;  %v24186_v30 = vld [vmem:[%s20984_s25 + $0x2e4] sm:$0xff] }
 0x3b6   : > { %19597 = vmatmul.mubr.msk.f32.gmra.mrb[56].mxu1 %vm241_vm1, %v12937_v20  ;;  %19122 = vmatprep.mubr.msk.f32.mxu0 %vm241_vm1, %v9215_v52  ;;  %v24189_v20 = vld [vmem:[%s20984_s25 + $0x3f4] sm:$0xff]  ;;  %v24198_v52 = vld [vmem:[%s20984_s25 + $0x2ec] sm:$0xff] }
 0x3b7   : > { %19599 = vmatprep.mubr.msk.f32.mxu1 %vm241_vm1, %v12938_v43  ;;  %v24203_v43 = vld [vmem:[%s20984_s25 + $0x3fc] sm:$0xff] }
 0x3b9   : > { %19123 = vmatmul.mubr.msk.f32.gmra.mrb[58].mxu0 %vm241_vm1, %v9216_v31  ;;  %v24206_v31 = vld [vmem:[%s20984_s25 + $0x2f4] sm:$0xff] }
 0x3ba   : > { %19600 = vmatmul.mubr.msk.f32.gmra.mrb[58].mxu1 %vm241_vm1, %v12939_v22  ;;  %19125 = vmatprep.mubr.msk.f32.mxu0 %vm241_vm1, %v9217_v39  ;;  %v24209_v22 = vld [vmem:[%s20984_s25 + $0x404] sm:$0xff]  ;;  %v24218_v39 = vld [vmem:[%s20984_s25 + $0x2fc] sm:$0xff] }
 0x3bb   : > { %19602 = vmatprep.mubr.msk.f32.mxu1 %vm241_vm1, %v12940_v14  ;;  %v24223_v14 = vld [vmem:[%s20984_s25 + $0x40c] sm:$0xff] }
 0x3bd   : > { %19126 = vmatmul.mubr.msk.f32.gmra.mrb[60].mxu0 %vm241_vm1, %v9218_v41  ;;  %v24226_v41 = vld [vmem:[%s20984_s25 + $0x304] sm:$0xff] }
 0x3be   : > { %19603 = vmatmul.mubr.msk.f32.gmra.mrb[60].mxu1 %vm241_vm1, %v12941_v63  ;;  %19128 = vmatprep.mubr.msk.f32.mxu0 %vm241_vm1, %v9219_v3  ;;  %v24229_v63 = vld [vmem:[%s20984_s25 + $0x414] sm:$0xff]  ;;  %v24238_v3 = vld [vmem:[%s20984_s25 + $0x30c] sm:$0xff] }
 0x3bf   : > { %19605 = vmatprep.mubr.msk.f32.mxu1 %vm241_vm1, %v12942_v33  ;;  %v24243_v33 = vld [vmem:[%s20984_s25 + $0x41c] sm:$0xff] }
 0x3c1   : > { %19129 = vmatmul.mubr.msk.f32.gmra.mrb[62].mxu0 %vm241_vm1, %v9220_v5  ;;  %v24246_v5 = vld [vmem:[%s20984_s25 + $0x314] sm:$0xff] }
 0x3c2   : > { %19606 = vmatmul.mubr.msk.f32.gmra.mrb[62].mxu1 %vm241_vm1, %v12943_v59  ;;  %19131 = vmatprep.mubr.msk.f32.mxu0 %vm241_vm1, %v9221_v32  ;;  %v24249_v59 = vld [vmem:[%s20984_s25 + $0x424] sm:$0xff]  ;;  %v24258_v32 = vld [vmem:[%s20984_s25 + $0x31c] sm:$0xff] }
 0x3c3   : > { %19608 = vmatprep.mubr.msk.f32.mxu1 %vm241_vm1, %v12944_v28  ;;  %v24263_v28 = vld [vmem:[%s20984_s25 + $0x42c] sm:$0xff] }
 0x3c5   : > { %19132 = vmatmul.mubr.msk.f32.gmra.mrb[64].mxu0 %vm241_vm1, %v9222_v56  ;;  %v24266_v56 = vld [vmem:[%s20984_s25 + $0x324] sm:$0xff] }
 0x3c6   : > { %19609 = vmatmul.mubr.msk.f32.gmra.mrb[64].mxu1 %vm241_vm1, %v12945_v16  ;;  %19134 = vmatprep.mubr.msk.f32.mxu0 %vm241_vm1, %v9223_v9  ;;  %v24269_v16 = vld [vmem:[%s20984_s25 + $0x434] sm:$0xff]  ;;  %v24278_v9 = vld [vmem:[%s20984_s25 + $0x32c] sm:$0xff] }
 0x3c7   : > { %19611 = vmatprep.mubr.msk.f32.mxu1 %vm241_vm1, %v12946_v15  ;;  %v24283_v15 = vld [vmem:[%s20984_s25 + $0x43c] sm:$0xff] }
 0x3c9   : > { %19135 = vmatmul.mubr.msk.f32.gmra.mrb[66].mxu0 %vm241_vm1, %v9224_v38  ;;  %v24286_v38 = vld [vmem:[%s20984_s25 + $0x334] sm:$0xff] }
 0x3ca   : > { %19612 = vmatmul.mubr.msk.f32.gmra.mrb[66].mxu1 %vm241_vm1, %v12947_v35  ;;  %19139 = vmatprep.mubr.msk.f32.mxu0 %vm241_vm1, %v9600_v45  ;;  %v24289_v35 = vld [vmem:[%s20984_s25 + $0x444] sm:$0xff]  ;;  %v24298_v45 = vld [vmem:[%s20984_s25 + $0x33c] sm:$0xff] }
 0x3cb   : > { %19616 = vmatprep.mubr.msk.f32.mxu1 %vm241_vm1, %v23983_v21 }
 0x3cd   : > { %19140 = vmatmul.mubr.msk.f32.vlgmr.msra.gmra.mrb[34].mxu0 %vm241_vm1, %v9601_v44  ;;  %v24303_v44 = vld [vmem:[%s20984_s25 + $0x44c] sm:$0xff] }
 0x3ce   : > { %19191 = vmatpush3.msk.msra.mxu0 %vm344_vm0, %v23841_v0  ;;  %19617 = vmatmul.mubr.msk.f32.vlgmr.msra.gmra.mrb[34].mxu1 %vm241_vm1, %v23992_v48  ;;  %v24021_v0 = vld [vmem:[%s20984_s25 + $0x264] sm:$0xff]  ;;  %v24338_v48 = vld [vmem:[%s24946_s1 + $0x18] sm:$0x7] }
 0x3cf   : > { %19668 = vmatpush3.msk.msra.mxu1 %vm344_vm0, %v23850_v40  ;;  %19142 = vmatprep.mubr.msk.f32.mxu0 %vm241_vm1, %v9602_v8  ;;  %v24038_v40 = vld [vmem:[%s20984_s25 + $0x26c] sm:$0xff]  ;;  %v24306_v8 = vld [vmem:[%s20984_s25 + $0x344] sm:$0xff] }
 0x3d0   : > { %19619 = vmatprep.mubr.msk.f32.mxu1 %vm241_vm1, %v23997_v49  ;;  %19243 = vmatprep.subr.msk.mxu0 %vm344_vm0, %v24002_v58  ;;  %v24323_v49 = vld [vmem:[%s20984_s25 + $0x45c] sm:$0xff] }
 0x3d1   : > { %19143 = vmatmul.mubr.msk.f32.gmra.mrb[36].mxu0 %vm241_vm1, %v9603_v50  ;;  %19720 = vmatprep.subr.msk.mxu1 %vm344_vm0, %v24012_v61  ;;  %v24309_v50 = vld [vmem:[%s20984_s25 + $0x454] sm:$0xff] }
 0x3d2   : > { %19620 = vmatmul.mubr.msk.f32.gmra.mrb[36].mxu1 %vm241_vm1, %v24018_v46  ;;  %19145 = vmatprep.mubr.msk.f32.mxu0 %vm241_vm1, %v24021_v0  ;;  %v24318_v46 = vld [vmem:[%s20984_s25 + $0x34c] sm:$0xff] }
 0x3d3   : > { %19622 = vmatprep.mubr.msk.f32.mxu1 %vm241_vm1, %v24026_v51 }
 0x3d5   : > { %19146 = vmatmul.mubr.msk.f32.gmra.mrb[38].mxu0 %vm241_vm1, %v24038_v40 }
 0x3d6   : > { %19623 = vmatmul.mubr.msk.f32.gmra.mrb[38].mxu1 %vm241_vm1, %v24043_v54  ;;  %19148 = vmatprep.mubr.msk.f32.mxu0 %vm241_vm1, %v24046_v55 }
 0x3d7   : > { %19625 = vmatprep.mubr.msk.f32.mxu1 %vm241_vm1, %v24049_v4 }
 0x3d9   : > { %19149 = vmatmul.mubr.msk.f32.gmra.mrb[40].mxu0 %vm241_vm1, %v24058_v13 }
 0x3da   : > { %19626 = vmatmul.mubr.msk.f32.gmra.mrb[40].mxu1 %vm241_vm1, %v24063_v18  ;;  %19151 = vmatprep.mubr.msk.f32.mxu0 %vm241_vm1, %v24066_v29 }
 0x3db   : > { %19628 = vmatprep.mubr.msk.f32.mxu1 %vm241_vm1, %v24069_v12 }
 0x3dd   : > { %19152 = vmatmul.mubr.msk.f32.gmra.mrb[42].mxu0 %vm241_vm1, %v24078_v1 }
 0x3de   : > { %19629 = vmatmul.mubr.msk.f32.gmra.mrb[42].mxu1 %vm241_vm1, %v24083_v27  ;;  %19154 = vmatprep.mubr.msk.f32.mxu0 %vm241_vm1, %v24086_v60 }
 0x3df   : > { %19631 = vmatprep.mubr.msk.f32.mxu1 %vm241_vm1, %v24089_v34 }
 0x3e1   : > { %19155 = vmatmul.mubr.msk.f32.gmra.mrb[44].mxu0 %vm241_vm1, %v24098_v17 }
 0x3e2   : > { %19632 = vmatmul.mubr.msk.f32.gmra.mrb[44].mxu1 %vm241_vm1, %v24103_v24  ;;  %19157 = vmatprep.mubr.msk.f32.mxu0 %vm241_vm1, %v24106_v47 }
 0x3e3   : > { %19634 = vmatprep.mubr.msk.f32.mxu1 %vm241_vm1, %v24109_v36 }
 0x3e5   : > { %19158 = vmatmul.mubr.msk.f32.gmra.mrb[46].mxu0 %vm241_vm1, %v24118_v57 }
 0x3e6   : > { %19635 = vmatmul.mubr.msk.f32.gmra.mrb[46].mxu1 %vm241_vm1, %v24123_v53  ;;  %19160 = vmatprep.mubr.msk.f32.mxu0 %vm241_vm1, %v24126_v2 }
 0x3e7   : > { %19637 = vmatprep.mubr.msk.f32.mxu1 %vm241_vm1, %v24129_v10 }
 0x3e9   : > { %19161 = vmatmul.mubr.msk.f32.gmra.mrb[48].mxu0 %vm241_vm1, %v24138_v42 }
 0x3ea   : > { %19638 = vmatmul.mubr.msk.f32.gmra.mrb[48].mxu1 %vm241_vm1, %v24143_v26  ;;  %19163 = vmatprep.mubr.msk.f32.mxu0 %vm241_vm1, %v24146_v25 }
 0x3eb   : > { %19640 = vmatprep.mubr.msk.f32.mxu1 %vm241_vm1, %v24149_v7 }
 0x3ed   : > { %19164 = vmatmul.mubr.msk.f32.gmra.mrb[50].mxu0 %vm241_vm1, %v24158_v23 }
 0x3ee   : > { %19641 = vmatmul.mubr.msk.f32.gmra.mrb[50].mxu1 %vm241_vm1, %v24163_v37  ;;  %19166 = vmatprep.mubr.msk.f32.mxu0 %vm241_vm1, %v24166_v62 }
 0x3ef   : > { %19643 = vmatprep.mubr.msk.f32.mxu1 %vm241_vm1, %v24169_v11 }
 0x3f1   : > { %19167 = vmatmul.mubr.msk.f32.gmra.mrb[52].mxu0 %vm241_vm1, %v24178_v6 }
 0x3f2   : > { %19644 = vmatmul.mubr.msk.f32.gmra.mrb[52].mxu1 %vm241_vm1, %v24183_v19  ;;  %19169 = vmatprep.mubr.msk.f32.mxu0 %vm241_vm1, %v24186_v30 }
 0x3f3   : > { %19646 = vmatprep.mubr.msk.f32.mxu1 %vm241_vm1, %v24189_v20 }
 0x3f5   : > { %19170 = vmatmul.mubr.msk.f32.gmra.mrb[54].mxu0 %vm241_vm1, %v24198_v52 }
 0x3f6   : > { %19647 = vmatmul.mubr.msk.f32.gmra.mrb[54].mxu1 %vm241_vm1, %v24203_v43  ;;  %19172 = vmatprep.mubr.msk.f32.mxu0 %vm241_vm1, %v24206_v31 }
 0x3f7   : > { %19649 = vmatprep.mubr.msk.f32.mxu1 %vm241_vm1, %v24209_v22 }
 0x3f9   : > { %19173 = vmatmul.mubr.msk.f32.gmra.mrb[56].mxu0 %vm241_vm1, %v24218_v39 }
 0x3fa   : > { %19650 = vmatmul.mubr.msk.f32.gmra.mrb[56].mxu1 %vm241_vm1, %v24223_v14  ;;  %19175 = vmatprep.mubr.msk.f32.mxu0 %vm241_vm1, %v24226_v41 }
 0x3fb   : > { %19652 = vmatprep.mubr.msk.f32.mxu1 %vm241_vm1, %v24229_v63 }
 0x3fd   : > { %19176 = vmatmul.mubr.msk.f32.gmra.mrb[58].mxu0 %vm241_vm1, %v24238_v3 }
 0x3fe   : > { %19653 = vmatmul.mubr.msk.f32.gmra.mrb[58].mxu1 %vm241_vm1, %v24243_v33  ;;  %19178 = vmatprep.mubr.msk.f32.mxu0 %vm241_vm1, %v24246_v5 }
 0x3ff   : > { %19655 = vmatprep.mubr.msk.f32.mxu1 %vm241_vm1, %v24249_v59 }
 0x401   : > { %19179 = vmatmul.mubr.msk.f32.gmra.mrb[60].mxu0 %vm241_vm1, %v24258_v32 }
 0x402   : > { %19656 = vmatmul.mubr.msk.f32.gmra.mrb[60].mxu1 %vm241_vm1, %v24263_v28  ;;  %19181 = vmatprep.mubr.msk.f32.mxu0 %vm241_vm1, %v24266_v56 }
 0x403   : > { %19658 = vmatprep.mubr.msk.f32.mxu1 %vm241_vm1, %v24269_v16 }
 0x405   : > { %19182 = vmatmul.mubr.msk.f32.gmra.mrb[62].mxu0 %vm241_vm1, %v24278_v9 }
 0x406   : > { %19659 = vmatmul.mubr.msk.f32.gmra.mrb[62].mxu1 %vm241_vm1, %v24283_v15  ;;  %19184 = vmatprep.mubr.msk.f32.mxu0 %vm241_vm1, %v24286_v38 }
 0x407   : > { %19661 = vmatprep.mubr.msk.f32.mxu1 %vm241_vm1, %v24289_v35 }
 0x409   : > { %19185 = vmatmul.mubr.msk.f32.gmra.mrb[64].mxu0 %vm241_vm1, %v24298_v45 }
 0x40a   : > { %19662 = vmatmul.mubr.msk.f32.gmra.mrb[64].mxu1 %vm241_vm1, %v24303_v44  ;;  %19187 = vmatprep.mubr.msk.f32.mxu0 %vm241_vm1, %v24306_v8 }
 0x40b   : > { %19664 = vmatprep.mubr.msk.f32.mxu1 %vm241_vm1, %v24309_v50 }
 0x40d   : > { %19188 = vmatmul.mubr.msk.f32.gmra.mrb[66].mxu0 %vm241_vm1, %v24318_v46 }
 0x40e   : > { %19665 = vmatmul.mubr.msk.f32.gmra.mrb[66].mxu1 %vm241_vm1, %v24323_v49  ;;  %19192 = vmatprep.mubr.msk.f32.mxu0 %vm241_vm1, %v24021_v0  ;;  %v24347_v0 = vld [vmem:[%s24946_s1 + $0x18] sm:$0x7] }
 0x40f   : > { %19669 = vmatprep.mubr.msk.f32.mxu1 %vm241_vm1, %v24026_v51  ;;  %v13764_v51 = vld [vmem:[%s20984_s25 + $0x474] sm:$0xff] }
 0x411   : > { %19193 = vmatmul.mubr.msk.f32.vlgmr.msra.gmra.mrb[34].mxu0 %vm241_vm1, %v24038_v40  ;;  %v25062_v40 = vld [vmem:[#allocation3_spill] sm:$0xff] }
 0x412   : > { %19244 = vmatpush3.msk.msra.mxu0 %vm344_vm0, %v24002_v58  ;;  %19670 = vmatmul.mubr.msk.f32.vlgmr.msra.gmra.mrb[34].mxu1 %vm241_vm1, %v24043_v54  ;;  %v13762_v58 = vld [vmem:[%s20984_s25 + $0x464] sm:$0xff]  ;;  %v14141_v54 = vld [vmem:[%s20984_s25 + $0x375] sm:$0xff] }
 0x413   : > { %19721 = vmatpush3.msk.msra.mxu1 %vm344_vm0, %v24012_v61  ;;  %19195 = vmatprep.mubr.msk.f32.mxu0 %vm241_vm1, %v24046_v55  ;;  %v13763_v61 = vld [vmem:[%s20984_s25 + $0x46c] sm:$0xff] }
 0x414   : > { %19672 = vmatprep.mubr.msk.f32.mxu1 %vm241_vm1, %v24049_v4  ;;  %19296 = vmatprep.subr.msk.mxu0 %vm344_vm0, %v24338_v48  ;;  %v25064_v55 = vld [vmem:[#allocation5_spill] sm:$0xff] }
 0x415   : > { %19196 = vmatmul.mubr.msk.f32.gmra.mrb[36].mxu0 %vm241_vm1, %v24058_v13  ;;  %19773 = vmatprep.subr.msk.mxu1 %vm344_vm0, %v24347_v0  ;;  %v10419_v4 = vld [vmem:[%s20984_s25 + $0x26d] sm:$0xff]  ;;  %v14142_v13 = vld [vmem:[%s20984_s25 + $0x37d] sm:$0xff] }
 0x416   : > { %19673 = vmatmul.mubr.msk.f32.gmra.mrb[36].mxu1 %vm241_vm1, %v24063_v18  ;;  %19198 = vmatprep.mubr.msk.f32.mxu0 %vm241_vm1, %v24066_v29  ;;  %v10420_v18 = vld [vmem:[%s20984_s25 + $0x275] sm:$0xff]  ;;  %v14143_v29 = vld [vmem:[%s20984_s25 + $0x385] sm:$0xff] }
 0x417   : > { %19675 = vmatprep.mubr.msk.f32.mxu1 %vm241_vm1, %v24069_v12  ;;  %v10421_v12 = vld [vmem:[%s20984_s25 + $0x27d] sm:$0xff] }
 0x419   : > { %19199 = vmatmul.mubr.msk.f32.gmra.mrb[38].mxu0 %vm241_vm1, %v24078_v1  ;;  %v14144_v1 = vld [vmem:[%s20984_s25 + $0x38d] sm:$0xff] }
 0x41a   : > { %19676 = vmatmul.mubr.msk.f32.gmra.mrb[38].mxu1 %vm241_vm1, %v24083_v27  ;;  %19201 = vmatprep.mubr.msk.f32.mxu0 %vm241_vm1, %v24086_v60  ;;  %v10422_v27 = vld [vmem:[%s20984_s25 + $0x285] sm:$0xff]  ;;  %v14145_v60 = vld [vmem:[%s20984_s25 + $0x395] sm:$0xff] }
 0x41b   : > { %19678 = vmatprep.mubr.msk.f32.mxu1 %vm241_vm1, %v24089_v34  ;;  %v14146_v34 = vld [vmem:[%s20984_s25 + $0x39d] sm:$0xff] }
 0x41d   : > { %19202 = vmatmul.mubr.msk.f32.gmra.mrb[40].mxu0 %vm241_vm1, %v24098_v17  ;;  %v10424_v17 = vld [vmem:[%s20984_s25 + $0x295] sm:$0xff] }
 0x41e   : > { %19679 = vmatmul.mubr.msk.f32.gmra.mrb[40].mxu1 %vm241_vm1, %v24103_v24  ;;  %19204 = vmatprep.mubr.msk.f32.mxu0 %vm241_vm1, %v24106_v47  ;;  %v14147_v24 = vld [vmem:[%s20984_s25 + $0x3a5] sm:$0xff]  ;;  %v10425_v47 = vld [vmem:[%s20984_s25 + $0x29d] sm:$0xff] }
 0x41f   : > { %19681 = vmatprep.mubr.msk.f32.mxu1 %vm241_vm1, %v24109_v36  ;;  %v14148_v36 = vld [vmem:[%s20984_s25 + $0x3ad] sm:$0xff] }
 0x421   : > { %19205 = vmatmul.mubr.msk.f32.gmra.mrb[42].mxu0 %vm241_vm1, %v24118_v57  ;;  %v10426_v57 = vld [vmem:[%s20984_s25 + $0x2a5] sm:$0xff] }
 0x422   : > { %19682 = vmatmul.mubr.msk.f32.gmra.mrb[42].mxu1 %vm241_vm1, %v24123_v53  ;;  %19207 = vmatprep.mubr.msk.f32.mxu0 %vm241_vm1, %v24126_v2  ;;  %v14149_v53 = vld [vmem:[%s20984_s25 + $0x3b5] sm:$0xff]  ;;  %v10427_v2 = vld [vmem:[%s20984_s25 + $0x2ad] sm:$0xff] }
 0x423   : > { %19684 = vmatprep.mubr.msk.f32.mxu1 %vm241_vm1, %v24129_v10  ;;  %v14150_v10 = vld [vmem:[%s20984_s25 + $0x3bd] sm:$0xff] }
 0x425   : > { %19208 = vmatmul.mubr.msk.f32.gmra.mrb[44].mxu0 %vm241_vm1, %v24138_v42  ;;  %v10428_v42 = vld [vmem:[%s20984_s25 + $0x2b5] sm:$0xff] }
 0x426   : > { %19685 = vmatmul.mubr.msk.f32.gmra.mrb[44].mxu1 %vm241_vm1, %v24143_v26  ;;  %19210 = vmatprep.mubr.msk.f32.mxu0 %vm241_vm1, %v24146_v25  ;;  %v14151_v26 = vld [vmem:[%s20984_s25 + $0x3c5] sm:$0xff]  ;;  %v10429_v25 = vld [vmem:[%s20984_s25 + $0x2bd] sm:$0xff] }
 0x427   : > { %19687 = vmatprep.mubr.msk.f32.mxu1 %vm241_vm1, %v24149_v7  ;;  %v14152_v7 = vld [vmem:[%s20984_s25 + $0x3cd] sm:$0xff] }
 0x429   : > { %19211 = vmatmul.mubr.msk.f32.gmra.mrb[46].mxu0 %vm241_vm1, %v24158_v23  ;;  %v10430_v23 = vld [vmem:[%s20984_s25 + $0x2c5] sm:$0xff] }
 0x42a   : > { %19688 = vmatmul.mubr.msk.f32.gmra.mrb[46].mxu1 %vm241_vm1, %v24163_v37  ;;  %19213 = vmatprep.mubr.msk.f32.mxu0 %vm241_vm1, %v24166_v62  ;;  %v14153_v37 = vld [vmem:[%s20984_s25 + $0x3d5] sm:$0xff]  ;;  %v10431_v62 = vld [vmem:[%s20984_s25 + $0x2cd] sm:$0xff] }
 0x42b   : > { %19690 = vmatprep.mubr.msk.f32.mxu1 %vm241_vm1, %v24169_v11  ;;  %v14154_v11 = vld [vmem:[%s20984_s25 + $0x3dd] sm:$0xff] }
 0x42d   : > { %19214 = vmatmul.mubr.msk.f32.gmra.mrb[48].mxu0 %vm241_vm1, %v24178_v6  ;;  %v10432_v6 = vld [vmem:[%s20984_s25 + $0x2d5] sm:$0xff] }
 0x42e   : > { %19691 = vmatmul.mubr.msk.f32.gmra.mrb[48].mxu1 %vm241_vm1, %v24183_v19  ;;  %19216 = vmatprep.mubr.msk.f32.mxu0 %vm241_vm1, %v24186_v30  ;;  %v14155_v19 = vld [vmem:[%s20984_s25 + $0x3e5] sm:$0xff]  ;;  %v10433_v30 = vld [vmem:[%s20984_s25 + $0x2dd] sm:$0xff] }
 0x42f   : > { %19693 = vmatprep.mubr.msk.f32.mxu1 %vm241_vm1, %v24189_v20  ;;  %v14156_v20 = vld [vmem:[%s20984_s25 + $0x3ed] sm:$0xff] }
 0x431   : > { %19217 = vmatmul.mubr.msk.f32.gmra.mrb[50].mxu0 %vm241_vm1, %v24198_v52  ;;  %v10434_v52 = vld [vmem:[%s20984_s25 + $0x2e5] sm:$0xff] }
 0x432   : > { %19694 = vmatmul.mubr.msk.f32.gmra.mrb[50].mxu1 %vm241_vm1, %v24203_v43  ;;  %19219 = vmatprep.mubr.msk.f32.mxu0 %vm241_vm1, %v24206_v31  ;;  %v14157_v43 = vld [vmem:[%s20984_s25 + $0x3f5] sm:$0xff]  ;;  %v10435_v31 = vld [vmem:[%s20984_s25 + $0x2ed] sm:$0xff] }
 0x433   : > { %19696 = vmatprep.mubr.msk.f32.mxu1 %vm241_vm1, %v24209_v22  ;;  %v14158_v22 = vld [vmem:[%s20984_s25 + $0x3fd] sm:$0xff] }
 0x435   : > { %19220 = vmatmul.mubr.msk.f32.gmra.mrb[52].mxu0 %vm241_vm1, %v24218_v39  ;;  %v10436_v39 = vld [vmem:[%s20984_s25 + $0x2f5] sm:$0xff] }
 0x436   : > { %19697 = vmatmul.mubr.msk.f32.gmra.mrb[52].mxu1 %vm241_vm1, %v24223_v14  ;;  %19222 = vmatprep.mubr.msk.f32.mxu0 %vm241_vm1, %v24226_v41  ;;  %v14159_v14 = vld [vmem:[%s20984_s25 + $0x405] sm:$0xff]  ;;  %v10437_v41 = vld [vmem:[%s20984_s25 + $0x2fd] sm:$0xff] }
 0x437   : > { %19699 = vmatprep.mubr.msk.f32.mxu1 %vm241_vm1, %v24229_v63  ;;  %v14160_v63 = vld [vmem:[%s20984_s25 + $0x40d] sm:$0xff] }
 0x439   : > { %19223 = vmatmul.mubr.msk.f32.gmra.mrb[54].mxu0 %vm241_vm1, %v24238_v3  ;;  %v10438_v3 = vld [vmem:[%s20984_s25 + $0x305] sm:$0xff] }
 0x43a   : > { %19700 = vmatmul.mubr.msk.f32.gmra.mrb[54].mxu1 %vm241_vm1, %v24243_v33  ;;  %19225 = vmatprep.mubr.msk.f32.mxu0 %vm241_vm1, %v24246_v5  ;;  %v14161_v33 = vld [vmem:[%s20984_s25 + $0x415] sm:$0xff]  ;;  %v10439_v5 = vld [vmem:[%s20984_s25 + $0x30d] sm:$0xff] }
 0x43b   : > { %19702 = vmatprep.mubr.msk.f32.mxu1 %vm241_vm1, %v24249_v59  ;;  %v14162_v59 = vld [vmem:[%s20984_s25 + $0x41d] sm:$0xff] }
 0x43d   : > { %19226 = vmatmul.mubr.msk.f32.gmra.mrb[56].mxu0 %vm241_vm1, %v24258_v32  ;;  %v10440_v32 = vld [vmem:[%s20984_s25 + $0x315] sm:$0xff] }
 0x43e   : > { %19703 = vmatmul.mubr.msk.f32.gmra.mrb[56].mxu1 %vm241_vm1, %v24263_v28  ;;  %19228 = vmatprep.mubr.msk.f32.mxu0 %vm241_vm1, %v24266_v56  ;;  %v14163_v28 = vld [vmem:[%s20984_s25 + $0x425] sm:$0xff]  ;;  %v10441_v56 = vld [vmem:[%s20984_s25 + $0x31d] sm:$0xff] }
 0x43f   : > { %19705 = vmatprep.mubr.msk.f32.mxu1 %vm241_vm1, %v24269_v16  ;;  %v14164_v16 = vld [vmem:[%s20984_s25 + $0x42d] sm:$0xff] }
 0x441   : > { %19229 = vmatmul.mubr.msk.f32.gmra.mrb[58].mxu0 %vm241_vm1, %v24278_v9  ;;  %v10442_v9 = vld [vmem:[%s20984_s25 + $0x325] sm:$0xff] }
 0x442   : > { %19706 = vmatmul.mubr.msk.f32.gmra.mrb[58].mxu1 %vm241_vm1, %v24283_v15  ;;  %19231 = vmatprep.mubr.msk.f32.mxu0 %vm241_vm1, %v24286_v38  ;;  %v14165_v15 = vld [vmem:[%s20984_s25 + $0x435] sm:$0xff]  ;;  %v10443_v38 = vld [vmem:[%s20984_s25 + $0x32d] sm:$0xff] }
 0x443   : > { %19708 = vmatprep.mubr.msk.f32.mxu1 %vm241_vm1, %v24289_v35  ;;  %v14166_v35 = vld [vmem:[%s20984_s25 + $0x43d] sm:$0xff] }
 0x445   : > { %19232 = vmatmul.mubr.msk.f32.gmra.mrb[60].mxu0 %vm241_vm1, %v24298_v45  ;;  %v10444_v45 = vld [vmem:[%s20984_s25 + $0x335] sm:$0xff] }
 0x446   : > { %19709 = vmatmul.mubr.msk.f32.gmra.mrb[60].mxu1 %vm241_vm1, %v24303_v44  ;;  %19234 = vmatprep.mubr.msk.f32.mxu0 %vm241_vm1, %v24306_v8  ;;  %v14167_v44 = vld [vmem:[%s20984_s25 + $0x445] sm:$0xff]  ;;  %v10445_v8 = vld [vmem:[%s20984_s25 + $0x33d] sm:$0xff] }
 0x447   : > { %19711 = vmatprep.mubr.msk.f32.mxu1 %vm241_vm1, %v24309_v50  ;;  %v14168_v50 = vld [vmem:[%s20984_s25 + $0x44d] sm:$0xff] }
 0x449   : > { %19235 = vmatmul.mubr.msk.f32.gmra.mrb[62].mxu0 %vm241_vm1, %v24318_v46  ;;  %v25063_v46 = vld [vmem:[#allocation4_spill] sm:$0xff] }
 0x44a   : > { %19712 = vmatmul.mubr.msk.f32.gmra.mrb[62].mxu1 %vm241_vm1, %v24323_v49  ;;  %19237 = vmatprep.mubr.msk.f32.mxu0 %vm241_vm1, %v23983_v21  ;;  %v13765_v49 = vld [vmem:[%s20984_s25 + $0x47c] sm:$0xff]  ;;  %v10418_v21 = vld [vmem:[%s20984_s25 + $0x265] sm:$0xff] }
 0x44b   : > { %19714 = vmatprep.mubr.msk.f32.mxu1 %vm241_vm1, %v13762_v58  ;;  %v14169_v58 = vld [vmem:[%s20984_s25 + $0x455] sm:$0xff] }
 0x44d   : > { %19238 = vmatmul.mubr.msk.f32.gmra.mrb[64].mxu0 %vm241_vm1, %v25062_v40  ;;  %v10448_v40 = vld [vmem:[%s20984_s25 + $0x355] sm:$0xff] }
 0x44e   : > { %19715 = vmatmul.mubr.msk.f32.gmra.mrb[64].mxu1 %vm241_vm1, %v13763_v61  ;;  %19240 = vmatprep.mubr.msk.f32.mxu0 %vm241_vm1, %v25063_v46  ;;  %v10447_v61 = vld [vmem:[%s20984_s25 + $0x34d] sm:$0xff]  ;;  %v14171_v46 = vld [vmem:[%s20984_s25 + $0x465] sm:$0xff] }
 0x44f   : > { %19717 = vmatprep.mubr.msk.f32.mxu1 %vm241_vm1, %v13764_v51  ;;  %v14170_v51 = vld [vmem:[%s20984_s25 + $0x45d] sm:$0xff] }
 0x451   : > { %19241 = vmatmul.mubr.msk.f32.gmra.mrb[66].mxu0 %vm241_vm1, %v25064_v55  ;;  %v14173_v55 = vld [vmem:[%s20984_s25 + $0x475] sm:$0xff] }
 0x452   : > { %19718 = vmatmul.mubr.msk.f32.gmra.mrb[66].mxu1 %vm241_vm1, %v13765_v49  ;;  %19245 = vmatprep.mubr.msk.f32.mxu0 %vm241_vm1, %v10418_v21  ;;  %v10449_v49 = vld [vmem:[%s20984_s25 + $0x35d] sm:$0xff]  ;;  %v14172_v21 = vld [vmem:[%s20984_s25 + $0x46d] sm:$0xff] }
 0x453   : > { %19722 = vmatprep.mubr.msk.f32.mxu1 %vm241_vm1, %v14141_v54  ;;  %v10450_v54 = vld [vmem:[%s20984_s25 + $0x365] sm:$0xff] }
 0x455   : > { %19246 = vmatmul.mubr.msk.f32.vlgmr.msra.gmra.mrb[34].mxu0 %vm241_vm1, %v10419_v4  ;;  %v10451_v4 = vld [vmem:[%s20984_s25 + $0x36d] sm:$0xff] }
 0x456   : > { %19297 = vmatpush3.msk.msra.mxu0 %vm344_vm0, %v24338_v48  ;;  %19723 = vmatmul.mubr.msk.f32.vlgmr.msra.gmra.mrb[34].mxu1 %vm241_vm1, %v14142_v13  ;;  %v10423_v48 = vld [vmem:[%s20984_s25 + $0x28d] sm:$0xff]  ;;  %v14174_v13 = vld [vmem:[%s20984_s25 + $0x47d] sm:$0xff] }
 0x457   : > { %19774 = vmatpush3.msk.msra.mxu1 %vm344_vm0, %v24347_v0  ;;  %19248 = vmatprep.mubr.msk.f32.mxu0 %vm241_vm1, %v10420_v18  ;;  %v10446_v0 = vld [vmem:[%s20984_s25 + $0x345] sm:$0xff] }
 0x458   : > { %19725 = vmatprep.mubr.msk.f32.mxu1 %vm241_vm1, %v14143_v29  ;;  %v10827_v18 = vld [vmem:[%s20984_s25 + $0x266] sm:$0xff]  ;;  %v14550_v29 = vld [vmem:[%s20984_s25 + $0x376] sm:$0xff] }
 0x459   : > { %19249 = vmatmul.mubr.msk.f32.gmra.mrb[36].mxu0 %vm241_vm1, %v10421_v12  ;;  %v10828_v12 = vld [vmem:[%s20984_s25 + $0x26e] sm:$0xff] }
 0x45a   : > { %19726 = vmatmul.mubr.msk.f32.gmra.mrb[36].mxu1 %vm241_vm1, %v14144_v1  ;;  %19251 = vmatprep.mubr.msk.f32.mxu0 %vm241_vm1, %v10422_v27  ;;  %v14551_v1 = vld [vmem:[%s20984_s25 + $0x37e] sm:$0xff]  ;;  %v10829_v27 = vld [vmem:[%s20984_s25 + $0x276] sm:$0xff] }
 0x45b   : > { %19728 = vmatprep.mubr.msk.f32.mxu1 %vm241_vm1, %v14145_v60  ;;  %v14552_v60 = vld [vmem:[%s20984_s25 + $0x386] sm:$0xff] }
 0x45d   : > { %19252 = vmatmul.mubr.msk.f32.gmra.mrb[38].mxu0 %vm241_vm1, %v10423_v48  ;;  %v10830_v48 = vld [vmem:[%s20984_s25 + $0x27e] sm:$0xff] }
 0x45e   : > { %19729 = vmatmul.mubr.msk.f32.gmra.mrb[38].mxu1 %vm241_vm1, %v14146_v34  ;;  %19254 = vmatprep.mubr.msk.f32.mxu0 %vm241_vm1, %v10424_v17  ;;  %v14553_v34 = vld [vmem:[%s20984_s25 + $0x38e] sm:$0xff]  ;;  %v10831_v17 = vld [vmem:[%s20984_s25 + $0x286] sm:$0xff] }
 0x45f   : > { %19731 = vmatprep.mubr.msk.f32.mxu1 %vm241_vm1, %v14147_v24  ;;  %v14554_v24 = vld [vmem:[%s20984_s25 + $0x396] sm:$0xff] }
 0x461   : > { %19255 = vmatmul.mubr.msk.f32.gmra.mrb[40].mxu0 %vm241_vm1, %v10425_v47  ;;  %v10832_v47 = vld [vmem:[%s20984_s25 + $0x28e] sm:$0xff] }
 0x462   : > { %19732 = vmatmul.mubr.msk.f32.gmra.mrb[40].mxu1 %vm241_vm1, %v14148_v36  ;;  %19257 = vmatprep.mubr.msk.f32.mxu0 %vm241_vm1, %v10426_v57  ;;  %v14555_v36 = vld [vmem:[%s20984_s25 + $0x39e] sm:$0xff]  ;;  %v10833_v57 = vld [vmem:[%s20984_s25 + $0x296] sm:$0xff] }
 0x463   : > { %19734 = vmatprep.mubr.msk.f32.mxu1 %vm241_vm1, %v14149_v53  ;;  %v14556_v53 = vld [vmem:[%s20984_s25 + $0x3a6] sm:$0xff] }
 0x465   : > { %19258 = vmatmul.mubr.msk.f32.gmra.mrb[42].mxu0 %vm241_vm1, %v10427_v2  ;;  %v10834_v2 = vld [vmem:[%s20984_s25 + $0x29e] sm:$0xff] }
 0x466   : > { %19735 = vmatmul.mubr.msk.f32.gmra.mrb[42].mxu1 %vm241_vm1, %v14150_v10  ;;  %19260 = vmatprep.mubr.msk.f32.mxu0 %vm241_vm1, %v10428_v42  ;;  %v14557_v10 = vld [vmem:[%s20984_s25 + $0x3ae] sm:$0xff]  ;;  %v10835_v42 = vld [vmem:[%s20984_s25 + $0x2a6] sm:$0xff] }
 0x467   : > { %19737 = vmatprep.mubr.msk.f32.mxu1 %vm241_vm1, %v14151_v26  ;;  %v14558_v26 = vld [vmem:[%s20984_s25 + $0x3b6] sm:$0xff] }
 0x469   : > { %19261 = vmatmul.mubr.msk.f32.gmra.mrb[44].mxu0 %vm241_vm1, %v10429_v25  ;;  %v10836_v25 = vld [vmem:[%s20984_s25 + $0x2ae] sm:$0xff] }
 0x46a   : > { %19738 = vmatmul.mubr.msk.f32.gmra.mrb[44].mxu1 %vm241_vm1, %v14152_v7  ;;  %19263 = vmatprep.mubr.msk.f32.mxu0 %vm241_vm1, %v10430_v23  ;;  %v14559_v7 = vld [vmem:[%s20984_s25 + $0x3be] sm:$0xff]  ;;  %v10837_v23 = vld [vmem:[%s20984_s25 + $0x2b6] sm:$0xff] }
 0x46b   : > { %19740 = vmatprep.mubr.msk.f32.mxu1 %vm241_vm1, %v14153_v37  ;;  %v14560_v37 = vld [vmem:[%s20984_s25 + $0x3c6] sm:$0xff] }
 0x46d   : > { %19264 = vmatmul.mubr.msk.f32.gmra.mrb[46].mxu0 %vm241_vm1, %v10431_v62  ;;  %v10838_v62 = vld [vmem:[%s20984_s25 + $0x2be] sm:$0xff] }
 0x46e   : > { %19741 = vmatmul.mubr.msk.f32.gmra.mrb[46].mxu1 %vm241_vm1, %v14154_v11  ;;  %19266 = vmatprep.mubr.msk.f32.mxu0 %vm241_vm1, %v10432_v6  ;;  %v14561_v11 = vld [vmem:[%s20984_s25 + $0x3ce] sm:$0xff]  ;;  %v10839_v6 = vld [vmem:[%s20984_s25 + $0x2c6] sm:$0xff] }
 0x46f   : > { %19743 = vmatprep.mubr.msk.f32.mxu1 %vm241_vm1, %v14155_v19  ;;  %v14562_v19 = vld [vmem:[%s20984_s25 + $0x3d6] sm:$0xff] }
 0x471   : > { %19267 = vmatmul.mubr.msk.f32.gmra.mrb[48].mxu0 %vm241_vm1, %v10433_v30  ;;  %v10840_v30 = vld [vmem:[%s20984_s25 + $0x2ce] sm:$0xff] }
 0x472   : > { %19744 = vmatmul.mubr.msk.f32.gmra.mrb[48].mxu1 %vm241_vm1, %v14156_v20  ;;  %19269 = vmatprep.mubr.msk.f32.mxu0 %vm241_vm1, %v10434_v52  ;;  %v14563_v20 = vld [vmem:[%s20984_s25 + $0x3de] sm:$0xff]  ;;  %v10841_v52 = vld [vmem:[%s20984_s25 + $0x2d6] sm:$0xff] }
 0x473   : > { %19746 = vmatprep.mubr.msk.f32.mxu1 %vm241_vm1, %v14157_v43  ;;  %v14564_v43 = vld [vmem:[%s20984_s25 + $0x3e6] sm:$0xff] }
 0x475   : > { %19270 = vmatmul.mubr.msk.f32.gmra.mrb[50].mxu0 %vm241_vm1, %v10435_v31  ;;  %v10842_v31 = vld [vmem:[%s20984_s25 + $0x2de] sm:$0xff] }
 0x476   : > { %19747 = vmatmul.mubr.msk.f32.gmra.mrb[50].mxu1 %vm241_vm1, %v14158_v22  ;;  %19272 = vmatprep.mubr.msk.f32.mxu0 %vm241_vm1, %v10436_v39  ;;  %v14565_v22 = vld [vmem:[%s20984_s25 + $0x3ee] sm:$0xff]  ;;  %v10843_v39 = vld [vmem:[%s20984_s25 + $0x2e6] sm:$0xff] }
 0x477   : > { %19749 = vmatprep.mubr.msk.f32.mxu1 %vm241_vm1, %v14159_v14  ;;  %v14566_v14 = vld [vmem:[%s20984_s25 + $0x3f6] sm:$0xff] }
 0x479   : > { %19273 = vmatmul.mubr.msk.f32.gmra.mrb[52].mxu0 %vm241_vm1, %v10437_v41  ;;  %v10844_v41 = vld [vmem:[%s20984_s25 + $0x2ee] sm:$0xff] }
 0x47a   : > { %19750 = vmatmul.mubr.msk.f32.gmra.mrb[52].mxu1 %vm241_vm1, %v14160_v63  ;;  %19275 = vmatprep.mubr.msk.f32.mxu0 %vm241_vm1, %v10438_v3  ;;  %v14567_v63 = vld [vmem:[%s20984_s25 + $0x3fe] sm:$0xff]  ;;  %v10845_v3 = vld [vmem:[%s20984_s25 + $0x2f6] sm:$0xff] }
 0x47b   : > { %19752 = vmatprep.mubr.msk.f32.mxu1 %vm241_vm1, %v14161_v33  ;;  %v14568_v33 = vld [vmem:[%s20984_s25 + $0x406] sm:$0xff] }
 0x47d   : > { %19276 = vmatmul.mubr.msk.f32.gmra.mrb[54].mxu0 %vm241_vm1, %v10439_v5  ;;  %v10846_v5 = vld [vmem:[%s20984_s25 + $0x2fe] sm:$0xff] }
 0x47e   : > { %19753 = vmatmul.mubr.msk.f32.gmra.mrb[54].mxu1 %vm241_vm1, %v14162_v59  ;;  %19278 = vmatprep.mubr.msk.f32.mxu0 %vm241_vm1, %v10440_v32  ;;  %v14569_v59 = vld [vmem:[%s20984_s25 + $0x40e] sm:$0xff]  ;;  %v10847_v32 = vld [vmem:[%s20984_s25 + $0x306] sm:$0xff] }
 0x47f   : > { %19755 = vmatprep.mubr.msk.f32.mxu1 %vm241_vm1, %v14163_v28  ;;  %v14570_v28 = vld [vmem:[%s20984_s25 + $0x416] sm:$0xff] }
 0x481   : > { %19279 = vmatmul.mubr.msk.f32.gmra.mrb[56].mxu0 %vm241_vm1, %v10441_v56  ;;  %v10848_v56 = vld [vmem:[%s20984_s25 + $0x30e] sm:$0xff] }
 0x482   : > { %19756 = vmatmul.mubr.msk.f32.gmra.mrb[56].mxu1 %vm241_vm1, %v14164_v16  ;;  %19281 = vmatprep.mubr.msk.f32.mxu0 %vm241_vm1, %v10442_v9  ;;  %v14571_v16 = vld [vmem:[%s20984_s25 + $0x41e] sm:$0xff]  ;;  %v10849_v9 = vld [vmem:[%s20984_s25 + $0x316] sm:$0xff] }
 0x483   : > { %19758 = vmatprep.mubr.msk.f32.mxu1 %vm241_vm1, %v14165_v15  ;;  %v14572_v15 = vld [vmem:[%s20984_s25 + $0x426] sm:$0xff] }
 0x485   : > { %19282 = vmatmul.mubr.msk.f32.gmra.mrb[58].mxu0 %vm241_vm1, %v10443_v38  ;;  %v10850_v38 = vld [vmem:[%s20984_s25 + $0x31e] sm:$0xff] }
 0x486   : > { %19759 = vmatmul.mubr.msk.f32.gmra.mrb[58].mxu1 %vm241_vm1, %v14166_v35  ;;  %19284 = vmatprep.mubr.msk.f32.mxu0 %vm241_vm1, %v10444_v45  ;;  %v14573_v35 = vld [vmem:[%s20984_s25 + $0x42e] sm:$0xff]  ;;  %v10851_v45 = vld [vmem:[%s20984_s25 + $0x326] sm:$0xff] }
 0x487   : > { %19761 = vmatprep.mubr.msk.f32.mxu1 %vm241_vm1, %v14167_v44  ;;  %v14574_v44 = vld [vmem:[%s20984_s25 + $0x436] sm:$0xff] }
 0x489   : > { %19285 = vmatmul.mubr.msk.f32.gmra.mrb[60].mxu0 %vm241_vm1, %v10445_v8  ;;  %v10852_v8 = vld [vmem:[%s20984_s25 + $0x32e] sm:$0xff] }
 0x48a   : > { %19762 = vmatmul.mubr.msk.f32.gmra.mrb[60].mxu1 %vm241_vm1, %v14168_v50  ;;  %19287 = vmatprep.mubr.msk.f32.mxu0 %vm241_vm1, %v10446_v0  ;;  %v14575_v50 = vld [vmem:[%s20984_s25 + $0x43e] sm:$0xff]  ;;  %v10853_v0 = vld [vmem:[%s20984_s25 + $0x336] sm:$0xff] }
 0x48b   : > { %19764 = vmatprep.mubr.msk.f32.mxu1 %vm241_vm1, %v14169_v58  ;;  %v14576_v58 = vld [vmem:[%s20984_s25 + $0x446] sm:$0xff] }
 0x48d   : > { %19288 = vmatmul.mubr.msk.f32.gmra.mrb[62].mxu0 %vm241_vm1, %v10447_v61  ;;  %v10854_v61 = vld [vmem:[%s20984_s25 + $0x33e] sm:$0xff] }
 0x48e   : > { %19765 = vmatmul.mubr.msk.f32.gmra.mrb[62].mxu1 %vm241_vm1, %v14170_v51  ;;  %19290 = vmatprep.mubr.msk.f32.mxu0 %vm241_vm1, %v10448_v40  ;;  %v14577_v51 = vld [vmem:[%s20984_s25 + $0x44e] sm:$0xff]  ;;  %v10855_v40 = vld [vmem:[%s20984_s25 + $0x346] sm:$0xff] }
 0x48f   : > { %19767 = vmatprep.mubr.msk.f32.mxu1 %vm241_vm1, %v14171_v46  ;;  %v14578_v46 = vld [vmem:[%s20984_s25 + $0x456] sm:$0xff] }
 0x491   : > { %19291 = vmatmul.mubr.msk.f32.gmra.mrb[64].mxu0 %vm241_vm1, %v10449_v49  ;;  %v10856_v49 = vld [vmem:[%s20984_s25 + $0x34e] sm:$0xff] }
 0x492   : > { %19768 = vmatmul.mubr.msk.f32.gmra.mrb[64].mxu1 %vm241_vm1, %v14172_v21  ;;  %19293 = vmatprep.mubr.msk.f32.mxu0 %vm241_vm1, %v10450_v54  ;;  %v14579_v21 = vld [vmem:[%s20984_s25 + $0x45e] sm:$0xff]  ;;  %v10857_v54 = vld [vmem:[%s20984_s25 + $0x356] sm:$0xff] }
 0x493   : > { %19770 = vmatprep.mubr.msk.f32.mxu1 %vm241_vm1, %v14173_v55  ;;  %v14580_v55 = vld [vmem:[%s20984_s25 + $0x466] sm:$0xff] }
 0x495   : > { %19294 = vmatmul.mubr.msk.f32.gmra.mrb[66].mxu0 %vm241_vm1, %v10451_v4  ;;  %v10858_v4 = vld [vmem:[%s20984_s25 + $0x35e] sm:$0xff] }
 0x496   : > { %19771 = vmatmul.mubr.msk.f32.gmra.mrb[66].mxu1 %vm241_vm1, %v14174_v13  ;;  %19298 = vmatprep.mubr.msk.f32.mxu0 %vm241_vm1, %v10827_v18  ;;  %v14581_v13 = vld [vmem:[%s20984_s25 + $0x46e] sm:$0xff]  ;;  %v10859_v18 = vld [vmem:[%s20984_s25 + $0x366] sm:$0xff] }
 0x497   : > { %19775 = vmatprep.mubr.msk.f32.mxu1 %vm241_vm1, %v14550_v29  ;;  %v14582_v29 = vld [vmem:[%s20984_s25 + $0x476] sm:$0xff] }
 0x499   : > { %19299 = vmatmul.mubr.msk.f32.vlgmr.msra.gmra.mrb[34].mxu0 %vm241_vm1, %v10828_v12  ;;  %v10860_v12 = vld [vmem:[%s20984_s25 + $0x36e] sm:$0xff] }
 0x49a   : > { %19776 = vmatmul.mubr.msk.f32.vlgmr.msra.gmra.mrb[34].mxu1 %vm241_vm1, %v14551_v1  ;;  %19301 = vmatprep.mubr.msk.f32.mxu0 %vm241_vm1, %v10829_v27  ;;  %v14583_v1 = vld [vmem:[%s20984_s25 + $0x47e] sm:$0xff] }
 0x49b   : > { %19778 = vmatprep.mubr.msk.f32.mxu1 %vm241_vm1, %v14552_v60 }
 0x49d   : > { %19302 = vmatmul.mubr.msk.f32.gmra.mrb[36].mxu0 %vm241_vm1, %v10830_v48 }
 0x49e   : > { %19779 = vmatmul.mubr.msk.f32.gmra.mrb[36].mxu1 %vm241_vm1, %v14553_v34  ;;  %19304 = vmatprep.mubr.msk.f32.mxu0 %vm241_vm1, %v10831_v17 }
 0x49f   : > { %19781 = vmatprep.mubr.msk.f32.mxu1 %vm241_vm1, %v14554_v24 }
 0x4a1   : > { %19305 = vmatmul.mubr.msk.f32.gmra.mrb[38].mxu0 %vm241_vm1, %v10832_v47 }
 0x4a2   : > { %19782 = vmatmul.mubr.msk.f32.gmra.mrb[38].mxu1 %vm241_vm1, %v14555_v36  ;;  %19307 = vmatprep.mubr.msk.f32.mxu0 %vm241_vm1, %v10833_v57 }
 0x4a3   : > { %19784 = vmatprep.mubr.msk.f32.mxu1 %vm241_vm1, %v14556_v53 }
 0x4a5   : > { %19308 = vmatmul.mubr.msk.f32.gmra.mrb[40].mxu0 %vm241_vm1, %v10834_v2 }
 0x4a6   : > { %19785 = vmatmul.mubr.msk.f32.gmra.mrb[40].mxu1 %vm241_vm1, %v14557_v10  ;;  %19310 = vmatprep.mubr.msk.f32.mxu0 %vm241_vm1, %v10835_v42 }
 0x4a7   : > { %19787 = vmatprep.mubr.msk.f32.mxu1 %vm241_vm1, %v14558_v26 }
 0x4a9   : > { %19311 = vmatmul.mubr.msk.f32.gmra.mrb[42].mxu0 %vm241_vm1, %v10836_v25 }
 0x4aa   : > { %19788 = vmatmul.mubr.msk.f32.gmra.mrb[42].mxu1 %vm241_vm1, %v14559_v7  ;;  %19313 = vmatprep.mubr.msk.f32.mxu0 %vm241_vm1, %v10837_v23 }
 0x4ab   : > { %19790 = vmatprep.mubr.msk.f32.mxu1 %vm241_vm1, %v14560_v37 }
 0x4ad   : > { %19314 = vmatmul.mubr.msk.f32.gmra.mrb[44].mxu0 %vm241_vm1, %v10838_v62 }
 0x4ae   : > { %19791 = vmatmul.mubr.msk.f32.gmra.mrb[44].mxu1 %vm241_vm1, %v14561_v11  ;;  %19316 = vmatprep.mubr.msk.f32.mxu0 %vm241_vm1, %v10839_v6 }
 0x4af   : > { %19793 = vmatprep.mubr.msk.f32.mxu1 %vm241_vm1, %v14562_v19 }
 0x4b1   : > { %19317 = vmatmul.mubr.msk.f32.gmra.mrb[46].mxu0 %vm241_vm1, %v10840_v30 }
 0x4b2   : > { %19794 = vmatmul.mubr.msk.f32.gmra.mrb[46].mxu1 %vm241_vm1, %v14563_v20  ;;  %19319 = vmatprep.mubr.msk.f32.mxu0 %vm241_vm1, %v10841_v52 }
 0x4b3   : > { %19796 = vmatprep.mubr.msk.f32.mxu1 %vm241_vm1, %v14564_v43 }
 0x4b5   : > { %19320 = vmatmul.mubr.msk.f32.gmra.mrb[48].mxu0 %vm241_vm1, %v10842_v31 }
 0x4b6   : > { %19797 = vmatmul.mubr.msk.f32.gmra.mrb[48].mxu1 %vm241_vm1, %v14565_v22  ;;  %19322 = vmatprep.mubr.msk.f32.mxu0 %vm241_vm1, %v10843_v39 }
 0x4b7   : > { %19799 = vmatprep.mubr.msk.f32.mxu1 %vm241_vm1, %v14566_v14 }
 0x4b9   : > { %19323 = vmatmul.mubr.msk.f32.gmra.mrb[50].mxu0 %vm241_vm1, %v10844_v41 }
 0x4ba   : > { %19800 = vmatmul.mubr.msk.f32.gmra.mrb[50].mxu1 %vm241_vm1, %v14567_v63  ;;  %19325 = vmatprep.mubr.msk.f32.mxu0 %vm241_vm1, %v10845_v3 }
 0x4bb   : > { %19802 = vmatprep.mubr.msk.f32.mxu1 %vm241_vm1, %v14568_v33 }
 0x4bd   : > { %19326 = vmatmul.mubr.msk.f32.gmra.mrb[52].mxu0 %vm241_vm1, %v10846_v5 }
 0x4be   : > { %19803 = vmatmul.mubr.msk.f32.gmra.mrb[52].mxu1 %vm241_vm1, %v14569_v59  ;;  %19328 = vmatprep.mubr.msk.f32.mxu0 %vm241_vm1, %v10847_v32 }
 0x4bf   : > { %19805 = vmatprep.mubr.msk.f32.mxu1 %vm241_vm1, %v14570_v28 }
 0x4c1   : > { %19329 = vmatmul.mubr.msk.f32.gmra.mrb[54].mxu0 %vm241_vm1, %v10848_v56 }
 0x4c2   : > { %19806 = vmatmul.mubr.msk.f32.gmra.mrb[54].mxu1 %vm241_vm1, %v14571_v16  ;;  %19331 = vmatprep.mubr.msk.f32.mxu0 %vm241_vm1, %v10849_v9 }
 0x4c3   : > { %19808 = vmatprep.mubr.msk.f32.mxu1 %vm241_vm1, %v14572_v15 }
 0x4c5   : > { %19332 = vmatmul.mubr.msk.f32.gmra.mrb[56].mxu0 %vm241_vm1, %v10850_v38 }
 0x4c6   : > { %19809 = vmatmul.mubr.msk.f32.gmra.mrb[56].mxu1 %vm241_vm1, %v14573_v35  ;;  %19334 = vmatprep.mubr.msk.f32.mxu0 %vm241_vm1, %v10851_v45 }
 0x4c7   : > { %19811 = vmatprep.mubr.msk.f32.mxu1 %vm241_vm1, %v14574_v44 }
 0x4c9   : > { %19335 = vmatmul.mubr.msk.f32.gmra.mrb[58].mxu0 %vm241_vm1, %v10852_v8 }
 0x4ca   : > { %19812 = vmatmul.mubr.msk.f32.gmra.mrb[58].mxu1 %vm241_vm1, %v14575_v50  ;;  %19337 = vmatprep.mubr.msk.f32.mxu0 %vm241_vm1, %v10853_v0 }
 0x4cb   : > { %19814 = vmatprep.mubr.msk.f32.mxu1 %vm241_vm1, %v14576_v58 }
 0x4cd   : > { %19338 = vmatmul.mubr.msk.f32.gmra.mrb[60].mxu0 %vm241_vm1, %v10854_v61 }
 0x4ce   : > { %19815 = vmatmul.mubr.msk.f32.gmra.mrb[60].mxu1 %vm241_vm1, %v14577_v51  ;;  %19340 = vmatprep.mubr.msk.f32.mxu0 %vm241_vm1, %v10855_v40 }
 0x4cf   : > { %19817 = vmatprep.mubr.msk.f32.mxu1 %vm241_vm1, %v14578_v46 }
 0x4d1   : > { %19341 = vmatmul.mubr.msk.f32.gmra.mrb[62].mxu0 %vm241_vm1, %v10856_v49 }
 0x4d2   : > { %19818 = vmatmul.mubr.msk.f32.gmra.mrb[62].mxu1 %vm241_vm1, %v14579_v21  ;;  %19343 = vmatprep.mubr.msk.f32.mxu0 %vm241_vm1, %v10857_v54 }
 0x4d3   : > { %19820 = vmatprep.mubr.msk.f32.mxu1 %vm241_vm1, %v14580_v55 }
 0x4d5   : > { %19344 = vmatmul.mubr.msk.f32.gmra.mrb[64].mxu0 %vm241_vm1, %v10858_v4 }
 0x4d6   : > { %19821 = vmatmul.mubr.msk.f32.gmra.mrb[64].mxu1 %vm241_vm1, %v14581_v13  ;;  %19346 = vmatprep.mubr.msk.f32.mxu0 %vm241_vm1, %v10859_v18 }
 0x4d7   : > { %19823 = vmatprep.mubr.msk.f32.mxu1 %vm241_vm1, %v14582_v29 }
 0x4d9   : > { %19347 = vmatmul.mubr.msk.f32.gmra.mrb[66].mxu0 %vm241_vm1, %v10860_v12 }
 0x4da   : > { %19824 = vmatmul.mubr.msk.f32.gmra.mrb[66].mxu1 %vm241_vm1, %v14583_v1 }
 0x56c   : > { %v19300_v27 = vpop.f32.mrb[34].mxu0 }
 0x56d   : > { %v19777_v60 = vpop.f32.mrb[34].mxu1  ;;  %v11033_v48 = vpop.f32.mrb[35].mxu0 }
 0x56e   : > { %v14756_v34 = vpop.f32.mrb[35].mxu1 }
 0x570   : > { %v19303_v17 = vpop.f32.mrb[36].mxu0 }
 0x571   : > { %v19780_v24 = vpop.f32.mrb[36].mxu1  ;;  %v11043_v47 = vpop.f32.mrb[37].mxu0 }
 0x572   : > { %v14766_v36 = vpop.f32.mrb[37].mxu1 }
 0x574   : > { %v19306_v57 = vpop.f32.mrb[38].mxu0 }
 0x575   : > { %v11242_v53 = vrot.slane %v19306_v57, 2  ;;  %v19783_v2 = vpop.f32.mrb[38].mxu1  ;;  %v11053_v10 = vpop.f32.mrb[39].mxu0 }
 0x576   : > { %v14965_v42 = vrot.slane %v19783_v2, 2  ;;  %v11241_v26 = vrot.slane %v11053_v10, 2  ;;  %v14776_v25 = vpop.f32.mrb[39].mxu1 }
 0x577   : > { %v14964_v7 = vrot.slane %v14776_v25, 2 }
 0x578   : > { %v11243_v23 = vsel %vm3791_vm2, %v11241_v26, %v11242_v53  ;;  %v19309_v37 = vpop.f32.mrb[40].mxu0 }
 0x579   : > { %v11254_v62 = vmax.f32 %v11033_v48, %v11243_v23  ;;  %v14966_v11 = vsel %vm3791_vm2, %v14964_v7, %v14965_v42  ;;  %v11246_v6 = vrot.slane %v19309_v37, 2  ;;  %v19786_v19 = vpop.f32.mrb[40].mxu1  ;;  %v11063_v30 = vpop.f32.mrb[41].mxu0  ;;  %v24789_v48 = vld [vmem:[%s24947_s2] ss:$0 sm:$0xff] }
 0x57a   : > { %v14977_v20 = vmax.f32 %v14756_v34, %v14966_v11  ;;  %v14969_v52 = vrot.slane %v19786_v19, 2  ;;  %v11244_v43 = vrot.slane %v11063_v30, 2  ;;  %v14786_v31 = vpop.f32.mrb[41].mxu1 }
 0x57b   : > { %11258 = vst.msk [vmem:[#allocation2 + $0x100] sm:$0xff] %vm3809_vm3, %v11254_v62  ;;  %v14967_v22 = vrot.slane %v14786_v31, 2 }
 0x57c   : > { %14981 = vst.msk [vmem:[#allocation2 + $0x180] sm:$0xff] %vm3809_vm3, %v14977_v20  ;;  %v11245_v39 = vsel %vm3791_vm2, %v11242_v53, %v11244_v43  ;;  %v11247_v14 = vsel %vm3791_vm2, %v11244_v43, %v11246_v6  ;;  %v24765_v41 = vpop.f32.mrb[42].mxu0 }
 0x57d   : > { %v11255_v63 = vmax.f32 %v19300_v27, %v11245_v39  ;;  %v11256_v3 = vmax.f32 %v11043_v47, %v11247_v14  ;;  %v14968_v33 = vsel %vm3791_vm2, %v14965_v42, %v14967_v22  ;;  %v14970_v5 = vsel %vm3791_vm2, %v14967_v22, %v14969_v52  ;;  %v24769_v59 = vpop.f32.mrb[42].mxu1  ;;  %v11073_v32 = vpop.f32.mrb[43].mxu0 }
 0x57e   : > { %v14978_v28 = vmax.f32 %v19777_v60, %v14968_v33  ;;  %v14979_v56 = vmax.f32 %v14766_v36, %v14970_v5  ;;  %v11248_v16 = vrot.slane %v11073_v32, 2  ;;  %v14796_v9 = vpop.f32.mrb[43].mxu1 }
 0x57f   : > { %11259 = vst.msk [vmem:[#allocation2 + $0x108] sm:$0xff] %vm3809_vm3, %v11255_v63  ;;  %11260 = vst.msk [vmem:[#allocation2 + $0x110] sm:$0xff] %vm3809_vm3, %v11256_v3  ;;  %v14971_v15 = vrot.slane %v14796_v9, 2 }
 0x580   : > { %14982 = vst.msk [vmem:[#allocation2 + $0x188] sm:$0xff] %vm3809_vm3, %v14978_v28  ;;  %14983 = vst.msk [vmem:[#allocation2 + $0x190] sm:$0xff] %vm3809_vm3, %v14979_v56  ;;  %v11249_v38 = vsel %vm3791_vm2, %v11246_v6, %v11248_v16  ;;  %v24776_v35 = vpop.f32.mrb[44].mxu0 }
 0x581   : > { %v11257_v45 = vmax.f32 %v19303_v17, %v11249_v38  ;;  %v14972_v44 = vsel %vm3791_vm2, %v14969_v52, %v14971_v15  ;;  %v24779_v8 = vpop.f32.mrb[44].mxu1  ;;  %v11083_v50 = vpop.f32.mrb[45].mxu0 }
 0x582   : > { %v14980_v0 = vmax.f32 %v19780_v24, %v14972_v44  ;;  %v24781_v58 = vpop.f32.mrb[45].mxu1 }
 0x583   : > { %11261 = vst.msk [vmem:[#allocation2 + $0x118] sm:$0xff] %vm3809_vm3, %v11257_v45 }
 0x584   : > { %14984 = vst.msk [vmem:[#allocation2 + $0x198] sm:$0xff] %vm3809_vm3, %v14980_v0  ;;  %v19318_v61 = vpop.f32.mrb[46].mxu0 }
 0x585   : > { %v11268_v51 = vrot.slane %v19318_v61, 2  ;;  %v19795_v40 = vpop.f32.mrb[46].mxu1  ;;  %v11093_v46 = vpop.f32.mrb[47].mxu0 }
 0x586   : > { %v15101_v49 = vld [vmem:[#allocation2 + $0x100] ss:$2 sm:$0xff]  ;;  %v15165_v21 = vld [vmem:[#allocation2 + $0x101] ss:$2 sm:$0xff]  ;;  %v14991_v54 = vrot.slane %v19795_v40, 2  ;;  %v11267_v55 = vrot.slane %v11093_v46, 2 }
 0x587   : > { %v15212_v4 = vmax.f32 %v15101_v49, %v15165_v21  ;;  %v15117_v13 = vld [vmem:[#allocation2 + $0x180] ss:$2 sm:$0xff]  ;;  %v15181_v18 = vld [vmem:[#allocation2 + $0x181] ss:$2 sm:$0xff]  ;;  %v14816_v29 = vpop.f32.mrb[47].mxu1 }
 0x588   : > { %v15220_v12 = vmax.f32 %v15117_v13, %v15181_v18  ;;  %v11269_v1 = vsel %vm3791_vm2, %v11267_v55, %v11268_v51  ;;  %v14990_v27 = vrot.slane %v14816_v29, 2  ;;  %v19321_v60 = vpop.f32.mrb[48].mxu0 }
 0x589   : > { %v15251_v34 = vadd.f32 %v24789_v48, %v15212_v4  ;;  %v11281_v17 = vmax.f32 %v11073_v32, %v11269_v1  ;;  %v11272_v24 = vrot.slane %v19321_v60, 2  ;;  %v19798_v47 = vpop.f32.mrb[48].mxu1  ;;  %v11103_v36 = vpop.f32.mrb[49].mxu0 }
 0x58a   : > { %v15259_v57 = vadd.f32 %v24789_v48, %v15220_v12  ;;  %v15103_v53 = vld [vmem:[#allocation2 + $0x110] ss:$2 sm:$0xff]  ;;  %v15167_v2 = vld [vmem:[#allocation2 + $0x111] ss:$2 sm:$0xff]  ;;  %v14992_v10 = vsel %vm3791_vm2, %v14990_v27, %v14991_v54  ;;  %v14995_v42 = vrot.slane %v19798_v47, 2  ;;  %v11270_v26 = vrot.slane %v11103_v36, 2 }
 0x58b   : > { %v15283_v25 = vmax.f32 %v15251_v34, 0.0  ;;  %v15213_v7 = vmax.f32 %v15103_v53, %v15167_v2  ;;  %v15119_v23 = vld [vmem:[#allocation2 + $0x190] ss:$2 sm:$0xff]  ;;  %v15183_v37 = vld [vmem:[#allocation2 + $0x191] ss:$2 sm:$0xff]  ;;  %v15004_v62 = vmax.f32 %v14796_v9, %v14992_v10  ;;  %v14826_v11 = vpop.f32.mrb[49].mxu1 }
 0x58c   : > { %11286 = vst.msk [vmem:[#allocation2 + $0x11c] sm:$0xf0] %vm3838_vm4, %v11281_v17  ;;  %v15291_v6 = vmax.f32 %v15259_v57, 0.0  ;;  %v15221_v19 = vmax.f32 %v15119_v23, %v15183_v37  ;;  %v11271_v30 = vsel %vm3791_vm2, %v11268_v51, %v11270_v26  ;;  %v11273_v20 = vsel %vm3791_vm2, %v11270_v26, %v11272_v24  ;;  %v24797_v52 = vpop.f32.mrb[50].mxu0 }
 0x58d   : > { %15315 = vst.msk [vmem:[%s23348_s4 + $0x80] sm:$0xff] %vm3809_vm3, %v15283_v25  ;;  %v15252_v43 = vadd.f32 %v24789_v48, %v15213_v7  ;;  %v11282_v31 = vmax.f32 %v24765_v41, %v11271_v30  ;;  %v11283_v22 = vmax.f32 %v11083_v50, %v11273_v20  ;;  %v14993_v39 = vrot.slane %v14826_v11, 2  ;;  %v24804_v14 = vpop.f32.mrb[50].mxu1  ;;  %v11113_v63 = vpop.f32.mrb[51].mxu0 }
 0x58e   : > { %15009 = vst.msk [vmem:[#allocation2 + $0x19c] sm:$0xf0] %vm3838_vm4, %v15004_v62  ;;  %v15260_v3 = vadd.f32 %v24789_v48, %v15221_v19  ;;  %v11274_v33 = vrot.slane %v11113_v63, 2  ;;  %v14836_v5 = vpop.f32.mrb[51].mxu1 }
 0x58f   : > { %15323 = vst.msk [vmem:[%s23348_s4 + $0xc0] sm:$0xff] %vm3809_vm3, %v15291_v6  ;;  %v15284_v32 = vmax.f32 %v15252_v43, 0.0  ;;  %11287 = vst.msk [vmem:[#allocation2 + $0x124] sm:$0xff] %vm3809_vm3, %v11282_v31  ;;  %v14994_v41 = vsel %vm3791_vm2, %v14991_v54, %v14993_v39  ;;  %v14996_v28 = vsel %vm3791_vm2, %v14993_v39, %v14995_v42  ;;  %v14997_v56 = vrot.slane %v14836_v5, 2 }
 0x590   : > { %11288 = vst.msk [vmem:[#allocation2 + $0x12c] sm:$0xff] %vm3809_vm3, %v11283_v22  ;;  %v15292_v16 = vmax.f32 %v15260_v3, 0.0  ;;  %v15005_v9 = vmax.f32 %v24769_v59, %v14994_v41  ;;  %v15006_v15 = vmax.f32 %v24781_v58, %v14996_v28  ;;  %v11275_v38 = vsel %vm3791_vm2, %v11272_v24, %v11274_v33  ;;  %v24816_v45 = vpop.f32.mrb[52].mxu0 }
 0x591   : > { %15316 = vst.msk [vmem:[%s23348_s4 + $0x88] sm:$0xff] %vm3809_vm3, %v15284_v32  ;;  %v11284_v44 = vmax.f32 %v24776_v35, %v11275_v38  ;;  %v11285_v50 = vmax.f32 %v11093_v46, %v11274_v33  ;;  %v14998_v0 = vsel %vm3791_vm2, %v14995_v42, %v14997_v56  ;;  %v15008_v61 = vmax.f32 %v14816_v29, %v14997_v56  ;;  %v24822_v51 = vpop.f32.mrb[52].mxu1  ;;  %v11123_v40 = vpop.f32.mrb[53].mxu0 }
 0x592   : > { %15324 = vst.msk [vmem:[%s23348_s4 + $0xc8] sm:$0xff] %vm3809_vm3, %v15292_v16  ;;  %15010 = vst.msk [vmem:[#allocation2 + $0x1a4] sm:$0xff] %vm3809_vm3, %v15005_v9  ;;  %v15007_v59 = vmax.f32 %v24779_v8, %v14998_v0  ;;  %v24829_v58 = vpop.f32.mrb[53].mxu1 }
 0x593   : > { %15011 = vst.msk [vmem:[#allocation2 + $0x1ac] sm:$0xff] %vm3809_vm3, %v15006_v15  ;;  %11289 = vst.msk [vmem:[#allocation2 + $0x134] sm:$0xff] %vm3809_vm3, %v11284_v44 }
 0x594   : > { %11290 = vst.msk [vmem:[#allocation2 + $0x13c] sm:$0xf] %vm3843_vm5, %v11285_v50  ;;  %15013 = vst.msk [vmem:[#allocation2 + $0x1bc] sm:$0xf] %vm3843_vm5, %v15008_v61  ;;  %v19330_v35 = vpop.f32.mrb[54].mxu0 }
 0x595   : > { %15012 = vst.msk [vmem:[#allocation2 + $0x1b4] sm:$0xff] %vm3809_vm3, %v15007_v59  ;;  %v19807_v46 = vpop.f32.mrb[54].mxu1  ;;  %v24835_v49 = vpop.f32.mrb[55].mxu0  ;;  %v11296_v8 = vrot.slane %v19330_v35, 2 }
 0x596   : > { %v24837_v55 = vpop.f32.mrb[55].mxu1  ;;  %v15019_v25 = vrot.slane %v19807_v46, 2 }
 0x597   : > { %v15105_v21 = vld [vmem:[#allocation2 + $0x120] ss:$2 sm:$0xff]  ;;  %v15169_v54 = vld [vmem:[#allocation2 + $0x121] ss:$2 sm:$0xff] }
 0x598   : > { %v15214_v4 = vmax.f32 %v15105_v21, %v15169_v54  ;;  %v19333_v13 = vpop.f32.mrb[56].mxu0 }
 0x599   : > { %v11299_v1 = vrot.slane %v19333_v13, 2  ;;  %v19810_v27 = vpop.f32.mrb[56].mxu1  ;;  %v11143_v47 = vpop.f32.mrb[57].mxu0 }
 0x59a   : > { %v15253_v18 = vadd.f32 %v24789_v48, %v15214_v4  ;;  %v15121_v29 = vld [vmem:[#allocation2 + $0x1a0] ss:$2 sm:$0xff]  ;;  %v15185_v12 = vld [vmem:[#allocation2 + $0x1a1] ss:$2 sm:$0xff]  ;;  %v15022_v24 = vrot.slane %v19810_v27, 2  ;;  %v11297_v10 = vrot.slane %v11143_v47, 2 }
 0x59b   : > { %v15222_v60 = vmax.f32 %v15121_v29, %v15185_v12  ;;  %v15107_v34 = vld [vmem:[#allocation2 + $0x130] ss:$2 sm:$0xff]  ;;  %v15171_v17 = vld [vmem:[#allocation2 + $0x131] ss:$2 sm:$0xff]  ;;  %v14866_v7 = vpop.f32.mrb[57].mxu1 }
 0x59c   : > { %v15285_v36 = vmax.f32 %v15253_v18, 0.0  ;;  %v15215_v57 = vmax.f32 %v15107_v34, %v15171_v17  ;;  %v15123_v53 = vld [vmem:[#allocation2 + $0x1b0] ss:$2 sm:$0xff]  ;;  %v15187_v2 = vld [vmem:[#allocation2 + $0x1b1] ss:$2 sm:$0xff]  ;;  %v24841_v23 = vpop.f32.mrb[58].mxu0  ;;  %v11298_v62 = vsel %vm3791_vm2, %v11296_v8, %v11297_v10  ;;  %v11300_v11 = vsel %vm3791_vm2, %v11297_v10, %v11299_v1 }
 0x59d   : > { %v15261_v42 = vadd.f32 %v24789_v48, %v15222_v60  ;;  %v15223_v26 = vmax.f32 %v15123_v53, %v15187_v2  ;;  %v15020_v6 = vrot.slane %v14866_v7, 2  ;;  %v24848_v19 = vpop.f32.mrb[58].mxu1  ;;  %v11153_v30 = vpop.f32.mrb[59].mxu0  ;;  %v11309_v31 = vmax.f32 %v24797_v52, %v11298_v62 }
 0x59e   : > { %15317 = vst.msk [vmem:[%s23348_s4 + $0x90] sm:$0xff] %vm3809_vm3, %v15285_v36  ;;  %v15254_v37 = vadd.f32 %v24789_v48, %v15215_v57  ;;  %v11310_v22 = vmax.f32 %v11123_v40, %v11300_v11  ;;  %v14876_v39 = vpop.f32.mrb[59].mxu1  ;;  %v11303_v5 = vrot.slane %v24841_v23, 2  ;;  %v15026_v28 = vrot.slane %v24848_v19, 2 }
 0x59f   : > { %v15293_v20 = vmax.f32 %v15261_v42, 0.0  ;;  %v15262_v43 = vadd.f32 %v24789_v48, %v15223_v26  ;;  %v15021_v3 = vsel %vm3791_vm2, %v15019_v25, %v15020_v6  ;;  %v15023_v33 = vsel %vm3791_vm2, %v15020_v6, %v15022_v24  ;;  %11313 = vst.msk [vmem:[#allocation2 + $0x140] sm:$0xff] %vm3809_vm3, %v11309_v31 }
 0x5a0   : > { %v15286_v63 = vmax.f32 %v15254_v37, 0.0  ;;  %11314 = vst.msk [vmem:[#allocation2 + $0x148] sm:$0xff] %vm3809_vm3, %v11310_v22  ;;  %v15032_v41 = vmax.f32 %v24804_v14, %v15021_v3  ;;  %v15033_v52 = vmax.f32 %v24829_v58, %v15023_v33  ;;  %v24862_v56 = vpop.f32.mrb[60].mxu0  ;;  %v11301_v16 = vrot.slane %v11153_v30, 2 }
 0x5a1   : > { %15325 = vst.msk [vmem:[%s23348_s4 + $0xd0] sm:$0xff] %vm3809_vm3, %v15293_v20  ;;  %v15294_v32 = vmax.f32 %v15262_v43, 0.0  ;;  %v15024_v9 = vrot.slane %v14876_v39, 2  ;;  %v24866_v15 = vpop.f32.mrb[60].mxu1  ;;  %v24868_v38 = vpop.f32.mrb[61].mxu0 }
 0x5a2   : > { %15318 = vst.msk [vmem:[%s23348_s4 + $0x98] sm:$0xff] %vm3809_vm3, %v15286_v63  ;;  %15036 = vst.msk [vmem:[#allocation2 + $0x1c0] sm:$0xff] %vm3809_vm3, %v15032_v41  ;;  %v24874_v14 = vpop.f32.mrb[61].mxu1  ;;  %v11302_v44 = vsel %vm3791_vm2, %v11299_v1, %v11301_v16  ;;  %v11304_v50 = vsel %vm3791_vm2, %v11301_v16, %v11303_v5 }
 0x5a3   : > { %15326 = vst.msk [vmem:[%s23348_s4 + $0xd8] sm:$0xff] %vm3809_vm3, %v15294_v32  ;;  %15037 = vst.msk [vmem:[#allocation2 + $0x1c8] sm:$0xff] %vm3809_vm3, %v15033_v52  ;;  %v15025_v0 = vsel %vm3791_vm2, %v15022_v24, %v15024_v9  ;;  %v15027_v61 = vsel %vm3791_vm2, %v15024_v9, %v15026_v28  ;;  %v11311_v40 = vmax.f32 %v24816_v45, %v11302_v44 }
 0x5a4   : > { %v11312_v59 = vmax.f32 %v24835_v49, %v11304_v50  ;;  %v15034_v58 = vmax.f32 %v24822_v51, %v15025_v0  ;;  %v15035_v35 = vmax.f32 %v24837_v55, %v15027_v61  ;;  %v19342_v46 = vpop.f32.mrb[62].mxu0 }
 0x5a5   : > { %v19819_v21 = vpop.f32.mrb[62].mxu1  ;;  %v24884_v54 = vpop.f32.mrb[63].mxu0  ;;  %11315 = vst.msk [vmem:[#allocation2 + $0x150] sm:$0xff] %vm3809_vm3, %v11311_v40  ;;  %v11322_v17 = vrot.slane %v19342_v46, 2 }
 0x5a6   : > { %11316 = vst.msk [vmem:[#allocation2 + $0x158] sm:$0xff] %vm3809_vm3, %v11312_v59  ;;  %15038 = vst.msk [vmem:[#allocation2 + $0x1d0] sm:$0xff] %vm3809_vm3, %v15034_v58  ;;  %v24890_v4 = vpop.f32.mrb[63].mxu1  ;;  %v15045_v24 = vrot.slane %v19819_v21, 2 }
 0x5a7   : > { %15039 = vst.msk [vmem:[#allocation2 + $0x1d8] sm:$0xff] %vm3809_vm3, %v15035_v35  ;;  %v15109_v45 = vld [vmem:[#allocation2 + $0x140] ss:$2 sm:$0xff]  ;;  %v15173_v49 = vld [vmem:[#allocation2 + $0x141] ss:$2 sm:$0xff] }
 0x5a8   : > { %v15216_v8 = vmax.f32 %v15109_v45, %v15173_v49  ;;  %v19345_v51 = vpop.f32.mrb[64].mxu0 }
 0x5a9   : > { %v11325_v18 = vrot.slane %v19345_v51, 2  ;;  %v19822_v29 = vpop.f32.mrb[64].mxu1  ;;  %v11183_v60 = vpop.f32.mrb[65].mxu0 }
 0x5aa   : > { %v15125_v13 = vld [vmem:[#allocation2 + $0x1c0] ss:$2 sm:$0xff]  ;;  %v15189_v55 = vld [vmem:[#allocation2 + $0x1c1] ss:$2 sm:$0xff]  ;;  %v15255_v12 = vadd.f32 %v24789_v48, %v15216_v8  ;;  %v15048_v27 = vrot.slane %v19822_v29, 2  ;;  %v14906_v34 = vpop.f32.mrb[65].mxu1 }
 0x5ab   : > { %v15224_v1 = vmax.f32 %v15125_v13, %v15189_v55  ;;  %v11323_v47 = vrot.slane %v11183_v60, 2  ;;  %v15046_v36 = vrot.slane %v14906_v34, 2 }
 0x5ac   : > { %v15287_v57 = vmax.f32 %v15255_v12, 0.0  ;;  %v19348_v2 = vpop.f32.mrb[66].mxu0 }
 0x5ad   : > { %v15263_v53 = vadd.f32 %v24789_v48, %v15224_v1  ;;  %v15111_v10 = vld [vmem:[#allocation2 + $0x150] ss:$2 sm:$0xff]  ;;  %v15175_v42 = vld [vmem:[#allocation2 + $0x151] ss:$2 sm:$0xff]  ;;  %v11324_v25 = vsel %vm3791_vm2, %v11322_v17, %v11323_v47  ;;  %v11326_v7 = vsel %vm3791_vm2, %v11323_v47, %v11325_v18  ;;  %v15047_v37 = vsel %vm3791_vm2, %v15045_v24, %v15046_v36  ;;  %v19825_v31 = vpop.f32.mrb[66].mxu1  ;;  %v11193_v22 = vpop.f32.mrb[67].mxu0 }
 0x5ae   : > { %v15127_v26 = vld [vmem:[#allocation2 + $0x1d0] ss:$2 sm:$0xff]  ;;  %v15049_v62 = vsel %vm3791_vm2, %v15046_v36, %v15048_v27  ;;  %15319 = vst.msk [vmem:[%s23348_s4 + $0xa0] sm:$0xff] %vm3809_vm3, %v15287_v57  ;;  %v15217_v6 = vmax.f32 %v15111_v10, %v15175_v42  ;;  %v15191_v30 = vld [vmem:[#allocation2 + $0x1d1] ss:$2 sm:$0xff]  ;;  %v11336_v20 = vmax.f32 %v24841_v23, %v11324_v25  ;;  %v11337_v43 = vmax.f32 %v24868_v38, %v11326_v7  ;;  %v14916_v5 = vpop.f32.mrb[67].mxu1 }
 0x5af   : > { %v15295_v11 = vmax.f32 %v15263_v53, 0.0  ;;  %v15225_v39 = vmax.f32 %v15127_v26, %v15191_v30  ;;  %v15059_v63 = vmax.f32 %v24848_v19, %v15047_v37  ;;  %v15060_v3 = vmax.f32 %v24874_v14, %v15049_v62 }
 0x5b0   : > { %v11329_v33 = vrot.slane %v19348_v2, 2  ;;  %v15256_v32 = vadd.f32 %v24789_v48, %v15217_v6  ;;  %11341 = vst.msk [vmem:[#allocation2 + $0x15c] sm:$0xf0] %vm3838_vm4, %v11336_v20  ;;  %v15052_v23 = vrot.slane %v19825_v31, 2  ;;  %v11327_v41 = vrot.slane %v11193_v22, 2 }
 0x5b1   : > { %15327 = vst.msk [vmem:[%s23348_s4 + $0xe0] sm:$0xff] %vm3809_vm3, %v15295_v11  ;;  %11342 = vst.msk [vmem:[#allocation2 + $0x164] sm:$0xff] %vm3809_vm3, %v11337_v43  ;;  %v15050_v52 = vrot.slane %v14916_v5, 2  ;;  %v15264_v28 = vadd.f32 %v24789_v48, %v15225_v39 }
 0x5b2   : > { %15064 = vst.msk [vmem:[#allocation2 + $0x1dc] sm:$0xf0] %vm3838_vm4, %v15059_v63  ;;  %v11340_v19 = vmax.f32 %v19342_v46, %v11329_v33  ;;  %v15288_v16 = vmax.f32 %v15256_v32, 0.0  ;;  %v15063_v9 = vmax.f32 %v19819_v21, %v15052_v23  ;;  %v11328_v38 = vsel %vm3791_vm2, %v11325_v18, %v11327_v41 }
 0x5b3   : > { %15065 = vst.msk [vmem:[#allocation2 + $0x1e4] sm:$0xff] %vm3809_vm3, %v15060_v3  ;;  %v11330_v14 = vsel %vm3791_vm2, %v11327_v41, %v11329_v33  ;;  %v15296_v44 = vmax.f32 %v15264_v28, 0.0  ;;  %v11338_v50 = vmax.f32 %v24862_v56, %v11328_v38  ;;  %v15051_v61 = vsel %vm3791_vm2, %v15048_v27, %v15050_v52 }
 0x5b4   : > { %11345 = vst.msk [vmem:[#allocation2 + $0x17c] sm:$0xf] %vm3843_vm5, %v11340_v19  ;;  %v11339_v0 = vmax.f32 %v24884_v54, %v11330_v14  ;;  %15068 = vst.msk [vmem:[#allocation2 + $0x1fc] sm:$0xf] %vm3843_vm5, %v15063_v9  ;;  %v15053_v40 = vsel %vm3791_vm2, %v15050_v52, %v15052_v23  ;;  %v15061_v59 = vmax.f32 %v24866_v15, %v15051_v61 }
 0x5b5   : > { %15320 = vst.msk [vmem:[%s23348_s4 + $0xa8] sm:$0xff] %vm3809_vm3, %v15288_v16  ;;  %15328 = vst.msk [vmem:[%s23348_s4 + $0xe8] sm:$0xff] %vm3809_vm3, %v15296_v44  ;;  %v15062_v56 = vmax.f32 %v24890_v4, %v15053_v40 }
 0x5b6   : > { %11343 = vst.msk [vmem:[#allocation2 + $0x16c] sm:$0xff] %vm3809_vm3, %v11338_v50  ;;  %11344 = vst.msk [vmem:[#allocation2 + $0x174] sm:$0xff] %vm3809_vm3, %v11339_v0 }
 0x5b7   : > { %15066 = vst.msk [vmem:[#allocation2 + $0x1ec] sm:$0xff] %vm3809_vm3, %v15061_v59  ;;  %15067 = vst.msk [vmem:[#allocation2 + $0x1f4] sm:$0xff] %vm3809_vm3, %v15062_v56 }
 0x5bd   : > { %v15113_v58 = vld [vmem:[#allocation2 + $0x160] ss:$2 sm:$0xff]  ;;  %v15115_v35 = vld [vmem:[#allocation2 + $0x170] ss:$2 sm:$0xff]  ;;  %v15177_v46 = vld [vmem:[#allocation2 + $0x161] ss:$2 sm:$0xff] }
 0x5be   : > { %v15179_v21 = vld [vmem:[#allocation2 + $0x171] ss:$2 sm:$0xff]  ;;  %v15218_v54 = vmax.f32 %v15113_v58, %v15177_v46  ;;  %v15129_v45 = vld [vmem:[#allocation2 + $0x1e0] ss:$2 sm:$0xff]  ;;  %v15193_v15 = vld [vmem:[#allocation2 + $0x1e1] ss:$2 sm:$0xff] }
 0x5bf   : > { %v15219_v49 = vmax.f32 %v15115_v35, %v15179_v21  ;;  %v15131_v8 = vld [vmem:[#allocation2 + $0x1f0] ss:$2 sm:$0xff]  ;;  %v15195_v51 = vld [vmem:[#allocation2 + $0x1f1] ss:$2 sm:$0xff]  ;;  %v15226_v13 = vmax.f32 %v15129_v45, %v15193_v15 }
 0x5c0   : > { %v15257_v4 = vadd.f32 %v24789_v48, %v15218_v54  ;;  %v15227_v55 = vmax.f32 %v15131_v8, %v15195_v51 }
 0x5c1   : > { %v15258_v18 = vadd.f32 %v24789_v48, %v15219_v49  ;;  %v15265_v29 = vadd.f32 %v24789_v48, %v15226_v13 }
 0x5c2   : > { %v15289_v12 = vmax.f32 %v15257_v4, 0.0  ;;  %v15266_v1 = vadd.f32 %v24789_v48, %v15227_v55 }
 0x5c3   : > { %v15290_v27 = vmax.f32 %v15258_v18, 0.0  ;;  %v15297_v60 = vmax.f32 %v15265_v29, 0.0 }
 0x5c4   : > { %15321 = vst.msk [vmem:[%s23348_s4 + $0xb0] sm:$0xff] %vm3809_vm3, %v15289_v12  ;;  %v15298_v34 = vmax.f32 %v15266_v1, 0.0 }
 0x5c5   : > { %15322 = vst.msk [vmem:[%s23348_s4 + $0xb8] sm:$0xff] %vm3809_vm3, %v15290_v27  ;;  %15329 = vst.msk [vmem:[%s23348_s4 + $0xf0] sm:$0xff] %vm3809_vm3, %v15297_v60 }
 0x5c6   : > { %15330 = vst.msk [vmem:[%s23348_s4 + $0xf8] sm:$0xff] %vm3809_vm3, %v15298_v34 }
 0x5c7 PF: > { %s13_s12 = sadd.s32 1, %s20930_s12  }
 0x5c8   : > { %p10_p4 = scmp.ge.s32.totalorder %s13_s12, 4  }
 0x5ca   :  { %12 = sbr.rel (!%p10_p4) target bundleno = 1 (0x1), region = 125 }

</bundles_post_ra>
